<compile_context>
chip_gen: v6e
topology: v6e:2x2x1
jax: 0.10.0
libtpu: 0.0.40
codegen_flags: <defaults>
</compile_context>

<pallas_src>
import functools

import jax
import jax.numpy as jnp
from jax.experimental import pallas as pl
from jax.experimental.pallas import tpu as pltpu

_TL = 512       # lane tile (output spatial positions) per grid step
_BN_EPS = 1e-5


def _round_up(x, m):
    return (x + m - 1) // m * m


# ----------------------------- Pallas kernels -----------------------------

def _conv_gemm_kernel(w_ref, x_ref, scale_ref, shift_ref, o_ref, *, relu):
    # (Cout, K) @ (K, TL) on the MXU, f32 accumulate; fused bias/BN/ReLU epilogue.
    acc = jnp.dot(w_ref[...], x_ref[...], preferred_element_type=jnp.float32)
    y = acc * scale_ref[...] + shift_ref[...]
    if relu:
        y = jnp.maximum(y, 0.0)
    o_ref[...] = y.astype(o_ref.dtype)


def _conv_gemm_res_kernel(w_ref, x_ref, scale_ref, shift_ref, res_ref, o_ref, *, relu):
    # Same as above plus a fused residual add before the activation.
    acc = jnp.dot(w_ref[...], x_ref[...], preferred_element_type=jnp.float32)
    y = acc * scale_ref[...] + shift_ref[...] + res_ref[...].astype(jnp.float32)
    if relu:
        y = jnp.maximum(y, 0.0)
    o_ref[...] = y.astype(o_ref.dtype)


def pallas_conv_gemm(w2, cols, scale, shift, *, relu, residual=None,
                     out_dtype=jnp.bfloat16):
    """w2: (Cout, K), cols: (K, M), scale/shift: (Cout,) -> (Cout, M).

    M = B*Do*Ho*Wo output positions is the lane axis and is tiled by the grid.
    Ragged final tiles are handled by Pallas out-of-bounds masking, so no
    padded operand copy is materialized and no garbage lane is ever stored.
    """
    Cout, K = w2.shape
    K2, M = cols.shape
    assert K == K2
    tl = min(_TL, _round_up(M, 128))
    grid = (pl.cdiv(M, tl),)

    in_specs = [
        pl.BlockSpec((Cout, K), lambda i: (0, 0)),
        pl.BlockSpec((K, tl), lambda i: (0, i)),
        pl.BlockSpec((Cout, 1), lambda i: (0, 0)),
        pl.BlockSpec((Cout, 1), lambda i: (0, 0)),
    ]
    args = [
        w2.astype(jnp.bfloat16),
        cols.astype(jnp.bfloat16),
        scale.reshape(Cout, 1).astype(jnp.float32),
        shift.reshape(Cout, 1).astype(jnp.float32),
    ]
    if residual is None:
        kernel = functools.partial(_conv_gemm_kernel, relu=relu)
    else:
        kernel = functools.partial(_conv_gemm_res_kernel, relu=relu)
        in_specs.append(pl.BlockSpec((Cout, tl), lambda i: (0, i)))
        args.append(residual.astype(jnp.bfloat16))

    return pl.pallas_call(
        kernel,
        out_shape=jax.ShapeDtypeStruct((Cout, M), out_dtype),
        grid=grid,
        in_specs=in_specs,
        out_specs=pl.BlockSpec((Cout, tl), lambda i: (0, i)),
        compiler_params=pltpu.CompilerParams(dimension_semantics=("parallel",)),
    )(*args)


def _window_max_kernel(x_ref, o_ref):
    o_ref[...] = jnp.max(x_ref[...], axis=0)


def pallas_window_max(taps):
    """taps: (T, C, M) -> (C, M) elementwise max over the T window taps, tiled over M."""
    T, C, M = taps.shape
    tl = min(_TL, _round_up(M, 128))
    return pl.pallas_call(
        _window_max_kernel,
        out_shape=jax.ShapeDtypeStruct((C, M), taps.dtype),
        grid=(pl.cdiv(M, tl),),
        in_specs=[pl.BlockSpec((T, C, tl), lambda i: (0, 0, i))],
        out_specs=pl.BlockSpec((C, tl), lambda i: (0, i)),
        compiler_params=pltpu.CompilerParams(dimension_semantics=("parallel",)),
    )(taps)


def _head_kernel(x_ref, w_ref, b_ref, o_ref):
    # AdaptiveAvgPool3d((1,1,1)) + Flatten + Linear(C, 1), fused.
    pooled = jnp.mean(x_ref[...].astype(jnp.float32), axis=-1)            # (C, B)
    o_ref[...] = jnp.dot(w_ref[...], pooled,
                         preferred_element_type=jnp.float32) + b_ref[...]  # (1, B)


def pallas_head(x5, fc_w, fc_b):
    """x5: (C, B, D, H, W) -> (B, 1) logits (global average pool + linear)."""
    C, B, D, H, W = x5.shape
    S = D * H * W
    x3 = x5.reshape(C, B, S)
    out = pl.pallas_call(
        _head_kernel,
        out_shape=jax.ShapeDtypeStruct((1, B), jnp.float32),
        grid=(1,),
        in_specs=[
            pl.BlockSpec((C, B, S), lambda i: (0, 0, 0)),
            pl.BlockSpec((1, C), lambda i: (0, 0)),
            pl.BlockSpec((1, 1), lambda i: (0, 0)),
        ],
        out_specs=pl.BlockSpec((1, B), lambda i: (0, 0)),
    )(x3, fc_w.astype(jnp.float32), fc_b.reshape(1, 1).astype(jnp.float32))
    return out.T                                                           # (B, 1)


# ------------------------ Glue (transposed im2col, pooling taps) ------------------------

def _im2col_T(x, k, stride, pad):
    """x: (C, B, D, H, W) -> cols (k^3*C, B*Do*Ho*Wo), tap-major / channel-minor rows."""
    C, B, D, H, W = x.shape
    Do = (D + 2 * pad - k) // stride + 1
    Ho = (H + 2 * pad - k) // stride + 1
    Wo = (W + 2 * pad - k) // stride + 1
    if pad > 0:
        x = jnp.pad(x, ((0, 0), (0, 0), (pad, pad), (pad, pad), (pad, pad)))
    taps = []
    for kd in range(k):
        for kh in range(k):
            for kw in range(k):
                taps.append(
                    x[:, :, kd:kd + stride * Do:stride,
                          kh:kh + stride * Ho:stride,
                          kw:kw + stride * Wo:stride].reshape(C, B * Do * Ho * Wo))
    cols = taps[0] if len(taps) == 1 else jnp.concatenate(taps, axis=0)
    return cols, (B, Do, Ho, Wo)


def _fold_bn(conv_bias, bn, eps=_BN_EPS):
    """Eval-mode BN (running_mean=0, running_var=1) folded with the conv bias."""
    if bn is None:
        return jnp.ones_like(conv_bias), conv_bias
    scale = bn["gamma"] / jnp.sqrt(1.0 + eps)
    shift = bn["beta"] + conv_bias * scale
    return scale, shift


def conv_bn_act(x, conv, bn, *, stride, pad, relu, residual=None):
    """Conv3d + BN (+ residual add) + ReLU as a single fused Pallas GEMM."""
    w, b = conv["w"], conv["b"]
    Cout, Cin, k, _, _ = w.shape
    cols, (B, Do, Ho, Wo) = _im2col_T(x, k, stride, pad)
    # PyTorch weight (Cout, Cin, kd, kh, kw) -> (Cout, kd*kh*kw*Cin), matching cols row order.
    w2 = jnp.transpose(w, (0, 2, 3, 4, 1)).reshape(Cout, k * k * k * Cin)
    scale, shift = _fold_bn(b, bn)
    res2 = None if residual is None else residual.reshape(Cout, B * Do * Ho * Wo)
    y = pallas_conv_gemm(w2, cols, scale, shift, relu=relu, residual=res2)
    return y.reshape(Cout, B, Do, Ho, Wo)


def max_pool3d(x, *, k, stride, pad):
    C, B, D, H, W = x.shape
    Do = (D + 2 * pad - k) // stride + 1
    Ho = (H + 2 * pad - k) // stride + 1
    Wo = (W + 2 * pad - k) // stride + 1
    x_p = jnp.pad(x, ((0, 0), (0, 0), (pad, pad), (pad, pad), (pad, pad)),
                  constant_values=-jnp.inf)
    taps = []
    for kd in range(k):
        for kh in range(k):
            for kw in range(k):
                taps.append(
                    x_p[:, :, kd:kd + stride * Do:stride,
                            kh:kh + stride * Ho:stride,
                            kw:kw + stride * Wo:stride].reshape(C, B * Do * Ho * Wo))
    y = pallas_window_max(jnp.stack(taps, axis=0))
    return y.reshape(C, B, Do, Ho, Wo)


# ----------------------------- Parameters & forward -----------------------------

def init_params(key, n_blocks, residuals_per_block, channels_per_block, in_channels):
    keys = iter(jax.random.split(key, 512))

    def nk():
        return next(keys)

    def conv_p(cout, cin, k):
        return {"w": 0.1 * jax.random.normal(nk(), (cout, cin, k, k, k), jnp.float32),
                "b": 0.05 * jax.random.normal(nk(), (cout,), jnp.float32)}

    def bn_p(c):
        return {"gamma": 1.0 + 0.1 * jax.random.normal(nk(), (c,), jnp.float32),
                "beta": 0.1 * jax.random.normal(nk(), (c,), jnp.float32)}

    params = {"init_conv": conv_p(64, in_channels, 7), "init_bn": bn_p(64)}
    blocks = []
    for bi in range(n_blocks):
        c_in, c_out = channels_per_block[bi]
        units = []
        for ri in range(residuals_per_block[bi]):
            u_in = c_in if ri == 0 else c_out
            unit = {"conv1": conv_p(c_out, u_in, 3), "bn1": bn_p(c_out),
                    "conv2": conv_p(c_out, c_out, 3), "bn2": bn_p(c_out)}
            if u_in != c_out:
                unit["proj_conv"] = conv_p(c_out, u_in, 1)
                unit["proj_bn"] = bn_p(c_out)
            units.append(unit)
        blocks.append(units)
    params["blocks"] = blocks
    c_last = channels_per_block[-1][-1]
    params["fc_w"] = 0.1 * jax.random.normal(nk(), (1, c_last), jnp.float32)  # nn.Linear (out, in)
    params["fc_b"] = 0.05 * jax.random.normal(nk(), (1,), jnp.float32)
    return params


def resnet3d_forward(x_ncdhw, params):
    # NCDHW -> channel-major (C, B, D, H, W); bf16 activations between layers.
    x = jnp.transpose(x_ncdhw, (1, 0, 2, 3, 4)).astype(jnp.bfloat16)
    p = params
    # init layer: Conv7x7x7/s2/p3 + BN + ReLU (fused) -> MaxPool3x3x3/s2/p1
    x = conv_bn_act(x, p["init_conv"], p["init_bn"], stride=2, pad=3, relu=True)
    x = max_pool3d(x, k=3, stride=2, pad=1)
    # ResNet blocks: Conv-BN-ReLU, Conv-BN (+skip, fused into the epilogue), ReLU
    for units in p["blocks"]:
        for u in units:
            if "proj_conv" in u:
                skip = conv_bn_act(x, u["proj_conv"], u["proj_bn"],
                                   stride=1, pad=0, relu=False)
            else:
                skip = x
            h = conv_bn_act(x, u["conv1"], u["bn1"], stride=1, pad=1, relu=True)
            x = conv_bn_act(h, u["conv2"], u["bn2"], stride=1, pad=1, relu=True,
                            residual=skip)
    # head: AdaptiveAvgPool3d((1,1,1)) + Flatten + Linear(c_last, 1), one fused kernel
    return pallas_head(x, p["fc_w"], p["fc_b"])


if __name__ == "__main__":
    key = jax.random.PRNGKey(0)
    k_param, k_x = jax.random.split(key)
    n_blocks = 2
    residuals_per_block = [1, 2]
    channels_per_block = [(64, 32), (32, 64)]
    in_channels = 1
    params = init_params(k_param, n_blocks, residuals_per_block,
                         channels_per_block, in_channels)
    x = jax.random.normal(k_x, (2, in_channels, 16, 16, 16), jnp.float32)
    fwd = jax.jit(resnet3d_forward)
    out = jax.block_until_ready(fwd(x, params))
    assert out.shape == (2, 1) and bool(jnp.all(jnp.isfinite(out)))
    print("KERNEL_OK")
</pallas_src>

<mosaic_0001>
module attributes {stable_mosaic.version = 11 : i64} {
  func.func @_conv_gemm_kernel(%arg0: i32, %arg1: memref<64x343xbf16, #tpu.memory_space<vmem>>, %arg2: memref<343x512xbf16, #tpu.memory_space<vmem>>, %arg3: memref<64x1xf32, #tpu.memory_space<vmem>>, %arg4: memref<64x1xf32, #tpu.memory_space<vmem>>, %arg5: memref<64x512xbf16, #tpu.memory_space<vmem>>) attributes {dimension_semantics = [#tpu.dimension_semantics<parallel>], iteration_bounds = array<i64: 2>, scalar_prefetch = 0 : i64, scratch_operands = 0 : i64, tpu.core_type = #tpu.core_type<tc>, window_params = [{pipeline_mode = #tpu.pipeline_mode<synchronous>, transform_indices = @transform_0, window_bounds = array<i64: 64, 343>}, {transform_indices = @transform_1, window_bounds = array<i64: 343, 512>}, {pipeline_mode = #tpu.pipeline_mode<synchronous>, transform_indices = @transform_2, window_bounds = array<i64: 64, 1>}, {pipeline_mode = #tpu.pipeline_mode<synchronous>, transform_indices = @transform_3, window_bounds = array<i64: 64, 1>}, {transform_indices = @transform_4, window_bounds = array<i64: 64, 512>}]} {
    %c0 = arith.constant 0 : index
    %c0_0 = arith.constant 0 : index
    %0 = vector.load %arg1[%c0, %c0_0] : memref<64x343xbf16, #tpu.memory_space<vmem>>, vector<64x343xbf16>
    %c0_1 = arith.constant 0 : index
    %c0_2 = arith.constant 0 : index
    %1 = vector.load %arg2[%c0_1, %c0_2] : memref<343x512xbf16, #tpu.memory_space<vmem>>, vector<343x512xbf16>
    %cst = arith.constant dense<0.000000e+00> : vector<64x512xf32>
    %2 = tpu.matmul %0, %1, %cst {dimension_numbers = #tpu.dot_dimension_numbers<[1], [0], [0], [1], [0, 0, 1, 1], [], []>} : vector<64x343xbf16>, vector<343x512xbf16>, vector<64x512xf32> -> vector<64x512xf32>
    %c0_3 = arith.constant 0 : index
    %c0_4 = arith.constant 0 : index
    %3 = vector.load %arg3[%c0_3, %c0_4] : memref<64x1xf32, #tpu.memory_space<vmem>>, vector<64x1xf32>
    %4 = vector.broadcast %3 : vector<64x1xf32> to vector<64x512xf32>
    %5 = arith.mulf %2, %4 : vector<64x512xf32>
    %c0_5 = arith.constant 0 : index
    %c0_6 = arith.constant 0 : index
    %6 = vector.load %arg4[%c0_5, %c0_6] : memref<64x1xf32, #tpu.memory_space<vmem>>, vector<64x1xf32>
    %7 = vector.broadcast %6 : vector<64x1xf32> to vector<64x512xf32>
    %8 = arith.addf %5, %7 : vector<64x512xf32>
    %cst_7 = arith.constant 0.000000e+00 : f32
    %9 = vector.broadcast %cst_7 : f32 to vector<64x512xf32>
    %10 = arith.maximumf %8, %9 : vector<64x512xf32>
    %11 = arith.truncf %10 : vector<64x512xf32> to vector<64x512xbf16>
    %c0_8 = arith.constant 0 : index
    %c0_9 = arith.constant 0 : index
    %12 = vector.load %arg5[%c0_8, %c0_9] : memref<64x512xbf16, #tpu.memory_space<vmem>>, vector<64x512xbf16>
    tpu.vector_store %arg5[%c0_8, %c0_9], %11 {strides = array<i32>} : memref<64x512xbf16, #tpu.memory_space<vmem>>, vector<64x512xbf16>,
    return
  }
  func.func @transform_0(%arg0: i32) -> (i32, i32) {
    %c0_i32 = arith.constant 0 : i32
    %c0_i32_0 = arith.constant 0 : i32
    %c0_i32_1 = arith.constant 0 : i32
    return %c0_i32, %c0_i32_0 : i32, i32
  }
  func.func @transform_1(%arg0: i32) -> (i32, i32) {
    %c0_i32 = arith.constant 0 : i32
    %c0_i32_0 = arith.constant 0 : i32
    return %c0_i32, %arg0 : i32, i32
  }
  func.func @transform_2(%arg0: i32) -> (i32, i32) {
    %c0_i32 = arith.constant 0 : i32
    %c0_i32_0 = arith.constant 0 : i32
    %c0_i32_1 = arith.constant 0 : i32
    return %c0_i32, %c0_i32_0 : i32, i32
  }
  func.func @transform_3(%arg0: i32) -> (i32, i32) {
    %c0_i32 = arith.constant 0 : i32
    %c0_i32_0 = arith.constant 0 : i32
    %c0_i32_1 = arith.constant 0 : i32
    return %c0_i32, %c0_i32_0 : i32, i32
  }
  func.func @transform_4(%arg0: i32) -> (i32, i32) {
    %c0_i32 = arith.constant 0 : i32
    %c0_i32_0 = arith.constant 0 : i32
    return %c0_i32, %arg0 : i32, i32
  }
}

module attributes {stable_mosaic.version = 11 : i64} {
  func.func @_window_max_kernel(%arg0: i32, %arg1: memref<27x64x128xbf16, #tpu.memory_space<vmem>>, %arg2: memref<64x128xbf16, #tpu.memory_space<vmem>>) attributes {dimension_semantics = [#tpu.dimension_semantics<parallel>], iteration_bounds = array<i64: 1>, scalar_prefetch = 0 : i64, scratch_operands = 0 : i64, tpu.core_type = #tpu.core_type<tc>, window_params = [{transform_indices = @transform_0, window_bounds = array<i64: 27, 64, 128>}, {transform_indices = @transform_1, window_bounds = array<i64: 64, 128>}]} {
    %c0 = arith.constant 0 : index
    %c0_0 = arith.constant 0 : index
    %c0_1 = arith.constant 0 : index
    %0 = vector.load %arg1[%c0, %c0_0, %c0_1] : memref<27x64x128xbf16, #tpu.memory_space<vmem>>, vector<27x64x128xbf16>
    %cst = arith.constant dense<0xFF80> : vector<64x128xbf16>
    %1 = vector.multi_reduction <maximumf>, %0, %cst [0] : vector<27x64x128xbf16> to vector<64x128xbf16>
    %c0_2 = arith.constant 0 : index
    %c0_3 = arith.constant 0 : index
    %2 = vector.load %arg2[%c0_2, %c0_3] : memref<64x128xbf16, #tpu.memory_space<vmem>>, vector<64x128xbf16>
    tpu.vector_store %arg2[%c0_2, %c0_3], %1 {strides = array<i32>} : memref<64x128xbf16, #tpu.memory_space<vmem>>, vector<64x128xbf16>,
    return
  }
  func.func @transform_0(%arg0: i32) -> (i32, i32, i32) {
    %c0_i32 = arith.constant 0 : i32
    %c0_i32_0 = arith.constant 0 : i32
    %c0_i32_1 = arith.constant 0 : i32
    return %c0_i32, %c0_i32_0, %arg0 : i32, i32, i32
  }
  func.func @transform_1(%arg0: i32) -> (i32, i32) {
    %c0_i32 = arith.constant 0 : i32
    %c0_i32_0 = arith.constant 0 : i32
    return %c0_i32, %arg0 : i32, i32
  }
}

module attributes {stable_mosaic.version = 11 : i64} {
  func.func @_conv_gemm_kernel(%arg0: i32, %arg1: memref<32x1728xbf16, #tpu.memory_space<vmem>>, %arg2: memref<1728x128xbf16, #tpu.memory_space<vmem>>, %arg3: memref<32x1xf32, #tpu.memory_space<vmem>>, %arg4: memref<32x1xf32, #tpu.memory_space<vmem>>, %arg5: memref<32x128xbf16, #tpu.memory_space<vmem>>) attributes {dimension_semantics = [#tpu.dimension_semantics<parallel>], iteration_bounds = array<i64: 1>, scalar_prefetch = 0 : i64, scratch_operands = 0 : i64, tpu.core_type = #tpu.core_type<tc>, window_params = [{pipeline_mode = #tpu.pipeline_mode<synchronous>, transform_indices = @transform_0, window_bounds = array<i64: 32, 1728>}, {transform_indices = @transform_1, window_bounds = array<i64: 1728, 128>}, {pipeline_mode = #tpu.pipeline_mode<synchronous>, transform_indices = @transform_2, window_bounds = array<i64: 32, 1>}, {pipeline_mode = #tpu.pipeline_mode<synchronous>, transform_indices = @transform_3, window_bounds = array<i64: 32, 1>}, {transform_indices = @transform_4, window_bounds = array<i64: 32, 128>}]} {
    %c0 = arith.constant 0 : index
    %c0_0 = arith.constant 0 : index
    %0 = vector.load %arg1[%c0, %c0_0] : memref<32x1728xbf16, #tpu.memory_space<vmem>>, vector<32x1728xbf16>
    %c0_1 = arith.constant 0 : index
    %c0_2 = arith.constant 0 : index
    %1 = vector.load %arg2[%c0_1, %c0_2] : memref<1728x128xbf16, #tpu.memory_space<vmem>>, vector<1728x128xbf16>
    %cst = arith.constant dense<0.000000e+00> : vector<32x128xf32>
    %2 = tpu.matmul %0, %1, %cst {dimension_numbers = #tpu.dot_dimension_numbers<[1], [0], [0], [1], [0, 0, 1, 1], [], []>} : vector<32x1728xbf16>, vector<1728x128xbf16>, vector<32x128xf32> -> vector<32x128xf32>
    %c0_3 = arith.constant 0 : index
    %c0_4 = arith.constant 0 : index
    %3 = vector.load %arg3[%c0_3, %c0_4] : memref<32x1xf32, #tpu.memory_space<vmem>>, vector<32x1xf32>
    %4 = vector.broadcast %3 : vector<32x1xf32> to vector<32x128xf32>
    %5 = arith.mulf %2, %4 : vector<32x128xf32>
    %c0_5 = arith.constant 0 : index
    %c0_6 = arith.constant 0 : index
    %6 = vector.load %arg4[%c0_5, %c0_6] : memref<32x1xf32, #tpu.memory_space<vmem>>, vector<32x1xf32>
    %7 = vector.broadcast %6 : vector<32x1xf32> to vector<32x128xf32>
    %8 = arith.addf %5, %7 : vector<32x128xf32>
    %cst_7 = arith.constant 0.000000e+00 : f32
    %9 = vector.broadcast %cst_7 : f32 to vector<32x128xf32>
    %10 = arith.maximumf %8, %9 : vector<32x128xf32>
    %11 = arith.truncf %10 : vector<32x128xf32> to vector<32x128xbf16>
    %c0_8 = arith.constant 0 : index
    %c0_9 = arith.constant 0 : index
    %12 = vector.load %arg5[%c0_8, %c0_9] : memref<32x128xbf16, #tpu.memory_space<vmem>>, vector<32x128xbf16>
    tpu.vector_store %arg5[%c0_8, %c0_9], %11 {strides = array<i32>} : memref<32x128xbf16, #tpu.memory_space<vmem>>, vector<32x128xbf16>,
    return
  }
  func.func @transform_0(%arg0: i32) -> (i32, i32) {
    %c0_i32 = arith.constant 0 : i32
    %c0_i32_0 = arith.constant 0 : i32
    %c0_i32_1 = arith.constant 0 : i32
    return %c0_i32, %c0_i32_0 : i32, i32
  }
  func.func @transform_1(%arg0: i32) -> (i32, i32) {
    %c0_i32 = arith.constant 0 : i32
    %c0_i32_0 = arith.constant 0 : i32
    return %c0_i32, %arg0 : i32, i32
  }
  func.func @transform_2(%arg0: i32) -> (i32, i32) {
    %c0_i32 = arith.constant 0 : i32
    %c0_i32_0 = arith.constant 0 : i32
    %c0_i32_1 = arith.constant 0 : i32
    return %c0_i32, %c0_i32_0 : i32, i32
  }
  func.func @transform_3(%arg0: i32) -> (i32, i32) {
    %c0_i32 = arith.constant 0 : i32
    %c0_i32_0 = arith.constant 0 : i32
    %c0_i32_1 = arith.constant 0 : i32
    return %c0_i32, %c0_i32_0 : i32, i32
  }
  func.func @transform_4(%arg0: i32) -> (i32, i32) {
    %c0_i32 = arith.constant 0 : i32
    %c0_i32_0 = arith.constant 0 : i32
    return %c0_i32, %arg0 : i32, i32
  }
}

module attributes {stable_mosaic.version = 11 : i64} {
  func.func @_conv_gemm_kernel(%arg0: i32, %arg1: memref<32x64xbf16, #tpu.memory_space<vmem>>, %arg2: memref<64x128xbf16, #tpu.memory_space<vmem>>, %arg3: memref<32x1xf32, #tpu.memory_space<vmem>>, %arg4: memref<32x1xf32, #tpu.memory_space<vmem>>, %arg5: memref<32x128xbf16, #tpu.memory_space<vmem>>) attributes {dimension_semantics = [#tpu.dimension_semantics<parallel>], iteration_bounds = array<i64: 1>, scalar_prefetch = 0 : i64, scratch_operands = 0 : i64, tpu.core_type = #tpu.core_type<tc>, window_params = [{pipeline_mode = #tpu.pipeline_mode<synchronous>, transform_indices = @transform_0, window_bounds = array<i64: 32, 64>}, {transform_indices = @transform_1, window_bounds = array<i64: 64, 128>}, {pipeline_mode = #tpu.pipeline_mode<synchronous>, transform_indices = @transform_2, window_bounds = array<i64: 32, 1>}, {pipeline_mode = #tpu.pipeline_mode<synchronous>, transform_indices = @transform_3, window_bounds = array<i64: 32, 1>}, {transform_indices = @transform_4, window_bounds = array<i64: 32, 128>}]} {
    %c0 = arith.constant 0 : index
    %c0_0 = arith.constant 0 : index
    %0 = vector.load %arg1[%c0, %c0_0] : memref<32x64xbf16, #tpu.memory_space<vmem>>, vector<32x64xbf16>
    %c0_1 = arith.constant 0 : index
    %c0_2 = arith.constant 0 : index
    %1 = vector.load %arg2[%c0_1, %c0_2] : memref<64x128xbf16, #tpu.memory_space<vmem>>, vector<64x128xbf16>
    %cst = arith.constant dense<0.000000e+00> : vector<32x128xf32>
    %2 = tpu.matmul %0, %1, %cst {dimension_numbers = #tpu.dot_dimension_numbers<[1], [0], [0], [1], [0, 0, 1, 1], [], []>} : vector<32x64xbf16>, vector<64x128xbf16>, vector<32x128xf32> -> vector<32x128xf32>
    %c0_3 = arith.constant 0 : index
    %c0_4 = arith.constant 0 : index
    %3 = vector.load %arg3[%c0_3, %c0_4] : memref<32x1xf32, #tpu.memory_space<vmem>>, vector<32x1xf32>
    %4 = vector.broadcast %3 : vector<32x1xf32> to vector<32x128xf32>
    %5 = arith.mulf %2, %4 : vector<32x128xf32>
    %c0_5 = arith.constant 0 : index
    %c0_6 = arith.constant 0 : index
    %6 = vector.load %arg4[%c0_5, %c0_6] : memref<32x1xf32, #tpu.memory_space<vmem>>, vector<32x1xf32>
    %7 = vector.broadcast %6 : vector<32x1xf32> to vector<32x128xf32>
    %8 = arith.addf %5, %7 : vector<32x128xf32>
    %9 = arith.truncf %8 : vector<32x128xf32> to vector<32x128xbf16>
    %c0_7 = arith.constant 0 : index
    %c0_8 = arith.constant 0 : index
    %10 = vector.load %arg5[%c0_7, %c0_8] : memref<32x128xbf16, #tpu.memory_space<vmem>>, vector<32x128xbf16>
    tpu.vector_store %arg5[%c0_7, %c0_8], %9 {strides = array<i32>} : memref<32x128xbf16, #tpu.memory_space<vmem>>, vector<32x128xbf16>,
    return
  }
  func.func @transform_0(%arg0: i32) -> (i32, i32) {
    %c0_i32 = arith.constant 0 : i32
    %c0_i32_0 = arith.constant 0 : i32
    %c0_i32_1 = arith.constant 0 : i32
    return %c0_i32, %c0_i32_0 : i32, i32
  }
  func.func @transform_1(%arg0: i32) -> (i32, i32) {
    %c0_i32 = arith.constant 0 : i32
    %c0_i32_0 = arith.constant 0 : i32
    return %c0_i32, %arg0 : i32, i32
  }
  func.func @transform_2(%arg0: i32) -> (i32, i32) {
    %c0_i32 = arith.constant 0 : i32
    %c0_i32_0 = arith.constant 0 : i32
    %c0_i32_1 = arith.constant 0 : i32
    return %c0_i32, %c0_i32_0 : i32, i32
  }
  func.func @transform_3(%arg0: i32) -> (i32, i32) {
    %c0_i32 = arith.constant 0 : i32
    %c0_i32_0 = arith.constant 0 : i32
    %c0_i32_1 = arith.constant 0 : i32
    return %c0_i32, %c0_i32_0 : i32, i32
  }
  func.func @transform_4(%arg0: i32) -> (i32, i32) {
    %c0_i32 = arith.constant 0 : i32
    %c0_i32_0 = arith.constant 0 : i32
    return %c0_i32, %arg0 : i32, i32
  }
}

module attributes {stable_mosaic.version = 11 : i64} {
  func.func @_conv_gemm_res_kernel(%arg0: i32, %arg1: memref<32x864xbf16, #tpu.memory_space<vmem>>, %arg2: memref<864x128xbf16, #tpu.memory_space<vmem>>, %arg3: memref<32x1xf32, #tpu.memory_space<vmem>>, %arg4: memref<32x1xf32, #tpu.memory_space<vmem>>, %arg5: memref<32x128xbf16, #tpu.memory_space<vmem>>, %arg6: memref<32x128xbf16, #tpu.memory_space<vmem>>) attributes {dimension_semantics = [#tpu.dimension_semantics<parallel>], iteration_bounds = array<i64: 1>, scalar_prefetch = 0 : i64, scratch_operands = 0 : i64, tpu.core_type = #tpu.core_type<tc>, window_params = [{pipeline_mode = #tpu.pipeline_mode<synchronous>, transform_indices = @transform_0, window_bounds = array<i64: 32, 864>}, {transform_indices = @transform_1, window_bounds = array<i64: 864, 128>}, {pipeline_mode = #tpu.pipeline_mode<synchronous>, transform_indices = @transform_2, window_bounds = array<i64: 32, 1>}, {pipeline_mode = #tpu.pipeline_mode<synchronous>, transform_indices = @transform_3, window_bounds = array<i64: 32, 1>}, {transform_indices = @transform_4, window_bounds = array<i64: 32, 128>}, {transform_indices = @transform_5, window_bounds = array<i64: 32, 128>}]} {
    %c0 = arith.constant 0 : index
    %c0_0 = arith.constant 0 : index
    %0 = vector.load %arg1[%c0, %c0_0] : memref<32x864xbf16, #tpu.memory_space<vmem>>, vector<32x864xbf16>
    %c0_1 = arith.constant 0 : index
    %c0_2 = arith.constant 0 : index
    %1 = vector.load %arg2[%c0_1, %c0_2] : memref<864x128xbf16, #tpu.memory_space<vmem>>, vector<864x128xbf16>
    %cst = arith.constant dense<0.000000e+00> : vector<32x128xf32>
    %2 = tpu.matmul %0, %1, %cst {dimension_numbers = #tpu.dot_dimension_numbers<[1], [0], [0], [1], [0, 0, 1, 1], [], []>} : vector<32x864xbf16>, vector<864x128xbf16>, vector<32x128xf32> -> vector<32x128xf32>
    %c0_3 = arith.constant 0 : index
    %c0_4 = arith.constant 0 : index
    %3 = vector.load %arg3[%c0_3, %c0_4] : memref<32x1xf32, #tpu.memory_space<vmem>>, vector<32x1xf32>
    %4 = vector.broadcast %3 : vector<32x1xf32> to vector<32x128xf32>
    %5 = arith.mulf %2, %4 : vector<32x128xf32>
    %c0_5 = arith.constant 0 : index
    %c0_6 = arith.constant 0 : index
    %6 = vector.load %arg4[%c0_5, %c0_6] : memref<32x1xf32, #tpu.memory_space<vmem>>, vector<32x1xf32>
    %7 = vector.broadcast %6 : vector<32x1xf32> to vector<32x128xf32>
    %8 = arith.addf %5, %7 : vector<32x128xf32>
    %c0_7 = arith.constant 0 : index
    %c0_8 = arith.constant 0 : index
    %9 = vector.load %arg5[%c0_7, %c0_8] : memref<32x128xbf16, #tpu.memory_space<vmem>>, vector<32x128xbf16>
    %10 = arith.extf %9 : vector<32x128xbf16> to vector<32x128xf32>
    %11 = arith.addf %8, %10 : vector<32x128xf32>
    %cst_9 = arith.constant 0.000000e+00 : f32
    %12 = vector.broadcast %cst_9 : f32 to vector<32x128xf32>
    %13 = arith.maximumf %11, %12 : vector<32x128xf32>
    %14 = arith.truncf %13 : vector<32x128xf32> to vector<32x128xbf16>
    %c0_10 = arith.constant 0 : index
    %c0_11 = arith.constant 0 : index
    %15 = vector.load %arg6[%c0_10, %c0_11] : memref<32x128xbf16, #tpu.memory_space<vmem>>, vector<32x128xbf16>
    tpu.vector_store %arg6[%c0_10, %c0_11], %14 {strides = array<i32>} : memref<32x128xbf16, #tpu.memory_space<vmem>>, vector<32x128xbf16>,
    return
  }
  func.func @transform_0(%arg0: i32) -> (i32, i32) {
    %c0_i32 = arith.constant 0 : i32
    %c0_i32_0 = arith.constant 0 : i32
    %c0_i32_1 = arith.constant 0 : i32
    return %c0_i32, %c0_i32_0 : i32, i32
  }
  func.func @transform_1(%arg0: i32) -> (i32, i32) {
    %c0_i32 = arith.constant 0 : i32
    %c0_i32_0 = arith.constant 0 : i32
    return %c0_i32, %arg0 : i32, i32
  }
  func.func @transform_2(%arg0: i32) -> (i32, i32) {
    %c0_i32 = arith.constant 0 : i32
    %c0_i32_0 = arith.constant 0 : i32
    %c0_i32_1 = arith.constant 0 : i32
    return %c0_i32, %c0_i32_0 : i32, i32
  }
  func.func @transform_3(%arg0: i32) -> (i32, i32) {
    %c0_i32 = arith.constant 0 : i32
    %c0_i32_0 = arith.constant 0 : i32
    %c0_i32_1 = arith.constant 0 : i32
    return %c0_i32, %c0_i32_0 : i32, i32
  }
  func.func @transform_4(%arg0: i32) -> (i32, i32) {
    %c0_i32 = arith.constant 0 : i32
    %c0_i32_0 = arith.constant 0 : i32
    return %c0_i32, %arg0 : i32, i32
  }
  func.func @transform_5(%arg0: i32) -> (i32, i32) {
    %c0_i32 = arith.constant 0 : i32
    %c0_i32_0 = arith.constant 0 : i32
    return %c0_i32, %arg0 : i32, i32
  }
}

module attributes {stable_mosaic.version = 11 : i64} {
  func.func @_conv_gemm_kernel(%arg0: i32, %arg1: memref<64x864xbf16, #tpu.memory_space<vmem>>, %arg2: memref<864x128xbf16, #tpu.memory_space<vmem>>, %arg3: memref<64x1xf32, #tpu.memory_space<vmem>>, %arg4: memref<64x1xf32, #tpu.memory_space<vmem>>, %arg5: memref<64x128xbf16, #tpu.memory_space<vmem>>) attributes {dimension_semantics = [#tpu.dimension_semantics<parallel>], iteration_bounds = array<i64: 1>, scalar_prefetch = 0 : i64, scratch_operands = 0 : i64, tpu.core_type = #tpu.core_type<tc>, window_params = [{pipeline_mode = #tpu.pipeline_mode<synchronous>, transform_indices = @transform_0, window_bounds = array<i64: 64, 864>}, {transform_indices = @transform_1, window_bounds = array<i64: 864, 128>}, {pipeline_mode = #tpu.pipeline_mode<synchronous>, transform_indices = @transform_2, window_bounds = array<i64: 64, 1>}, {pipeline_mode = #tpu.pipeline_mode<synchronous>, transform_indices = @transform_3, window_bounds = array<i64: 64, 1>}, {transform_indices = @transform_4, window_bounds = array<i64: 64, 128>}]} {
    %c0 = arith.constant 0 : index
    %c0_0 = arith.constant 0 : index
    %0 = vector.load %arg1[%c0, %c0_0] : memref<64x864xbf16, #tpu.memory_space<vmem>>, vector<64x864xbf16>
    %c0_1 = arith.constant 0 : index
    %c0_2 = arith.constant 0 : index
    %1 = vector.load %arg2[%c0_1, %c0_2] : memref<864x128xbf16, #tpu.memory_space<vmem>>, vector<864x128xbf16>
    %cst = arith.constant dense<0.000000e+00> : vector<64x128xf32>
    %2 = tpu.matmul %0, %1, %cst {dimension_numbers = #tpu.dot_dimension_numbers<[1], [0], [0], [1], [0, 0, 1, 1], [], []>} : vector<64x864xbf16>, vector<864x128xbf16>, vector<64x128xf32> -> vector<64x128xf32>
    %c0_3 = arith.constant 0 : index
    %c0_4 = arith.constant 0 : index
    %3 = vector.load %arg3[%c0_3, %c0_4] : memref<64x1xf32, #tpu.memory_space<vmem>>, vector<64x1xf32>
    %4 = vector.broadcast %3 : vector<64x1xf32> to vector<64x128xf32>
    %5 = arith.mulf %2, %4 : vector<64x128xf32>
    %c0_5 = arith.constant 0 : index
    %c0_6 = arith.constant 0 : index
    %6 = vector.load %arg4[%c0_5, %c0_6] : memref<64x1xf32, #tpu.memory_space<vmem>>, vector<64x1xf32>
    %7 = vector.broadcast %6 : vector<64x1xf32> to vector<64x128xf32>
    %8 = arith.addf %5, %7 : vector<64x128xf32>
    %cst_7 = arith.constant 0.000000e+00 : f32
    %9 = vector.broadcast %cst_7 : f32 to vector<64x128xf32>
    %10 = arith.maximumf %8, %9 : vector<64x128xf32>
    %11 = arith.truncf %10 : vector<64x128xf32> to vector<64x128xbf16>
    %c0_8 = arith.constant 0 : index
    %c0_9 = arith.constant 0 : index
    %12 = vector.load %arg5[%c0_8, %c0_9] : memref<64x128xbf16, #tpu.memory_space<vmem>>, vector<64x128xbf16>
    tpu.vector_store %arg5[%c0_8, %c0_9], %11 {strides = array<i32>} : memref<64x128xbf16, #tpu.memory_space<vmem>>, vector<64x128xbf16>,
    return
  }
  func.func @transform_0(%arg0: i32) -> (i32, i32) {
    %c0_i32 = arith.constant 0 : i32
    %c0_i32_0 = arith.constant 0 : i32
    %c0_i32_1 = arith.constant 0 : i32
    return %c0_i32, %c0_i32_0 : i32, i32
  }
  func.func @transform_1(%arg0: i32) -> (i32, i32) {
    %c0_i32 = arith.constant 0 : i32
    %c0_i32_0 = arith.constant 0 : i32
    return %c0_i32, %arg0 : i32, i32
  }
  func.func @transform_2(%arg0: i32) -> (i32, i32) {
    %c0_i32 = arith.constant 0 : i32
    %c0_i32_0 = arith.constant 0 : i32
    %c0_i32_1 = arith.constant 0 : i32
    return %c0_i32, %c0_i32_0 : i32, i32
  }
  func.func @transform_3(%arg0: i32) -> (i32, i32) {
    %c0_i32 = arith.constant 0 : i32
    %c0_i32_0 = arith.constant 0 : i32
    %c0_i32_1 = arith.constant 0 : i32
    return %c0_i32, %c0_i32_0 : i32, i32
  }
  func.func @transform_4(%arg0: i32) -> (i32, i32) {
    %c0_i32 = arith.constant 0 : i32
    %c0_i32_0 = arith.constant 0 : i32
    return %c0_i32, %arg0 : i32, i32
  }
}

module attributes {stable_mosaic.version = 11 : i64} {
  func.func @_conv_gemm_kernel(%arg0: i32, %arg1: memref<64x32xbf16, #tpu.memory_space<vmem>>, %arg2: memref<32x128xbf16, #tpu.memory_space<vmem>>, %arg3: memref<64x1xf32, #tpu.memory_space<vmem>>, %arg4: memref<64x1xf32, #tpu.memory_space<vmem>>, %arg5: memref<64x128xbf16, #tpu.memory_space<vmem>>) attributes {dimension_semantics = [#tpu.dimension_semantics<parallel>], iteration_bounds = array<i64: 1>, scalar_prefetch = 0 : i64, scratch_operands = 0 : i64, tpu.core_type = #tpu.core_type<tc>, window_params = [{pipeline_mode = #tpu.pipeline_mode<synchronous>, transform_indices = @transform_0, window_bounds = array<i64: 64, 32>}, {transform_indices = @transform_1, window_bounds = array<i64: 32, 128>}, {pipeline_mode = #tpu.pipeline_mode<synchronous>, transform_indices = @transform_2, window_bounds = array<i64: 64, 1>}, {pipeline_mode = #tpu.pipeline_mode<synchronous>, transform_indices = @transform_3, window_bounds = array<i64: 64, 1>}, {transform_indices = @transform_4, window_bounds = array<i64: 64, 128>}]} {
    %c0 = arith.constant 0 : index
    %c0_0 = arith.constant 0 : index
    %0 = vector.load %arg1[%c0, %c0_0] : memref<64x32xbf16, #tpu.memory_space<vmem>>, vector<64x32xbf16>
    %c0_1 = arith.constant 0 : index
    %c0_2 = arith.constant 0 : index
    %1 = vector.load %arg2[%c0_1, %c0_2] : memref<32x128xbf16, #tpu.memory_space<vmem>>, vector<32x128xbf16>
    %cst = arith.constant dense<0.000000e+00> : vector<64x128xf32>
    %2 = tpu.matmul %0, %1, %cst {dimension_numbers = #tpu.dot_dimension_numbers<[1], [0], [0], [1], [0, 0, 1, 1], [], []>} : vector<64x32xbf16>, vector<32x128xbf16>, vector<64x128xf32> -> vector<64x128xf32>
    %c0_3 = arith.constant 0 : index
    %c0_4 = arith.constant 0 : index
    %3 = vector.load %arg3[%c0_3, %c0_4] : memref<64x1xf32, #tpu.memory_space<vmem>>, vector<64x1xf32>
    %4 = vector.broadcast %3 : vector<64x1xf32> to vector<64x128xf32>
    %5 = arith.mulf %2, %4 : vector<64x128xf32>
    %c0_5 = arith.constant 0 : index
    %c0_6 = arith.constant 0 : index
    %6 = vector.load %arg4[%c0_5, %c0_6] : memref<64x1xf32, #tpu.memory_space<vmem>>, vector<64x1xf32>
    %7 = vector.broadcast %6 : vector<64x1xf32> to vector<64x128xf32>
    %8 = arith.addf %5, %7 : vector<64x128xf32>
    %9 = arith.truncf %8 : vector<64x128xf32> to vector<64x128xbf16>
    %c0_7 = arith.constant 0 : index
    %c0_8 = arith.constant 0 : index
    %10 = vector.load %arg5[%c0_7, %c0_8] : memref<64x128xbf16, #tpu.memory_space<vmem>>, vector<64x128xbf16>
    tpu.vector_store %arg5[%c0_7, %c0_8], %9 {strides = array<i32>} : memref<64x128xbf16, #tpu.memory_space<vmem>>, vector<64x128xbf16>,
    return
  }
  func.func @transform_0(%arg0: i32) -> (i32, i32) {
    %c0_i32 = arith.constant 0 : i32
    %c0_i32_0 = arith.constant 0 : i32
    %c0_i32_1 = arith.constant 0 : i32
    return %c0_i32, %c0_i32_0 : i32, i32
  }
  func.func @transform_1(%arg0: i32) -> (i32, i32) {
    %c0_i32 = arith.constant 0 : i32
    %c0_i32_0 = arith.constant 0 : i32
    return %c0_i32, %arg0 : i32, i32
  }
  func.func @transform_2(%arg0: i32) -> (i32, i32) {
    %c0_i32 = arith.constant 0 : i32
    %c0_i32_0 = arith.constant 0 : i32
    %c0_i32_1 = arith.constant 0 : i32
    return %c0_i32, %c0_i32_0 : i32, i32
  }
  func.func @transform_3(%arg0: i32) -> (i32, i32) {
    %c0_i32 = arith.constant 0 : i32
    %c0_i32_0 = arith.constant 0 : i32
    %c0_i32_1 = arith.constant 0 : i32
    return %c0_i32, %c0_i32_0 : i32, i32
  }
  func.func @transform_4(%arg0: i32) -> (i32, i32) {
    %c0_i32 = arith.constant 0 : i32
    %c0_i32_0 = arith.constant 0 : i32
    return %c0_i32, %arg0 : i32, i32
  }
}

module attributes {stable_mosaic.version = 11 : i64} {
  func.func @_conv_gemm_res_kernel(%arg0: i32, %arg1: memref<64x1728xbf16, #tpu.memory_space<vmem>>, %arg2: memref<1728x128xbf16, #tpu.memory_space<vmem>>, %arg3: memref<64x1xf32, #tpu.memory_space<vmem>>, %arg4: memref<64x1xf32, #tpu.memory_space<vmem>>, %arg5: memref<64x128xbf16, #tpu.memory_space<vmem>>, %arg6: memref<64x128xbf16, #tpu.memory_space<vmem>>) attributes {dimension_semantics = [#tpu.dimension_semantics<parallel>], iteration_bounds = array<i64: 1>, scalar_prefetch = 0 : i64, scratch_operands = 0 : i64, tpu.core_type = #tpu.core_type<tc>, window_params = [{pipeline_mode = #tpu.pipeline_mode<synchronous>, transform_indices = @transform_0, window_bounds = array<i64: 64, 1728>}, {transform_indices = @transform_1, window_bounds = array<i64: 1728, 128>}, {pipeline_mode = #tpu.pipeline_mode<synchronous>, transform_indices = @transform_2, window_bounds = array<i64: 64, 1>}, {pipeline_mode = #tpu.pipeline_mode<synchronous>, transform_indices = @transform_3, window_bounds = array<i64: 64, 1>}, {transform_indices = @transform_4, window_bounds = array<i64: 64, 128>}, {transform_indices = @transform_5, window_bounds = array<i64: 64, 128>}]} {
    %c0 = arith.constant 0 : index
    %c0_0 = arith.constant 0 : index
    %0 = vector.load %arg1[%c0, %c0_0] : memref<64x1728xbf16, #tpu.memory_space<vmem>>, vector<64x1728xbf16>
    %c0_1 = arith.constant 0 : index
    %c0_2 = arith.constant 0 : index
    %1 = vector.load %arg2[%c0_1, %c0_2] : memref<1728x128xbf16, #tpu.memory_space<vmem>>, vector<1728x128xbf16>
    %cst = arith.constant dense<0.000000e+00> : vector<64x128xf32>
    %2 = tpu.matmul %0, %1, %cst {dimension_numbers = #tpu.dot_dimension_numbers<[1], [0], [0], [1], [0, 0, 1, 1], [], []>} : vector<64x1728xbf16>, vector<1728x128xbf16>, vector<64x128xf32> -> vector<64x128xf32>
    %c0_3 = arith.constant 0 : index
    %c0_4 = arith.constant 0 : index
    %3 = vector.load %arg3[%c0_3, %c0_4] : memref<64x1xf32, #tpu.memory_space<vmem>>, vector<64x1xf32>
    %4 = vector.broadcast %3 : vector<64x1xf32> to vector<64x128xf32>
    %5 = arith.mulf %2, %4 : vector<64x128xf32>
    %c0_5 = arith.constant 0 : index
    %c0_6 = arith.constant 0 : index
    %6 = vector.load %arg4[%c0_5, %c0_6] : memref<64x1xf32, #tpu.memory_space<vmem>>, vector<64x1xf32>
    %7 = vector.broadcast %6 : vector<64x1xf32> to vector<64x128xf32>
    %8 = arith.addf %5, %7 : vector<64x128xf32>
    %c0_7 = arith.constant 0 : index
    %c0_8 = arith.constant 0 : index
    %9 = vector.load %arg5[%c0_7, %c0_8] : memref<64x128xbf16, #tpu.memory_space<vmem>>, vector<64x128xbf16>
    %10 = arith.extf %9 : vector<64x128xbf16> to vector<64x128xf32>
    %11 = arith.addf %8, %10 : vector<64x128xf32>
    %cst_9 = arith.constant 0.000000e+00 : f32
    %12 = vector.broadcast %cst_9 : f32 to vector<64x128xf32>
    %13 = arith.maximumf %11, %12 : vector<64x128xf32>
    %14 = arith.truncf %13 : vector<64x128xf32> to vector<64x128xbf16>
    %c0_10 = arith.constant 0 : index
    %c0_11 = arith.constant 0 : index
    %15 = vector.load %arg6[%c0_10, %c0_11] : memref<64x128xbf16, #tpu.memory_space<vmem>>, vector<64x128xbf16>
    tpu.vector_store %arg6[%c0_10, %c0_11], %14 {strides = array<i32>} : memref<64x128xbf16, #tpu.memory_space<vmem>>, vector<64x128xbf16>,
    return
  }
  func.func @transform_0(%arg0: i32) -> (i32, i32) {
    %c0_i32 = arith.constant 0 : i32
    %c0_i32_0 = arith.constant 0 : i32
    %c0_i32_1 = arith.constant 0 : i32
    return %c0_i32, %c0_i32_0 : i32, i32
  }
  func.func @transform_1(%arg0: i32) -> (i32, i32) {
    %c0_i32 = arith.constant 0 : i32
    %c0_i32_0 = arith.constant 0 : i32
    return %c0_i32, %arg0 : i32, i32
  }
  func.func @transform_2(%arg0: i32) -> (i32, i32) {
    %c0_i32 = arith.constant 0 : i32
    %c0_i32_0 = arith.constant 0 : i32
    %c0_i32_1 = arith.constant 0 : i32
    return %c0_i32, %c0_i32_0 : i32, i32
  }
  func.func @transform_3(%arg0: i32) -> (i32, i32) {
    %c0_i32 = arith.constant 0 : i32
    %c0_i32_0 = arith.constant 0 : i32
    %c0_i32_1 = arith.constant 0 : i32
    return %c0_i32, %c0_i32_0 : i32, i32
  }
  func.func @transform_4(%arg0: i32) -> (i32, i32) {
    %c0_i32 = arith.constant 0 : i32
    %c0_i32_0 = arith.constant 0 : i32
    return %c0_i32, %arg0 : i32, i32
  }
  func.func @transform_5(%arg0: i32) -> (i32, i32) {
    %c0_i32 = arith.constant 0 : i32
    %c0_i32_0 = arith.constant 0 : i32
    return %c0_i32, %arg0 : i32, i32
  }
}

module attributes {stable_mosaic.version = 11 : i64} {
  func.func @_conv_gemm_kernel(%arg0: i32, %arg1: memref<64x1728xbf16, #tpu.memory_space<vmem>>, %arg2: memref<1728x128xbf16, #tpu.memory_space<vmem>>, %arg3: memref<64x1xf32, #tpu.memory_space<vmem>>, %arg4: memref<64x1xf32, #tpu.memory_space<vmem>>, %arg5: memref<64x128xbf16, #tpu.memory_space<vmem>>) attributes {dimension_semantics = [#tpu.dimension_semantics<parallel>], iteration_bounds = array<i64: 1>, scalar_prefetch = 0 : i64, scratch_operands = 0 : i64, tpu.core_type = #tpu.core_type<tc>, window_params = [{pipeline_mode = #tpu.pipeline_mode<synchronous>, transform_indices = @transform_0, window_bounds = array<i64: 64, 1728>}, {transform_indices = @transform_1, window_bounds = array<i64: 1728, 128>}, {pipeline_mode = #tpu.pipeline_mode<synchronous>, transform_indices = @transform_2, window_bounds = array<i64: 64, 1>}, {pipeline_mode = #tpu.pipeline_mode<synchronous>, transform_indices = @transform_3, window_bounds = array<i64: 64, 1>}, {transform_indices = @transform_4, window_bounds = array<i64: 64, 128>}]} {
    %c0 = arith.constant 0 : index
    %c0_0 = arith.constant 0 : index
    %0 = vector.load %arg1[%c0, %c0_0] : memref<64x1728xbf16, #tpu.memory_space<vmem>>, vector<64x1728xbf16>
    %c0_1 = arith.constant 0 : index
    %c0_2 = arith.constant 0 : index
    %1 = vector.load %arg2[%c0_1, %c0_2] : memref<1728x128xbf16, #tpu.memory_space<vmem>>, vector<1728x128xbf16>
    %cst = arith.constant dense<0.000000e+00> : vector<64x128xf32>
    %2 = tpu.matmul %0, %1, %cst {dimension_numbers = #tpu.dot_dimension_numbers<[1], [0], [0], [1], [0, 0, 1, 1], [], []>} : vector<64x1728xbf16>, vector<1728x128xbf16>, vector<64x128xf32> -> vector<64x128xf32>
    %c0_3 = arith.constant 0 : index
    %c0_4 = arith.constant 0 : index
    %3 = vector.load %arg3[%c0_3, %c0_4] : memref<64x1xf32, #tpu.memory_space<vmem>>, vector<64x1xf32>
    %4 = vector.broadcast %3 : vector<64x1xf32> to vector<64x128xf32>
    %5 = arith.mulf %2, %4 : vector<64x128xf32>
    %c0_5 = arith.constant 0 : index
    %c0_6 = arith.constant 0 : index
    %6 = vector.load %arg4[%c0_5, %c0_6] : memref<64x1xf32, #tpu.memory_space<vmem>>, vector<64x1xf32>
    %7 = vector.broadcast %6 : vector<64x1xf32> to vector<64x128xf32>
    %8 = arith.addf %5, %7 : vector<64x128xf32>
    %cst_7 = arith.constant 0.000000e+00 : f32
    %9 = vector.broadcast %cst_7 : f32 to vector<64x128xf32>
    %10 = arith.maximumf %8, %9 : vector<64x128xf32>
    %11 = arith.truncf %10 : vector<64x128xf32> to vector<64x128xbf16>
    %c0_8 = arith.constant 0 : index
    %c0_9 = arith.constant 0 : index
    %12 = vector.load %arg5[%c0_8, %c0_9] : memref<64x128xbf16, #tpu.memory_space<vmem>>, vector<64x128xbf16>
    tpu.vector_store %arg5[%c0_8, %c0_9], %11 {strides = array<i32>} : memref<64x128xbf16, #tpu.memory_space<vmem>>, vector<64x128xbf16>,
    return
  }
  func.func @transform_0(%arg0: i32) -> (i32, i32) {
    %c0_i32 = arith.constant 0 : i32
    %c0_i32_0 = arith.constant 0 : i32
    %c0_i32_1 = arith.constant 0 : i32
    return %c0_i32, %c0_i32_0 : i32, i32
  }
  func.func @transform_1(%arg0: i32) -> (i32, i32) {
    %c0_i32 = arith.constant 0 : i32
    %c0_i32_0 = arith.constant 0 : i32
    return %c0_i32, %arg0 : i32, i32
  }
  func.func @transform_2(%arg0: i32) -> (i32, i32) {
    %c0_i32 = arith.constant 0 : i32
    %c0_i32_0 = arith.constant 0 : i32
    %c0_i32_1 = arith.constant 0 : i32
    return %c0_i32, %c0_i32_0 : i32, i32
  }
  func.func @transform_3(%arg0: i32) -> (i32, i32) {
    %c0_i32 = arith.constant 0 : i32
    %c0_i32_0 = arith.constant 0 : i32
    %c0_i32_1 = arith.constant 0 : i32
    return %c0_i32, %c0_i32_0 : i32, i32
  }
  func.func @transform_4(%arg0: i32) -> (i32, i32) {
    %c0_i32 = arith.constant 0 : i32
    %c0_i32_0 = arith.constant 0 : i32
    return %c0_i32, %arg0 : i32, i32
  }
}

module attributes {stable_mosaic.version = 11 : i64} {
  func.func @_head_kernel(%arg0: i32, %arg1: memref<64x2x64xbf16, #tpu.memory_space<vmem>>, %arg2: memref<1x64xf32, #tpu.memory_space<vmem>>, %arg3: memref<1x1xf32, #tpu.memory_space<vmem>>, %arg4: memref<1x2xf32, #tpu.memory_space<vmem>>) attributes {dimension_semantics = [#tpu.dimension_semantics<arbitrary>], iteration_bounds = array<i64: 1>, scalar_prefetch = 0 : i64, scratch_operands = 0 : i64, tpu.core_type = #tpu.core_type<tc>, window_params = [{pipeline_mode = #tpu.pipeline_mode<synchronous>, transform_indices = @transform_0, window_bounds = array<i64: 64, 2, 64>}, {pipeline_mode = #tpu.pipeline_mode<synchronous>, transform_indices = @transform_1, window_bounds = array<i64: 1, 64>}, {pipeline_mode = #tpu.pipeline_mode<synchronous>, transform_indices = @transform_2, window_bounds = array<i64: 1, 1>}, {pipeline_mode = #tpu.pipeline_mode<synchronous>, transform_indices = @transform_3, window_bounds = array<i64: 1, 2>}]} {
    %c0 = arith.constant 0 : index
    %c0_0 = arith.constant 0 : index
    %c0_1 = arith.constant 0 : index
    %0 = vector.load %arg1[%c0, %c0_0, %c0_1] : memref<64x2x64xbf16, #tpu.memory_space<vmem>>, vector<64x2x64xbf16>
    %1 = arith.extf %0 : vector<64x2x64xbf16> to vector<64x2x64xf32>
    %cst = arith.constant dense<0.000000e+00> : vector<64x2xf32>
    %2 = vector.multi_reduction <add>, %1, %cst [2] : vector<64x2x64xf32> to vector<64x2xf32>
    %cst_2 = arith.constant 6.400000e+01 : f32
    %3 = vector.broadcast %cst_2 : f32 to vector<64x2xf32>
    %4 = arith.divf %2, %3 : vector<64x2xf32>
    %c0_3 = arith.constant 0 : index
    %c0_4 = arith.constant 0 : index
    %5 = vector.load %arg2[%c0_3, %c0_4] : memref<1x64xf32, #tpu.memory_space<vmem>>, vector<1x64xf32>
    %cst_5 = arith.constant dense<0.000000e+00> : vector<1x2xf32>
    %6 = tpu.matmul %5, %4, %cst_5 {dimension_numbers = #tpu.dot_dimension_numbers<[1], [0], [0], [1], [0, 0, 1, 1], [], []>} : vector<1x64xf32>, vector<64x2xf32>, vector<1x2xf32> -> vector<1x2xf32>
    %c0_6 = arith.constant 0 : index
    %c0_7 = arith.constant 0 : index
    %7 = vector.load %arg3[%c0_6, %c0_7] : memref<1x1xf32, #tpu.memory_space<vmem>>, vector<1x1xf32>
    %8 = vector.broadcast %7 : vector<1x1xf32> to vector<1x2xf32>
    %9 = arith.addf %6, %8 : vector<1x2xf32>
    %c0_8 = arith.constant 0 : index
    %c0_9 = arith.constant 0 : index
    %10 = vector.load %arg4[%c0_8, %c0_9] : memref<1x2xf32, #tpu.memory_space<vmem>>, vector<1x2xf32>
    tpu.vector_store %arg4[%c0_8, %c0_9], %9 {strides = array<i32>} : memref<1x2xf32, #tpu.memory_space<vmem>>, vector<1x2xf32>,
    return
  }
  func.func @transform_0(%arg0: i32) -> (i32, i32, i32) {
    %c0_i32 = arith.constant 0 : i32
    %c0_i32_0 = arith.constant 0 : i32
    %c0_i32_1 = arith.constant 0 : i32
    %c0_i32_2 = arith.constant 0 : i32
    return %c0_i32, %c0_i32_0, %c0_i32_1 : i32, i32, i32
  }
  func.func @transform_1(%arg0: i32) -> (i32, i32) {
    %c0_i32 = arith.constant 0 : i32
    %c0_i32_0 = arith.constant 0 : i32
    %c0_i32_1 = arith.constant 0 : i32
    return %c0_i32, %c0_i32_0 : i32, i32
  }
  func.func @transform_2(%arg0: i32) -> (i32, i32) {
    %c0_i32 = arith.constant 0 : i32
    %c0_i32_0 = arith.constant 0 : i32
    %c0_i32_1 = arith.constant 0 : i32
    return %c0_i32, %c0_i32_0 : i32, i32
  }
  func.func @transform_3(%arg0: i32) -> (i32, i32) {
    %c0_i32 = arith.constant 0 : i32
    %c0_i32_0 = arith.constant 0 : i32
    %c0_i32_1 = arith.constant 0 : i32
    return %c0_i32, %c0_i32_0 : i32, i32
  }
}

</mosaic_0001>

<bundles_post_ra>
// kernel: resnet3d_forward.11
= control target key start
LH: loop header
LB: loop body
LE: loop exit
PB: predicated region body
PF: predicated region fallthrough
CT: control target
= control target key end

     0   :  { %s2097_s15 = smov 0   ;;  %s2099_s16 = smov 0   ;;  %s2699_s0 = inlined_call_operand.vmem [shape: bf16[64,343], index: 0, kind: input, shape index: {}]   ;;  %s2700_s1 = inlined_call_operand.vmem [shape: bf16[343,1024], index: 1, kind: input, shape index: {}]   ;;  %s2701_s2 = inlined_call_operand.vmem [shape: f32[64,1], index: 2, kind: input, shape index: {}]   ;;  %s2702_s3 = inlined_call_operand.vmem [shape: f32[64,1], index: 3, kind: input, shape index: {}]   ;;  %s2703_s4 = inlined_call_operand.vmem [shape: bf16[64,1024], index: 4, kind: output, shape index: {}]  }
   0x1   :  { %s2101_s17 = smov 0  }
   0x2 LB: > { %s1715_s18 = sadd.s32 4294967295, %s2068_s17   ;;  %s2114_s19 = sadd.s32 1, %s2068_s17   ;;  %s2068_s17 = sphi %s2101_s17, %s2707_s17   ;;  %s2064_s16 = sphi %s2099_s16, %s2706_s16   ;;  %s2060_s15 = sphi %s2097_s15, %s2705_s15  }
   0x3   : > { %s39_s20 = ssub.s32 %s2068_s17, %s2114_s19  ;;  %s42_s21 = sadd.s32 1, %s2064_s16 }
   0x4   : > { %p40_p0 = scmp.eq.s32.totalorder %s39_s20, 0  ;;  %p49_p1 = scmp.ne.s32.totalorder %s2064_s16, %s2060_s15 }
   0x5   : > { %p50_p2 = scmp.eq.s32.totalorder %s2068_s17, 0  ;;  %p121_p3 = scmp.eq.s32.totalorder %s1715_s18, 1 }
   0x6   : > { %s2125_s22 = scalar_select %p40_p0, %s2064_s16, %s42_s21  }
   0x7   : > { %p51_p4 = por %p50_p2, %p49_p1  ;;  %p2127_p5 = por %p121_p3, %p49_p1 }
   0x8   : > { %p1718_p6 = scmp.ge.s32.totalorder %s2068_s17, 2 }
   0xa   : > { %152 = sbr.rel (%p1718_p6) target bundleno = 62 (0x3e), region = 28 }
   0xf   : > { %155 = sbr.rel (!%p51_p4) target bundleno = 62 (0x3e), region = 32  ;;  %s157_s24 = sand.u32 (%p51_p4), 1, %s2064_s16  }
  0x10   : > { %s1852_s25 = sshll.u32 (%p51_p4), %s2068_s17, 4  ;;  %s1870_s26 = smul.u32 (%p51_p4), 688, %s157_s24 }
  0x11   : > { %s2137_s29 = scalar_lea.vmem (%p51_p4), %s2700_s1, %s1852_s25 }
  0x12   : > { %v175_v0 = vld [vmem:[%s2137_s29] sm:$0xff] (%p51_p4)  ;;  %v177_v1 = vld [vmem:[%s2137_s29 + $0x8] sm:$0xff] (%p51_p4)  ;;  %s2145_s30 = scalar_lea.vmem (%p51_p4), [#allocation2], %s1870_s26 }
  0x13   : > { %v179_v2 = vld [vmem:[%s2137_s29 + $0x20] sm:$0xff] (%p51_p4)  ;;  %v181_v3 = vld [vmem:[%s2137_s29 + $0x28] sm:$0xff] (%p51_p4)  ;;  %176 = vst [vmem:[%s2145_s30] sm:$0xff] (%p51_p4), %v175_v0  ;;  %178 = vst [vmem:[%s2145_s30 + $0x8] sm:$0xff] (%p51_p4), %v177_v1 }
  0x14   : > { %v183_v4 = vld [vmem:[%s2137_s29 + $0x40] sm:$0xff]  ;;  %v185_v5 = vld [vmem:[%s2137_s29 + $0x48] sm:$0xff]  ;;  %180 = vst [vmem:[%s2145_s30 + $0x10] sm:$0xff] %v179_v2  ;;  %182 = vst [vmem:[%s2145_s30 + $0x18] sm:$0xff] %v181_v3 }
  0x15   : > { %184 = vst [vmem:[%s2145_s30 + $0x20] sm:$0xff] %v183_v4  ;;  %186 = vst [vmem:[%s2145_s30 + $0x28] sm:$0xff] %v185_v5  ;;  %v187_v6 = vld [vmem:[%s2137_s29 + $0x60] sm:$0xff]  ;;  %v189_v7 = vld [vmem:[%s2137_s29 + $0x68] sm:$0xff] }
  0x16   : > { %v191_v8 = vld [vmem:[%s2137_s29 + $0x80] sm:$0xff]  ;;  %188 = vst [vmem:[%s2145_s30 + $0x30] sm:$0xff] %v187_v6  ;;  %190 = vst [vmem:[%s2145_s30 + $0x38] sm:$0xff] %v189_v7  ;;  %v193_v9 = vld [vmem:[%s2137_s29 + $0x88] sm:$0xff] }
  0x17   : > { %192 = vst [vmem:[%s2145_s30 + $0x40] sm:$0xff] %v191_v8  ;;  %v195_v10 = vld [vmem:[%s2137_s29 + $0xa0] sm:$0xff]  ;;  %v197_v11 = vld [vmem:[%s2137_s29 + $0xa8] sm:$0xff]  ;;  %194 = vst [vmem:[%s2145_s30 + $0x48] sm:$0xff] %v193_v9 }
  0x18   : > { %196 = vst [vmem:[%s2145_s30 + $0x50] sm:$0xff] %v195_v10  ;;  %198 = vst [vmem:[%s2145_s30 + $0x58] sm:$0xff] %v197_v11  ;;  %v199_v12 = vld [vmem:[%s2137_s29 + $0xc0] sm:$0xff]  ;;  %v201_v13 = vld [vmem:[%s2137_s29 + $0xc8] sm:$0xff] }
  0x19   : > { %v203_v14 = vld [vmem:[%s2137_s29 + $0xe0] sm:$0xff]  ;;  %200 = vst [vmem:[%s2145_s30 + $0x60] sm:$0xff] %v199_v12  ;;  %202 = vst [vmem:[%s2145_s30 + $0x68] sm:$0xff] %v201_v13  ;;  %v205_v15 = vld [vmem:[%s2137_s29 + $0xe8] sm:$0xff] }
  0x1a   : > { %204 = vst [vmem:[%s2145_s30 + $0x70] sm:$0xff] %v203_v14  ;;  %v207_v16 = vld [vmem:[%s2137_s29 + $0x100] sm:$0xff]  ;;  %v209_v17 = vld [vmem:[%s2137_s29 + $0x108] sm:$0xff]  ;;  %206 = vst [vmem:[%s2145_s30 + $0x78] sm:$0xff] %v205_v15 }
  0x1b   : > { %208 = vst [vmem:[%s2145_s30 + $0x80] sm:$0xff] %v207_v16  ;;  %210 = vst [vmem:[%s2145_s30 + $0x88] sm:$0xff] %v209_v17  ;;  %v211_v18 = vld [vmem:[%s2137_s29 + $0x120] sm:$0xff]  ;;  %v213_v19 = vld [vmem:[%s2137_s29 + $0x128] sm:$0xff] }
  0x1c   : > { %v215_v20 = vld [vmem:[%s2137_s29 + $0x140] sm:$0xff]  ;;  %212 = vst [vmem:[%s2145_s30 + $0x90] sm:$0xff] %v211_v18  ;;  %214 = vst [vmem:[%s2145_s30 + $0x98] sm:$0xff] %v213_v19  ;;  %v217_v21 = vld [vmem:[%s2137_s29 + $0x148] sm:$0xff] }
  0x1d   : > { %216 = vst [vmem:[%s2145_s30 + $0xa0] sm:$0xff] %v215_v20  ;;  %v219_v22 = vld [vmem:[%s2137_s29 + $0x160] sm:$0xff]  ;;  %v221_v23 = vld [vmem:[%s2137_s29 + $0x168] sm:$0xff]  ;;  %218 = vst [vmem:[%s2145_s30 + $0xa8] sm:$0xff] %v217_v21 }
  0x1e   : > { %220 = vst [vmem:[%s2145_s30 + $0xb0] sm:$0xff] %v219_v22  ;;  %222 = vst [vmem:[%s2145_s30 + $0xb8] sm:$0xff] %v221_v23  ;;  %v223_v24 = vld [vmem:[%s2137_s29 + $0x180] sm:$0xff]  ;;  %v225_v25 = vld [vmem:[%s2137_s29 + $0x188] sm:$0xff] }
  0x1f   : > { %v227_v26 = vld [vmem:[%s2137_s29 + $0x1a0] sm:$0xff]  ;;  %224 = vst [vmem:[%s2145_s30 + $0xc0] sm:$0xff] %v223_v24  ;;  %226 = vst [vmem:[%s2145_s30 + $0xc8] sm:$0xff] %v225_v25  ;;  %v229_v27 = vld [vmem:[%s2137_s29 + $0x1a8] sm:$0xff] }
  0x20   : > { %228 = vst [vmem:[%s2145_s30 + $0xd0] sm:$0xff] %v227_v26  ;;  %v231_v28 = vld [vmem:[%s2137_s29 + $0x1c0] sm:$0xff]  ;;  %v233_v29 = vld [vmem:[%s2137_s29 + $0x1c8] sm:$0xff]  ;;  %230 = vst [vmem:[%s2145_s30 + $0xd8] sm:$0xff] %v229_v27 }
  0x21   : > { %232 = vst [vmem:[%s2145_s30 + $0xe0] sm:$0xff] %v231_v28  ;;  %234 = vst [vmem:[%s2145_s30 + $0xe8] sm:$0xff] %v233_v29  ;;  %v235_v30 = vld [vmem:[%s2137_s29 + $0x1e0] sm:$0xff]  ;;  %v237_v31 = vld [vmem:[%s2137_s29 + $0x1e8] sm:$0xff] }
  0x22   : > { %v239_v32 = vld [vmem:[%s2137_s29 + $0x200] sm:$0xff]  ;;  %236 = vst [vmem:[%s2145_s30 + $0xf0] sm:$0xff] %v235_v30  ;;  %238 = vst [vmem:[%s2145_s30 + $0xf8] sm:$0xff] %v237_v31  ;;  %v241_v33 = vld [vmem:[%s2137_s29 + $0x208] sm:$0xff] }
  0x23   : > { %240 = vst [vmem:[%s2145_s30 + $0x100] sm:$0xff] %v239_v32  ;;  %v243_v34 = vld [vmem:[%s2137_s29 + $0x220] sm:$0xff]  ;;  %v245_v35 = vld [vmem:[%s2137_s29 + $0x228] sm:$0xff]  ;;  %242 = vst [vmem:[%s2145_s30 + $0x108] sm:$0xff] %v241_v33 }
  0x24   : > { %244 = vst [vmem:[%s2145_s30 + $0x110] sm:$0xff] %v243_v34  ;;  %246 = vst [vmem:[%s2145_s30 + $0x118] sm:$0xff] %v245_v35  ;;  %v247_v36 = vld [vmem:[%s2137_s29 + $0x240] sm:$0xff]  ;;  %v249_v37 = vld [vmem:[%s2137_s29 + $0x248] sm:$0xff] }
  0x25   : > { %v251_v38 = vld [vmem:[%s2137_s29 + $0x260] sm:$0xff]  ;;  %248 = vst [vmem:[%s2145_s30 + $0x120] sm:$0xff] %v247_v36  ;;  %250 = vst [vmem:[%s2145_s30 + $0x128] sm:$0xff] %v249_v37  ;;  %v253_v39 = vld [vmem:[%s2137_s29 + $0x268] sm:$0xff] }
  0x26   : > { %252 = vst [vmem:[%s2145_s30 + $0x130] sm:$0xff] %v251_v38  ;;  %v255_v40 = vld [vmem:[%s2137_s29 + $0x280] sm:$0xff]  ;;  %v257_v41 = vld [vmem:[%s2137_s29 + $0x288] sm:$0xff]  ;;  %254 = vst [vmem:[%s2145_s30 + $0x138] sm:$0xff] %v253_v39 }
  0x27   : > { %256 = vst [vmem:[%s2145_s30 + $0x140] sm:$0xff] %v255_v40  ;;  %258 = vst [vmem:[%s2145_s30 + $0x148] sm:$0xff] %v257_v41  ;;  %v259_v42 = vld [vmem:[%s2137_s29 + $0x2a0] sm:$0xff]  ;;  %v261_v43 = vld [vmem:[%s2137_s29 + $0x2a8] sm:$0xff] }
  0x28   : > { %v263_v44 = vld [vmem:[%s2137_s29 + $0x2c0] sm:$0xff]  ;;  %260 = vst [vmem:[%s2145_s30 + $0x150] sm:$0xff] %v259_v42  ;;  %262 = vst [vmem:[%s2145_s30 + $0x158] sm:$0xff] %v261_v43  ;;  %v265_v45 = vld [vmem:[%s2137_s29 + $0x2c8] sm:$0xff] }
  0x29   : > { %264 = vst [vmem:[%s2145_s30 + $0x160] sm:$0xff] %v263_v44  ;;  %v267_v46 = vld [vmem:[%s2137_s29 + $0x2e0] sm:$0xff]  ;;  %v269_v47 = vld [vmem:[%s2137_s29 + $0x2e8] sm:$0xff]  ;;  %266 = vst [vmem:[%s2145_s30 + $0x168] sm:$0xff] %v265_v45 }
  0x2a   : > { %268 = vst [vmem:[%s2145_s30 + $0x170] sm:$0xff] %v267_v46  ;;  %270 = vst [vmem:[%s2145_s30 + $0x178] sm:$0xff] %v269_v47  ;;  %v271_v48 = vld [vmem:[%s2137_s29 + $0x300] sm:$0xff]  ;;  %v273_v49 = vld [vmem:[%s2137_s29 + $0x308] sm:$0xff] }
  0x2b   : > { %v275_v50 = vld [vmem:[%s2137_s29 + $0x320] sm:$0xff]  ;;  %272 = vst [vmem:[%s2145_s30 + $0x180] sm:$0xff] %v271_v48  ;;  %274 = vst [vmem:[%s2145_s30 + $0x188] sm:$0xff] %v273_v49  ;;  %v277_v51 = vld [vmem:[%s2137_s29 + $0x328] sm:$0xff] }
  0x2c   : > { %276 = vst [vmem:[%s2145_s30 + $0x190] sm:$0xff] %v275_v50  ;;  %v279_v52 = vld [vmem:[%s2137_s29 + $0x340] sm:$0xff]  ;;  %v281_v53 = vld [vmem:[%s2137_s29 + $0x348] sm:$0xff]  ;;  %278 = vst [vmem:[%s2145_s30 + $0x198] sm:$0xff] %v277_v51 }
  0x2d   : > { %280 = vst [vmem:[%s2145_s30 + $0x1a0] sm:$0xff] %v279_v52  ;;  %282 = vst [vmem:[%s2145_s30 + $0x1a8] sm:$0xff] %v281_v53  ;;  %v283_v54 = vld [vmem:[%s2137_s29 + $0x360] sm:$0xff]  ;;  %v285_v55 = vld [vmem:[%s2137_s29 + $0x368] sm:$0xff] }
  0x2e   : > { %v287_v56 = vld [vmem:[%s2137_s29 + $0x380] sm:$0xff]  ;;  %284 = vst [vmem:[%s2145_s30 + $0x1b0] sm:$0xff] %v283_v54  ;;  %286 = vst [vmem:[%s2145_s30 + $0x1b8] sm:$0xff] %v285_v55  ;;  %v289_v57 = vld [vmem:[%s2137_s29 + $0x388] sm:$0xff] }
  0x2f   : > { %288 = vst [vmem:[%s2145_s30 + $0x1c0] sm:$0xff] %v287_v56  ;;  %v291_v58 = vld [vmem:[%s2137_s29 + $0x3a0] sm:$0xff]  ;;  %v293_v59 = vld [vmem:[%s2137_s29 + $0x3a8] sm:$0xff]  ;;  %290 = vst [vmem:[%s2145_s30 + $0x1c8] sm:$0xff] %v289_v57 }
  0x30   : > { %292 = vst [vmem:[%s2145_s30 + $0x1d0] sm:$0xff] %v291_v58  ;;  %294 = vst [vmem:[%s2145_s30 + $0x1d8] sm:$0xff] %v293_v59  ;;  %v295_v60 = vld [vmem:[%s2137_s29 + $0x3c0] sm:$0xff]  ;;  %v297_v61 = vld [vmem:[%s2137_s29 + $0x3c8] sm:$0xff] }
  0x31   : > { %v299_v62 = vld [vmem:[%s2137_s29 + $0x3e0] sm:$0xff]  ;;  %296 = vst [vmem:[%s2145_s30 + $0x1e0] sm:$0xff] %v295_v60  ;;  %298 = vst [vmem:[%s2145_s30 + $0x1e8] sm:$0xff] %v297_v61  ;;  %v301_v63 = vld [vmem:[%s2137_s29 + $0x3e8] sm:$0xff] }
  0x32   : > { %300 = vst [vmem:[%s2145_s30 + $0x1f0] sm:$0xff] %v299_v62  ;;  %v303_v0 = vld [vmem:[%s2137_s29 + $0x400] sm:$0xff]  ;;  %v305_v1 = vld [vmem:[%s2137_s29 + $0x408] sm:$0xff]  ;;  %302 = vst [vmem:[%s2145_s30 + $0x1f8] sm:$0xff] %v301_v63 }
  0x33   : > { %304 = vst [vmem:[%s2145_s30 + $0x200] sm:$0xff] %v303_v0  ;;  %306 = vst [vmem:[%s2145_s30 + $0x208] sm:$0xff] %v305_v1  ;;  %v307_v2 = vld [vmem:[%s2137_s29 + $0x420] sm:$0xff]  ;;  %v309_v3 = vld [vmem:[%s2137_s29 + $0x428] sm:$0xff] }
  0x34   : > { %v311_v4 = vld [vmem:[%s2137_s29 + $0x440] sm:$0xff]  ;;  %308 = vst [vmem:[%s2145_s30 + $0x210] sm:$0xff] %v307_v2  ;;  %310 = vst [vmem:[%s2145_s30 + $0x218] sm:$0xff] %v309_v3  ;;  %v313_v5 = vld [vmem:[%s2137_s29 + $0x448] sm:$0xff] }
  0x35   : > { %312 = vst [vmem:[%s2145_s30 + $0x220] sm:$0xff] %v311_v4  ;;  %v315_v6 = vld [vmem:[%s2137_s29 + $0x460] sm:$0xff]  ;;  %v317_v7 = vld [vmem:[%s2137_s29 + $0x468] sm:$0xff]  ;;  %314 = vst [vmem:[%s2145_s30 + $0x228] sm:$0xff] %v313_v5 }
  0x36   : > { %316 = vst [vmem:[%s2145_s30 + $0x230] sm:$0xff] %v315_v6  ;;  %318 = vst [vmem:[%s2145_s30 + $0x238] sm:$0xff] %v317_v7  ;;  %v319_v8 = vld [vmem:[%s2137_s29 + $0x480] sm:$0xff]  ;;  %v321_v9 = vld [vmem:[%s2137_s29 + $0x488] sm:$0xff] }
  0x37   : > { %v323_v10 = vld [vmem:[%s2137_s29 + $0x4a0] sm:$0xff]  ;;  %320 = vst [vmem:[%s2145_s30 + $0x240] sm:$0xff] %v319_v8  ;;  %322 = vst [vmem:[%s2145_s30 + $0x248] sm:$0xff] %v321_v9  ;;  %v325_v11 = vld [vmem:[%s2137_s29 + $0x4a8] sm:$0xff] }
  0x38   : > { %324 = vst [vmem:[%s2145_s30 + $0x250] sm:$0xff] %v323_v10  ;;  %v327_v12 = vld [vmem:[%s2137_s29 + $0x4c0] sm:$0xff]  ;;  %v329_v13 = vld [vmem:[%s2137_s29 + $0x4c8] sm:$0xff]  ;;  %326 = vst [vmem:[%s2145_s30 + $0x258] sm:$0xff] %v325_v11 }
  0x39   : > { %328 = vst [vmem:[%s2145_s30 + $0x260] sm:$0xff] %v327_v12  ;;  %330 = vst [vmem:[%s2145_s30 + $0x268] sm:$0xff] %v329_v13  ;;  %v331_v14 = vld [vmem:[%s2137_s29 + $0x4e0] sm:$0xff]  ;;  %v333_v15 = vld [vmem:[%s2137_s29 + $0x4e8] sm:$0xff] }
  0x3a   : > { %v335_v16 = vld [vmem:[%s2137_s29 + $0x500] sm:$0xff]  ;;  %332 = vst [vmem:[%s2145_s30 + $0x270] sm:$0xff] %v331_v14  ;;  %334 = vst [vmem:[%s2145_s30 + $0x278] sm:$0xff] %v333_v15  ;;  %v337_v17 = vld [vmem:[%s2137_s29 + $0x508] sm:$0xff] }
  0x3b   : > { %336 = vst [vmem:[%s2145_s30 + $0x280] sm:$0xff] %v335_v16  ;;  %v339_v18 = vld [vmem:[%s2137_s29 + $0x520] sm:$0xff]  ;;  %v341_v19 = vld [vmem:[%s2137_s29 + $0x528] sm:$0xff]  ;;  %338 = vst [vmem:[%s2145_s30 + $0x288] sm:$0xff] %v337_v17 }
  0x3c   : > { %340 = vst [vmem:[%s2145_s30 + $0x290] sm:$0xff] %v339_v18  ;;  %342 = vst [vmem:[%s2145_s30 + $0x298] sm:$0xff] %v341_v19  ;;  %v343_v20 = vld [vmem:[%s2137_s29 + $0x540] sm:$0xff]  ;;  %v345_v21 = vld [vmem:[%s2137_s29 + $0x548] sm:$0xff] }
  0x3d   : > { %344 = vst [vmem:[%s2145_s30 + $0x2a0] sm:$0xff] %v343_v20  ;;  %346 = vst [vmem:[%s2145_s30 + $0x2a8] sm:$0xff] %v345_v21 }
  0x3e PF: > { %p1721_p7 = scmp.ge.s32.totalorder %s2068_s17, 1  ;;  %p351_p8 = scmp.lt.s32.totalorder %s2068_s17, 3 }
  0x40   : > { %p352_p9 = pnand %p1721_p7, %p351_p8 }
  0x41   : > { %s358_s5 = sand.u32 (!%p352_p9), 1, %s2060_s15  }
  0x42   : > { %355 = sbr.rel (%p352_p9) target bundleno = 412 (0x19c), region = 55 }
  0x43   : > { %s1871_s6 = smul.u32 (!%p352_p9), 688, %s358_s5 }
  0x45   : > { %s2326_s9 = scalar_lea.vmem (!%p352_p9), [#allocation2], %s1871_s6 }
  0x47   : > { %vm990_vm0 = vcmask 1042432   ;;  %v2070_v22 = vmov 0   ;;  %vm991_vm1 = vcmask 1043456   ;;  %v2071_v23 = vmov 65535   ;;  %v2324_v25 = vld [vmem:[%s2699_s0 + $0x4] ss:$12 sps:$4 sm:$0xff]  }
  0x48   : > { %1111 = vmatprep.mubr.bf16.mxu1 %v2070_v22  ;;  %1898 = vset.pattern.permute.xlu0 %v2070_v22  ;;  %v992_v24 = vsel %vm990_vm0, 4294967295, %v2071_v23  ;;  %v1900_v26 = vld [vmem:[%s2326_s9 + $0xe4] ss:$16 sps:$4 sm:$0xff]   ;;  %v1902_v27 = vld [vmem:[%s2326_s9 + $0xe0] ss:$16 sps:$4 sm:$0xff]   ;;  %vm977_vm2 = vcmask 711680  }
  0x49   : > { %1899 = vset.pattern.permute.xlu1 %v2070_v22  ;;  %v485_v28 = vld [vmem:[%s2326_s9 + $0x2a0] sm:$0xff]  ;;  %v2331_v29 = vsel %vm991_vm1, %v992_v24, 0  ;;  %1038 = vmatprep.mubr.bf16.mxu0 %v2324_v25  ;;  %v1940_v56 = vld [vmem:[%s2326_s9 + $0xec] ss:$16 sps:$4 sm:$0xff]   ;;  %v1938_v59 = vld [vmem:[%s2326_s9 + $0xe8] ss:$16 sps:$4 sm:$0xff]  }
  0x4a   : > { %1006 = vmatprep.subr.bf16.mxu0 %v1900_v26  ;;  %v1820_v30 = vcombine.high %v485_v28, %v485_v28  ;;  %v1904_v31 = vld [vmem:[%s2326_s9 + $0xc4] ss:$16 sps:$4 sm:$0xff]   ;;  %v1819_v32 = vcombine.low %v485_v28, %v485_v28  ;;  %v1907_v33 = vld [vmem:[%s2326_s9 + $0xc0] ss:$16 sps:$4 sm:$0xff]   ;;  %v1947_v61 = vld [vmem:[%s2326_s9 + $0xcc] ss:$16 sps:$4 sm:$0xff]  }
  0x4b   : > { %1007 = vmatpush1.bf16.msra.mxu0 %v1902_v27  ;;  %v1908_v34 = vld [vmem:[%s2326_s9 + $0x284] ss:$16 sps:$4 sm:$0xff]   ;;  %v1912_v38 = vld [vmem:[%s2326_s9 + $0x280] ss:$16 sps:$4 sm:$0xff]   ;;  %v1945_v63 = vld [vmem:[%s2326_s9 + $0xc8] ss:$16 sps:$4 sm:$0xff]  }
  0x4c   : > { %v998_v35 = vand.u32 %v1820_v30, %v2331_v29  ;;  %1008 = vmatprep.subr.bf16.mxu0 %v1904_v31  ;;  %v995_v36 = vand.u32 %v1819_v32, %v2331_v29  ;;  %v1910_v37 = vld [vmem:[%s2326_s9 + $0xa4] ss:$16 sps:$4 sm:$0xff]   ;;  %v1913_v39 = vld [vmem:[%s2326_s9 + $0xa0] ss:$16 sps:$4 sm:$0xff]   ;;  %v1953_v1 = vld [vmem:[%s2326_s9 + $0xac] ss:$16 sps:$4 sm:$0xff]  }
  0x4d   : > { %v1914_v40 = vld [vmem:[%s2326_s9 + $0x264] ss:$16 sps:$4 sm:$0xff]   ;;  %v1918_v42 = vld [vmem:[%s2326_s9 + $0x260] ss:$16 sps:$4 sm:$0xff]   ;;  %v1951_v3 = vld [vmem:[%s2326_s9 + $0xa8] ss:$16 sps:$4 sm:$0xff]  }
  0x4e   : > { %1083 = vmatprep.subr.bf16.mxu1 %v998_v35  ;;  %v1916_v41 = vld [vmem:[%s2326_s9 + $0x84] ss:$16 sps:$4 sm:$0xff]   ;;  %v1919_v43 = vld [vmem:[%s2326_s9 + $0x80] ss:$16 sps:$4 sm:$0xff]   ;;  %v1959_v5 = vld [vmem:[%s2326_s9 + $0x8c] ss:$16 sps:$4 sm:$0xff]  }
  0x4f   : > { %1084 = vmatpush1.bf16.msra.mxu1 %v995_v36  ;;  %1009 = vmatpush1.bf16.msra.mxu0 %v1907_v33  ;;  %v1920_v44 = vld [vmem:[%s2326_s9 + $0x244] ss:$16 sps:$4 sm:$0xff]   ;;  %v1924_v46 = vld [vmem:[%s2326_s9 + $0x240] ss:$16 sps:$4 sm:$0xff]   ;;  %v1957_v7 = vld [vmem:[%s2326_s9 + $0x88] ss:$16 sps:$4 sm:$0xff]  }
  0x50   : > { %1085 = vmatprep.subr.bf16.mxu1 %v1908_v34  ;;  %1010 = vmatprep.subr.bf16.mxu0 %v1910_v37  ;;  %v1922_v45 = vld [vmem:[%s2326_s9 + $0x64] ss:$16 sps:$4 sm:$0xff]   ;;  %v1925_v47 = vld [vmem:[%s2326_s9 + $0x60] ss:$16 sps:$4 sm:$0xff]   ;;  %v1965_v9 = vld [vmem:[%s2326_s9 + $0x6c] ss:$16 sps:$4 sm:$0xff]  }
  0x51   : > { %v1926_v48 = vld [vmem:[%s2326_s9 + $0x224] ss:$16 sps:$4 sm:$0xff]   ;;  %v1930_v50 = vld [vmem:[%s2326_s9 + $0x220] ss:$16 sps:$4 sm:$0xff]   ;;  %v1963_v11 = vld [vmem:[%s2326_s9 + $0x68] ss:$16 sps:$4 sm:$0xff]  }
  0x52   : > { %v1928_v49 = vld [vmem:[%s2326_s9 + $0x44] ss:$16 sps:$4 sm:$0xff]   ;;  %v1931_v51 = vld [vmem:[%s2326_s9 + $0x40] ss:$16 sps:$4 sm:$0xff]   ;;  %v1971_v14 = vld [vmem:[%s2326_s9 + $0x4c] ss:$16 sps:$4 sm:$0xff]  }
  0x53   : > { %1086 = vmatpush1.bf16.msra.mxu1 %v1912_v38  ;;  %1011 = vmatpush1.bf16.msra.mxu0 %v1913_v39  ;;  %v1932_v52 = vld [vmem:[%s2326_s9 + $0x204] ss:$16 sps:$4 sm:$0xff]   ;;  %v1936_v54 = vld [vmem:[%s2326_s9 + $0x200] ss:$16 sps:$4 sm:$0xff]   ;;  %v1969_v16 = vld [vmem:[%s2326_s9 + $0x48] ss:$16 sps:$4 sm:$0xff]  }
  0x54   : > { %1087 = vmatprep.subr.bf16.mxu1 %v1914_v40  ;;  %1012 = vmatprep.subr.bf16.mxu0 %v1916_v41  ;;  %v1934_v53 = vld [vmem:[%s2326_s9 + $0x24] ss:$16 sps:$4 sm:$0xff]   ;;  %v1937_v55 = vld [vmem:[%s2326_s9 + $0x20] ss:$16 sps:$4 sm:$0xff]   ;;  %v1977_v18 = vld [vmem:[%s2326_s9 + $0x2c] ss:$16 sps:$4 sm:$0xff]  }
  0x55   : > { %v1941_v57 = vld [vmem:[%s2326_s9 + $0x4] ss:$16 sps:$4 sm:$0xff]   ;;  %v1944_v60 = vld [vmem:[%s2326_s9] ss:$16 sps:$4 sm:$0xff]   ;;  %v1975_v20 = vld [vmem:[%s2326_s9 + $0x28] ss:$16 sps:$4 sm:$0xff]  }
  0x56   : > { %v2363_v58 = vld [vmem:[%s2699_s0 + $0x8] ss:$12 sps:$4 sm:$0xff]   ;;  %v1950_v0 = vld [vmem:[%s2326_s9 + $0x1e0] ss:$16 sps:$4 sm:$0xff]   ;;  %v2404_v21 = vld [vmem:[%s2699_s0 + $0x38] ss:$12 sps:$4 sm:$0xff]  }
  0x57   : > { %1088 = vmatpush1.bf16.msra.mxu1 %v1918_v42  ;;  %1013 = vmatpush1.bf16.msra.mxu0 %v1919_v43  ;;  %v1948_v62 = vld [vmem:[%s2326_s9 + $0x1e4] ss:$16 sps:$4 sm:$0xff]   ;;  %v1956_v4 = vld [vmem:[%s2326_s9 + $0x1c0] ss:$16 sps:$4 sm:$0xff]   ;;  %v1983_v24 = vld [vmem:[%s2326_s9 + $0xc] ss:$16 sps:$4 sm:$0xff]  }
  0x58   : > { %1089 = vmatprep.subr.bf16.mxu1 %v1920_v44  ;;  %1014 = vmatprep.subr.bf16.mxu0 %v1922_v45  ;;  %v1954_v2 = vld [vmem:[%s2326_s9 + $0x1c4] ss:$16 sps:$4 sm:$0xff]   ;;  %v1962_v8 = vld [vmem:[%s2326_s9 + $0x1a0] ss:$16 sps:$4 sm:$0xff]   ;;  %v1981_v27 = vld [vmem:[%s2326_s9 + $0x8] ss:$16 sps:$4 sm:$0xff]  }
  0x59   : > { %v1960_v6 = vld [vmem:[%s2326_s9 + $0x1a4] ss:$16 sps:$4 sm:$0xff]   ;;  %v1968_v12 = vld [vmem:[%s2326_s9 + $0x180] ss:$16 sps:$4 sm:$0xff]   ;;  %v486_v28 = vld [vmem:[%s2326_s9 + $0x2a8] sm:$0xff] }
  0x5a   : > { %v1966_v10 = vld [vmem:[%s2326_s9 + $0x184] ss:$16 sps:$4 sm:$0xff]   ;;  %v2389_v13 = vld [vmem:[%s2699_s0 + $0x20] ss:$12 sps:$4 sm:$0xff]   ;;  %v1822_v33 = vcombine.high %v486_v28, %v486_v28  ;;  %v2420_v34 = vld [vmem:[%s2699_s0 + $0x50] ss:$12 sps:$4 sm:$0xff]   ;;  %v1821_v37 = vcombine.low %v486_v28, %v486_v28 }
  0x5b   : > { %1090 = vmatpush1.bf16.msra.mxu1 %v1924_v46  ;;  %1015 = vmatpush1.bf16.msra.mxu0 %v1925_v47  ;;  %v1972_v15 = vld [vmem:[%s2326_s9 + $0x164] ss:$16 sps:$4 sm:$0xff]   ;;  %v1974_v17 = vld [vmem:[%s2326_s9 + $0x160] ss:$16 sps:$4 sm:$0xff]   ;;  %v1989_v31 = vld [vmem:[%s2326_s9 + $0x1ec] ss:$16 sps:$4 sm:$0xff]  }
  0x5c   : > { %1091 = vmatprep.subr.bf16.mxu1 %v1926_v48  ;;  %1016 = vmatprep.subr.bf16.mxu0 %v1928_v49  ;;  %v1978_v19 = vld [vmem:[%s2326_s9 + $0x144] ss:$16 sps:$4 sm:$0xff]   ;;  %v1980_v23 = vld [vmem:[%s2326_s9 + $0x140] ss:$16 sps:$4 sm:$0xff]   ;;  %v1987_v35 = vld [vmem:[%s2326_s9 + $0x1e8] ss:$16 sps:$4 sm:$0xff]   ;;  %v1004_v39 = vand.u32 %v1822_v33, %v2331_v29  ;;  %v1001_v42 = vand.u32 %v1821_v37, %v2331_v29 }
  0x5d   : > { %v1984_v26 = vld [vmem:[%s2326_s9 + $0x124] ss:$16 sps:$4 sm:$0xff]   ;;  %v1986_v30 = vld [vmem:[%s2326_s9 + $0x120] ss:$16 sps:$4 sm:$0xff]   ;;  %v1998_v38 = vld [vmem:[%s2326_s9 + $0x1cc] ss:$16 sps:$4 sm:$0xff]  }
  0x5e   : > { %v1990_v32 = vld [vmem:[%s2326_s9 + $0x104] ss:$16 sps:$4 sm:$0xff]   ;;  %v1992_v36 = vld [vmem:[%s2326_s9 + $0x100] ss:$16 sps:$4 sm:$0xff]   ;;  %v1996_v41 = vld [vmem:[%s2326_s9 + $0x1c8] ss:$16 sps:$4 sm:$0xff]  }
  0x5f   : > { %1092 = vmatpush1.bf16.msra.mxu1 %v1930_v50  ;;  %1017 = vmatpush1.bf16.msra.mxu0 %v1931_v51  ;;  %v2431_v40 = vld [vmem:[%s2699_s0] ss:$12 sps:$4 sm:$0xff]   ;;  %v1300_v44 = vld [vmem:[%s2701_s2 + $0x10] sm:$0xff]  ;;  %v2447_v46 = vld [vmem:[%s2699_s0 + $0x1c] ss:$12 sps:$4 sm:$0xff]  }
  0x60   : > { %1093 = vmatprep.subr.bf16.mxu1 %v1932_v52  ;;  %1018 = vmatprep.subr.bf16.mxu0 %v1934_v53  ;;  %v1298_v43 = vld [vmem:[%s2701_s2] sm:$0xff]  ;;  %v2007_v45 = vld [vmem:[%s2326_s9 + $0x28c] ss:$16 sps:$4 sm:$0xff]   ;;  %v2002_v47 = vld [vmem:[%s2326_s9 + $0x1a8] ss:$16 sps:$4 sm:$0xff]  }
  0x61   : > { %1308 = vperm.xlu0 %1898, %v1298_v43   ;;  %1318 = vperm.xlu1 %1899, %v1300_v44   ;;  %v1299_v29 = vld [vmem:[%s2701_s2 + $0x8] sm:$0xff]  ;;  %v1301_v49 = vld [vmem:[%s2701_s2 + $0x18] sm:$0xff]  ;;  %v1302_v53 = vld [vmem:[%s2701_s2 + $0x20] sm:$0xff] }
  0x62   : > { %v2005_v48 = vld [vmem:[%s2326_s9 + $0x288] ss:$16 sps:$4 sm:$0xff]   ;;  %v2012_v50 = vld [vmem:[%s2326_s9 + $0x18c] ss:$16 sps:$4 sm:$0xff]  }
  0x63   : > { %1094 = vmatpush1.bf16.msra.mxu1 %v1936_v54  ;;  %1019 = vmatpush1.bf16.msra.mxu0 %v1937_v55  ;;  %v2020_v51 = vld [vmem:[%s2326_s9 + $0x26c] ss:$16 sps:$4 sm:$0xff]   ;;  %v2464_v52 = vld [vmem:[%s2699_s0 + $0x18] ss:$12 sps:$4 sm:$0xff]  }
  0x64   : > { %1152 = vmatprep.subr.bf16.mxu1 %v1940_v56  ;;  %1020 = vmatprep.subr.bf16.mxu0 %v1941_v57  ;;  %v2010_v54 = vld [vmem:[%s2326_s9 + $0x188] ss:$16 sps:$4 sm:$0xff]   ;;  %v2017_v57 = vld [vmem:[%s2326_s9 + $0x16c] ss:$16 sps:$4 sm:$0xff]  }
  0x65   : > { %1313 = vperm.xlu0 %1898, %v1299_v29   ;;  %1323 = vperm.xlu1 %1899, %v1301_v49   ;;  %v2018_v55 = vld [vmem:[%s2326_s9 + $0x268] ss:$16 sps:$4 sm:$0xff]  }
  0x66   : > { %1823 = vmatmul.mubr.msk.bf16.vlgmr.msra.gmra.mxu1 %vm977_vm2, %v2363_v58  ;;  %v1303_v56 = vld [vmem:[%s2701_s2 + $0x28] sm:$0xff] }
  0x67   : > { %1153 = vmatpush1.bf16.msra.mxu1 %v1938_v59  ;;  %1021 = vmatpush1.bf16.msra.mxu0 %v1944_v60  ;;  %v2478_v59 = vld [vmem:[%s2699_s0 + $0x34] ss:$12 sps:$4 sm:$0xff]   ;;  %v2029_v60 = vld [vmem:[%s2326_s9 + $0x24c] ss:$16 sps:$4 sm:$0xff]  }
  0x68   : > { %1154 = vmatprep.subr.bf16.mxu1 %v1947_v61  ;;  %1022 = vmatprep.subr.bf16.mxu0 %v1948_v62  ;;  %v1304_v61 = vld [vmem:[%s2701_s2 + $0x30] sm:$0xff]  ;;  %v2015_v62 = vld [vmem:[%s2326_s9 + $0x168] ss:$16 sps:$4 sm:$0xff]  }
  0x69   : > { %1121 = vmatprep.mubr.bf16.mxu1 %v2070_v22  ;;  %1328 = vperm.xlu0 %1898, %v1302_v53  }
  0x6a   : > { %1333 = vperm.xlu1 %1899, %v1303_v56  }
  0x6b   : > { %1155 = vmatpush1.bf16.msra.mxu1 %v1945_v63  ;;  %1023 = vmatpush2.bf16.msra.mxu0 %v1950_v0  ;;  %v2027_v63 = vld [vmem:[%s2326_s9 + $0x248] ss:$16 sps:$4 sm:$0xff]  }
  0x6c   : > { %1156 = vmatprep.subr.bf16.mxu1 %v1953_v1  ;;  %1024 = vmatprep.subr.bf16.mxu0 %v1954_v2  ;;  %v1305_v0 = vld [vmem:[%s2701_s2 + $0x38] sm:$0xff] }
  0x6d   : > { %v2025_v1 = vld [vmem:[%s2326_s9 + $0x14c] ss:$16 sps:$4 sm:$0xff]   ;;  %1338 = vperm.xlu0 %1898, %v1304_v61  }
  0x6e   : > { %1824 = vmatmul.mubr.msk.bf16.gmra.mxu1 %vm977_vm2, %v2389_v13  ;;  %v2036_v2 = vld [vmem:[%s2326_s9 + $0x22c] ss:$16 sps:$4 sm:$0xff]   ;;  %1343 = vperm.xlu1 %1899, %v1305_v0  }
  0x6f   : > { %1157 = vmatpush1.bf16.msra.mxu1 %v1951_v3  ;;  %1025 = vmatpush2.bf16.msra.mxu0 %v1956_v4  ;;  %v2026_v3 = vld [vmem:[%s2699_s0 + $0x30] ss:$12 sps:$4 sm:$0xff]   ;;  %v1378_v4 = vld [vmem:[%s2702_s3] sm:$0xff] }
  0x70   : > { %1158 = vmatprep.subr.bf16.mxu1 %v1959_v5  ;;  %1026 = vmatprep.subr.bf16.mxu0 %v1960_v6  ;;  %v2023_v5 = vld [vmem:[%s2326_s9 + $0x148] ss:$16 sps:$4 sm:$0xff]  }
  0x71   : > { %1131 = vmatprep.mubr.bf16.mxu1 %v2070_v22  ;;  %v2037_v6 = vld [vmem:[%s2699_s0 + $0x4c] ss:$12 sps:$4 sm:$0xff]   ;;  %1388 = vperm.xlu0 %1898, %v1378_v4  }
  0x73   : > { %1159 = vmatpush1.bf16.msra.mxu1 %v1957_v7  ;;  %1027 = vmatpush2.bf16.msra.mxu0 %v1962_v8  ;;  %v1379_v7 = vld [vmem:[%s2702_s3 + $0x8] sm:$0xff] }
  0x74   : > { %1160 = vmatprep.subr.bf16.mxu1 %v1965_v9  ;;  %1028 = vmatprep.subr.bf16.mxu0 %v1966_v10  ;;  %v2033_v8 = vld [vmem:[%s2326_s9 + $0x12c] ss:$16 sps:$4 sm:$0xff]   ;;  %v2034_v9 = vld [vmem:[%s2326_s9 + $0x228] ss:$16 sps:$4 sm:$0xff]  }
  0x75   : > { %v2045_v10 = vld [vmem:[%s2326_s9 + $0x20c] ss:$16 sps:$4 sm:$0xff]   ;;  %1393 = vperm.xlu1 %1899, %v1379_v7  }
  0x76   : > { %1825 = vmatmul.mubr.msk.bf16.gmra.mxu1 %vm977_vm2, %v2404_v21 }
  0x77   : > { %1161 = vmatpush1.bf16.msra.mxu1 %v1963_v11  ;;  %1029 = vmatpush2.bf16.msra.mxu0 %v1968_v12  ;;  %v1380_v11 = vld [vmem:[%s2702_s3 + $0x10] sm:$0xff]  ;;  %v2031_v12 = vld [vmem:[%s2326_s9 + $0x128] ss:$16 sps:$4 sm:$0xff]  }
  0x78   : > { %1162 = vmatprep.subr.bf16.mxu1 %v1971_v14  ;;  %1030 = vmatprep.subr.bf16.mxu0 %v1972_v15  ;;  %v1381_v14 = vld [vmem:[%s2702_s3 + $0x18] sm:$0xff] }
  0x79   : > { %1141 = vmatprep.mubr.bf16.mxu1 %v2070_v22  ;;  %v2041_v15 = vld [vmem:[%s2326_s9 + $0x10c] ss:$16 sps:$4 sm:$0xff]   ;;  %1398 = vperm.xlu0 %1898, %v1380_v11  }
  0x7a   : > { %1403 = vperm.xlu1 %1899, %v1381_v14  }
  0x7b   : > { %1163 = vmatpush1.bf16.msra.mxu1 %v1969_v16  ;;  %1031 = vmatpush2.bf16.msra.mxu0 %v1974_v17  ;;  %v2043_v16 = vld [vmem:[%s2326_s9 + $0x208] ss:$16 sps:$4 sm:$0xff]  }
  0x7c   : > { %1164 = vmatprep.subr.bf16.mxu1 %v1977_v18  ;;  %1032 = vmatprep.subr.bf16.mxu0 %v1978_v19  ;;  %v2042_v17 = vld [vmem:[%s2699_s0 + $0x48] ss:$12 sps:$4 sm:$0xff]   ;;  %v1382_v18 = vld [vmem:[%s2702_s3 + $0x20] sm:$0xff] }
  0x7d   : > { %v2039_v19 = vld [vmem:[%s2326_s9 + $0x108] ss:$16 sps:$4 sm:$0xff]   ;;  %1408 = vperm.xlu0 %1898, %v1382_v18  }
  0x7e   : > { %1826 = vmatmul.mubr.msk.bf16.gmra.mxu1 %vm977_vm2, %v2420_v34 }
  0x7f   : > { %1165 = vmatpush1.bf16.msra.mxu1 %v1975_v20  ;;  %1033 = vmatpush2.bf16.msra.mxu0 %v1980_v23  ;;  %v1383_v20 = vld [vmem:[%s2702_s3 + $0x28] sm:$0xff]  ;;  %v1384_v23 = vld [vmem:[%s2702_s3 + $0x30] sm:$0xff] }
  0x80   : > { %1166 = vmatprep.subr.bf16.mxu1 %v1983_v24  ;;  %1034 = vmatprep.subr.bf16.mxu0 %v1984_v26  ;;  %v1385_v24 = vld [vmem:[%s2702_s3 + $0x38] sm:$0xff] }
  0x81   : > { %1184 = vmatprep.mubr.bf16.mxu1 %v2324_v25  ;;  %v2004_v25 = vld [vmem:[%s2326_s9 + $0x1ac] ss:$16 sps:$4 sm:$0xff]   ;;  %1413 = vperm.xlu1 %1899, %v1383_v20   ;;  %s1722_s9 = sshll.u32 %s358_s5, 7  ;;  %s1869_s5 = sshll.u32 (%p2127_p5), %s1715_s18, 4 }
  0x82   : > { %1418 = vperm.xlu0 %1898, %v1384_v23   ;;  %s2583_s15 = scalar_lea.vmem [#allocation3], %s1722_s9  ;;  %s1611_s23 = scalar_lea.vmem (%p2127_p5), %s2703_s4, %s1869_s5 }
  0x83   : > { %1167 = vmatpush1.bf16.msra.mxu1 %v1981_v27  ;;  %1035 = vmatpush2.bf16.msra.mxu0 %v1986_v30 }
  0x84   : > { %1168 = vmatprep.subr.bf16.mxu1 %v1989_v31  ;;  %1036 = vmatprep.subr.bf16.mxu0 %v1990_v32 }
  0x85   : > { %1423 = vperm.xlu1 %1899, %v1385_v24  }
  0x87   : > { %1169 = vmatpush2.bf16.msra.mxu1 %v1987_v35  ;;  %1037 = vmatpush2.bf16.msra.mxu0 %v1992_v36 }
  0x88   : > { %1170 = vmatprep.subr.bf16.mxu1 %v1998_v38  ;;  %1229 = vmatprep.subr.bf16.mxu0 %v1004_v39 }
  0x8a   : > { %1039 = vmatmul.mubr.bf16.vlgmr.msra.gmra.mxu0 %v2431_v40 }
  0x8b   : > { %1171 = vmatpush2.bf16.msra.mxu1 %v1996_v41  ;;  %1230 = vmatpush1.bf16.msra.mxu0 %v1001_v42 }
  0x8c   : > { %1172 = vmatprep.subr.bf16.mxu1 %v2004_v25  ;;  %1231 = vmatprep.subr.bf16.mxu0 %v2007_v45 }
  0x8d   : > { %1048 = vmatprep.mubr.bf16.mxu0 %v2447_v46 }
  0x8f   : > { %1173 = vmatpush2.bf16.msra.mxu1 %v2002_v47  ;;  %1232 = vmatpush1.bf16.msra.mxu0 %v2005_v48 }
  0x90   : > { %1174 = vmatprep.subr.bf16.mxu1 %v2012_v50  ;;  %1233 = vmatprep.subr.bf16.mxu0 %v2020_v51 }
  0x92   : > { %1049 = vmatmul.mubr.bf16.gmra.mxu0 %v2464_v52 }
  0x93   : > { %1175 = vmatpush2.bf16.msra.mxu1 %v2010_v54  ;;  %1234 = vmatpush1.bf16.msra.mxu0 %v2018_v55 }
  0x94   : > { %1176 = vmatprep.subr.bf16.mxu1 %v2017_v57  ;;  %1058 = vmatprep.mubr.bf16.mxu0 %v2478_v59 }
  0x95   : > { %1235 = vmatprep.subr.bf16.mxu0 %v2029_v60 }
  0x97   : > { %1177 = vmatpush2.bf16.msra.mxu1 %v2015_v62  ;;  %1236 = vmatpush1.bf16.msra.mxu0 %v2027_v63 }
  0x98   : > { %1178 = vmatprep.subr.bf16.mxu1 %v2025_v1  ;;  %1237 = vmatprep.subr.bf16.mxu0 %v2036_v2 }
  0x9a   : > { %1059 = vmatmul.mubr.bf16.gmra.mxu0 %v2026_v3 }
  0x9b   : > { %1179 = vmatpush2.bf16.msra.mxu1 %v2023_v5  ;;  %1068 = vmatprep.mubr.bf16.mxu0 %v2037_v6 }
  0x9c   : > { %1180 = vmatprep.subr.bf16.mxu1 %v2033_v8  ;;  %1238 = vmatpush1.bf16.msra.mxu0 %v2034_v9 }
  0x9d   : > { %1239 = vmatprep.subr.bf16.mxu0 %v2045_v10 }
  0x9f   : > { %1181 = vmatpush2.bf16.msra.mxu1 %v2031_v12 }
  0xa0   : > { %1182 = vmatprep.subr.bf16.mxu1 %v2041_v15  ;;  %1240 = vmatpush1.bf16.msra.mxu0 %v2043_v16 }
  0xa2   : > { %1069 = vmatmul.mubr.bf16.gmra.mxu0 %v2042_v17 }
  0xa3   : > { %1183 = vmatpush2.bf16.msra.mxu1 %v2039_v19  ;;  %1257 = vmatprep.mubr.bf16.mxu0 %v2070_v22 }
  0xa6   : > { %1185 = vmatmul.mubr.bf16.vlgmr.msra.gmra.mxu1 %v2431_v40 }
  0xa7   : > { %1194 = vmatprep.mubr.bf16.mxu1 %v2447_v46 }
  0xaa   : > { %1827 = vmatmul.mubr.msk.bf16.vlgmr.msra.gmra.mxu0 %vm977_vm2, %v2363_v58 }
  0xab   : > { %1267 = vmatprep.mubr.bf16.mxu0 %v2070_v22 }
  0xae   : > { %1195 = vmatmul.mubr.bf16.gmra.mxu1 %v2464_v52 }
  0xaf   : > { %1204 = vmatprep.mubr.bf16.mxu1 %v2478_v59 }
  0xb2   : > { %1828 = vmatmul.mubr.msk.bf16.gmra.mxu0 %vm977_vm2, %v2389_v13 }
  0xb3   : > { %1277 = vmatprep.mubr.bf16.mxu0 %v2070_v22 }
  0xb6   : > { %1205 = vmatmul.mubr.bf16.gmra.mxu1 %v2026_v3 }
  0xb7   : > { %1214 = vmatprep.mubr.bf16.mxu1 %v2037_v6 }
  0xba   : > { %1829 = vmatmul.mubr.msk.bf16.gmra.mxu0 %vm977_vm2, %v2404_v21 }
  0xbb   : > { %1287 = vmatprep.mubr.bf16.mxu0 %v2070_v22 }
  0xbe   : > { %1215 = vmatmul.mubr.bf16.gmra.mxu1 %v2042_v17 }
  0xc2   : > { %1830 = vmatmul.mubr.msk.bf16.gmra.mxu0 %vm977_vm2, %v2420_v34 }
  0xdc   : > { %v2550_v30 = vpop.permute.xlu0 %1308  ;;  %v2552_v31 = vpop.permute.xlu1 %1318 }
  0xe0   : > { %v2554_v32 = vpop.permute.xlu0 %1313  ;;  %v2556_v35 = vpop.permute.xlu1 %1323 }
  0xe4   : > { %v2558_v22 = vpop.permute.xlu0 %1328 }
  0xe5   : > { %v2560_v37 = vpop.permute.xlu1 %1333 }
  0xe8   : > { %v2562_v34 = vpop.permute.xlu0 %1338 }
  0xe9   : > { %v2564_v39 = vpop.permute.xlu1 %1343 }
  0xec   : > { %v2566_v44 = vpop.permute.xlu0 %1388 }
  0xf0   : > { %v2571_v51 = vpop.permute.xlu1 %1393 }
  0xf4   : > { %v2581_v3 = vpop.permute.xlu0 %1398 }
  0xf5   : > { %v2588_v14 = vpop.permute.xlu1 %1403 }
 0x126   : > { %v1113_v58 = vpop.f32.mrf.mxu1 }
 0x128   : > { %v1115_v26 = vpop.f32.mrf.mxu1 }
 0x12a   : > { %v1117_v27 = vpop.f32.mrf.mxu1 }
 0x12c   : > { %v1119_v28 = vpop.f32.mrf.mxu1 }
 0x12e   : > { %v1123_v13 = vpop.f32.mrf.mxu1 }
 0x130   : > { %v1125_v33 = vpop.f32.mrf.mxu1 }
 0x132   : > { %v1127_v21 = vpop.f32.mrf.mxu1 }
 0x134   : > { %v1129_v36 = vpop.f32.mrf.mxu1 }
 0x136   : > { %v1133_v38 = vpop.f32.mrf.mxu1 }
 0x138   : > { %v1135_v41 = vpop.f32.mrf.mxu1 }
 0x13a   : > { %v1137_v29 = vpop.f32.mrf.mxu1 }
 0x13c   : > { %v1139_v57 = vpop.f32.mrf.mxu1 }
 0x13e   : > { %v1143_v6 = vpop.f32.mrf.mxu1 }
 0x140   : > { %v1145_v20 = vpop.f32.mrf.mxu1 }
 0x14a   : > { %v1040_v40 = vpop.f32.mrf.mxu0 }
 0x14b   : > { %v1114_v42 = vadd.f32 %v1113_v58, %v1040_v40 }
 0x14c   : > { %v1042_v43 = vpop.f32.mrf.mxu0 }
 0x14d   : > { %v1346_v25 = vmul.f32 %v2550_v30, %v1114_v42  ;;  %v1116_v45 = vadd.f32 %v1115_v26, %v1042_v43 }
 0x14e   : > { %v1044_v46 = vpop.f32.mrf.mxu0 }
 0x14f   : > { %v1347_v47 = vmul.f32 %v2550_v30, %v1116_v45  ;;  %v1426_v48 = vadd.f32 %v2566_v44, %v1346_v25  ;;  %v1118_v49 = vadd.f32 %v1117_v27, %v1044_v46  ;;  %v1147_v25 = vpop.f32.mrf.mxu1 }
 0x150   : > { %v1046_v50 = vpop.f32.mrf.mxu0 }
 0x151   : > { %v1427_v52 = vadd.f32 %v2566_v44, %v1347_v47  ;;  %v1350_v53 = vmul.f32 %v2554_v32, %v1118_v49  ;;  %v1120_v54 = vadd.f32 %v1119_v28, %v1046_v50  ;;  %v1458_v55 = vmax.f32 %v1426_v48, 0.0 }
 0x152   : > { %v1050_v56 = vpop.f32.mrf.mxu0 }
 0x153   : > { %v1459_v59 = vmax.f32 %v1427_v52, 0.0  ;;  %v1351_v60 = vmul.f32 %v2554_v32, %v1120_v54  ;;  %v1430_v61 = vadd.f32 %v2571_v51, %v1350_v53  ;;  %v1124_v62 = vadd.f32 %v1123_v13, %v1050_v56  ;;  %v2595_v13 = vpop.permute.xlu0 %1408  ;;  %v2604_v53 = vpop.permute.xlu1 %1413 }
 0x154   : > { %v1052_v63 = vpop.f32.mrf.mxu0 }
 0x155   : > { %v1853_v0 = vpack.c.bf16 %v1459_v59, %v1458_v55  ;;  %v1431_v1 = vadd.f32 %v2571_v51, %v1351_v60  ;;  %v1354_v2 = vmul.f32 %v2552_v31, %v1124_v62  ;;  %v1126_v4 = vadd.f32 %v1125_v33, %v1052_v63  ;;  %v1149_v55 = vpop.f32.mrf.mxu1 }
 0x156   : > { %v1054_v5 = vpop.f32.mrf.mxu0  ;;  %v1462_v7 = vmax.f32 %v1430_v61, 0.0 }
 0x157   : > { %1586 = vst [vmem:[%s2583_s15] sm:$0xff] %v1853_v0  ;;  %v1463_v8 = vmax.f32 %v1431_v1, 0.0  ;;  %v1128_v9 = vadd.f32 %v1127_v21, %v1054_v5  ;;  %v1355_v10 = vmul.f32 %v2552_v31, %v1126_v4  ;;  %v1434_v11 = vadd.f32 %v2581_v3, %v1354_v2  ;;  %v2609_v63 = vpop.permute.xlu0 %1418 }
 0x158   : > { %v1056_v12 = vpop.f32.mrf.mxu0 }
 0x159   : > { %v1855_v15 = vpack.c.bf16 %v1463_v8, %v1462_v7  ;;  %v1358_v16 = vmul.f32 %v2556_v35, %v1128_v9  ;;  %v1130_v17 = vadd.f32 %v1129_v36, %v1056_v12  ;;  %v1435_v18 = vadd.f32 %v2581_v3, %v1355_v10  ;;  %v2616_v9 = vpop.permute.xlu1 %1423 }
 0x15a   : > { %v1060_v19 = vpop.f32.mrf.mxu0  ;;  %v1466_v26 = vmax.f32 %v1434_v11, 0.0 }
 0x15b   : > { %1588 = vst [vmem:[%s2583_s15 + $0x10] sm:$0xff] %v1855_v15  ;;  %v1359_v23 = vmul.f32 %v2556_v35, %v1130_v17  ;;  %v1438_v24 = vadd.f32 %v2588_v14, %v1358_v16  ;;  %v1134_v58 = vadd.f32 %v1133_v38, %v1060_v19  ;;  %v1467_v27 = vmax.f32 %v1435_v18, 0.0 }
 0x15c   : > { %v1062_v28 = vpop.f32.mrf.mxu0 }
 0x15d   : > { %v1439_v33 = vadd.f32 %v2588_v14, %v1359_v23  ;;  %v1362_v21 = vmul.f32 %v2558_v22, %v1134_v58  ;;  %v1136_v36 = vadd.f32 %v1135_v41, %v1062_v28  ;;  %v1857_v40 = vpack.c.bf16 %v1467_v27, %v1466_v26 }
 0x15e   : > { %v1470_v42 = vmax.f32 %v1438_v24, 0.0  ;;  %v1064_v43 = vpop.f32.mrf.mxu0 }
 0x15f   : > { %v1471_v45 = vmax.f32 %v1439_v33, 0.0  ;;  %v1363_v46 = vmul.f32 %v2558_v22, %v1136_v36  ;;  %v1138_v38 = vadd.f32 %v1137_v29, %v1064_v43  ;;  %v1442_v47 = vadd.f32 %v2595_v13, %v1362_v21  ;;  %1590 = vst [vmem:[%s2583_s15 + $0x20] sm:$0xff] %v1857_v40 }
 0x160   : > { %v1066_v48 = vpop.f32.mrf.mxu0 }
 0x161   : > { %v1859_v49 = vpack.c.bf16 %v1471_v45, %v1470_v42  ;;  %v1366_v50 = vmul.f32 %v2560_v37, %v1138_v38  ;;  %v1443_v52 = vadd.f32 %v2595_v13, %v1363_v46  ;;  %v1140_v41 = vadd.f32 %v1139_v57, %v1066_v48 }
 0x162   : > { %v1070_v54 = vpop.f32.mrf.mxu0  ;;  %v1474_v56 = vmax.f32 %v1442_v47, 0.0 }
 0x163   : > { %1592 = vst [vmem:[%s2583_s15 + $0x30] sm:$0xff] %v1859_v49  ;;  %v1475_v59 = vmax.f32 %v1443_v52, 0.0  ;;  %v1144_v60 = vadd.f32 %v1143_v6, %v1070_v54  ;;  %v1367_v29 = vmul.f32 %v2560_v37, %v1140_v41  ;;  %v1446_v61 = vadd.f32 %v2604_v53, %v1366_v50 }
 0x164   : > { %v1072_v62 = vpop.f32.mrf.mxu0 }
 0x165   : > { %v1861_v0 = vpack.c.bf16 %v1475_v59, %v1474_v56  ;;  %v1370_v1 = vmul.f32 %v2562_v34, %v1144_v60  ;;  %v1146_v2 = vadd.f32 %v1145_v20, %v1072_v62  ;;  %v1447_v57 = vadd.f32 %v2604_v53, %v1367_v29 }
 0x166   : > { %v1186_v4 = vpop.f32.mrf.mxu1  ;;  %v1074_v5 = vpop.f32.mrf.mxu0  ;;  %v1478_v10 = vmax.f32 %v1446_v61, 0.0 }
 0x167   : > { %1594 = vst [vmem:[%s2583_s15 + $0x40] sm:$0xff] %v1861_v0  ;;  %v1371_v7 = vmul.f32 %v2562_v34, %v1146_v2  ;;  %v1148_v8 = vadd.f32 %v1147_v25, %v1074_v5  ;;  %v1450_v6 = vadd.f32 %v2609_v63, %v1370_v1  ;;  %v1479_v11 = vmax.f32 %v1447_v57, 0.0 }
 0x168   : > { %v1188_v12 = vpop.f32.mrf.mxu1  ;;  %v1076_v15 = vpop.f32.mrf.mxu0 }
 0x169   : > { %v1374_v16 = vmul.f32 %v2564_v39, %v1148_v8  ;;  %v1451_v17 = vadd.f32 %v2609_v63, %v1371_v7  ;;  %v1150_v18 = vadd.f32 %v1149_v55, %v1076_v15  ;;  %v1863_v19 = vpack.c.bf16 %v1479_v11, %v1478_v10 }
 0x16a   : > { %v1482_v20 = vmax.f32 %v1450_v6, 0.0  ;;  %v1190_v23 = vpop.f32.mrf.mxu1  ;;  %v1259_v24 = vpop.f32.mrf.mxu0 }
 0x16b   : > { %v1483_v58 = vmax.f32 %v1451_v17, 0.0  ;;  %v1375_v26 = vmul.f32 %v2564_v39, %v1150_v18  ;;  %v1454_v27 = vadd.f32 %v2616_v9, %v1374_v16  ;;  %v1260_v28 = vadd.f32 %v1259_v24, %v1186_v4  ;;  %1596 = vst [vmem:[%s2583_s15 + $0x50] sm:$0xff] %v1863_v19 }
 0x16c   : > { %v1192_v33 = vpop.f32.mrf.mxu1  ;;  %v1261_v21 = vpop.f32.mrf.mxu0 }
 0x16d   : > { %v1865_v36 = vpack.c.bf16 %v1483_v58, %v1482_v20  ;;  %v1455_v40 = vadd.f32 %v2616_v9, %v1375_v26  ;;  %v1348_v42 = vmul.f32 %v2550_v30, %v1260_v28  ;;  %v1262_v43 = vadd.f32 %v1261_v21, %v1188_v12 }
 0x16e   : > { %v1196_v25 = vpop.f32.mrf.mxu1  ;;  %v1263_v45 = vpop.f32.mrf.mxu0  ;;  %v1486_v46 = vmax.f32 %v1454_v27, 0.0 }
 0x16f   : > { %1598 = vst [vmem:[%s2583_s15 + $0x60] sm:$0xff] %v1865_v36  ;;  %v1487_v38 = vmax.f32 %v1455_v40, 0.0  ;;  %v1264_v47 = vadd.f32 %v1263_v45, %v1190_v23  ;;  %v1428_v48 = vadd.f32 %v2566_v44, %v1348_v42  ;;  %v1349_v49 = vmul.f32 %v2550_v30, %v1262_v43 }
 0x170   : > { %v1198_v50 = vpop.f32.mrf.mxu1  ;;  %v1265_v52 = vpop.f32.mrf.mxu0 }
 0x171   : > { %v1867_v41 = vpack.c.bf16 %v1487_v38, %v1486_v46  ;;  %v1352_v54 = vmul.f32 %v2554_v32, %v1264_v47  ;;  %v1266_v55 = vadd.f32 %v1265_v52, %v1192_v33  ;;  %v1429_v56 = vadd.f32 %v2566_v44, %v1349_v49 }
 0x172   : > { %v1200_v59 = vpop.f32.mrf.mxu1  ;;  %v1269_v60 = vpop.f32.mrf.mxu0  ;;  %v1460_v0 = vmax.f32 %v1428_v48, 0.0 }
 0x173   : > { %1600 = vst [vmem:[%s2583_s15 + $0x70] sm:$0xff] %v1867_v41  ;;  %v1432_v29 = vadd.f32 %v2571_v51, %v1352_v54  ;;  %v1353_v61 = vmul.f32 %v2554_v32, %v1266_v55  ;;  %v1270_v62 = vadd.f32 %v1269_v60, %v1196_v25  ;;  %v1461_v1 = vmax.f32 %v1429_v56, 0.0 }
 0x174   : > { %v1202_v30 = vpop.f32.mrf.mxu1  ;;  %v1271_v2 = vpop.f32.mrf.mxu0 }
 0x175   : > { %v1433_v57 = vadd.f32 %v2571_v51, %v1353_v61  ;;  %v1356_v4 = vmul.f32 %v2552_v31, %v1270_v62  ;;  %v1272_v5 = vadd.f32 %v1271_v2, %v1198_v50  ;;  %v1854_v7 = vpack.c.bf16 %v1461_v1, %v1460_v0 }
 0x176   : > { %v1464_v44 = vmax.f32 %v1432_v29, 0.0  ;;  %v1206_v8 = vpop.f32.mrf.mxu1  ;;  %v1273_v6 = vpop.f32.mrf.mxu0 }
 0x177   : > { %v1465_v10 = vmax.f32 %v1433_v57, 0.0  ;;  %v1436_v11 = vadd.f32 %v2581_v3, %v1356_v4  ;;  %v1357_v32 = vmul.f32 %v2552_v31, %v1272_v5  ;;  %v1274_v12 = vadd.f32 %v1273_v6, %v1200_v59  ;;  %1587 = vst [vmem:[%s2583_s15 + $0x8] sm:$0xff] %v1854_v7 }
 0x178   : > { %v1208_v15 = vpop.f32.mrf.mxu1  ;;  %v1275_v16 = vpop.f32.mrf.mxu0 }
 0x179   : > { %v1856_v17 = vpack.c.bf16 %v1465_v10, %v1464_v44  ;;  %v1437_v51 = vadd.f32 %v2581_v3, %v1357_v32  ;;  %v1360_v18 = vmul.f32 %v2556_v35, %v1274_v12  ;;  %v1276_v19 = vadd.f32 %v1275_v16, %v1202_v30 }
 0x17a   : > { %v1210_v20 = vpop.f32.mrf.mxu1  ;;  %v1279_v23 = vpop.f32.mrf.mxu0  ;;  %v1468_v24 = vmax.f32 %v1436_v11, 0.0 }
 0x17b   : > { %1589 = vst [vmem:[%s2583_s15 + $0x18] sm:$0xff] %v1856_v17  ;;  %v1469_v58 = vmax.f32 %v1437_v51, 0.0  ;;  %v1280_v26 = vadd.f32 %v1279_v23, %v1206_v8  ;;  %v1440_v27 = vadd.f32 %v2588_v14, %v1360_v18  ;;  %v1361_v31 = vmul.f32 %v2556_v35, %v1276_v19  ;;  %v1632_v19 = vld [vmem:[%s2583_s15 + $0x20] sm:$0xff] (%p2127_p5)  ;;  %v1636_v23 = vld [vmem:[%s2583_s15 + $0x30] sm:$0xff] (%p2127_p5) }
 0x17c   : > { %v1212_v28 = vpop.f32.mrf.mxu1  ;;  %v1281_v33 = vpop.f32.mrf.mxu0  ;;  %1633 = vst [vmem:[%s1611_s23 + $0x40] sm:$0xff] (%p2127_p5), %v1632_v19  ;;  %1637 = vst [vmem:[%s1611_s23 + $0x60] sm:$0xff] (%p2127_p5), %v1636_v23 }
 0x17d   : > { %v1858_v21 = vpack.c.bf16 %v1469_v58, %v1468_v24  ;;  %v1364_v36 = vmul.f32 %v2558_v22, %v1280_v26  ;;  %v1282_v3 = vadd.f32 %v1281_v33, %v1208_v15  ;;  %v1441_v40 = vadd.f32 %v2588_v14, %v1361_v31  ;;  %v1640_v58 = vld [vmem:[%s2583_s15 + $0x40] sm:$0xff] (%p2127_p5) }
 0x17e   : > { %v1216_v42 = vpop.f32.mrf.mxu1  ;;  %v1283_v43 = vpop.f32.mrf.mxu0  ;;  %v1472_v38 = vmax.f32 %v1440_v27, 0.0  ;;  %1641 = vst [vmem:[%s1611_s23 + $0x80] sm:$0xff] (%p2127_p5), %v1640_v58  ;;  %v1644_v27 = vld [vmem:[%s2583_s15 + $0x50] sm:$0xff] (%p2127_p5) }
 0x17f   : > { %1591 = vst [vmem:[%s2583_s15 + $0x28] sm:$0xff] %v1858_v21  ;;  %v1444_v25 = vadd.f32 %v2595_v13, %v1364_v36  ;;  %v1365_v45 = vmul.f32 %v2558_v22, %v1282_v3  ;;  %v1284_v46 = vadd.f32 %v1283_v43, %v1210_v20  ;;  %v1473_v47 = vmax.f32 %v1441_v40, 0.0  ;;  %1645 = vst [vmem:[%s1611_s23 + $0xa0] sm:$0xff] (%p2127_p5), %v1644_v27  ;;  %v1652_v21 = vld [vmem:[%s2583_s15 + $0x70] sm:$0xff] (%p2127_p5) }
 0x180   : > { %v1218_v35 = vpop.f32.mrf.mxu1  ;;  %v1285_v48 = vpop.f32.mrf.mxu0  ;;  %1653 = vst [vmem:[%s1611_s23 + $0xe0] sm:$0xff] (%p2127_p5), %v1652_v21 }
 0x181   : > { %v1445_v49 = vadd.f32 %v2595_v13, %v1365_v45  ;;  %v1368_v50 = vmul.f32 %v2560_v37, %v1284_v46  ;;  %v1286_v52 = vadd.f32 %v1285_v48, %v1212_v28  ;;  %v1860_v14 = vpack.c.bf16 %v1473_v47, %v1472_v38  ;;  %v1648_v28 = vld [vmem:[%s2583_s15 + $0x60] sm:$0xff] (%p2127_p5) }
 0x182   : > { %v1476_v41 = vmax.f32 %v1444_v25, 0.0  ;;  %v1289_v54 = vpop.f32.mrf.mxu0  ;;  %v1220_v60 = vpop.f32.mrf.mxu1  ;;  %v1630_v18 = vld [vmem:[%s2583_s15 + $0x18] sm:$0xff] (%p2127_p5)  ;;  %1649 = vst [vmem:[%s1611_s23 + $0xc0] sm:$0xff] (%p2127_p5), %v1648_v28 }
 0x183   : > { %v1477_v55 = vmax.f32 %v1445_v49, 0.0  ;;  %v1448_v56 = vadd.f32 %v2604_v53, %v1368_v50  ;;  %v1369_v22 = vmul.f32 %v2560_v37, %v1286_v52  ;;  %v1290_v59 = vadd.f32 %v1289_v54, %v1216_v42  ;;  %1593 = vst [vmem:[%s2583_s15 + $0x38] sm:$0xff] %v1860_v14  ;;  %1631 = vst [vmem:[%s1611_s23 + $0x28] sm:$0xff] (%p2127_p5), %v1630_v18 }
 0x184   : > { %v1291_v29 = vpop.f32.mrf.mxu0  ;;  %v1222_v5 = vpop.f32.mrf.mxu1 }
 0x185   : > { %v1862_v61 = vpack.c.bf16 %v1477_v55, %v1476_v41  ;;  %v1449_v62 = vadd.f32 %v2604_v53, %v1369_v22  ;;  %v1372_v13 = vmul.f32 %v2562_v34, %v1290_v59  ;;  %v1292_v0 = vadd.f32 %v1291_v29, %v1218_v35 }
 0x186   : > { %v1293_v1 = vpop.f32.mrf.mxu0  ;;  %v1480_v30 = vmax.f32 %v1448_v56, 0.0  ;;  %v1634_v20 = vld [vmem:[%s2583_s15 + $0x28] sm:$0xff] (%p2127_p5) }
 0x187   : > { %1595 = vst [vmem:[%s2583_s15 + $0x48] sm:$0xff] %v1862_v61  ;;  %v1481_v2 = vmax.f32 %v1449_v62, 0.0  ;;  %v1294_v57 = vadd.f32 %v1293_v1, %v1220_v60  ;;  %v1452_v4 = vadd.f32 %v2609_v63, %v1372_v13  ;;  %v1373_v37 = vmul.f32 %v2562_v34, %v1292_v0  ;;  %1635 = vst [vmem:[%s1611_s23 + $0x48] sm:$0xff] (%p2127_p5), %v1634_v20 }
 0x188   : > { %v1295_v7 = vpop.f32.mrf.mxu0 }
 0x189   : > { %v1864_v44 = vpack.c.bf16 %v1481_v2, %v1480_v30  ;;  %v1376_v53 = vmul.f32 %v2564_v39, %v1294_v57  ;;  %v1296_v8 = vadd.f32 %v1295_v7, %v1222_v5  ;;  %v1453_v6 = vadd.f32 %v2609_v63, %v1373_v37  ;;  %v1626_v63 = vld [vmem:[%s2583_s15 + $0x8] sm:$0xff] (%p2127_p5) }
 0x18a   : > { %v1484_v32 = vmax.f32 %v1452_v4, 0.0  ;;  %1627 = vst [vmem:[%s1611_s23 + $0x8] sm:$0xff] (%p2127_p5), %v1626_v63  ;;  %v1638_v24 = vld [vmem:[%s2583_s15 + $0x38] sm:$0xff] (%p2127_p5) }
 0x18b   : > { %1597 = vst [vmem:[%s2583_s15 + $0x58] sm:$0xff] %v1864_v44  ;;  %v1456_v10 = vadd.f32 %v2616_v9, %v1376_v53  ;;  %v1377_v11 = vmul.f32 %v2564_v39, %v1296_v8  ;;  %v1485_v12 = vmax.f32 %v1453_v6, 0.0  ;;  %v1624_v39 = vld [vmem:[%s2583_s15] sm:$0xff] (%p2127_p5)  ;;  %1639 = vst [vmem:[%s1611_s23 + $0x68] sm:$0xff] (%p2127_p5), %v1638_v24 }
 0x18c   : > { %1625 = vst [vmem:[%s1611_s23] sm:$0xff] (%p2127_p5), %v1624_v39 }
 0x18d   : > { %v1457_v15 = vadd.f32 %v2616_v9, %v1377_v11  ;;  %v1866_v16 = vpack.c.bf16 %v1485_v12, %v1484_v32  ;;  %v1488_v17 = vmax.f32 %v1456_v10, 0.0  ;;  %v1628_v9 = vld [vmem:[%s2583_s15 + $0x10] sm:$0xff] (%p2127_p5) }
 0x18e   : > { %1629 = vst [vmem:[%s1611_s23 + $0x20] sm:$0xff] (%p2127_p5), %v1628_v9  ;;  %v1642_v26 = vld [vmem:[%s2583_s15 + $0x48] sm:$0xff] (%p2127_p5) }
 0x18f   : > { %v1489_v34 = vmax.f32 %v1457_v15, 0.0  ;;  %1599 = vst [vmem:[%s2583_s15 + $0x68] sm:$0xff] %v1866_v16  ;;  %1608 = sbr.rel (!%p2127_p5) target bundleno = 412 (0x19c), region = 63  ;;  %1643 = vst [vmem:[%s1611_s23 + $0x88] sm:$0xff] (%p2127_p5), %v1642_v26 }
 0x191   : > { %v1868_v51 = vpack.c.bf16 %v1489_v34, %v1488_v17 }
 0x192   : > { %v1646_v31 = vld [vmem:[%s2583_s15 + $0x58] sm:$0xff] (%p2127_p5) }
 0x193   : > { %1601 = vst [vmem:[%s2583_s15 + $0x78] sm:$0xff] %v1868_v51  ;;  %1647 = vst [vmem:[%s1611_s23 + $0xa8] sm:$0xff] (%p2127_p5), %v1646_v31 }
 0x196   : > { %v1650_v33 = vld [vmem:[%s2583_s15 + $0x68] sm:$0xff] }
 0x197   : > { %1651 = vst [vmem:[%s1611_s23 + $0xc8] sm:$0xff] %v1650_v33 }
 0x19a   : > { %v1654_v36 = vld [vmem:[%s2583_s15 + $0x78] sm:$0xff] }
 0x19b   : > { %1655 = vst [vmem:[%s1611_s23 + $0xe8] sm:$0xff] %v1654_v36 }
 0x19c PF: > { %p11_p10 = scmp.ge.s32.totalorder %s2114_s19, 4   ;;  %s2705_s15 = smov %s2064_s16 }
 0x19d   : > { %s2706_s16 = smov %s2125_s22  ;;  %s2707_s17 = smov %s2114_s19 }
 0x19e   :  { %13 = sbr.rel (!%p11_p10) target bundleno = 2 (0x2), region = 117 }

// kernel: resnet3d_forward.12
= control target key start
LH: loop header
LB: loop body
LE: loop exit
PB: predicated region body
PF: predicated region fallthrough
CT: control target
= control target key end

     0   :  { %vm225_vm0 = vcmask 1043456   ;;  %s2116_s0 = inlined_call_operand.vmem [shape: bf16[27,64,128], index: 0, kind: input, shape index: {}]   ;;  %s2117_s1 = inlined_call_operand.vmem [shape: bf16[64,128], index: 1, kind: output, shape index: {}]  }
   0x1   :  { %v9_v0 = vld [vmem:[%s2116_s0] sm:$0xf]  ;;  %v10_v13 = vld [vmem:[%s2116_s0 + $0x4] sm:$0xf]  ;;  %v11_v41 = vld [vmem:[%s2116_s0 + $0x8] sm:$0xf] }
   0x2   :  { %v17_v1 = vld [vmem:[%s2116_s0 + $0x20] sm:$0xf]  ;;  %v228_v4 = vsel %vm225_vm0, %v9_v0, 4286644096  ;;  %v18_v16 = vld [vmem:[%s2116_s0 + $0x24] sm:$0xf] }
   0x3   :  { %v25_v2 = vld [vmem:[%s2116_s0 + $0x40] sm:$0xf]  ;;  %v231_v5 = vsel %vm225_vm0, %v17_v1, 4286644096  ;;  %v26_v17 = vld [vmem:[%s2116_s0 + $0x44] sm:$0xf] }
   0x4   :  { %v33_v3 = vld [vmem:[%s2116_s0 + $0x60] sm:$0xf]  ;;  %v235_v6 = vsel %vm225_vm0, %v25_v2, 4286644096  ;;  %v233_v8 = vmax.bf16 %v231_v5, %v228_v4  ;;  %v34_v21 = vld [vmem:[%s2116_s0 + $0x64] sm:$0xf] }
   0x5   :  { %v41_v7 = vld [vmem:[%s2116_s0 + $0x80] sm:$0xf]  ;;  %v239_v9 = vsel %vm225_vm0, %v33_v3, 4286644096  ;;  %v335_v25 = vsel %vm225_vm0, %v10_v13, 4286644096 }
   0x6   :  { %v49_v10 = vld [vmem:[%s2116_s0 + $0xa0] sm:$0xf]  ;;  %v237_v11 = vmax.bf16 %v235_v6, %v233_v8  ;;  %v243_v12 = vsel %vm225_vm0, %v41_v7, 4286644096  ;;  %v338_v26 = vsel %vm225_vm0, %v18_v16, 4286644096 }
   0x7   :  { %v57_v14 = vld [vmem:[%s2116_s0 + $0xc0] sm:$0xf]  ;;  %v247_v18 = vsel %vm225_vm0, %v49_v10, 4286644096  ;;  %v342_v27 = vsel %vm225_vm0, %v26_v17, 4286644096  ;;  %v340_v31 = vmax.bf16 %v338_v26, %v335_v25 }
   0x8   :  { %v241_v15 = vmax.bf16 %v239_v9, %v237_v11  ;;  %v65_v19 = vld [vmem:[%s2116_s0 + $0xe0] sm:$0xf]  ;;  %v251_v23 = vsel %vm225_vm0, %v57_v14, 4286644096  ;;  %v42_v28 = vld [vmem:[%s2116_s0 + $0x84] sm:$0xf] }
   0x9   :  { %v73_v22 = vld [vmem:[%s2116_s0 + $0x100] sm:$0xf]  ;;  %v50_v29 = vld [vmem:[%s2116_s0 + $0xa4] sm:$0xf]  ;;  %v255_v30 = vsel %vm225_vm0, %v65_v19, 4286644096  ;;  %v344_v40 = vmax.bf16 %v342_v27, %v340_v31 }
   0xa   :  { %v245_v20 = vmax.bf16 %v243_v12, %v241_v15  ;;  %v81_v32 = vld [vmem:[%s2116_s0 + $0x120] sm:$0xf]  ;;  %v346_v35 = vsel %vm225_vm0, %v34_v21, 4286644096  ;;  %v58_v36 = vld [vmem:[%s2116_s0 + $0xc4] sm:$0xf] }
   0xb   :  { %v89_v33 = vld [vmem:[%s2116_s0 + $0x140] sm:$0xf]  ;;  %v259_v39 = vsel %vm225_vm0, %v73_v22, 4286644096  ;;  %v19_v42 = vld [vmem:[%s2116_s0 + $0x28] sm:$0xf]  ;;  %v348_v52 = vmax.bf16 %v346_v35, %v344_v40 }
   0xc   :  { %v249_v24 = vmax.bf16 %v247_v18, %v245_v20  ;;  %v97_v37 = vld [vmem:[%s2116_s0 + $0x160] sm:$0xf]  ;;  %v27_v43 = vld [vmem:[%s2116_s0 + $0x48] sm:$0xf]  ;;  %v350_v47 = vsel %vm225_vm0, %v42_v28, 4286644096 }
   0xd   :  { %v105_v38 = vld [vmem:[%s2116_s0 + $0x180] sm:$0xf]  ;;  %v66_v48 = vld [vmem:[%s2116_s0 + $0xe4] sm:$0xf]  ;;  %v263_v51 = vsel %vm225_vm0, %v81_v32, 4286644096  ;;  %v352_v0 = vmax.bf16 %v350_v47, %v348_v52 }
   0xe   :  { %v253_v34 = vmax.bf16 %v251_v23, %v249_v24  ;;  %v113_v44 = vld [vmem:[%s2116_s0 + $0x1a0] sm:$0xf]  ;;  %v35_v53 = vld [vmem:[%s2116_s0 + $0x68] sm:$0xf]  ;;  %v267_v57 = vsel %vm225_vm0, %v89_v33, 4286644096 }
   0xf   :  { %v121_v45 = vld [vmem:[%s2116_s0 + $0x1c0] sm:$0xf]  ;;  %v354_v58 = vsel %vm225_vm0, %v50_v29, 4286644096  ;;  %v74_v59 = vld [vmem:[%s2116_s0 + $0x104] sm:$0xf] }
  0x10   :  { %v257_v46 = vmax.bf16 %v255_v30, %v253_v34  ;;  %v129_v49 = vld [vmem:[%s2116_s0 + $0x1e0] sm:$0xf]  ;;  %v271_v61 = vsel %vm225_vm0, %v97_v37, 4286644096  ;;  %v275_v62 = vsel %vm225_vm0, %v105_v38, 4286644096  ;;  %v356_v10 = vmax.bf16 %v354_v58, %v352_v0 }
  0x11   :  { %v137_v50 = vld [vmem:[%s2116_s0 + $0x200] sm:$0xf]  ;;  %v1251_v63 = vsel %vm225_vm0, %v113_v44, 4286644096  ;;  %v43_v1 = vld [vmem:[%s2116_s0 + $0x88] sm:$0xf] }
  0x12   :  { %v145_v54 = vld [vmem:[%s2116_s0 + $0x220] sm:$0xf]  ;;  %v261_v56 = vmax.bf16 %v259_v39, %v257_v46  ;;  %v1263_v5 = vsel %vm225_vm0, %v121_v45, 4286644096  ;;  %v1266_v6 = vsel %vm225_vm0, %v129_v49, 4286644096 }
  0x13   :  { %v153_v55 = vld [vmem:[%s2116_s0 + $0x240] sm:$0xf]  ;;  %v358_v7 = vsel %vm225_vm0, %v58_v36, 4286644096  ;;  %v82_v8 = vld [vmem:[%s2116_s0 + $0x124] sm:$0xf] }
  0x14   :  { %v161_v60 = vld [vmem:[%s2116_s0 + $0x260] sm:$0xf]  ;;  %v265_v4 = vmax.bf16 %v263_v51, %v261_v56  ;;  %v442_v11 = vsel %vm225_vm0, %v11_v41, 4286644096  ;;  %v445_v12 = vsel %vm225_vm0, %v19_v42, 4286644096  ;;  %v360_v24 = vmax.bf16 %v358_v7, %v356_v10 }
  0x15   :  { %v169_v2 = vld [vmem:[%s2116_s0 + $0x280] sm:$0xf]  ;;  %v449_v13 = vsel %vm225_vm0, %v27_v43, 4286644096  ;;  %v51_v14 = vld [vmem:[%s2116_s0 + $0xa8] sm:$0xf]  ;;  %v447_v20 = vmax.bf16 %v445_v12, %v442_v11 }
  0x16   :  { %v177_v3 = vld [vmem:[%s2116_s0 + $0x2a0] sm:$0xf]  ;;  %v269_v17 = vmax.bf16 %v267_v57, %v265_v4  ;;  %v1288_v18 = vsel %vm225_vm0, %v137_v50, 4286644096  ;;  %v362_v19 = vsel %vm225_vm0, %v66_v48, 4286644096 }
  0x17   :  { %v185_v9 = vld [vmem:[%s2116_s0 + $0x2c0] sm:$0xf]  ;;  %v90_v21 = vld [vmem:[%s2116_s0 + $0x144] sm:$0xf]  ;;  %v1295_v22 = vsel %vm225_vm0, %v145_v54, 4286644096  ;;  %v451_v32 = vmax.bf16 %v449_v13, %v447_v20  ;;  %v364_v37 = vmax.bf16 %v362_v19, %v360_v24 }
  0x18   :  { %v193_v15 = vld [vmem:[%s2116_s0 + $0x2e0] sm:$0xf]  ;;  %v1298_v23 = vsel %vm225_vm0, %v153_v55, 4286644096  ;;  %v453_v25 = vsel %vm225_vm0, %v35_v53, 4286644096  ;;  %v273_v29 = vmax.bf16 %v271_v61, %v269_v17 }
  0x19   :  { %v201_v16 = vld [vmem:[%s2116_s0 + $0x300] sm:$0xf]  ;;  %v59_v26 = vld [vmem:[%s2116_s0 + $0xc8] sm:$0xf]  ;;  %v98_v27 = vld [vmem:[%s2116_s0 + $0x164] sm:$0xf]  ;;  %v455_v46 = vmax.bf16 %v453_v25, %v451_v32 }
  0x1a   :  { %v209_v28 = vld [vmem:[%s2116_s0 + $0x320] sm:$0xf]  ;;  %v1311_v30 = vsel %vm225_vm0, %v161_v60, 4286644096  ;;  %v366_v31 = vsel %vm225_vm0, %v74_v59, 4286644096  ;;  %v277_v43 = vmax.bf16 %v275_v62, %v273_v29 }
  0x1b   :  { %v106_v33 = vld [vmem:[%s2116_s0 + $0x184] sm:$0xf]  ;;  %v1321_v35 = vsel %vm225_vm0, %v169_v2, 4286644096  ;;  %v1324_v36 = vsel %vm225_vm0, %v177_v3, 4286644096  ;;  %v368_v51 = vmax.bf16 %v366_v31, %v364_v37 }
  0x1c   :  { %v114_v34 = vld [vmem:[%s2116_s0 + $0x1a4] sm:$0xf]  ;;  %v457_v38 = vsel %vm225_vm0, %v43_v1, 4286644096  ;;  %v12_v39 = vld [vmem:[%s2116_s0 + $0xc] sm:$0xf]  ;;  %v281_v55 = vmax.bf16 %v1251_v63, %v277_v43 }
  0x1d   :  { %v67_v40 = vld [vmem:[%s2116_s0 + $0xe8] sm:$0xf]  ;;  %v122_v41 = vld [vmem:[%s2116_s0 + $0x1c4] sm:$0xf]  ;;  %v217_v42 = vld [vmem:[%s2116_s0 + $0x340] sm:$0xf]  ;;  %v459_v58 = vmax.bf16 %v457_v38, %v455_v46 }
  0x1e   :  { %v1340_v44 = vsel %vm225_vm0, %v185_v9, 4286644096  ;;  %v370_v45 = vsel %vm225_vm0, %v82_v8, 4286644096  ;;  %v20_v47 = vld [vmem:[%s2116_s0 + $0x2c] sm:$0xf]  ;;  %v285_v4 = vmax.bf16 %v1263_v5, %v281_v55 }
  0x1f   :  { %v28_v48 = vld [vmem:[%s2116_s0 + $0x4c] sm:$0xf]  ;;  %v1350_v49 = vsel %vm225_vm0, %v193_v15, 4286644096  ;;  %v1353_v50 = vsel %vm225_vm0, %v201_v16, 4286644096  ;;  %v372_v63 = vmax.bf16 %v370_v45, %v368_v51 }
  0x20   :  { %v461_v52 = vsel %vm225_vm0, %v51_v14, 4286644096  ;;  %v75_v53 = vld [vmem:[%s2116_s0 + $0x108] sm:$0xf]  ;;  %v130_v54 = vld [vmem:[%s2116_s0 + $0x1e4] sm:$0xf]  ;;  %v289_v17 = vmax.bf16 %v1266_v6, %v285_v4 }
  0x21   :  { %v1364_v56 = vsel %vm225_vm0, %v209_v28, 4286644096  ;;  %v374_v57 = vsel %vm225_vm0, %v90_v21, 4286644096  ;;  %v36_v59 = vld [vmem:[%s2116_s0 + $0x6c] sm:$0xf]  ;;  %v463_v9 = vmax.bf16 %v461_v52, %v459_v58 }
  0x22   :  { %v138_v60 = vld [vmem:[%s2116_s0 + $0x204] sm:$0xf]  ;;  %v1377_v62 = vsel %vm225_vm0, %v217_v42, 4286644096  ;;  %v378_v0 = vsel %vm225_vm0, %v98_v27, 4286644096  ;;  %v376_v12 = vmax.bf16 %v374_v57, %v372_v63 }
  0x23   :  { %v146_v61 = vld [vmem:[%s2116_s0 + $0x224] sm:$0xf]  ;;  %v465_v1 = vsel %vm225_vm0, %v59_v26, 4286644096  ;;  %v83_v2 = vld [vmem:[%s2116_s0 + $0x128] sm:$0xf] }
  0x24   :  { %v154_v3 = vld [vmem:[%s2116_s0 + $0x244] sm:$0xf]  ;;  %v382_v7 = vsel %vm225_vm0, %v106_v33, 4286644096  ;;  %v386_v8 = vsel %vm225_vm0, %v114_v34, 4286644096  ;;  %v467_v19 = vmax.bf16 %v465_v1, %v463_v9  ;;  %v380_v27 = vmax.bf16 %v378_v0, %v376_v12 }
  0x25   :  { %v44_v10 = vld [vmem:[%s2116_s0 + $0x8c] sm:$0xf]  ;;  %v162_v11 = vld [vmem:[%s2116_s0 + $0x264] sm:$0xf]  ;;  %v390_v13 = vsel %vm225_vm0, %v122_v41, 4286644096 }
  0x26   :  { %v469_v14 = vsel %vm225_vm0, %v67_v40, 4286644096  ;;  %v549_v5 = vsel %vm225_vm0, %v12_v39, 4286644096  ;;  %v91_v15 = vld [vmem:[%s2116_s0 + $0x148] sm:$0xf]  ;;  %v384_v40 = vmax.bf16 %v382_v7, %v380_v27 }
  0x27   :  { %v170_v16 = vld [vmem:[%s2116_s0 + $0x284] sm:$0xf]  ;;  %v552_v20 = vsel %vm225_vm0, %v20_v47, 4286644096  ;;  %v556_v21 = vsel %vm225_vm0, %v28_v48, 4286644096  ;;  %v471_v34 = vmax.bf16 %v469_v14, %v467_v19  ;;  %v293_v47 = vmax.bf16 %v1288_v18, %v289_v17 }
  0x28   :  { %v52_v24 = vld [vmem:[%s2116_s0 + $0xac] sm:$0xf]  ;;  %v178_v25 = vld [vmem:[%s2116_s0 + $0x2a4] sm:$0xf]  ;;  %v394_v6 = vsel %vm225_vm0, %v130_v54, 4286644096  ;;  %v554_v29 = vmax.bf16 %v552_v20, %v549_v5  ;;  %v388_v57 = vmax.bf16 %v386_v8, %v384_v40 }
  0x29   :  { %v186_v26 = vld [vmem:[%s2116_s0 + $0x2c4] sm:$0xf]  ;;  %v473_v28 = vsel %vm225_vm0, %v75_v53, 4286644096  ;;  %v99_v31 = vld [vmem:[%s2116_s0 + $0x168] sm:$0xf] }
  0x2a   :  { %v398_v32 = vsel %vm225_vm0, %v138_v60, 4286644096  ;;  %v1424_v33 = vsel %vm225_vm0, %v146_v61, 4286644096  ;;  %v560_v37 = vsel %vm225_vm0, %v36_v59, 4286644096  ;;  %v558_v43 = vmax.bf16 %v556_v21, %v554_v29 }
  0x2b   :  { %v60_v38 = vld [vmem:[%s2116_s0 + $0xcc] sm:$0xf]  ;;  %v194_v39 = vld [vmem:[%s2116_s0 + $0x2e4] sm:$0xf]  ;;  %v1434_v41 = vsel %vm225_vm0, %v154_v3, 4286644096  ;;  %v475_v51 = vmax.bf16 %v473_v28, %v471_v34  ;;  %v392_v4 = vmax.bf16 %v390_v13, %v388_v57  ;;  %v297_v13 = vmax.bf16 %v1295_v22, %v293_v47 }
  0x2c   :  { %v477_v42 = vsel %vm225_vm0, %v83_v2, 4286644096  ;;  %v107_v45 = vld [vmem:[%s2116_s0 + $0x188] sm:$0xf]  ;;  %v202_v46 = vld [vmem:[%s2116_s0 + $0x304] sm:$0xf]  ;;  %v562_v59 = vmax.bf16 %v560_v37, %v558_v43 }
  0x2d   :  { %v1445_v48 = vsel %vm225_vm0, %v162_v11, 4286644096  ;;  %v564_v52 = vsel %vm225_vm0, %v44_v10, 4286644096  ;;  %v68_v53 = vld [vmem:[%s2116_s0 + $0xec] sm:$0xf]  ;;  %v479_v0 = vmax.bf16 %v477_v42, %v475_v51  ;;  %v396_v20 = vmax.bf16 %v394_v6, %v392_v4 }
  0x2e   :  { %v115_v54 = vld [vmem:[%s2116_s0 + $0x1a8] sm:$0xf]  ;;  %v210_v55 = vld [vmem:[%s2116_s0 + $0x324] sm:$0xf]  ;;  %v1458_v18 = vsel %vm225_vm0, %v170_v16, 4286644096  ;;  %v566_v9 = vmax.bf16 %v564_v52, %v562_v59  ;;  %v301_v43 = vmax.bf16 %v1298_v23, %v297_v13 }
  0x2f   :  { %v481_v58 = vsel %vm225_vm0, %v91_v15, 4286644096  ;;  %v123_v60 = vld [vmem:[%s2116_s0 + $0x1c8] sm:$0xf]  ;;  %v1465_v61 = vsel %vm225_vm0, %v178_v25, 4286644096  ;;  %v400_v34 = vmax.bf16 %v398_v32, %v396_v20 }
  0x30   :  { %v1468_v63 = vsel %vm225_vm0, %v186_v26, 4286644096  ;;  %v568_v1 = vsel %vm225_vm0, %v52_v24, 4286644096  ;;  %v76_v2 = vld [vmem:[%s2116_s0 + $0x10c] sm:$0xf]  ;;  %v483_v5 = vmax.bf16 %v481_v58, %v479_v0 }
  0x31   :  { %v218_v3 = vld [vmem:[%s2116_s0 + $0x344] sm:$0xf]  ;;  %v1478_v7 = vsel %vm225_vm0, %v194_v39, 4286644096  ;;  %v485_v8 = vsel %vm225_vm0, %v99_v31, 4286644096  ;;  %v570_v24 = vmax.bf16 %v568_v1, %v566_v9  ;;  %v404_v52 = vmax.bf16 %v1424_v33, %v400_v34 }
  0x32   :  { %v13_v10 = vld [vmem:[%s2116_s0 + $0x10] sm:$0xf]  ;;  %v131_v12 = vld [vmem:[%s2116_s0 + $0x1e8] sm:$0xf]  ;;  %v1492_v14 = vsel %vm225_vm0, %v202_v46, 4286644096  ;;  %v487_v27 = vmax.bf16 %v485_v8, %v483_v5 }
  0x33   :  { %v21_v11 = vld [vmem:[%s2116_s0 + $0x30] sm:$0xf]  ;;  %v572_v15 = vsel %vm225_vm0, %v60_v38, 4286644096  ;;  %v84_v17 = vld [vmem:[%s2116_s0 + $0x12c] sm:$0xf] }
  0x34   :  { %v29_v16 = vld [vmem:[%s2116_s0 + $0x50] sm:$0xf]  ;;  %v139_v19 = vld [vmem:[%s2116_s0 + $0x208] sm:$0xf]  ;;  %v1505_v22 = vsel %vm225_vm0, %v210_v55, 4286644096  ;;  %v574_v39 = vmax.bf16 %v572_v15, %v570_v24 }
  0x35   :  { %v489_v21 = vsel %vm225_vm0, %v107_v45, 4286644096  ;;  %v37_v25 = vld [vmem:[%s2116_s0 + $0x70] sm:$0xf]  ;;  %v1512_v26 = vsel %vm225_vm0, %v218_v3, 4286644096 }
  0x36   :  { %v493_v28 = vsel %vm225_vm0, %v115_v54, 4286644096  ;;  %v576_v29 = vsel %vm225_vm0, %v68_v53, 4286644096  ;;  %v92_v6 = vld [vmem:[%s2116_s0 + $0x14c] sm:$0xf]  ;;  %v491_v45 = vmax.bf16 %v489_v21, %v487_v27 }
  0x37   :  { %v147_v31 = vld [vmem:[%s2116_s0 + $0x228] sm:$0xf]  ;;  %v497_v37 = vsel %vm225_vm0, %v123_v60, 4286644096  ;;  %v501_v38 = vsel %vm225_vm0, %v131_v12, 4286644096  ;;  %v578_v53 = vmax.bf16 %v576_v29, %v574_v39 }
  0x38   :  { %v45_v40 = vld [vmem:[%s2116_s0 + $0x90] sm:$0xf]  ;;  %v155_v42 = vld [vmem:[%s2116_s0 + $0x248] sm:$0xf]  ;;  %v505_v46 = vsel %vm225_vm0, %v139_v19, 4286644096  ;;  %v495_v58 = vmax.bf16 %v493_v28, %v491_v45 }
  0x39   :  { %v580_v32 = vsel %vm225_vm0, %v76_v2, 4286644096  ;;  %v100_v47 = vld [vmem:[%s2116_s0 + $0x16c] sm:$0xf]  ;;  %v163_v51 = vld [vmem:[%s2116_s0 + $0x268] sm:$0xf] }
  0x3a   :  { %v656_v54 = vsel %vm225_vm0, %v13_v10, 4286644096  ;;  %v659_v23 = vsel %vm225_vm0, %v21_v11, 4286644096  ;;  %v53_v55 = vld [vmem:[%s2116_s0 + $0xb0] sm:$0xf]  ;;  %v582_v3 = vmax.bf16 %v580_v32, %v578_v53  ;;  %v305_v11 = vmax.bf16 %v1311_v30, %v301_v43 }
  0x3b   :  { %v171_v57 = vld [vmem:[%s2116_s0 + $0x288] sm:$0xf]  ;;  %v584_v59 = vsel %vm225_vm0, %v84_v17, 4286644096  ;;  %v661_v60 = vmax.bf16 %v659_v23, %v656_v54  ;;  %v663_v0 = vsel %vm225_vm0, %v29_v16, 4286644096  ;;  %v499_v12 = vmax.bf16 %v497_v37, %v495_v58 }
  0x3c   :  { %v108_v33 = vld [vmem:[%s2116_s0 + $0x18c] sm:$0xf]  ;;  %v509_v1 = vsel %vm225_vm0, %v147_v31, 4286644096  ;;  %v513_v2 = vsel %vm225_vm0, %v155_v42, 4286644096  ;;  %v408_v17 = vmax.bf16 %v1434_v41, %v404_v52  ;;  %v586_v20 = vmax.bf16 %v584_v59, %v582_v3 }
  0x3d   :  { %v667_v4 = vsel %vm225_vm0, %v37_v25, 4286644096  ;;  %v61_v8 = vld [vmem:[%s2116_s0 + $0xd0] sm:$0xf]  ;;  %v179_v9 = vld [vmem:[%s2116_s0 + $0x2a8] sm:$0xf]  ;;  %v665_v5 = vmax.bf16 %v663_v0, %v661_v60  ;;  %v503_v25 = vmax.bf16 %v501_v38, %v499_v12  ;;  %v309_v43 = vmax.bf16 %v1321_v35, %v305_v11 }
  0x3e   :  { %v187_v10 = vld [vmem:[%s2116_s0 + $0x2c8] sm:$0xf]  ;;  %v588_v13 = vsel %vm225_vm0, %v92_v6, 4286644096  ;;  %v116_v15 = vld [vmem:[%s2116_s0 + $0x1ac] sm:$0xf]  ;;  %v412_v52 = vmax.bf16 %v1445_v48, %v408_v17 }
  0x3f   :  { %v195_v16 = vld [vmem:[%s2116_s0 + $0x2e8] sm:$0xf]  ;;  %v1575_v19 = vsel %vm225_vm0, %v163_v51, 4286644096  ;;  %v671_v30 = vsel %vm225_vm0, %v45_v40, 4286644096  ;;  %v669_v41 = vmax.bf16 %v667_v4, %v665_v5  ;;  %v590_v34 = vmax.bf16 %v588_v13, %v586_v20 }
  0x40   :  { %v69_v21 = vld [vmem:[%s2116_s0 + $0xf0] sm:$0xf]  ;;  %v203_v24 = vld [vmem:[%s2116_s0 + $0x308] sm:$0xf]  ;;  %v521_v27 = vsel %vm225_vm0, %v171_v57, 4286644096  ;;  %v507_v45 = vmax.bf16 %v505_v46, %v503_v25 }
  0x41   :  { %v592_v28 = vsel %vm225_vm0, %v100_v47, 4286644096  ;;  %v124_v29 = vld [vmem:[%s2116_s0 + $0x1cc] sm:$0xf]  ;;  %v1590_v6 = vsel %vm225_vm0, %v179_v9, 4286644096  ;;  %v673_v47 = vmax.bf16 %v671_v30, %v669_v41  ;;  %v313_v9 = vmax.bf16 %v1324_v36, %v309_v43 }
  0x42   :  { %v1593_v31 = vsel %vm225_vm0, %v187_v10, 4286644096  ;;  %v675_v37 = vsel %vm225_vm0, %v53_v55, 4286644096  ;;  %v77_v38 = vld [vmem:[%s2116_s0 + $0x110] sm:$0xf]  ;;  %v594_v54 = vmax.bf16 %v592_v28, %v590_v34  ;;  %v511_v55 = vmax.bf16 %v509_v1, %v507_v45 }
  0x43   :  { %v132_v39 = vld [vmem:[%s2116_s0 + $0x1ec] sm:$0xf]  ;;  %v211_v40 = vld [vmem:[%s2116_s0 + $0x328] sm:$0xf]  ;;  %v596_v32 = vsel %vm225_vm0, %v108_v33, 4286644096  ;;  %v677_v58 = vmax.bf16 %v675_v37, %v673_v47  ;;  %v317_v37 = vmax.bf16 %v1340_v44, %v313_v9 }
  0x44   :  { %v219_v42 = vld [vmem:[%s2116_s0 + $0x348] sm:$0xf]  ;;  %v140_v51 = vld [vmem:[%s2116_s0 + $0x20c] sm:$0xf]  ;;  %v1615_v53 = vsel %vm225_vm0, %v195_v16, 4286644096  ;;  %v598_v0 = vmax.bf16 %v596_v32, %v594_v54  ;;  %v515_v10 = vmax.bf16 %v513_v2, %v511_v55 }
  0x45   :  { %v679_v23 = vsel %vm225_vm0, %v61_v8, 4286644096  ;;  %v85_v35 = vld [vmem:[%s2116_s0 + $0x130] sm:$0xf]  ;;  %v148_v46 = vld [vmem:[%s2116_s0 + $0x22c] sm:$0xf] }
  0x46   :  { %v1625_v57 = vsel %vm225_vm0, %v203_v24, 4286644096  ;;  %v600_v48 = vsel %vm225_vm0, %v116_v15, 4286644096  ;;  %v1629_v59 = vsel %vm225_vm0, %v211_v40, 4286644096  ;;  %v681_v12 = vmax.bf16 %v679_v23, %v677_v58 }
  0x47   :  { %v1632_v60 = vsel %vm225_vm0, %v219_v42, 4286644096  ;;  %v683_v33 = vsel %vm225_vm0, %v69_v21, 4286644096  ;;  %v14_v3 = vld [vmem:[%s2116_s0 + $0x14] sm:$0xf]  ;;  %v416_v15 = vmax.bf16 %v1458_v18, %v412_v52  ;;  %v602_v16 = vmax.bf16 %v600_v48, %v598_v0 }
  0x48   :  { %v22_v1 = vld [vmem:[%s2116_s0 + $0x34] sm:$0xf]  ;;  %v156_v4 = vld [vmem:[%s2116_s0 + $0x24c] sm:$0xf]  ;;  %v604_v11 = vsel %vm225_vm0, %v124_v29, 4286644096  ;;  %v519_v2 = vmax.bf16 %v1575_v19, %v515_v10  ;;  %v685_v24 = vmax.bf16 %v683_v33, %v681_v12  ;;  %v321_v33 = vmax.bf16 %v1350_v49, %v317_v37 }
  0x49   :  { %v164_v8 = vld [vmem:[%s2116_s0 + $0x26c] sm:$0xf]  ;;  %v30_v13 = vld [vmem:[%s2116_s0 + $0x54] sm:$0xf]  ;;  %v93_v5 = vld [vmem:[%s2116_s0 + $0x150] sm:$0xf]  ;;  %v606_v25 = vmax.bf16 %v604_v11, %v602_v16  ;;  %v420_v43 = vmax.bf16 %v1465_v61, %v416_v15 }
  0x4a   :  { %v608_v17 = vsel %vm225_vm0, %v132_v39, 4286644096  ;;  %v687_v20 = vsel %vm225_vm0, %v77_v38, 4286644096  ;;  %v38_v36 = vld [vmem:[%s2116_s0 + $0x74] sm:$0xf]  ;;  %v523_v38 = vmax.bf16 %v521_v27, %v519_v2 }
  0x4b   :  { %v612_v30 = vsel %vm225_vm0, %v140_v51, 4286644096  ;;  %v616_v21 = vsel %vm225_vm0, %v148_v46, 4286644096  ;;  %v620_v28 = vsel %vm225_vm0, %v156_v4, 4286644096  ;;  %v689_v39 = vmax.bf16 %v687_v20, %v685_v24 }
  0x4c   :  { %v1666_v18 = vsel %vm225_vm0, %v164_v8, 4286644096  ;;  %v691_v41 = vsel %vm225_vm0, %v85_v35, 4286644096  ;;  %v46_v29 = vld [vmem:[%s2116_s0 + $0x94] sm:$0xf]  ;;  %v610_v45 = vmax.bf16 %v608_v17, %v606_v25  ;;  %v527_v52 = vmax.bf16 %v1590_v6, %v523_v38 }
  0x4d   :  { %v101_v19 = vld [vmem:[%s2116_s0 + $0x170] sm:$0xf]  ;;  %v172_v34 = vld [vmem:[%s2116_s0 + $0x28c] sm:$0xf]  ;;  %v695_v40 = vsel %vm225_vm0, %v93_v5, 4286644096  ;;  %v693_v61 = vmax.bf16 %v691_v41, %v689_v39  ;;  %v424_v9 = vmax.bf16 %v1468_v63, %v420_v43  ;;  %v1743_v25 = vmax.bf16 %v1353_v50, %v321_v33 }
  0x4e   :  { %v180_v42 = vld [vmem:[%s2116_s0 + $0x2ac] sm:$0xf]  ;;  %v763_v32 = vsel %vm225_vm0, %v14_v3, 4286644096  ;;  %v766_v47 = vsel %vm225_vm0, %v22_v1, 4286644096  ;;  %v614_v35 = vmax.bf16 %v612_v30, %v610_v45  ;;  %v531_v15 = vmax.bf16 %v1593_v31, %v527_v52 }
  0x4f   :  { %v54_v51 = vld [vmem:[%s2116_s0 + $0xb4] sm:$0xf]  ;;  %v109_v44 = vld [vmem:[%s2116_s0 + $0x190] sm:$0xf]  ;;  %v188_v27 = vld [vmem:[%s2116_s0 + $0x2cc] sm:$0xf]  ;;  %v768_v54 = vmax.bf16 %v766_v47, %v763_v32  ;;  %v697_v1 = vmax.bf16 %v695_v40, %v693_v61  ;;  %v329_v61 = vmax.bf16 %v1364_v56, %v1743_v25 }
  0x50   :  { %v770_v23 = vsel %vm225_vm0, %v30_v13, 4286644096  ;;  %v628_v46 = vsel %vm225_vm0, %v172_v34, 4286644096  ;;  %v699_v55 = vsel %vm225_vm0, %v101_v19, 4286644096  ;;  %v618_v10 = vmax.bf16 %v616_v21, %v614_v35 }
  0x51   :  { %v774_v48 = vsel %vm225_vm0, %v38_v36, 4286644096  ;;  %v62_v58 = vld [vmem:[%s2116_s0 + $0xd4] sm:$0xf]  ;;  %v117_v0 = vld [vmem:[%s2116_s0 + $0x1b0] sm:$0xf]  ;;  %v772_v4 = vmax.bf16 %v770_v23, %v768_v54  ;;  %v701_v16 = vmax.bf16 %v699_v55, %v697_v1  ;;  %v428_v34 = vmax.bf16 %v1478_v7, %v424_v9 }
  0x52   :  { %v196_v6 = vld [vmem:[%s2116_s0 + $0x2ec] sm:$0xf]  ;;  %v632_v3 = vsel %vm225_vm0, %v180_v42, 4286644096  ;;  %v703_v11 = vsel %vm225_vm0, %v109_v44, 4286644096  ;;  %v622_v20 = vmax.bf16 %v620_v28, %v618_v10 }
  0x53   :  { %v204_v8 = vld [vmem:[%s2116_s0 + $0x30c] sm:$0xf]  ;;  %v778_v12 = vsel %vm225_vm0, %v46_v29, 4286644096  ;;  %v70_v13 = vld [vmem:[%s2116_s0 + $0xf4] sm:$0xf]  ;;  %v776_v17 = vmax.bf16 %v774_v48, %v772_v4  ;;  %v705_v41 = vmax.bf16 %v703_v11, %v701_v16  ;;  %v432_v55 = vmax.bf16 %v1492_v14, %v428_v34 }
  0x54   :  { %v125_v49 = vld [vmem:[%s2116_s0 + $0x1d0] sm:$0xf]  ;;  %v212_v5 = vld [vmem:[%s2116_s0 + $0x32c] sm:$0xf]  ;;  %v636_v63 = vsel %vm225_vm0, %v188_v27, 4286644096  ;;  %v626_v37 = vmax.bf16 %v1666_v18, %v622_v20  ;;  %v535_v18 = vmax.bf16 %v1615_v53, %v531_v15 }
  0x55   :  { %v1729_v36 = vsel %vm225_vm0, %v196_v6, 4286644096  ;;  %v707_v2 = vsel %vm225_vm0, %v117_v0, 4286644096  ;;  %v782_v30 = vsel %vm225_vm0, %v54_v51, 4286644096  ;;  %v780_v29 = vmax.bf16 %v778_v12, %v776_v17 }
  0x56   :  { %v78_v21 = vld [vmem:[%s2116_s0 + $0x114] sm:$0xf]  ;;  %v133_v31 = vld [vmem:[%s2116_s0 + $0x1f0] sm:$0xf]  ;;  %v220_v24 = vld [vmem:[%s2116_s0 + $0x34c] sm:$0xf]  ;;  %v709_v45 = vmax.bf16 %v707_v2, %v705_v41  ;;  %v630_v47 = vmax.bf16 %v628_v46, %v626_v37  ;;  %v539_v33 = vmax.bf16 %v1625_v57, %v535_v18  ;;  %v436_v15 = vmax.bf16 %v1505_v22, %v432_v55 }
  0x57   :  { %v644_v28 = vsel %vm225_vm0, %v204_v8, 4286644096  ;;  %v141_v19 = vld [vmem:[%s2116_s0 + $0x210] sm:$0xf]  ;;  %v711_v38 = vsel %vm225_vm0, %v125_v49, 4286644096  ;;  %v784_v32 = vmax.bf16 %v782_v30, %v780_v29  ;;  %v333_v37 = vmax.bf16 %v1377_v62, %v329_v61 }
  0x58   :  { %v786_v39 = vsel %vm225_vm0, %v62_v58, 4286644096  ;;  %v15_v50 = vld [vmem:[%s2116_s0 + $0x18] sm:$0xf]  ;;  %v86_v42 = vld [vmem:[%s2116_s0 + $0x134] sm:$0xf]  ;;  %v713_v54 = vmax.bf16 %v711_v38, %v709_v45  ;;  %v634_v48 = vmax.bf16 %v632_v3, %v630_v47 }
  0x59   :  { %v23_v40 = vld [vmem:[%s2116_s0 + $0x38] sm:$0xf]  ;;  %v149_v7 = vld [vmem:[%s2116_s0 + $0x230] sm:$0xf]  ;;  %v1767_v43 = vsel %vm225_vm0, %v212_v5, 4286644096  ;;  %v788_v35 = vmax.bf16 %v786_v39, %v784_v32 }
  0x5a   :  { %v1770_v51 = vsel %vm225_vm0, %v220_v24, 4286644096  ;;  %v715_v44 = vsel %vm225_vm0, %v133_v31, 4286644096  ;;  %v790_v27 = vsel %vm225_vm0, %v70_v13, 4286644096  ;;  %v638_v14 = vmax.bf16 %v636_v63, %v634_v48 }
  0x5b   :  { %v31_v52 = vld [vmem:[%s2116_s0 + $0x58] sm:$0xf]  ;;  %v719_v23 = vsel %vm225_vm0, %v141_v19, 4286644096  ;;  %v157_v46 = vld [vmem:[%s2116_s0 + $0x250] sm:$0xf]  ;;  %v717_v1 = vmax.bf16 %v715_v44, %v713_v54  ;;  %v792_v4 = vmax.bf16 %v790_v27, %v788_v35 }
  0x5c   :  { %v39_v53 = vld [vmem:[%s2116_s0 + $0x78] sm:$0xf]  ;;  %v723_v58 = vsel %vm225_vm0, %v149_v7, 4286644096  ;;  %v794_v0 = vsel %vm225_vm0, %v78_v21, 4286644096  ;;  %v642_v63 = vmax.bf16 %v1729_v36, %v638_v14  ;;  %v543_v36 = vmax.bf16 %v1629_v59, %v539_v33 }
  0x5d   :  { %v94_v6 = vld [vmem:[%s2116_s0 + $0x154] sm:$0xf]  ;;  %v165_v56 = vld [vmem:[%s2116_s0 + $0x270] sm:$0xf]  ;;  %v798_v8 = vsel %vm225_vm0, %v86_v42, 4286644096  ;;  %v721_v57 = vmax.bf16 %v719_v23, %v717_v1  ;;  %v796_v49 = vmax.bf16 %v794_v0, %v792_v4 }
  0x5e   :  { %v870_v3 = vsel %vm225_vm0, %v15_v50, 4286644096  ;;  %v873_v9 = vsel %vm225_vm0, %v23_v40, 4286644096  ;;  %v877_v10 = vsel %vm225_vm0, %v31_v52, 4286644096  ;;  %v646_v25 = vmax.bf16 %v644_v28, %v642_v63 }
  0x5f   :  { %v47_v11 = vld [vmem:[%s2116_s0 + $0x98] sm:$0xf]  ;;  %v102_v12 = vld [vmem:[%s2116_s0 + $0x174] sm:$0xf]  ;;  %v727_v13 = vsel %vm225_vm0, %v157_v46, 4286644096  ;;  %v875_v5 = vmax.bf16 %v873_v9, %v870_v3  ;;  %v725_v30 = vmax.bf16 %v723_v58, %v721_v57  ;;  %v800_v31 = vmax.bf16 %v798_v8, %v796_v49 }
  0x60   :  { %v802_v16 = vsel %vm225_vm0, %v94_v6, 4286644096  ;;  %v881_v17 = vsel %vm225_vm0, %v39_v53, 4286644096  ;;  %v55_v20 = vld [vmem:[%s2116_s0 + $0xb8] sm:$0xf]  ;;  %v440_v28 = vmax.bf16 %v1512_v26, %v436_v15  ;;  %v650_v40 = vmax.bf16 %v1767_v43, %v646_v25 }
  0x61   :  { %v110_v2 = vld [vmem:[%s2116_s0 + $0x194] sm:$0xf]  ;;  %v731_v21 = vsel %vm225_vm0, %v165_v56, 4286644096  ;;  %v879_v24 = vmax.bf16 %v877_v10, %v875_v5  ;;  %v173_v22 = vld [vmem:[%s2116_s0 + $0x290] sm:$0xf]  ;;  %v729_v38 = vmax.bf16 %v727_v13, %v725_v30  ;;  %v804_v39 = vmax.bf16 %v802_v16, %v800_v31 }
  0x62   :  { %v806_v41 = vsel %vm225_vm0, %v102_v12, 4286644096  ;;  %v885_v29 = vsel %vm225_vm0, %v47_v11, 4286644096  ;;  %v63_v19 = vld [vmem:[%s2116_s0 + $0xd8] sm:$0xf]  ;;  %v547_v27 = vmax.bf16 %v1632_v60, %v543_v36  ;;  %v654_v52 = vmax.bf16 %v1770_v51, %v650_v40 }
  0x63   :  { %v118_v34 = vld [vmem:[%s2116_s0 + $0x1b4] sm:$0xf]  ;;  %v883_v50 = vmax.bf16 %v881_v17, %v879_v24  ;;  %v71_v59 = vld [vmem:[%s2116_s0 + $0xf8] sm:$0xf]  ;;  %v810_v42 = vsel %vm225_vm0, %v110_v2, 4286644096  ;;  %v733_v45 = vmax.bf16 %v731_v21, %v729_v38  ;;  %v808_v47 = vmax.bf16 %v806_v41, %v804_v39 }
  0x64   :  { %v889_v7 = vsel %vm225_vm0, %v55_v20, 4286644096  ;;  %v79_v18 = vld [vmem:[%s2116_s0 + $0x118] sm:$0xf]  ;;  %v126_v62 = vld [vmem:[%s2116_s0 + $0x1d4] sm:$0xf]  ;;  %v1115_v6 = vcombine.low %v333_v37, %v440_v28  ;;  %v1116_v12 = vcombine.low %v547_v27, %v654_v52 }
  0x65   :  { %v735_v32 = vsel %vm225_vm0, %v173_v22, 4286644096  ;;  %v887_v44 = vmax.bf16 %v885_v29, %v883_v50  ;;  %v16_v26 = vld [vmem:[%s2116_s0 + $0x1c] sm:$0xf]  ;;  %v181_v43 = vld [vmem:[%s2116_s0 + $0x2b0] sm:$0xf]  ;;  %v812_v46 = vmax.bf16 %v810_v42, %v808_v47 }
  0x66   :  { %v814_v53 = vsel %vm225_vm0, %v118_v34, 4286644096  ;;  %v893_v61 = vsel %vm225_vm0, %v63_v19, 4286644096  ;;  %v24_v54 = vld [vmem:[%s2116_s0 + $0x3c] sm:$0xf]  ;;  %v737_v4 = vmax.bf16 %v735_v32, %v733_v45  ;;  %1099 = vst [vmem:[%s2117_s1] sm:$0xff] %v1115_v6  }
  0x67   :  { %v32_v23 = vld [vmem:[%s2116_s0 + $0x5c] sm:$0xf]  ;;  %v87_v35 = vld [vmem:[%s2116_s0 + $0x138] sm:$0xf]  ;;  %v134_v60 = vld [vmem:[%s2116_s0 + $0x1f4] sm:$0xf]  ;;  %v891_v55 = vmax.bf16 %v889_v7, %v887_v44  ;;  %v816_v14 = vmax.bf16 %v814_v53, %v812_v46 }
  0x68   :  { %v189_v51 = vld [vmem:[%s2116_s0 + $0x2d0] sm:$0xf]  ;;  %v142_v48 = vld [vmem:[%s2116_s0 + $0x214] sm:$0xf]  ;;  %v818_v58 = vsel %vm225_vm0, %v126_v62, 4286644096 }
  0x69   :  { %v897_v0 = vsel %vm225_vm0, %v71_v59, 4286644096  ;;  %v40_v56 = vld [vmem:[%s2116_s0 + $0x7c] sm:$0xf]  ;;  %v95_v33 = vld [vmem:[%s2116_s0 + $0x158] sm:$0xf]  ;;  %v895_v3 = vmax.bf16 %v893_v61, %v891_v55  ;;  %v820_v49 = vmax.bf16 %v818_v58, %v816_v14 }
  0x6a   :  { %v150_v1 = vld [vmem:[%s2116_s0 + $0x234] sm:$0xf]  ;;  %v739_v8 = vsel %vm225_vm0, %v181_v43, 4286644096  ;;  %v743_v9 = vsel %vm225_vm0, %v189_v51, 4286644096 }
  0x6b   :  { %v822_v10 = vsel %vm225_vm0, %v134_v60, 4286644096  ;;  %v901_v11 = vsel %vm225_vm0, %v79_v18, 4286644096  ;;  %v48_v57 = vld [vmem:[%s2116_s0 + $0x9c] sm:$0xf]  ;;  %v899_v15 = vmax.bf16 %v897_v0, %v895_v3  ;;  %v741_v24 = vmax.bf16 %v739_v8, %v737_v4 }
  0x6c   :  { %v197_v13 = vld [vmem:[%s2116_s0 + $0x2f0] sm:$0xf]  ;;  %v826_v5 = vsel %vm225_vm0, %v142_v48, 4286644096  ;;  %v977_v63 = vsel %vm225_vm0, %v16_v26, 4286644096  ;;  %v824_v22 = vmax.bf16 %v822_v10, %v820_v49 }
  0x6d   :  { %v905_v16 = vsel %vm225_vm0, %v87_v35, 4286644096  ;;  %v980_v17 = vsel %vm225_vm0, %v24_v54, 4286644096  ;;  %v984_v20 = vsel %vm225_vm0, %v32_v23, 4286644096  ;;  %v903_v36 = vmax.bf16 %v901_v11, %v899_v15 }
  0x6e   :  { %1117 = vst [vmem:[%s2117_s1 + $0x8] sm:$0xff] %v1116_v12   ;;  %v56_v2 = vld [vmem:[%s2116_s0 + $0xbc] sm:$0xf]  ;;  %v103_v30 = vld [vmem:[%s2116_s0 + $0x178] sm:$0xf]  ;;  %v982_v25 = vmax.bf16 %v980_v17, %v977_v63  ;;  %v828_v50 = vmax.bf16 %v826_v5, %v824_v22  ;;  %v745_v47 = vmax.bf16 %v743_v9, %v741_v24 }
  0x6f   :  { %v111_v21 = vld [vmem:[%s2116_s0 + $0x198] sm:$0xf]  ;;  %v158_v31 = vld [vmem:[%s2116_s0 + $0x254] sm:$0xf]  ;;  %v830_v41 = vsel %vm225_vm0, %v150_v1, 4286644096  ;;  %v907_v59 = vmax.bf16 %v905_v16, %v903_v36 }
  0x70   :  { %v909_v29 = vsel %vm225_vm0, %v95_v33, 4286644096  ;;  %v988_v19 = vsel %vm225_vm0, %v40_v56, 4286644096  ;;  %v64_v34 = vld [vmem:[%s2116_s0 + $0xdc] sm:$0xf]  ;;  %v986_v28 = vmax.bf16 %v984_v20, %v982_v25  ;;  %v832_v44 = vmax.bf16 %v830_v41, %v828_v50 }
  0x71   :  { %v166_v37 = vld [vmem:[%s2116_s0 + $0x274] sm:$0xf]  ;;  %v205_v38 = vld [vmem:[%s2116_s0 + $0x310] sm:$0xf]  ;;  %v747_v39 = vsel %vm225_vm0, %v197_v13, 4286644096  ;;  %v911_v26 = vmax.bf16 %v909_v29, %v907_v59 }
  0x72   :  { %v834_v40 = vsel %vm225_vm0, %v158_v31, 4286644096  ;;  %v913_v42 = vsel %vm225_vm0, %v103_v30, 4286644096  ;;  %v992_v7 = vsel %vm225_vm0, %v48_v57, 4286644096  ;;  %v990_v43 = vmax.bf16 %v988_v19, %v986_v28 }
  0x73   :  { %v72_v18 = vld [vmem:[%s2116_s0 + $0xfc] sm:$0xf]  ;;  %v119_v62 = vld [vmem:[%s2116_s0 + $0x1b8] sm:$0xf]  ;;  %v174_v32 = vld [vmem:[%s2116_s0 + $0x294] sm:$0xf]  ;;  %v836_v60 = vmax.bf16 %v834_v40, %v832_v44  ;;  %v915_v51 = vmax.bf16 %v913_v42, %v911_v26  ;;  %v749_v1 = vmax.bf16 %v747_v39, %v745_v47 }
  0x74   :  { %v127_v45 = vld [vmem:[%s2116_s0 + $0x1d8] sm:$0xf]  ;;  %v838_v27 = vsel %vm225_vm0, %v166_v37, 4286644096  ;;  %v917_v52 = vsel %vm225_vm0, %v111_v21, 4286644096  ;;  %v994_v46 = vmax.bf16 %v992_v7, %v990_v43 }
  0x75   :  { %v996_v53 = vsel %vm225_vm0, %v56_v2, 4286644096  ;;  %v80_v61 = vld [vmem:[%s2116_s0 + $0x11c] sm:$0xf]  ;;  %v182_v54 = vld [vmem:[%s2116_s0 + $0x2b4] sm:$0xf]  ;;  %v840_v4 = vmax.bf16 %v838_v27, %v836_v60  ;;  %v919_v8 = vmax.bf16 %v917_v52, %v915_v51 }
  0x76   :  { %v213_v23 = vld [vmem:[%s2116_s0 + $0x330] sm:$0xf]  ;;  %v751_v35 = vsel %vm225_vm0, %v205_v38, 4286644096  ;;  %v842_v55 = vsel %vm225_vm0, %v174_v32, 4286644096  ;;  %v998_v14 = vmax.bf16 %v996_v53, %v994_v46 }
  0x77   :  { %v921_v48 = vsel %vm225_vm0, %v119_v62, 4286644096  ;;  %v1000_v58 = vsel %vm225_vm0, %v64_v34, 4286644096  ;;  %v88_v0 = vld [vmem:[%s2116_s0 + $0x13c] sm:$0xf]  ;;  %v844_v49 = vmax.bf16 %v842_v55, %v840_v4  ;;  %v753_v21 = vmax.bf16 %v751_v35, %v749_v1 }
  0x78   :  { %v135_v6 = vld [vmem:[%s2116_s0 + $0x1f8] sm:$0xf]  ;;  %v190_v33 = vld [vmem:[%s2116_s0 + $0x2d4] sm:$0xf]  ;;  %v846_v3 = vsel %vm225_vm0, %v182_v54, 4286644096  ;;  %v923_v5 = vmax.bf16 %v921_v48, %v919_v8  ;;  %v1002_v15 = vmax.bf16 %v1000_v58, %v998_v14 }
  0x79   :  { %v143_v56 = vld [vmem:[%s2116_s0 + $0x218] sm:$0xf]  ;;  %v925_v9 = vsel %vm225_vm0, %v127_v45, 4286644096  ;;  %v1004_v10 = vsel %vm225_vm0, %v72_v18, 4286644096  ;;  %v848_v31 = vmax.bf16 %v846_v3, %v844_v49 }
  0x7a   :  { %v96_v11 = vld [vmem:[%s2116_s0 + $0x15c] sm:$0xf]  ;;  %v198_v12 = vld [vmem:[%s2116_s0 + $0x2f4] sm:$0xf]  ;;  %v221_v57 = vld [vmem:[%s2116_s0 + $0x350] sm:$0xf]  ;;  %v927_v24 = vmax.bf16 %v925_v9, %v923_v5  ;;  %v1006_v22 = vmax.bf16 %v1004_v10, %v1002_v15 }
  0x7b   :  { %v755_v13 = vsel %vm225_vm0, %v213_v23, 4286644096  ;;  %v850_v63 = vsel %vm225_vm0, %v190_v33, 4286644096  ;;  %v929_v16 = vsel %vm225_vm0, %v135_v6, 4286644096 }
  0x7c   :  { %v1008_v17 = vsel %vm225_vm0, %v80_v61, 4286644096  ;;  %v104_v20 = vld [vmem:[%s2116_s0 + $0x17c] sm:$0xf]  ;;  %v151_v2 = vld [vmem:[%s2116_s0 + $0x238] sm:$0xf]  ;;  %v852_v37 = vmax.bf16 %v850_v63, %v848_v31  ;;  %v931_v38 = vmax.bf16 %v929_v16, %v927_v24  ;;  %v757_v18 = vmax.bf16 %v755_v13, %v753_v21 }
  0x7d   :  { %v206_v30 = vld [vmem:[%s2116_s0 + $0x314] sm:$0xf]  ;;  %v854_v36 = vsel %vm225_vm0, %v198_v12, 4286644096  ;;  %v933_v25 = vsel %vm225_vm0, %v143_v56, 4286644096  ;;  %v1010_v39 = vmax.bf16 %v1008_v17, %v1006_v22 }
  0x7e   :  { %v1012_v41 = vsel %vm225_vm0, %v88_v0, 4286644096  ;;  %v159_v29 = vld [vmem:[%s2116_s0 + $0x258] sm:$0xf]  ;;  %v214_v19 = vld [vmem:[%s2116_s0 + $0x334] sm:$0xf]  ;;  %v856_v62 = vmax.bf16 %v854_v36, %v852_v37  ;;  %v935_v45 = vmax.bf16 %v933_v25, %v931_v38 }
  0x7f   :  { %v759_v34 = vsel %vm225_vm0, %v221_v57, 4286644096  ;;  %v858_v50 = vsel %vm225_vm0, %v206_v30, 4286644096  ;;  %v937_v59 = vsel %vm225_vm0, %v151_v2, 4286644096  ;;  %v1014_v32 = vmax.bf16 %v1012_v41, %v1010_v39 }
  0x80   :  { %v1016_v28 = vsel %vm225_vm0, %v96_v11, 4286644096  ;;  %v112_v40 = vld [vmem:[%s2116_s0 + $0x19c] sm:$0xf]  ;;  %v167_v42 = vld [vmem:[%s2116_s0 + $0x278] sm:$0xf]  ;;  %v860_v52 = vmax.bf16 %v858_v50, %v856_v62  ;;  %v939_v53 = vmax.bf16 %v937_v59, %v935_v45  ;;  %v761_v51 = vmax.bf16 %v759_v34, %v757_v18 }
  0x81   :  { %v222_v7 = vld [vmem:[%s2116_s0 + $0x354] sm:$0xf]  ;;  %v862_v47 = vsel %vm225_vm0, %v214_v19, 4286644096  ;;  %v941_v44 = vsel %vm225_vm0, %v159_v29, 4286644096  ;;  %v1018_v61 = vmax.bf16 %v1016_v28, %v1014_v32 }
  0x82   :  { %v1020_v26 = vsel %vm225_vm0, %v104_v20, 4286644096  ;;  %v120_v43 = vld [vmem:[%s2116_s0 + $0x1bc] sm:$0xf]  ;;  %v175_v27 = vld [vmem:[%s2116_s0 + $0x298] sm:$0xf]  ;;  %v864_v46 = vmax.bf16 %v862_v47, %v860_v52  ;;  %v943_v55 = vmax.bf16 %v941_v44, %v939_v53 }
  0x83   :  { %v866_v54 = vsel %vm225_vm0, %v222_v7, 4286644096  ;;  %v945_v23 = vsel %vm225_vm0, %v167_v42, 4286644096  ;;  %v1024_v35 = vsel %vm225_vm0, %v112_v40, 4286644096  ;;  %v1022_v48 = vmax.bf16 %v1020_v26, %v1018_v61 }
  0x84   :  { %v128_v60 = vld [vmem:[%s2116_s0 + $0x1dc] sm:$0xf]  ;;  %v949_v58 = vsel %vm225_vm0, %v175_v27, 4286644096  ;;  %v1028_v0 = vsel %vm225_vm0, %v120_v43, 4286644096  ;;  %v868_v33 = vmax.bf16 %v866_v54, %v864_v46  ;;  %v947_v1 = vmax.bf16 %v945_v23, %v943_v55 }
  0x85   :  { %v136_v6 = vld [vmem:[%s2116_s0 + $0x1fc] sm:$0xf]  ;;  %v183_v56 = vld [vmem:[%s2116_s0 + $0x2b8] sm:$0xf]  ;;  %v1026_v4 = vmax.bf16 %v1024_v35, %v1022_v48  ;;  %v1032_v8 = vsel %vm225_vm0, %v128_v60, 4286644096 }
  0x86   :  { %v144_v14 = vld [vmem:[%s2116_s0 + $0x21c] sm:$0xf]  ;;  %v951_v3 = vmax.bf16 %v949_v58, %v947_v1  ;;  %v1118_v10 = vcombine.low %v761_v51, %v868_v33  ;;  %v953_v11 = vsel %vm225_vm0, %v183_v56, 4286644096  ;;  %v1036_v12 = vsel %vm225_vm0, %v136_v6, 4286644096 }
  0x87   :  { %v1030_v9 = vmax.bf16 %v1028_v0, %v1026_v4  ;;  %v152_v57 = vld [vmem:[%s2116_s0 + $0x23c] sm:$0xf]  ;;  %v191_v13 = vld [vmem:[%s2116_s0 + $0x2d8] sm:$0xf]  ;;  %v1040_v5 = vsel %vm225_vm0, %v144_v14, 4286644096 }
  0x88   :  { %1119 = vst [vmem:[%s2117_s1 + $0x10] sm:$0xff] %v1118_v10   ;;  %v160_v15 = vld [vmem:[%s2116_s0 + $0x25c] sm:$0xf]  ;;  %v955_v63 = vmax.bf16 %v953_v11, %v951_v3  ;;  %v957_v17 = vsel %vm225_vm0, %v191_v13, 4286644096 }
  0x89   :  { %v1034_v49 = vmax.bf16 %v1032_v8, %v1030_v9  ;;  %v1044_v20 = vsel %vm225_vm0, %v152_v57, 4286644096  ;;  %v168_v2 = vld [vmem:[%s2116_s0 + $0x27c] sm:$0xf]  ;;  %v199_v30 = vld [vmem:[%s2116_s0 + $0x2f8] sm:$0xf] }
  0x8a   :  { %v1048_v31 = vsel %vm225_vm0, %v160_v15, 4286644096  ;;  %v176_v24 = vld [vmem:[%s2116_s0 + $0x29c] sm:$0xf]  ;;  %v959_v22 = vmax.bf16 %v957_v17, %v955_v63  ;;  %v961_v25 = vsel %vm225_vm0, %v199_v30, 4286644096 }
  0x8b   :  { %v1038_v16 = vmax.bf16 %v1036_v12, %v1034_v49  ;;  %v1052_v41 = vsel %vm225_vm0, %v168_v2, 4286644096  ;;  %v184_v29 = vld [vmem:[%s2116_s0 + $0x2bc] sm:$0xf]  ;;  %v207_v19 = vld [vmem:[%s2116_s0 + $0x318] sm:$0xf] }
  0x8c   :  { %v1056_v37 = vsel %vm225_vm0, %v176_v24, 4286644096  ;;  %v192_v38 = vld [vmem:[%s2116_s0 + $0x2dc] sm:$0xf]  ;;  %v963_v39 = vmax.bf16 %v961_v25, %v959_v22  ;;  %v965_v59 = vsel %vm225_vm0, %v207_v19, 4286644096 }
  0x8d   :  { %v1042_v21 = vmax.bf16 %v1040_v5, %v1038_v16  ;;  %v1060_v28 = vsel %vm225_vm0, %v184_v29, 4286644096  ;;  %v200_v40 = vld [vmem:[%s2116_s0 + $0x2fc] sm:$0xf]  ;;  %v215_v42 = vld [vmem:[%s2116_s0 + $0x338] sm:$0xf] }
  0x8e   :  { %v1064_v18 = vsel %vm225_vm0, %v192_v38, 4286644096  ;;  %v208_v62 = vld [vmem:[%s2116_s0 + $0x31c] sm:$0xf]  ;;  %v967_v45 = vmax.bf16 %v965_v59, %v963_v39  ;;  %v969_v47 = vsel %vm225_vm0, %v215_v42, 4286644096 }
  0x8f   :  { %v1046_v36 = vmax.bf16 %v1044_v20, %v1042_v21  ;;  %v1068_v44 = vsel %vm225_vm0, %v200_v40, 4286644096  ;;  %v216_v26 = vld [vmem:[%s2116_s0 + $0x33c] sm:$0xf]  ;;  %v223_v43 = vld [vmem:[%s2116_s0 + $0x358] sm:$0xf] }
  0x90   :  { %v1072_v52 = vsel %vm225_vm0, %v208_v62, 4286644096  ;;  %v224_v53 = vld [vmem:[%s2116_s0 + $0x35c] sm:$0xf]  ;;  %v971_v61 = vmax.bf16 %v969_v47, %v967_v45  ;;  %v973_v23 = vsel %vm225_vm0, %v223_v43, 4286644096 }
  0x91   :  { %v1050_v34 = vmax.bf16 %v1048_v31, %v1046_v36  ;;  %v1076_v35 = vsel %vm225_vm0, %v216_v26, 4286644096  ;;  %v1080_v51 = vsel %vm225_vm0, %v224_v53, 4286644096 }
  0x92   :  { %v975_v46 = vmax.bf16 %v973_v23, %v971_v61 }
  0x93   :  { %v1054_v50 = vmax.bf16 %v1052_v41, %v1050_v34 }
  0x95   :  { %v1058_v7 = vmax.bf16 %v1056_v37, %v1054_v50 }
  0x97   :  { %v1062_v32 = vmax.bf16 %v1060_v28, %v1058_v7 }
  0x99   :  { %v1066_v27 = vmax.bf16 %v1064_v18, %v1062_v32 }
  0x9b   :  { %v1070_v54 = vmax.bf16 %v1068_v44, %v1066_v27 }
  0x9d   :  { %v1074_v60 = vmax.bf16 %v1072_v52, %v1070_v54 }
  0x9f   :  { %v1078_v55 = vmax.bf16 %v1076_v35, %v1074_v60 }
  0xa1   :  { %v1082_v48 = vmax.bf16 %v1080_v51, %v1078_v55 }
  0xa3   :  { %v1120_v58 = vcombine.low %v975_v46, %v1082_v48 }
  0xa5   :  { %1121 = vst [vmem:[%s2117_s1 + $0x18] sm:$0xff] %v1120_v58  }

// kernel: resnet3d_forward.14
= control target key start
LH: loop header
LB: loop body
LE: loop exit
PB: predicated region body
PF: predicated region fallthrough
CT: control target
= control target key end

     0   :  { %v1960_v1 = vmov 0   ;;  %vm1048_vm0 = vcmask 523264   ;;  %s2440_s1 = inlined_call_operand.vmem [shape: bf16[1728,128], index: 1, kind: input, shape index: {}]   ;;  %s2441_s0 = inlined_call_operand.vmem [shape: bf16[32,1728], index: 0, kind: input, shape index: {}]   ;;  %s2442_s2 = inlined_call_operand.vmem [shape: f32[32,1], index: 2, kind: input, shape index: {}]   ;;  %s2443_s3 = inlined_call_operand.vmem [shape: f32[32,1], index: 3, kind: input, shape index: {}]   ;;  %s2444_s4 = inlined_call_operand.vmem [shape: bf16[32,128], index: 4, kind: output, shape index: {}]  }
   0x1   :  { %v1810_v0 = vld [vmem:[%s2440_s1 + $0x78] sm:$0xff]   ;;  %1809 = vset.pattern.permute.xlu1 %v1960_v1  ;;  %1808 = vset.pattern.permute.xlu0 %v1960_v1  ;;  %v1812_v3 = vld [vmem:[%s2440_s1 + $0x70] sm:$0xff]   ;;  %v1814_v5 = vld [vmem:[%s2440_s1 + $0x68] sm:$0xff]  }
   0x2   :  { %v1811_v2 = vld [vmem:[%s2440_s1 + $0x38] sm:$0xff]   ;;  %1639 = vmatprep.subr.bf16.mxu1 %v1810_v0  ;;  %v1813_v4 = vld [vmem:[%s2440_s1 + $0x30] sm:$0xff]   ;;  %v1815_v6 = vld [vmem:[%s2440_s1 + $0x28] sm:$0xff]  }
   0x3   :  { %1640 = vmatpush3.bf16.msra.mxu1 %v1811_v2  ;;  %v1816_v7 = vld [vmem:[%s2440_s1 + $0x60] sm:$0xff]   ;;  %v1819_v8 = vld [vmem:[%s2440_s1 + $0x178] sm:$0xff]   ;;  %v1823_v12 = vld [vmem:[%s2440_s1 + $0x170] sm:$0xff]  }
   0x4   :  { %1641 = vmatprep.subr.bf16.mxu1 %v1812_v3  ;;  %v1817_v9 = vld [vmem:[%s2440_s1 + $0x20] sm:$0xff]   ;;  %1695 = vmatprep.subr.bf16.mxu0 %v1819_v8  ;;  %v1821_v10 = vld [vmem:[%s2440_s1 + $0x138] sm:$0xff]   ;;  %v1825_v14 = vld [vmem:[%s2440_s1 + $0x130] sm:$0xff]  }
   0x5   :  { %v1818_v11 = vld [vmem:[%s2440_s1 + $0x58] sm:$0xff]   ;;  %1696 = vmatpush3.bf16.msra.mxu0 %v1821_v10  ;;  %v1822_v15 = vld [vmem:[%s2440_s1 + $0x50] sm:$0xff]   ;;  %v1827_v16 = vld [vmem:[%s2440_s1 + $0x168] sm:$0xff]  }
   0x6   :  { %v1820_v13 = vld [vmem:[%s2440_s1 + $0x18] sm:$0xff]   ;;  %1697 = vmatprep.subr.bf16.mxu0 %v1823_v12  ;;  %v1824_v17 = vld [vmem:[%s2440_s1 + $0x10] sm:$0xff]   ;;  %v1829_v18 = vld [vmem:[%s2440_s1 + $0x128] sm:$0xff]  }
   0x7   :  { %1642 = vmatpush3.bf16.msra.mxu1 %v1813_v4  ;;  %v1826_v19 = vld [vmem:[%s2440_s1 + $0x48] sm:$0xff]   ;;  %v1831_v20 = vld [vmem:[%s2440_s1 + $0x160] sm:$0xff]   ;;  %v1838_v26 = vld [vmem:[%s2440_s1 + $0x158] sm:$0xff]  }
   0x8   :  { %1643 = vmatprep.subr.bf16.mxu1 %v1814_v5  ;;  %v1828_v21 = vld [vmem:[%s2440_s1 + $0x8] sm:$0xff]   ;;  %v1833_v22 = vld [vmem:[%s2440_s1 + $0x120] sm:$0xff]   ;;  %v1837_v28 = vld [vmem:[%s2440_s1 + $0xf8] sm:$0xff]  }
   0x9   :  { %1698 = vmatpush3.bf16.msra.mxu0 %v1825_v14  ;;  %v1830_v23 = vld [vmem:[%s2440_s1 + $0x40] sm:$0xff]   ;;  %v1840_v29 = vld [vmem:[%s2440_s1 + $0x118] sm:$0xff]   ;;  %v1842_v31 = vld [vmem:[%s2440_s1 + $0x150] sm:$0xff]  }
   0xa   :  { %1699 = vmatprep.subr.bf16.mxu0 %v1827_v16  ;;  %v1836_v24 = vld [vmem:[%s2441_s0 + $0x4] ss:$56 sps:$4 sm:$0xff]   ;;  %v1834_v27 = vld [vmem:[%s2441_s0] ss:$56 sps:$4 sm:$0xff]   ;;  %v1841_v32 = vld [vmem:[%s2440_s1 + $0xf0] sm:$0xff]  }
   0xb   :  { %1644 = vmatpush3.bf16.msra.mxu1 %v1815_v6  ;;  %v1832_v25 = vld [vmem:[%s2440_s1] sm:$0xff]   ;;  %1087 = vmatprep.mubr.bf16.mxu1 %v1836_v24  ;;  %v1839_v30 = vld [vmem:[%s2440_s1 + $0xb8] sm:$0xff]   ;;  %v1844_v33 = vld [vmem:[%s2440_s1 + $0x110] sm:$0xff]  }
   0xc   :  { %1645 = vmatprep.subr.bf16.mxu1 %v1816_v7  ;;  %v1843_v34 = vld [vmem:[%s2440_s1 + $0xb0] sm:$0xff]   ;;  %v1846_v35 = vld [vmem:[%s2440_s1 + $0x148] sm:$0xff]   ;;  %v1850_v39 = vld [vmem:[%s2440_s1 + $0x140] sm:$0xff]  }
   0xd   :  { %1700 = vmatpush3.bf16.msra.mxu0 %v1829_v18  ;;  %v1845_v36 = vld [vmem:[%s2440_s1 + $0xe8] sm:$0xff]   ;;  %v1849_v40 = vld [vmem:[%s2440_s1 + $0xe0] sm:$0xff]   ;;  %v1853_v43 = vld [vmem:[%s2440_s1 + $0xd8] sm:$0xff]  }
   0xe   :  { %1701 = vmatprep.subr.bf16.mxu0 %v1831_v20  ;;  %v1848_v37 = vld [vmem:[%s2440_s1 + $0x108] sm:$0xff]   ;;  %v1851_v41 = vld [vmem:[%s2440_s1 + $0xa0] sm:$0xff]   ;;  %v1857_v46 = vld [vmem:[%s2440_s1 + $0x278] sm:$0xff]  }
   0xf   :  { %1646 = vmatpush3.bf16.msra.mxu1 %v1817_v9  ;;  %v1847_v38 = vld [vmem:[%s2440_s1 + $0xa8] sm:$0xff]   ;;  %v1852_v42 = vld [vmem:[%s2440_s1 + $0x100] sm:$0xff]   ;;  %v1858_v47 = vld [vmem:[%s2440_s1 + $0x98] sm:$0xff]  }
  0x10   :  { %1647 = vmatprep.subr.bf16.mxu1 %v1818_v11  ;;  %v1854_v44 = vld [vmem:[%s2441_s0 + $0x10] ss:$56 sps:$4 sm:$0xff]   ;;  %v1856_v45 = vld [vmem:[%s2441_s0 + $0x14] ss:$56 sps:$4 sm:$0xff]   ;;  %v1859_v48 = vld [vmem:[%s2440_s1 + $0x238] sm:$0xff]  }
  0x11   :  { %1702 = vmatpush3.bf16.msra.mxu0 %v1833_v22  ;;  %1185 = vmatprep.mubr.bf16.mxu0 %v1856_v45  ;;  %v1860_v49 = vld [vmem:[%s2441_s0 + $0x74] ss:$56 sps:$4 sm:$0xff]   ;;  %v1862_v50 = vld [vmem:[%s2441_s0 + $0x70] ss:$56 sps:$4 sm:$0xff]   ;;  %v1871_v59 = vld [vmem:[%s2440_s1 + $0xc0] sm:$0xff]  }
  0x12   :  { %1703 = vmatprep.subr.bf16.mxu0 %v1838_v26  ;;  %v1863_v51 = vld [vmem:[%s2440_s1 + $0xd0] sm:$0xff]   ;;  %v1867_v55 = vld [vmem:[%s2440_s1 + $0xc8] sm:$0xff]   ;;  %v1872_v60 = vld [vmem:[%s2440_s1 + $0x260] sm:$0xff]  }
  0x13   :  { %1648 = vmatpush3.bf16.msra.mxu1 %v1820_v13  ;;  %v1864_v52 = vld [vmem:[%s2440_s1 + $0x270] sm:$0xff]   ;;  %v1868_v56 = vld [vmem:[%s2440_s1 + $0x268] sm:$0xff]   ;;  %v1873_v61 = vld [vmem:[%s2440_s1 + $0x80] sm:$0xff]  }
  0x14   :  { %1649 = vmatprep.subr.bf16.mxu1 %v1822_v15  ;;  %v1865_v53 = vld [vmem:[%s2440_s1 + $0x90] sm:$0xff]   ;;  %v1869_v57 = vld [vmem:[%s2440_s1 + $0x88] sm:$0xff]   ;;  %v1874_v62 = vld [vmem:[%s2440_s1 + $0x220] sm:$0xff]  }
  0x15   :  { %1704 = vmatpush3.bf16.msra.mxu0 %v1840_v29  ;;  %v1866_v54 = vld [vmem:[%s2440_s1 + $0x230] sm:$0xff]   ;;  %v1870_v58 = vld [vmem:[%s2440_s1 + $0x228] sm:$0xff]   ;;  %v1878_v2 = vld [vmem:[%s2440_s1 + $0x1f8] sm:$0xff]  }
  0x16   :  { %1705 = vmatprep.subr.bf16.mxu0 %v1842_v31  ;;  %v1875_v63 = vld [vmem:[%s2441_s0 + $0x8] ss:$56 sps:$4 sm:$0xff]   ;;  %v1877_v0 = vld [vmem:[%s2441_s0 + $0xc] ss:$56 sps:$4 sm:$0xff]   ;;  %v1879_v3 = vld [vmem:[%s2440_s1 + $0x258] sm:$0xff]  }
  0x17   :  { %1650 = vmatpush3.bf16.msra.mxu1 %v1824_v17  ;;  %v1880_v4 = vld [vmem:[%s2440_s1 + $0x1b8] sm:$0xff]   ;;  %v1882_v6 = vld [vmem:[%s2440_s1 + $0x1f0] sm:$0xff]   ;;  %v1891_v13 = vld [vmem:[%s2440_s1 + $0x1e8] sm:$0xff]  }
  0x18   :  { %1651 = vmatprep.subr.bf16.mxu1 %v1826_v19  ;;  %v1881_v5 = vld [vmem:[%s2440_s1 + $0x218] sm:$0xff]   ;;  %v1883_v7 = vld [vmem:[%s2440_s1 + $0x250] sm:$0xff]   ;;  %v1892_v14 = vld [vmem:[%s2440_s1 + $0x248] sm:$0xff]  }
  0x19   :  { %1706 = vmatpush3.bf16.msra.mxu0 %v1844_v33  ;;  %v1884_v8 = vld [vmem:[%s2440_s1 + $0x1b0] sm:$0xff]   ;;  %v1889_v12 = vld [vmem:[%s2441_s0 + $0x84] ss:$56 sps:$4 sm:$0xff]   ;;  %v1893_v15 = vld [vmem:[%s2441_s0 + $0x80] ss:$56 sps:$4 sm:$0xff]  }
  0x1a   :  { %1707 = vmatprep.subr.bf16.mxu0 %v1846_v35  ;;  %v1885_v9 = vld [vmem:[%s2440_s1 + $0x210] sm:$0xff]   ;;  %v1894_v16 = vld [vmem:[%s2440_s1 + $0x1a8] sm:$0xff]   ;;  %v1896_v18 = vld [vmem:[%s2440_s1 + $0x1e0] sm:$0xff]  }
  0x1b   :  { %1652 = vmatpush3.bf16.msra.mxu1 %v1828_v21  ;;  %v1886_v10 = vld [vmem:[%s2441_s0 + $0x7c] ss:$56 sps:$4 sm:$0xff]   ;;  %v1888_v11 = vld [vmem:[%s2441_s0 + $0x78] ss:$56 sps:$4 sm:$0xff]   ;;  %v1895_v17 = vld [vmem:[%s2440_s1 + $0x208] sm:$0xff]  }
  0x1c   :  { %1653 = vmatprep.subr.bf16.mxu1 %v1830_v23  ;;  %v1897_v19 = vld [vmem:[%s2440_s1 + $0x240] sm:$0xff]   ;;  %v1900_v22 = vld [vmem:[%s2440_s1 + $0x1d8] sm:$0xff]   ;;  %v1908_v29 = vld [vmem:[%s2440_s1 + $0x330] sm:$0xff]  }
  0x1d   :  { %1708 = vmatpush3.bf16.msra.mxu0 %v1848_v37  ;;  %v1898_v20 = vld [vmem:[%s2440_s1 + $0x1a0] sm:$0xff]   ;;  %v1905_v26 = vld [vmem:[%s2440_s1 + $0x338] sm:$0xff]   ;;  %v1910_v31 = vld [vmem:[%s2440_s1 + $0x188] sm:$0xff]  }
  0x1e   :  { %1709 = vmatprep.subr.bf16.mxu0 %v1850_v39  ;;  %v1899_v21 = vld [vmem:[%s2440_s1 + $0x200] sm:$0xff]   ;;  %v1917_v37 = vld [vmem:[%s2441_s0 + $0x1c] ss:$56 sps:$4 sm:$0xff]  }
  0x1f   :  { %1654 = vmatpush3.bf16.msra.mxu1 %v1832_v25  ;;  %v1901_v23 = vld [vmem:[%s2441_s0 + $0x20] ss:$56 sps:$4 sm:$0xff]   ;;  %v1903_v24 = vld [vmem:[%s2441_s0 + $0x24] ss:$56 sps:$4 sm:$0xff]  }
  0x20   :  { %1667 = vmatprep.subr.bf16.mxu1 %v1837_v28  ;;  %v1904_v25 = vld [vmem:[%s2440_s1 + $0x198] sm:$0xff]   ;;  %v1907_v28 = vld [vmem:[%s2440_s1 + $0x190] sm:$0xff]   ;;  %v1912_v33 = vld [vmem:[%s2440_s1 + $0x1c0] sm:$0xff]  }
  0x21   :  { %1710 = vmatpush3.bf16.msra.mxu0 %v1852_v42  ;;  %v1914_v35 = vld [vmem:[%s2440_s1 + $0x320] sm:$0xff]   ;;  %v1919_v39 = vld [vmem:[%s2440_s1 + $0x2b8] sm:$0xff]   ;;  %v1922_v42 = vld [vmem:[%s2440_s1 + $0x2b0] sm:$0xff]  }
  0x22   :  { %1088 = vmatmul.mubr.bf16.vlgmr.msra.gmra.mxu1 %v1834_v27  ;;  %1751 = vmatprep.subr.bf16.mxu0 %v1857_v46  ;;  %v1906_v27 = vld [vmem:[%s2440_s1 + $0x1d0] sm:$0xff]   ;;  %v1926_v45 = vld [vmem:[%s2441_s0 + $0x88] ss:$56 sps:$4 sm:$0xff]  }
  0x23   :  { %1668 = vmatpush3.bf16.msra.mxu1 %v1839_v30  ;;  %1095 = vmatprep.mubr.bf16.mxu1 %v1860_v49  ;;  %v1909_v30 = vld [vmem:[%s2440_s1 + $0x1c8] sm:$0xff]  }
  0x24   :  { %1669 = vmatprep.subr.bf16.mxu1 %v1841_v32  ;;  %1186 = vmatmul.mubr.bf16.vlgmr.msra.gmra.mxu0 %v1854_v44  ;;  %v1911_v32 = vld [vmem:[%s2440_s1 + $0x328] sm:$0xff]  }
  0x25   :  { %1752 = vmatpush3.bf16.msra.mxu0 %v1859_v48  ;;  %1193 = vmatprep.mubr.bf16.mxu0 %v1889_v12  ;;  %v1924_v44 = vld [vmem:[%s2441_s0 + $0x8c] ss:$56 sps:$4 sm:$0xff]  }
  0x26   :  { %1753 = vmatprep.subr.bf16.mxu0 %v1864_v52  ;;  %v1927_v46 = vld [vmem:[%s2440_s1 + $0x2e8] sm:$0xff]   ;;  %v1934_v52 = vld [vmem:[%s2440_s1 + $0x2a0] sm:$0xff]  }
  0x27   :  { %1670 = vmatpush3.bf16.msra.mxu1 %v1843_v34  ;;  %v1913_v34 = vld [vmem:[%s2440_s1 + $0x180] sm:$0xff]   ;;  %v1930_v48 = vld [vmem:[%s2440_s1 + $0x2a8] sm:$0xff]  }
  0x28   :  { %1671 = vmatprep.subr.bf16.mxu1 %v1845_v36  ;;  %v1915_v36 = vld [vmem:[%s2441_s0 + $0x18] ss:$56 sps:$4 sm:$0xff]   ;;  %v1931_v49 = vld [vmem:[%s2440_s1 + $0x308] sm:$0xff]  }
  0x29   :  { %1754 = vmatpush3.bf16.msra.mxu0 %v1866_v54  ;;  %v1936_v54 = vld [vmem:[%s2440_s1 + $0x2d8] sm:$0xff]   ;;  %v1427_v12 = vld [vmem:[%s2443_s3 + $0x8] sm:$0xff] }
  0x2a   :  { %1096 = vmatmul.mubr.bf16.gmra.mxu1 %v1862_v50  ;;  %1755 = vmatprep.subr.bf16.mxu0 %v1868_v56  ;;  %v1932_v50 = vld [vmem:[%s2441_s0 + $0x90] ss:$56 sps:$4 sm:$0xff]   ;;  %v1938_v56 = vld [vmem:[%s2440_s1 + $0x358] sm:$0xff]  }
  0x2b   :  { %1672 = vmatpush3.bf16.msra.mxu1 %v1847_v38  ;;  %1136 = vmatprep.mubr.bf16.mxu1 %v1877_v0  ;;  %v1918_v38 = vld [vmem:[%s2440_s1 + $0x2f8] sm:$0xff]   ;;  %v1950_v0 = vld [vmem:[%s2441_s0 + $0x2c] ss:$56 sps:$4 sm:$0xff]  }
  0x2c   :  { %1673 = vmatprep.subr.bf16.mxu1 %v1849_v40  ;;  %1194 = vmatmul.mubr.bf16.gmra.mxu0 %v1893_v15  ;;  %v1920_v40 = vld [vmem:[%s2440_s1 + $0x318] sm:$0xff]  }
  0x2d   :  { %1756 = vmatpush3.bf16.msra.mxu0 %v1870_v58  ;;  %1283 = vmatprep.mubr.bf16.mxu0 %v1903_v24  ;;  %v1940_v58 = vld [vmem:[%s2440_s1 + $0x290] sm:$0xff]   ;;  %v1429_v15 = vld [vmem:[%s2443_s3 + $0x18] sm:$0xff] }
  0x2e   :  { %1757 = vmatprep.subr.bf16.mxu0 %v1872_v60  ;;  %v1942_v60 = vld [vmem:[%s2440_s1 + $0x2c8] sm:$0xff]  }
  0x2f   :  { %1674 = vmatpush3.bf16.msra.mxu1 %v1851_v41  ;;  %v1921_v41 = vld [vmem:[%s2440_s1 + $0x2f0] sm:$0xff]  }
  0x30   :  { %1675 = vmatprep.subr.bf16.mxu1 %v1853_v43  ;;  %v1923_v43 = vld [vmem:[%s2440_s1 + $0x310] sm:$0xff]  }
  0x31   :  { %1758 = vmatpush3.bf16.msra.mxu0 %v1874_v62  ;;  %v1944_v62 = vld [vmem:[%s2440_s1 + $0x348] sm:$0xff]  }
  0x32   :  { %1759 = vmatprep.subr.bf16.mxu0 %v1879_v3  ;;  %v1946_v3 = vld [vmem:[%s2440_s1 + $0x280] sm:$0xff]  }
  0x33   :  { %1676 = vmatpush3.bf16.msra.mxu1 %v1858_v47  ;;  %v1928_v47 = vld [vmem:[%s2441_s0 + $0x94] ss:$56 sps:$4 sm:$0xff]  }
  0x34   :  { %1677 = vmatprep.subr.bf16.mxu1 %v1863_v51  ;;  %v1933_v51 = vld [vmem:[%s2440_s1 + $0x2e0] sm:$0xff]  }
  0x35   :  { %1760 = vmatpush3.bf16.msra.mxu0 %v1881_v5  ;;  %v1400_v5 = vld [vmem:[%s2442_s2 + $0x10] sm:$0xff] }
  0x36   :  { %1761 = vmatprep.subr.bf16.mxu0 %v1883_v7  ;;  %1414 = vperm.xlu1 %1809, %v1400_v5   ;;  %v1948_v7 = vld [vmem:[%s2441_s0 + $0x28] ss:$56 sps:$4 sm:$0xff]  }
  0x37   :  { %1678 = vmatpush3.bf16.msra.mxu1 %v1865_v53  ;;  %v1935_v53 = vld [vmem:[%s2440_s1 + $0x300] sm:$0xff]  }
  0x38   :  { %1679 = vmatprep.subr.bf16.mxu1 %v1867_v55  ;;  %v1937_v55 = vld [vmem:[%s2440_s1 + $0x298] sm:$0xff]  }
  0x39   :  { %1762 = vmatpush3.bf16.msra.mxu0 %v1885_v9  ;;  %v1951_v9 = vld [vmem:[%s2441_s0 + $0x30] ss:$56 sps:$4 sm:$0xff]  }
  0x3a   :  { %1763 = vmatprep.subr.bf16.mxu0 %v1892_v14  ;;  %v1958_v14 = vld [vmem:[%s2441_s0 + $0x98] ss:$56 sps:$4 sm:$0xff]  }
  0x3b   :  { %1680 = vmatpush3.bf16.msra.mxu1 %v1869_v57  ;;  %v1939_v57 = vld [vmem:[%s2440_s1 + $0x2d0] sm:$0xff]  }
  0x3c   :  { %1681 = vmatprep.subr.bf16.mxu1 %v1871_v59  ;;  %v1941_v59 = vld [vmem:[%s2440_s1 + $0x350] sm:$0xff]  }
  0x3d   :  { %1764 = vmatpush3.bf16.msra.mxu0 %v1895_v17  ;;  %v1428_v17 = vld [vmem:[%s2443_s3 + $0x10] sm:$0xff] }
  0x3e   :  { %1765 = vmatprep.subr.bf16.mxu0 %v1897_v19 }
  0x3f   :  { %1682 = vmatpush3.bf16.msra.mxu1 %v1873_v61  ;;  %v1943_v61 = vld [vmem:[%s2440_s1 + $0x288] sm:$0xff]  }
  0x40   :  { %1723 = vmatprep.subr.bf16.mxu1 %v1878_v2  ;;  %v1953_v2 = vld [vmem:[%s2441_s0 + $0x34] ss:$56 sps:$4 sm:$0xff]  }
  0x41   :  { %1766 = vmatpush3.bf16.msra.mxu0 %v1899_v21 }
  0x42   :  { %1137 = vmatmul.mubr.bf16.vlgmr.msra.gmra.mxu1 %v1875_v63  ;;  %1349 = vmatprep.subr.bf16.mxu0 %v1960_v1  ;;  %v1945_v63 = vld [vmem:[%s2440_s1 + $0x2c0] sm:$0xff]  }
  0x43   :  { %1724 = vmatpush3.bf16.msra.mxu1 %v1880_v4  ;;  %1144 = vmatprep.mubr.bf16.mxu1 %v1886_v10  ;;  %v1947_v4 = vld [vmem:[%s2440_s1 + $0x340] sm:$0xff]   ;;  %v1399_v10 = vld [vmem:[%s2442_s2 + $0x8] sm:$0xff] }
  0x44   :  { %1725 = vmatprep.subr.bf16.mxu1 %v1882_v6  ;;  %1284 = vmatmul.mubr.bf16.vlgmr.msra.gmra.mxu0 %v1901_v23  ;;  %v1398_v6 = vld [vmem:[%s2442_s2] sm:$0xff] }
  0x45   :  { %1350 = vmatpush1.bf16.msra.mxu0 %v1905_v26  ;;  %1291 = vmatprep.mubr.bf16.mxu0 %v1928_v47 }
  0x46   :  { %1351 = vmatprep.subr.bf16.mxu0 %v1960_v1  ;;  %1404 = vperm.xlu0 %1808, %v1398_v6  }
  0x47   :  { %1726 = vmatpush3.bf16.msra.mxu1 %v1884_v8  ;;  %v1401_v8 = vld [vmem:[%s2442_s2 + $0x18] sm:$0xff] }
  0x48   :  { %1727 = vmatprep.subr.bf16.mxu1 %v1891_v13  ;;  %1419 = vperm.xlu1 %1809, %v1401_v8   ;;  %v1426_v13 = vld [vmem:[%s2443_s3] sm:$0xff] }
  0x49   :  { %1352 = vmatpush1.bf16.msra.mxu0 %v1908_v29 }
  0x4a   :  { %1145 = vmatmul.mubr.bf16.gmra.mxu1 %v1888_v11  ;;  %1353 = vmatprep.subr.bf16.mxu0 %v1960_v1  ;;  %v1956_v11 = vld [vmem:[%s2441_s0 + $0xa4] ss:$56 sps:$4 sm:$0xff]  }
  0x4b   :  { %1728 = vmatpush3.bf16.msra.mxu1 %v1894_v16  ;;  %1234 = vmatprep.mubr.bf16.mxu1 %v1917_v37  ;;  %v1959_v16 = vld [vmem:[%s2441_s0 + $0xa0] ss:$56 sps:$4 sm:$0xff]  }
  0x4c   :  { %1729 = vmatprep.subr.bf16.mxu1 %v1896_v18  ;;  %1292 = vmatmul.mubr.bf16.gmra.mxu0 %v1932_v50 }
  0x4d   :  { %1354 = vmatpush1.bf16.msra.mxu0 %v1911_v32  ;;  %1618 = vmatprep.mubr.msk.bf16.mxu0 %vm1048_vm0, %v1953_v2 }
  0x4e   :  { %1355 = vmatprep.subr.bf16.mxu0 %v1960_v1  ;;  %1409 = vperm.xlu0 %1808, %v1399_v10  }
  0x4f   :  { %1730 = vmatpush3.bf16.msra.mxu1 %v1898_v20  ;;  %1437 = vperm.xlu1 %1809, %v1427_v12  }
  0x50   :  { %1731 = vmatprep.subr.bf16.mxu1 %v1900_v22 }
  0x51   :  { %1356 = vmatpush1.bf16.msra.mxu0 %v1914_v35 }
  0x52   :  { %1357 = vmatprep.subr.bf16.mxu0 %v1960_v1  ;;  %1432 = vperm.xlu0 %1808, %v1426_v13  }
  0x53   :  { %1732 = vmatpush3.bf16.msra.mxu1 %v1904_v25  ;;  %1447 = vperm.xlu1 %1809, %v1429_v15  }
  0x54   :  { %1733 = vmatprep.subr.bf16.mxu1 %v1906_v27 }
  0x55   :  { %1358 = vmatpush1.bf16.msra.mxu0 %v1920_v40 }
  0x56   :  { %1359 = vmatprep.subr.bf16.mxu0 %v1960_v1  ;;  %1442 = vperm.xlu0 %1808, %v1428_v17  }
  0x57   :  { %1734 = vmatpush3.bf16.msra.mxu1 %v1907_v28 }
  0x58   :  { %1735 = vmatprep.subr.bf16.mxu1 %v1909_v30 }
  0x59   :  { %1360 = vmatpush1.bf16.msra.mxu0 %v1923_v43 }
  0x5a   :  { %1361 = vmatprep.subr.bf16.mxu0 %v1960_v1 }
  0x5b   :  { %1736 = vmatpush3.bf16.msra.mxu1 %v1910_v31 }
  0x5c   :  { %1737 = vmatprep.subr.bf16.mxu1 %v1912_v33 }
  0x5d   :  { %1362 = vmatpush1.bf16.msra.mxu0 %v1931_v49 }
  0x5e   :  { %1363 = vmatprep.subr.bf16.mxu0 %v1960_v1 }
  0x5f   :  { %1738 = vmatpush3.bf16.msra.mxu1 %v1913_v34 }
  0x60   :  { %1779 = vmatprep.subr.bf16.mxu1 %v1918_v38 }
  0x61   :  { %1364 = vmatpush1.bf16.msra.mxu0 %v1935_v53 }
  0x62   :  { %1235 = vmatmul.mubr.bf16.vlgmr.msra.gmra.mxu1 %v1915_v36  ;;  %1373 = vmatprep.subr.bf16.mxu0 %v1960_v1 }
  0x63   :  { %1780 = vmatpush3.bf16.msra.mxu1 %v1919_v39  ;;  %1242 = vmatprep.mubr.bf16.mxu1 %v1924_v44 }
  0x64   :  { %1781 = vmatprep.subr.bf16.mxu1 %v1921_v41 }
  0x65   :  { %1374 = vmatpush2.bf16.msra.mxu0 %v1938_v56 }
  0x66   :  { %1375 = vmatprep.subr.bf16.mxu0 %v1960_v1 }
  0x67   :  { %1782 = vmatpush3.bf16.msra.mxu1 %v1922_v42 }
  0x68   :  { %1783 = vmatprep.subr.bf16.mxu1 %v1927_v46 }
  0x69   :  { %1376 = vmatpush2.bf16.msra.mxu0 %v1941_v59 }
  0x6a   :  { %1243 = vmatmul.mubr.bf16.gmra.mxu1 %v1926_v45  ;;  %1377 = vmatprep.subr.bf16.mxu0 %v1960_v1 }
  0x6b   :  { %1784 = vmatpush3.bf16.msra.mxu1 %v1930_v48  ;;  %1332 = vmatprep.mubr.bf16.mxu1 %v1950_v0 }
  0x6c   :  { %1785 = vmatprep.subr.bf16.mxu1 %v1933_v51 }
  0x6d   :  { %1378 = vmatpush2.bf16.msra.mxu0 %v1944_v62 }
  0x6e   :  { %1379 = vmatprep.subr.bf16.mxu0 %v1960_v1  ;;  %v1954_v1 = vld [vmem:[%s2441_s0 + $0x9c] ss:$56 sps:$4 sm:$0xff]  }
  0x6f   :  { %1786 = vmatpush3.bf16.msra.mxu1 %v1934_v52 }
  0x70   :  { %1787 = vmatprep.subr.bf16.mxu1 %v1936_v54 }
  0x71   :  { %1380 = vmatpush2.bf16.msra.mxu0 %v1947_v4 }
  0x73   :  { %1788 = vmatpush3.bf16.msra.mxu1 %v1937_v55 }
  0x74   :  { %1789 = vmatprep.subr.bf16.mxu1 %v1939_v57  ;;  %1382 = vmatmul.mubr.bf16.vlgmr.msra.gmra.mxu0 %v1951_v9 }
  0x75   :  { %1619 = vmatprep.mubr.msk.bf16.mxu0 %vm1048_vm0, %v1956_v11 }
  0x77   :  { %1790 = vmatpush3.bf16.msra.mxu1 %v1940_v58 }
  0x78   :  { %1791 = vmatprep.subr.bf16.mxu1 %v1942_v60 }
  0x7b   :  { %1792 = vmatpush3.bf16.msra.mxu1 %v1943_v61 }
  0x7c   :  { %1793 = vmatprep.subr.bf16.mxu1 %v1945_v63  ;;  %1390 = vmatmul.mubr.bf16.gmra.mxu0 %v1959_v16 }
  0x7f   :  { %1794 = vmatpush3.bf16.msra.mxu1 %v1946_v3 }
  0x82   :  { %1333 = vmatmul.mubr.bf16.vlgmr.msra.gmra.mxu1 %v1948_v7 }
  0x83   :  { %1340 = vmatprep.mubr.bf16.mxu1 %v1954_v1 }
  0x8a   :  { %1341 = vmatmul.mubr.bf16.gmra.mxu1 %v1958_v14 }
  0xb1   :  { %v1415_v17 = vpop.permute.xlu1 %1414 }
  0xc1   :  { %v1405_v10 = vpop.permute.xlu0 %1404 }
  0xe2   :  { %v1655_v18 = vpop.f32.mrf.mxu1 }
  0xe4   :  { %v1656_v19 = vpop.f32.mrf.mxu1  ;;  %v1711_v27 = vpop.f32.mrf.mxu0 }
  0xe5   :  { %v1657_v54 = vadd.f32 %v1656_v19, %v1655_v18 }
  0xe6   :  { %v1658_v20 = vpop.f32.mrf.mxu1  ;;  %v1712_v29 = vpop.f32.mrf.mxu0 }
  0xe7   :  { %v1713_v60 = vadd.f32 %v1712_v29, %v1711_v27 }
  0xe8   :  { %v1659_v21 = vpop.f32.mrf.mxu1  ;;  %v1714_v31 = vpop.f32.mrf.mxu0 }
  0xe9   :  { %v1660_v59 = vadd.f32 %v1659_v21, %v1658_v20 }
  0xea   :  { %v1661_v22 = vpop.f32.mrf.mxu1  ;;  %v1715_v33 = vpop.f32.mrf.mxu0 }
  0xeb   :  { %v1716_v5 = vadd.f32 %v1715_v33, %v1714_v31 }
  0xec   :  { %v1662_v23 = vpop.f32.mrf.mxu1  ;;  %v1717_v35 = vpop.f32.mrf.mxu0 }
  0xed   :  { %v1663_v3 = vadd.f32 %v1662_v23, %v1661_v22 }
  0xee   :  { %v1664_v24 = vpop.f32.mrf.mxu1  ;;  %v1718_v37 = vpop.f32.mrf.mxu0 }
  0xef   :  { %v1719_v1 = vadd.f32 %v1718_v37, %v1717_v35  ;;  %v1410_v35 = vpop.permute.xlu0 %1409 }
  0xf0   :  { %v1665_v25 = vpop.f32.mrf.mxu1  ;;  %v1720_v39 = vpop.f32.mrf.mxu0 }
  0xf1   :  { %v1666_v19 = vadd.f32 %v1665_v25, %v1664_v24  ;;  %v1420_v25 = vpop.permute.xlu1 %1419 }
  0xf2   :  { %v1721_v41 = vpop.f32.mrf.mxu0 }
  0xf3   :  { %v1722_v29 = vadd.f32 %v1721_v41, %v1720_v39 }
 0x102   :  { %v1683_v26 = vpop.f32.mrf.mxu1 }
 0x104   :  { %v1684_v28 = vpop.f32.mrf.mxu1  ;;  %v1767_v43 = vpop.f32.mrf.mxu0 }
 0x105   :  { %v1685_v52 = vadd.f32 %v1684_v28, %v1683_v26 }
 0x106   :  { %v1686_v30 = vpop.f32.mrf.mxu1  ;;  %v1768_v45 = vpop.f32.mrf.mxu0 }
 0x107   :  { %v1139_v56 = vadd.f32 %v1685_v52, %v1657_v54  ;;  %v1769_v13 = vadd.f32 %v1768_v45, %v1767_v43 }
 0x108   :  { %v1687_v32 = vpop.f32.mrf.mxu1  ;;  %v1770_v47 = vpop.f32.mrf.mxu0 }
 0x109   :  { %v1688_v57 = vadd.f32 %v1687_v32, %v1686_v30  ;;  %v1188_v2 = vadd.f32 %v1713_v60, %v1139_v56 }
 0x10a   :  { %v1689_v34 = vpop.f32.mrf.mxu1  ;;  %v1771_v49 = vpop.f32.mrf.mxu0 }
 0x10b   :  { %v1142_v0 = vadd.f32 %v1688_v57, %v1660_v59  ;;  %v1772_v30 = vadd.f32 %v1771_v49, %v1770_v47  ;;  %v1438_v59 = vpop.permute.xlu1 %1437 }
 0x10c   :  { %v1690_v36 = vpop.f32.mrf.mxu1  ;;  %v1773_v51 = vpop.f32.mrf.mxu0 }
 0x10d   :  { %v1691_v63 = vadd.f32 %v1690_v36, %v1689_v34  ;;  %v1191_v14 = vadd.f32 %v1716_v5, %v1142_v0 }
 0x10e   :  { %v1692_v38 = vpop.f32.mrf.mxu1  ;;  %v1774_v55 = vpop.f32.mrf.mxu0 }
 0x10f   :  { %v1147_v9 = vadd.f32 %v1691_v63, %v1663_v3  ;;  %v1775_v34 = vadd.f32 %v1774_v55, %v1773_v51 }
 0x110   :  { %v1693_v40 = vpop.f32.mrf.mxu1  ;;  %v1776_v62 = vpop.f32.mrf.mxu0 }
 0x111   :  { %v1694_v12 = vadd.f32 %v1693_v40, %v1692_v38  ;;  %v1196_v26 = vadd.f32 %v1719_v1, %v1147_v9 }
 0x112   :  { %v1777_v8 = vpop.f32.mrf.mxu0 }
 0x113   :  { %v1150_v28 = vadd.f32 %v1694_v12, %v1666_v19  ;;  %v1778_v47 = vadd.f32 %v1777_v8, %v1776_v62 }
 0x122   :  { %v1739_v42 = vpop.f32.mrf.mxu1 }
 0x124   :  { %v1740_v44 = vpop.f32.mrf.mxu1 }
 0x125   :  { %v1741_v61 = vadd.f32 %v1740_v44, %v1739_v42  ;;  %v1199_v44 = vadd.f32 %v1722_v29, %v1150_v28 }
 0x126   :  { %v1742_v46 = vpop.f32.mrf.mxu1 }
 0x127   :  { %v1237_v6 = vadd.f32 %v1741_v61, %v1188_v2 }
 0x128   :  { %v1743_v48 = vpop.f32.mrf.mxu1 }
 0x129   :  { %v1744_v7 = vadd.f32 %v1743_v48, %v1742_v46  ;;  %v1286_v21 = vadd.f32 %v1769_v13, %v1237_v6 }
 0x12a   :  { %v1745_v50 = vpop.f32.mrf.mxu1 }
 0x12b   :  { %v1240_v20 = vadd.f32 %v1744_v7, %v1191_v14 }
 0x12c   :  { %v1746_v53 = vpop.f32.mrf.mxu1 }
 0x12d   :  { %v1747_v16 = vadd.f32 %v1746_v53, %v1745_v50  ;;  %v1289_v40 = vadd.f32 %v1772_v30, %v1240_v20  ;;  %v1433_v53 = vpop.permute.xlu0 %1432 }
 0x12e   :  { %v1748_v58 = vpop.f32.mrf.mxu1 }
 0x12f   :  { %v1245_v33 = vadd.f32 %v1747_v16, %v1196_v26 }
 0x130   :  { %v1749_v4 = vpop.f32.mrf.mxu1 }
 0x131   :  { %v1750_v37 = vadd.f32 %v1749_v4, %v1748_v58  ;;  %v1294_v50 = vadd.f32 %v1775_v34, %v1245_v33  ;;  %v1443_v9 = vpop.permute.xlu0 %1442 }
 0x133   :  { %v1248_v41 = vadd.f32 %v1750_v37, %v1199_v44 }
 0x134   :  { %v1383_v15 = vpop.f32.mrf.mxu0 }
 0x135   :  { %v1297_v61 = vadd.f32 %v1778_v47, %v1248_v41 }
 0x136   :  { %v1385_v23 = vpop.f32.mrf.mxu0 }
 0x138   :  { %v1386_v32 = vpop.f32.mrf.mxu0 }
 0x13a   :  { %v1388_v24 = vpop.f32.mrf.mxu0 }
 0x13c   :  { %v1391_v48 = vpop.f32.mrf.mxu0 }
 0x13e   :  { %v1393_v51 = vpop.f32.mrf.mxu0 }
 0x140   :  { %v1394_v58 = vpop.f32.mrf.mxu0 }
 0x142   :  { %v1795_v11 = vpop.f32.mrf.mxu1  ;;  %v1396_v3 = vpop.f32.mrf.mxu0 }
 0x144   :  { %v1796_v18 = vpop.f32.mrf.mxu1 }
 0x145   :  { %v1797_v22 = vadd.f32 %v1796_v18, %v1795_v11  ;;  %v1448_v11 = vpop.permute.xlu1 %1447 }
 0x146   :  { %v1798_v27 = vpop.f32.mrf.mxu1 }
 0x147   :  { %v1335_v31 = vadd.f32 %v1797_v22, %v1286_v21 }
 0x148   :  { %v1799_v36 = vpop.f32.mrf.mxu1 }
 0x149   :  { %v1384_v38 = vadd.f32 %v1383_v15, %v1335_v31  ;;  %v1800_v42 = vadd.f32 %v1799_v36, %v1798_v27 }
 0x14a   :  { %v1801_v43 = vpop.f32.mrf.mxu1 }
 0x14b   :  { %v1422_v45 = vmul.f32 %v1405_v10, %v1384_v38  ;;  %v1338_v46 = vadd.f32 %v1800_v42, %v1289_v40 }
 0x14c   :  { %v1802_v39 = vpop.f32.mrf.mxu1 }
 0x14d   :  { %v1387_v49 = vadd.f32 %v1386_v32, %v1338_v46  ;;  %v1803_v52 = vadd.f32 %v1802_v39, %v1801_v43  ;;  %v1450_v55 = vadd.f32 %v1433_v53, %v1422_v45 }
 0x14e   :  { %v1804_v54 = vpop.f32.mrf.mxu1 }
 0x14f   :  { %v1423_v56 = vmul.f32 %v1410_v35, %v1387_v49  ;;  %v1343_v57 = vadd.f32 %v1803_v52, %v1294_v50  ;;  %v1454_v4 = vmax.f32 %v1450_v55, 0.0 }
 0x150   :  { %v1805_v60 = vpop.f32.mrf.mxu1 }
 0x151   :  { %v1451_v63 = vadd.f32 %v1438_v59, %v1423_v56  ;;  %v1392_v0 = vadd.f32 %v1391_v48, %v1343_v57  ;;  %v1806_v2 = vadd.f32 %v1805_v60, %v1804_v54 }
 0x153   :  { %v1455_v5 = vmax.f32 %v1451_v63, 0.0  ;;  %v1424_v6 = vmul.f32 %v1415_v17, %v1392_v0  ;;  %v1346_v62 = vadd.f32 %v1806_v2, %v1297_v61 }
 0x155   :  { %v1631_v7 = vpack.c.bf16 %v1455_v5, %v1454_v4  ;;  %v1395_v8 = vadd.f32 %v1394_v58, %v1346_v62  ;;  %v1452_v1 = vadd.f32 %v1443_v9, %v1424_v6 }
 0x157   :  { %1632 = vst [vmem:[%s2444_s4] sm:$0xff] %v1631_v7   ;;  %v1425_v10 = vmul.f32 %v1420_v25, %v1395_v8  ;;  %v1456_v13 = vmax.f32 %v1452_v1, 0.0 }
 0x159   :  { %v1453_v12 = vadd.f32 %v1448_v11, %v1425_v10 }
 0x15b   :  { %v1457_v14 = vmax.f32 %v1453_v12, 0.0 }
 0x15d   :  { %v1636_v15 = vpack.c.bf16 %v1457_v14, %v1456_v13 }
 0x15f   :  { %1638 = vst [vmem:[%s2444_s4 + $0x8] sm:$0xff] %v1636_v15  }

// kernel: resnet3d_forward.13
= control target key start
LH: loop header
LB: loop body
LE: loop exit
PB: predicated region body
PF: predicated region fallthrough
CT: control target
= control target key end

     0   :  { %v254_v1 = vmov 0   ;;  %vm64_vm0 = vcmask 523264   ;;  %s330_s1 = inlined_call_operand.vmem [shape: bf16[64,128], index: 1, kind: input, shape index: {}]   ;;  %s331_s0 = inlined_call_operand.vmem [shape: bf16[32,64], index: 0, kind: input, shape index: {}]   ;;  %s332_s2 = inlined_call_operand.vmem [shape: f32[32,1], index: 2, kind: input, shape index: {}]   ;;  %s333_s3 = inlined_call_operand.vmem [shape: f32[32,1], index: 3, kind: input, shape index: {}]   ;;  %s334_s4 = inlined_call_operand.vmem [shape: bf16[32,128], index: 4, kind: output, shape index: {}]  }
   0x1   :  { %v248_v0 = vld [vmem:[%s330_s1 + $0x18] sm:$0xff]   ;;  %247 = vset.pattern.permute.xlu1 %v254_v1  ;;  %246 = vset.pattern.permute.xlu0 %v254_v1  ;;  %v249_v2 = vld [vmem:[%s330_s1 + $0x10] sm:$0xff]   ;;  %v250_v3 = vld [vmem:[%s330_s1 + $0x8] sm:$0xff]  }
   0x2   :  { %233 = vmatprep.subr.bf16.mxu0 %v248_v0  ;;  %v252_v4 = vld [vmem:[%s331_s0] sm:$0xff]   ;;  %v122_v5 = vld [vmem:[%s332_s2 + $0x10] sm:$0xff]  ;;  %v123_v8 = vld [vmem:[%s332_s2 + $0x18] sm:$0xff] }
   0x3   :  { %234 = vmatpush3.bf16.msra.mxu0 %v248_v0  ;;  %241 = vmatprep.mubr.msk.bf16.mxu0 %vm64_vm0, %v252_v4  ;;  %v120_v6 = vld [vmem:[%s332_s2] sm:$0xff]  ;;  %v121_v9 = vld [vmem:[%s332_s2 + $0x8] sm:$0xff]  ;;  %v151_v13 = vld [vmem:[%s333_s3 + $0x18] sm:$0xff] }
   0x4   :  { %235 = vmatprep.subr.bf16.mxu0 %v249_v2  ;;  %136 = vperm.xlu1 %247, %v122_v5   ;;  %v251_v7 = vld [vmem:[%s330_s1] sm:$0xff]   ;;  %v149_v10 = vld [vmem:[%s333_s3 + $0x8] sm:$0xff]  ;;  %v150_v14 = vld [vmem:[%s333_s3 + $0x10] sm:$0xff] }
   0x5   :  { %126 = vperm.xlu0 %246, %v120_v6   ;;  %v148_v11 = vld [vmem:[%s333_s3] sm:$0xff]  ;;  %v253_v12 = vld [vmem:[%s331_s0 + $0x8] sm:$0xff]  }
   0x7   :  { %236 = vmatpush3.bf16.msra.mxu0 %v249_v2 }
   0x8   :  { %237 = vmatprep.subr.bf16.mxu0 %v250_v3  ;;  %141 = vperm.xlu1 %247, %v123_v8  }
   0x9   :  { %131 = vperm.xlu0 %246, %v121_v9  }
   0xb   :  { %238 = vmatpush3.bf16.msra.mxu0 %v250_v3 }
   0xc   :  { %239 = vmatprep.subr.bf16.mxu0 %v251_v7  ;;  %159 = vperm.xlu1 %247, %v149_v10  }
   0xd   :  { %154 = vperm.xlu0 %246, %v148_v11  }
   0xf   :  { %240 = vmatpush3.bf16.msra.mxu0 %v251_v7 }
  0x10   :  { %169 = vperm.xlu1 %247, %v151_v13  }
  0x11   :  { %164 = vperm.xlu0 %246, %v150_v14  }
  0x12   :  { %242 = vmatmul.mubr.msk.bf16.vlgmr.msra.gmra.mxu0 %vm64_vm0, %v253_v12 }
  0x7f   :  { %v137_v15 = vpop.permute.xlu1 %136 }
  0x80   :  { %v127_v16 = vpop.permute.xlu0 %126 }
  0x83   :  { %v142_v17 = vpop.permute.xlu1 %141 }
  0x84   :  { %v132_v18 = vpop.permute.xlu0 %131 }
  0x87   :  { %v160_v19 = vpop.permute.xlu1 %159 }
  0x88   :  { %v155_v20 = vpop.permute.xlu0 %154 }
  0x8b   :  { %v170_v25 = vpop.permute.xlu1 %169 }
  0x8c   :  { %v165_v28 = vpop.permute.xlu0 %164 }
  0xd2   :  { %v243_v21 = vpop.f32.mrf.mxu0 }
  0xd3   :  { %v146_v23 = vmul.f32 %v243_v21, %v137_v15 }
  0xd4   :  { %v105_v22 = vpop.f32.mrf.mxu0 }
  0xd5   :  { %v144_v26 = vmul.f32 %v127_v16, %v105_v22  ;;  %v174_v30 = vadd.f32 %v165_v28, %v146_v23 }
  0xd6   :  { %v244_v24 = vpop.f32.mrf.mxu0 }
  0xd7   :  { %v147_v27 = vmul.f32 %v244_v24, %v142_v17  ;;  %v172_v33 = vadd.f32 %v155_v20, %v144_v26 }
  0xd8   :  { %v108_v29 = vpop.f32.mrf.mxu0 }
  0xd9   :  { %v175_v31 = vadd.f32 %v170_v25, %v147_v27  ;;  %v145_v32 = vmul.f32 %v132_v18, %v108_v29 }
  0xdb   :  { %v224_v34 = vpack.c.bf16 %v175_v31, %v174_v30  ;;  %v173_v35 = vadd.f32 %v160_v19, %v145_v32 }
  0xdd   :  { %226 = vst [vmem:[%s334_s4 + $0x8] sm:$0xff] %v224_v34   ;;  %v219_v36 = vpack.c.bf16 %v173_v35, %v172_v33 }
  0xdf   :  { %220 = vst [vmem:[%s334_s4] sm:$0xff] %v219_v36  }

// kernel: resnet3d_forward.15
= control target key start
LH: loop header
LB: loop body
LE: loop exit
PB: predicated region body
PF: predicated region fallthrough
CT: control target
= control target key end

     0   :  { %v1121_v1 = vmov 0   ;;  %vm539_vm0 = vcmask 785408   ;;  %s1394_s1 = inlined_call_operand.vmem [shape: bf16[864,128], index: 1, kind: input, shape index: {}]   ;;  %s1395_s0 = inlined_call_operand.vmem [shape: bf16[32,864], index: 0, kind: input, shape index: {}]   ;;  %s1396_s2 = inlined_call_operand.vmem [shape: f32[32,1], index: 2, kind: input, shape index: {}]   ;;  %s1397_s3 = inlined_call_operand.vmem [shape: f32[32,1], index: 3, kind: input, shape index: {}]   ;;  %s1398_s4 = inlined_call_operand.vmem [shape: bf16[32,128], index: 4, kind: input, shape index: {}]   ;;  %s1399_s5 = inlined_call_operand.vmem [shape: bf16[32,128], index: 5, kind: output, shape index: {}]  }
   0x1   :  { %v1047_v0 = vld [vmem:[%s1394_s1 + $0x78] sm:$0xff]   ;;  %1046 = vset.pattern.permute.xlu1 %v1121_v1  ;;  %1045 = vset.pattern.permute.xlu0 %v1121_v1  ;;  %v1051_v5 = vld [vmem:[%s1394_s1 + $0x70] sm:$0xff]   ;;  %v1055_v9 = vld [vmem:[%s1394_s1 + $0x68] sm:$0xff]  }
   0x2   :  { %v1048_v2 = vld [vmem:[%s1394_s1 + $0xf8] sm:$0xff]   ;;  %936 = vmatprep.subr.bf16.mxu0 %v1047_v0  ;;  %v1052_v6 = vld [vmem:[%s1394_s1 + $0xf0] sm:$0xff]   ;;  %v1056_v10 = vld [vmem:[%s1394_s1 + $0xe8] sm:$0xff]  }
   0x3   :  { %v1049_v3 = vld [vmem:[%s1394_s1 + $0x38] sm:$0xff]   ;;  %964 = vmatprep.subr.bf16.mxu1 %v1048_v2  ;;  %v1053_v7 = vld [vmem:[%s1394_s1 + $0x30] sm:$0xff]   ;;  %v1057_v11 = vld [vmem:[%s1394_s1 + $0x28] sm:$0xff]  }
   0x4   :  { %v1050_v4 = vld [vmem:[%s1394_s1 + $0xb8] sm:$0xff]   ;;  %937 = vmatpush3.bf16.msra.mxu0 %v1049_v3  ;;  %v1054_v8 = vld [vmem:[%s1394_s1 + $0xb0] sm:$0xff]   ;;  %v1058_v12 = vld [vmem:[%s1394_s1 + $0xa8] sm:$0xff]  }
   0x5   :  { %965 = vmatpush3.bf16.msra.mxu1 %v1050_v4  ;;  %938 = vmatprep.subr.bf16.mxu0 %v1051_v5  ;;  %v1059_v13 = vld [vmem:[%s1394_s1 + $0x60] sm:$0xff]   ;;  %v1063_v17 = vld [vmem:[%s1394_s1 + $0x58] sm:$0xff]   ;;  %v1067_v21 = vld [vmem:[%s1394_s1 + $0x50] sm:$0xff]  }
   0x6   :  { %966 = vmatprep.subr.bf16.mxu1 %v1052_v6  ;;  %v1060_v14 = vld [vmem:[%s1394_s1 + $0xe0] sm:$0xff]   ;;  %v1064_v18 = vld [vmem:[%s1394_s1 + $0xd8] sm:$0xff]   ;;  %v1068_v22 = vld [vmem:[%s1394_s1 + $0xd0] sm:$0xff]  }
   0x7   :  { %v1061_v15 = vld [vmem:[%s1394_s1 + $0x20] sm:$0xff]   ;;  %v1065_v19 = vld [vmem:[%s1394_s1 + $0x18] sm:$0xff]   ;;  %v1069_v23 = vld [vmem:[%s1394_s1 + $0x10] sm:$0xff]  }
   0x8   :  { %939 = vmatpush3.bf16.msra.mxu0 %v1053_v7  ;;  %v1062_v16 = vld [vmem:[%s1394_s1 + $0xa0] sm:$0xff]   ;;  %v1066_v20 = vld [vmem:[%s1394_s1 + $0x98] sm:$0xff]   ;;  %v1070_v24 = vld [vmem:[%s1394_s1 + $0x90] sm:$0xff]  }
   0x9   :  { %967 = vmatpush3.bf16.msra.mxu1 %v1054_v8  ;;  %940 = vmatprep.subr.bf16.mxu0 %v1055_v9  ;;  %v1071_v25 = vld [vmem:[%s1394_s1 + $0x48] sm:$0xff]   ;;  %v1075_v29 = vld [vmem:[%s1394_s1 + $0x40] sm:$0xff]   ;;  %v1085_v37 = vld [vmem:[%s1394_s1 + $0x178] sm:$0xff]  }
   0xa   :  { %968 = vmatprep.subr.bf16.mxu1 %v1056_v10  ;;  %v1072_v26 = vld [vmem:[%s1394_s1 + $0xc8] sm:$0xff]   ;;  %v1076_v30 = vld [vmem:[%s1394_s1 + $0xc0] sm:$0xff]   ;;  %v1086_v38 = vld [vmem:[%s1394_s1 + $0x138] sm:$0xff]  }
   0xb   :  { %v1073_v27 = vld [vmem:[%s1394_s1 + $0x8] sm:$0xff]   ;;  %v1077_v31 = vld [vmem:[%s1394_s1] sm:$0xff]   ;;  %v1087_v39 = vld [vmem:[%s1394_s1 + $0x170] sm:$0xff]  }
   0xc   :  { %941 = vmatpush3.bf16.msra.mxu0 %v1057_v11  ;;  %v1074_v28 = vld [vmem:[%s1394_s1 + $0x88] sm:$0xff]   ;;  %v1078_v32 = vld [vmem:[%s1394_s1 + $0x80] sm:$0xff]   ;;  %v1088_v40 = vld [vmem:[%s1394_s1 + $0x130] sm:$0xff]  }
   0xd   :  { %969 = vmatpush3.bf16.msra.mxu1 %v1058_v12  ;;  %942 = vmatprep.subr.bf16.mxu0 %v1059_v13  ;;  %v1079_v33 = vld [vmem:[%s1395_s0] ss:$28 sps:$4 sm:$0xff]   ;;  %v1082_v35 = vld [vmem:[%s1395_s0 + $0x8] ss:$28 sps:$4 sm:$0xff]   ;;  %v1101_v51 = vld [vmem:[%s1395_s0 + $0x38] ss:$28 sps:$4 sm:$0xff]  }
   0xe   :  { %970 = vmatprep.subr.bf16.mxu1 %v1060_v14  ;;  %v1081_v34 = vld [vmem:[%s1395_s0 + $0x4] ss:$28 sps:$4 sm:$0xff]   ;;  %v1084_v36 = vld [vmem:[%s1395_s0 + $0xc] ss:$28 sps:$4 sm:$0xff]   ;;  %v1094_v46 = vld [vmem:[%s1394_s1 + $0x158] sm:$0xff]  }
   0xf   :  { %578 = vmatprep.mubr.bf16.mxu0 %v1081_v34  ;;  %627 = vmatprep.mubr.bf16.mxu1 %v1084_v36  ;;  %v1089_v41 = vld [vmem:[%s1394_s1 + $0x168] sm:$0xff]   ;;  %v1091_v44 = vld [vmem:[%s1394_s1 + $0x160] sm:$0xff]   ;;  %v1096_v48 = vld [vmem:[%s1395_s0 + $0x3c] ss:$28 sps:$4 sm:$0xff]  }
  0x10   :  { %943 = vmatpush3.bf16.msra.mxu0 %v1061_v15  ;;  %v1090_v42 = vld [vmem:[%s1394_s1 + $0x128] sm:$0xff]   ;;  %v1093_v45 = vld [vmem:[%s1394_s1 + $0x120] sm:$0xff]   ;;  %v1100_v50 = vld [vmem:[%s1394_s1 + $0x118] sm:$0xff]  }
  0x11   :  { %971 = vmatpush3.bf16.msra.mxu1 %v1062_v16  ;;  %944 = vmatprep.subr.bf16.mxu0 %v1063_v17  ;;  %v1092_v43 = vld [vmem:[%s1394_s1 + $0x1a8] sm:$0xff]   ;;  %v1095_v47 = vld [vmem:[%s1394_s1 + $0x1a0] sm:$0xff]   ;;  %v1103_v53 = vld [vmem:[%s1394_s1 + $0x150] sm:$0xff]  }
  0x12   :  { %972 = vmatprep.subr.bf16.mxu1 %v1064_v18  ;;  %v1098_v49 = vld [vmem:[%s1395_s0 + $0x44] ss:$28 sps:$4 sm:$0xff]   ;;  %v1104_v54 = vld [vmem:[%s1394_s1 + $0x198] sm:$0xff]   ;;  %v1105_v55 = vld [vmem:[%s1394_s1 + $0x110] sm:$0xff]  }
  0x13   :  { %v1102_v52 = vld [vmem:[%s1395_s0 + $0x40] ss:$28 sps:$4 sm:$0xff]   ;;  %v1107_v56 = vld [vmem:[%s1394_s1 + $0x190] sm:$0xff]   ;;  %v1106_v57 = vld [vmem:[%s1394_s1 + $0x148] sm:$0xff]  }
  0x14   :  { %945 = vmatpush3.bf16.msra.mxu0 %v1065_v19  ;;  %v1110_v58 = vld [vmem:[%s1394_s1 + $0x188] sm:$0xff]   ;;  %v1109_v60 = vld [vmem:[%s1394_s1 + $0x140] sm:$0xff]   ;;  %v1114_v61 = vld [vmem:[%s1395_s0 + $0x14] ss:$28 sps:$4 sm:$0xff]  }
  0x15   :  { %973 = vmatpush3.bf16.msra.mxu1 %v1066_v20  ;;  %946 = vmatprep.subr.bf16.mxu0 %v1067_v21  ;;  %v1108_v59 = vld [vmem:[%s1394_s1 + $0x108] sm:$0xff]   ;;  %v1115_v62 = vld [vmem:[%s1394_s1 + $0x180] sm:$0xff]   ;;  %v1116_v63 = vld [vmem:[%s1395_s0 + $0x18] ss:$28 sps:$4 sm:$0xff]  }
  0x16   :  { %974 = vmatprep.subr.bf16.mxu1 %v1068_v22  ;;  %v1111_v0 = vld [vmem:[%s1394_s1 + $0x100] sm:$0xff]   ;;  %v744_v1 = vld [vmem:[%s1396_s2 + $0x10] sm:$0xff]  ;;  %v1118_v5 = vld [vmem:[%s1395_s0 + $0x4c] ss:$28 sps:$4 sm:$0xff]  }
  0x17   :  { %v742_v2 = vld [vmem:[%s1396_s2] sm:$0xff]  ;;  %v1112_v3 = vld [vmem:[%s1395_s0 + $0x10] ss:$28 sps:$4 sm:$0xff]   ;;  %758 = vperm.xlu1 %1046, %v744_v1   ;;  %v745_v6 = vld [vmem:[%s1396_s2 + $0x18] sm:$0xff] }
  0x18   :  { %947 = vmatpush3.bf16.msra.mxu0 %v1069_v23  ;;  %v1117_v4 = vld [vmem:[%s1395_s0 + $0x50] ss:$28 sps:$4 sm:$0xff]   ;;  %748 = vperm.xlu0 %1045, %v742_v2   ;;  %v770_v9 = vld [vmem:[%s1397_s3] sm:$0xff]  ;;  %v773_v11 = vld [vmem:[%s1397_s3 + $0x18] sm:$0xff] }
  0x19   :  { %975 = vmatpush3.bf16.msra.mxu1 %v1070_v24  ;;  %948 = vmatprep.subr.bf16.mxu0 %v1071_v25  ;;  %v743_v7 = vld [vmem:[%s1396_s2 + $0x8] sm:$0xff]  ;;  %v772_v12 = vld [vmem:[%s1397_s3 + $0x10] sm:$0xff] }
  0x1a   :  { %976 = vmatprep.subr.bf16.mxu1 %v1072_v26  ;;  %v771_v8 = vld [vmem:[%s1397_s3 + $0x8] sm:$0xff] }
  0x1b   :  { %763 = vperm.xlu1 %1046, %v745_v6   ;;  %v1120_v10 = vld [vmem:[%s1395_s0 + $0x48] ss:$28 sps:$4 sm:$0xff]  }
  0x1c   :  { %949 = vmatpush3.bf16.msra.mxu0 %v1073_v27  ;;  %753 = vperm.xlu0 %1045, %v743_v7  }
  0x1d   :  { %977 = vmatpush3.bf16.msra.mxu1 %v1074_v28  ;;  %950 = vmatprep.subr.bf16.mxu0 %v1075_v29 }
  0x1e   :  { %978 = vmatprep.subr.bf16.mxu1 %v1076_v30 }
  0x1f   :  { %781 = vperm.xlu1 %1046, %v771_v8  }
  0x20   :  { %951 = vmatpush3.bf16.msra.mxu0 %v1077_v31  ;;  %776 = vperm.xlu0 %1045, %v770_v9   ;;  %v934_v9 = vld [vmem:[%s1398_s4 + $0x8] sm:$0xff]  }
  0x21   :  { %979 = vmatpush3.bf16.msra.mxu1 %v1078_v32  ;;  %992 = vmatprep.subr.bf16.mxu0 %v1085_v37 }
  0x22   :  { %1028 = vmatprep.subr.bf16.mxu1 %v1092_v43 }
  0x23   :  { %579 = vmatmul.mubr.bf16.vlgmr.msra.gmra.mxu0 %v1079_v33  ;;  %791 = vperm.xlu1 %1046, %v773_v11  }
  0x24   :  { %628 = vmatmul.mubr.bf16.vlgmr.msra.gmra.mxu1 %v1082_v35  ;;  %993 = vmatpush3.bf16.msra.mxu0 %v1086_v38 }
  0x25   :  { %994 = vmatprep.subr.bf16.mxu0 %v1087_v39  ;;  %1029 = vmatpush3.bf16.msra.mxu1 %v1092_v43 }
  0x26   :  { %1030 = vmatprep.subr.bf16.mxu1 %v1095_v47  ;;  %586 = vmatprep.mubr.bf16.mxu0 %v1096_v48 }
  0x27   :  { %635 = vmatprep.mubr.bf16.mxu1 %v1098_v49  ;;  %786 = vperm.xlu0 %1045, %v772_v12  }
  0x28   :  { %995 = vmatpush3.bf16.msra.mxu0 %v1088_v40 }
  0x29   :  { %996 = vmatprep.subr.bf16.mxu0 %v1089_v41  ;;  %1031 = vmatpush3.bf16.msra.mxu1 %v1095_v47 }
  0x2a   :  { %1032 = vmatprep.subr.bf16.mxu1 %v1104_v54 }
  0x2b   :  { %587 = vmatmul.mubr.bf16.gmra.mxu0 %v1101_v51 }
  0x2c   :  { %997 = vmatpush3.bf16.msra.mxu0 %v1090_v42  ;;  %636 = vmatmul.mubr.bf16.gmra.mxu1 %v1102_v52  ;;  %v917_v52 = vld [vmem:[%s1398_s4] sm:$0xff]  }
  0x2d   :  { %998 = vmatprep.subr.bf16.mxu0 %v1091_v44  ;;  %1033 = vmatpush3.bf16.msra.mxu1 %v1104_v54 }
  0x2e   :  { %1034 = vmatprep.subr.bf16.mxu1 %v1107_v56  ;;  %676 = vmatprep.mubr.bf16.mxu0 %v1114_v61 }
  0x2f   :  { %1040 = vmatprep.mubr.msk.bf16.mxu1 %vm539_vm0, %v1116_v63 }
  0x30   :  { %999 = vmatpush3.bf16.msra.mxu0 %v1093_v45 }
  0x31   :  { %1000 = vmatprep.subr.bf16.mxu0 %v1094_v46  ;;  %1035 = vmatpush3.bf16.msra.mxu1 %v1107_v56 }
  0x32   :  { %1036 = vmatprep.subr.bf16.mxu1 %v1110_v58 }
  0x34   :  { %1001 = vmatpush3.bf16.msra.mxu0 %v1100_v50 }
  0x35   :  { %1002 = vmatprep.subr.bf16.mxu0 %v1103_v53  ;;  %1037 = vmatpush3.bf16.msra.mxu1 %v1110_v58 }
  0x36   :  { %1038 = vmatprep.subr.bf16.mxu1 %v1115_v62 }
  0x38   :  { %1003 = vmatpush3.bf16.msra.mxu0 %v1105_v55 }
  0x39   :  { %1004 = vmatprep.subr.bf16.mxu0 %v1106_v57  ;;  %1039 = vmatpush3.bf16.msra.mxu1 %v1115_v62 }
  0x3c   :  { %1005 = vmatpush3.bf16.msra.mxu0 %v1108_v59  ;;  %1041 = vmatmul.mubr.msk.bf16.vlgmr.msra.gmra.mxu1 %vm539_vm0, %v1117_v4 }
  0x3d   :  { %1006 = vmatprep.subr.bf16.mxu0 %v1109_v60  ;;  %v918_v60 = vunpack.c.l.bf16 %v917_v52 }
  0x40   :  { %1007 = vmatpush3.bf16.msra.mxu0 %v1111_v0 }
  0x43   :  { %677 = vmatmul.mubr.bf16.vlgmr.msra.gmra.mxu0 %v1112_v3 }
  0x44   :  { %684 = vmatprep.mubr.bf16.mxu0 %v1118_v5  ;;  %v919_v5 = vunpack.c.h.bf16 %v917_v52 }
  0x4b   :  { %685 = vmatmul.mubr.bf16.gmra.mxu0 %v1120_v10 }
  0x92   :  { %v759_v34 = vpop.permute.xlu1 %758 }
  0x93   :  { %v749_v27 = vpop.permute.xlu0 %748 }
  0x96   :  { %v764_v49 = vpop.permute.xlu1 %763 }
  0x97   :  { %v754_v40 = vpop.permute.xlu0 %753 }
  0x9a   :  { %v782_v7 = vpop.permute.xlu1 %781 }
  0x9b   :  { %v777_v59 = vpop.permute.xlu0 %776 }
  0xe3   :  { %v952_v13 = vpop.f32.mrf.mxu0 }
  0xe4   :  { %v980_v14 = vpop.f32.mrf.mxu1 }
  0xe5   :  { %v953_v15 = vpop.f32.mrf.mxu0 }
  0xe6   :  { %v981_v16 = vpop.f32.mrf.mxu1  ;;  %v954_v30 = vadd.f32 %v953_v15, %v952_v13 }
  0xe7   :  { %v955_v17 = vpop.f32.mrf.mxu0  ;;  %v982_v31 = vadd.f32 %v981_v16, %v980_v14 }
  0xe8   :  { %v983_v18 = vpop.f32.mrf.mxu1 }
  0xe9   :  { %v956_v19 = vpop.f32.mrf.mxu0  ;;  %v630_v39 = vadd.f32 %v982_v31, %v954_v30 }
  0xea   :  { %v984_v20 = vpop.f32.mrf.mxu1  ;;  %v957_v35 = vadd.f32 %v956_v19, %v955_v17  ;;  %v787_v17 = vpop.permute.xlu0 %786 }
  0xeb   :  { %v958_v21 = vpop.f32.mrf.mxu0  ;;  %v985_v36 = vadd.f32 %v984_v20, %v983_v18  ;;  %v922_v18 = vunpack.c.l.bf16 %v934_v9 }
  0xec   :  { %v986_v22 = vpop.f32.mrf.mxu1 }
  0xed   :  { %v959_v23 = vpop.f32.mrf.mxu0  ;;  %v633_v45 = vadd.f32 %v985_v36, %v957_v35 }
  0xee   :  { %v987_v24 = vpop.f32.mrf.mxu1  ;;  %v960_v47 = vadd.f32 %v959_v23, %v958_v21 }
  0xef   :  { %v961_v25 = vpop.f32.mrf.mxu0  ;;  %v988_v48 = vadd.f32 %v987_v24, %v986_v22 }
  0xf0   :  { %v989_v26 = vpop.f32.mrf.mxu1 }
  0xf1   :  { %v962_v28 = vpop.f32.mrf.mxu0  ;;  %v638_v62 = vadd.f32 %v988_v48, %v960_v47 }
  0xf2   :  { %v990_v29 = vpop.f32.mrf.mxu1  ;;  %v963_v57 = vadd.f32 %v962_v28, %v961_v25  ;;  %v923_v25 = vunpack.c.h.bf16 %v934_v9 }
  0xf3   :  { %v991_v58 = vadd.f32 %v990_v29, %v989_v26  ;;  %v792_v26 = vpop.permute.xlu1 %791 }
  0xf5   :  { %v641_v6 = vadd.f32 %v991_v58, %v963_v57 }
  0xfc   :  { %v1042_v33 = vpop.f32.mrf.mxu1 }
  0xfe   :  { %v727_v38 = vpop.f32.mrf.mxu1 }
 0x100   :  { %v1043_v43 = vpop.f32.mrf.mxu1 }
 0x102   :  { %v730_v54 = vpop.f32.mrf.mxu1 }
 0x103   :  { %v1008_v32 = vpop.f32.mrf.mxu0 }
 0x105   :  { %v1009_v37 = vpop.f32.mrf.mxu0 }
 0x106   :  { %v1010_v41 = vadd.f32 %v1009_v37, %v1008_v32 }
 0x107   :  { %v1011_v42 = vpop.f32.mrf.mxu0 }
 0x108   :  { %v679_v44 = vadd.f32 %v1010_v41, %v630_v39 }
 0x109   :  { %v1012_v46 = vpop.f32.mrf.mxu0 }
 0x10a   :  { %v1013_v50 = vadd.f32 %v1012_v46, %v1011_v42  ;;  %v728_v51 = vadd.f32 %v727_v38, %v679_v44 }
 0x10b   :  { %v1014_v53 = vpop.f32.mrf.mxu0 }
 0x10c   :  { %v766_v55 = vmul.f32 %v749_v27, %v728_v51  ;;  %v682_v56 = vadd.f32 %v1013_v50, %v633_v45 }
 0x10d   :  { %v1015_v61 = vpop.f32.mrf.mxu0 }
 0x10e   :  { %v794_v63 = vadd.f32 %v777_v59, %v766_v55  ;;  %v1016_v0 = vadd.f32 %v1015_v61, %v1014_v53  ;;  %v731_v1 = vadd.f32 %v730_v54, %v682_v56 }
 0x10f   :  { %v1017_v2 = vpop.f32.mrf.mxu0 }
 0x110   :  { %v687_v3 = vadd.f32 %v1016_v0, %v638_v62  ;;  %v767_v4 = vmul.f32 %v754_v40, %v731_v1  ;;  %v806_v10 = vadd.f32 %v918_v60, %v794_v63 }
 0x111   :  { %v1018_v8 = vpop.f32.mrf.mxu0 }
 0x112   :  { %v736_v11 = vadd.f32 %v1042_v33, %v687_v3  ;;  %v795_v12 = vadd.f32 %v782_v7, %v767_v4  ;;  %v1019_v13 = vadd.f32 %v1018_v8, %v1017_v2  ;;  %v810_v19 = vmax.f32 %v806_v10, 0.0 }
 0x114   :  { %v768_v14 = vmul.f32 %v759_v34, %v736_v11  ;;  %v807_v15 = vadd.f32 %v919_v5, %v795_v12  ;;  %v690_v16 = vadd.f32 %v1019_v13, %v641_v6 }
 0x116   :  { %v796_v20 = vadd.f32 %v787_v17, %v768_v14  ;;  %v811_v21 = vmax.f32 %v807_v15, 0.0  ;;  %v739_v22 = vadd.f32 %v1043_v43, %v690_v16 }
 0x118   :  { %v927_v23 = vpack.c.bf16 %v811_v21, %v810_v19  ;;  %v769_v24 = vmul.f32 %v764_v49, %v739_v22  ;;  %v808_v27 = vadd.f32 %v922_v18, %v796_v20 }
 0x11a   :  { %928 = vst [vmem:[%s1399_s5] sm:$0xff] %v927_v23   ;;  %v797_v28 = vadd.f32 %v792_v26, %v769_v24  ;;  %v812_v30 = vmax.f32 %v808_v27, 0.0 }
 0x11c   :  { %v809_v29 = vadd.f32 %v923_v25, %v797_v28 }
 0x11e   :  { %v813_v31 = vmax.f32 %v809_v29, 0.0 }
 0x120   :  { %v932_v32 = vpack.c.bf16 %v813_v31, %v812_v30 }
 0x122   :  { %935 = vst [vmem:[%s1399_s5 + $0x8] sm:$0xff] %v932_v32  }

// kernel: resnet3d_forward.16
= control target key start
LH: loop header
LB: loop body
LE: loop exit
PB: predicated region body
PF: predicated region fallthrough
CT: control target
= control target key end

     0   :  { %v376_v1 = vmov 0   ;;  %vm62_vm0 = vcmask 261120   ;;  %s484_s1 = inlined_call_operand.vmem [shape: bf16[32,128], index: 1, kind: input, shape index: {}]   ;;  %s485_s0 = inlined_call_operand.vmem [shape: bf16[64,32], index: 0, kind: input, shape index: {}]   ;;  %s486_s2 = inlined_call_operand.vmem [shape: f32[64,1], index: 2, kind: input, shape index: {}]   ;;  %s487_s3 = inlined_call_operand.vmem [shape: f32[64,1], index: 3, kind: input, shape index: {}]   ;;  %s488_s4 = inlined_call_operand.vmem [shape: bf16[64,128], index: 4, kind: output, shape index: {}]  }
   0x1   :  { %v370_v0 = vld [vmem:[%s484_s1 + $0x8] sm:$0xff]   ;;  %369 = vset.pattern.permute.xlu1 %v376_v1  ;;  %368 = vset.pattern.permute.xlu0 %v376_v1  ;;  %v371_v2 = vld [vmem:[%s484_s1] sm:$0xff]   ;;  %v373_v4 = vld [vmem:[%s485_s0 + $0x10] sm:$0xff]  }
   0x2   :  { %351 = vmatprep.subr.bf16.mxu0 %v370_v0  ;;  %363 = vmatprep.subr.bf16.mxu1 %v370_v0  ;;  %v372_v3 = vld [vmem:[%s485_s0] sm:$0xff]   ;;  %v374_v5 = vld [vmem:[%s485_s0 + $0x8] sm:$0xff]   ;;  %v375_v6 = vld [vmem:[%s485_s0 + $0x18] sm:$0xff]  }
   0x3   :  { %352 = vmatpush3.bf16.msra.mxu0 %v370_v0  ;;  %365 = vmatpush3.bf16.msra.mxu1 %v370_v0  ;;  %v142_v7 = vld [vmem:[%s486_s2 + $0x10] sm:$0xff]  ;;  %v140_v8 = vld [vmem:[%s486_s2] sm:$0xff]  ;;  %v143_v9 = vld [vmem:[%s486_s2 + $0x18] sm:$0xff] }
   0x4   :  { %353 = vmatprep.subr.bf16.mxu0 %v371_v2  ;;  %364 = vmatprep.subr.bf16.mxu1 %v371_v2  ;;  %v141_v10 = vld [vmem:[%s486_s2 + $0x8] sm:$0xff]  ;;  %v144_v12 = vld [vmem:[%s486_s2 + $0x20] sm:$0xff]  ;;  %v147_v13 = vld [vmem:[%s486_s2 + $0x38] sm:$0xff] }
   0x5   :  { %355 = vmatprep.mubr.msk.bf16.mxu0 %vm62_vm0, %v372_v3  ;;  %359 = vmatprep.mubr.msk.bf16.mxu1 %vm62_vm0, %v373_v4  ;;  %v145_v11 = vld [vmem:[%s486_s2 + $0x28] sm:$0xff]  ;;  %v146_v14 = vld [vmem:[%s486_s2 + $0x30] sm:$0xff]  ;;  %v196_v16 = vld [vmem:[%s487_s3] sm:$0xff] }
   0x6   :  { %160 = vperm.xlu1 %369, %v142_v7   ;;  %150 = vperm.xlu0 %368, %v140_v8   ;;  %v197_v15 = vld [vmem:[%s487_s3 + $0x8] sm:$0xff]  ;;  %v199_v17 = vld [vmem:[%s487_s3 + $0x18] sm:$0xff]  ;;  %v198_v18 = vld [vmem:[%s487_s3 + $0x10] sm:$0xff] }
   0x7   :  { %354 = vmatpush3.bf16.msra.mxu0 %v371_v2  ;;  %366 = vmatpush3.bf16.msra.mxu1 %v371_v2  ;;  %v201_v19 = vld [vmem:[%s487_s3 + $0x28] sm:$0xff]  ;;  %v200_v20 = vld [vmem:[%s487_s3 + $0x20] sm:$0xff]  ;;  %v203_v21 = vld [vmem:[%s487_s3 + $0x38] sm:$0xff] }
   0x8   :  { %v202_v22 = vld [vmem:[%s487_s3 + $0x30] sm:$0xff] }
   0xa   :  { %356 = vmatmul.mubr.msk.bf16.vlgmr.msra.gmra.mxu0 %vm62_vm0, %v374_v5  ;;  %360 = vmatmul.mubr.msk.bf16.vlgmr.msra.gmra.mxu1 %vm62_vm0, %v375_v6 }
   0xb   :  { %165 = vperm.xlu1 %369, %v143_v9   ;;  %155 = vperm.xlu0 %368, %v141_v10  }
   0xf   :  { %175 = vperm.xlu1 %369, %v145_v11   ;;  %170 = vperm.xlu0 %368, %v144_v12  }
  0x13   :  { %185 = vperm.xlu1 %369, %v147_v13   ;;  %180 = vperm.xlu0 %368, %v146_v14  }
  0x17   :  { %211 = vperm.xlu1 %369, %v197_v15   ;;  %206 = vperm.xlu0 %368, %v196_v16  }
  0x1b   :  { %221 = vperm.xlu1 %369, %v199_v17   ;;  %216 = vperm.xlu0 %368, %v198_v18  }
  0x1f   :  { %231 = vperm.xlu1 %369, %v201_v19   ;;  %226 = vperm.xlu0 %368, %v200_v20  }
  0x23   :  { %241 = vperm.xlu1 %369, %v203_v21   ;;  %236 = vperm.xlu0 %368, %v202_v22  }
  0x81   :  { %v161_v23 = vpop.permute.xlu1 %160  ;;  %v151_v24 = vpop.permute.xlu0 %150 }
  0x86   :  { %v166_v25 = vpop.permute.xlu1 %165  ;;  %v156_v26 = vpop.permute.xlu0 %155 }
  0x8a   :  { %v176_v27 = vpop.permute.xlu1 %175  ;;  %v171_v28 = vpop.permute.xlu0 %170 }
  0x8e   :  { %v186_v29 = vpop.permute.xlu1 %185  ;;  %v181_v30 = vpop.permute.xlu0 %180 }
  0x92   :  { %v212_v31 = vpop.permute.xlu1 %211  ;;  %v207_v32 = vpop.permute.xlu0 %206 }
  0x96   :  { %v222_v33 = vpop.permute.xlu1 %221  ;;  %v217_v34 = vpop.permute.xlu0 %216 }
  0x9a   :  { %v232_v35 = vpop.permute.xlu1 %231  ;;  %v227_v36 = vpop.permute.xlu0 %226 }
  0x9e   :  { %v242_v47 = vpop.permute.xlu1 %241  ;;  %v237_v48 = vpop.permute.xlu0 %236 }
  0xca   :  { %v357_v37 = vpop.f32.mrf.mxu0  ;;  %v361_v38 = vpop.f32.mrf.mxu1 }
  0xcb   :  { %v190_v39 = vmul.f32 %v357_v37, %v161_v23  ;;  %v194_v40 = vmul.f32 %v361_v38, %v181_v30 }
  0xcc   :  { %v109_v41 = vpop.f32.mrf.mxu0  ;;  %v125_v42 = vpop.f32.mrf.mxu1 }
  0xcd   :  { %v188_v43 = vmul.f32 %v151_v24, %v109_v41  ;;  %v192_v44 = vmul.f32 %v171_v28, %v125_v42  ;;  %v246_v51 = vadd.f32 %v217_v34, %v190_v39  ;;  %v250_v52 = vadd.f32 %v237_v48, %v194_v40 }
  0xce   :  { %v358_v45 = vpop.f32.mrf.mxu0  ;;  %v362_v46 = vpop.f32.mrf.mxu1 }
  0xcf   :  { %v191_v49 = vmul.f32 %v358_v45, %v166_v25  ;;  %v195_v50 = vmul.f32 %v362_v46, %v186_v29  ;;  %v244_v59 = vadd.f32 %v207_v32, %v188_v43  ;;  %v248_v60 = vadd.f32 %v227_v36, %v192_v44 }
  0xd0   :  { %v112_v53 = vpop.f32.mrf.mxu0  ;;  %v128_v54 = vpop.f32.mrf.mxu1 }
  0xd1   :  { %v247_v55 = vadd.f32 %v222_v33, %v191_v49  ;;  %v251_v56 = vadd.f32 %v242_v47, %v195_v50  ;;  %v189_v57 = vmul.f32 %v156_v26, %v112_v53  ;;  %v193_v58 = vmul.f32 %v176_v27, %v128_v54 }
  0xd3   :  { %v330_v61 = vpack.c.bf16 %v247_v55, %v246_v51  ;;  %v340_v62 = vpack.c.bf16 %v251_v56, %v250_v52  ;;  %v245_v63 = vadd.f32 %v212_v31, %v189_v57  ;;  %v249_v0 = vadd.f32 %v232_v35, %v193_v58 }
  0xd5   :  { %342 = vst [vmem:[%s488_s4 + $0x8] sm:$0xff] %v330_v61   ;;  %344 = vst [vmem:[%s488_s4 + $0x18] sm:$0xff] %v340_v62   ;;  %v325_v1 = vpack.c.bf16 %v245_v63, %v244_v59  ;;  %v335_v2 = vpack.c.bf16 %v249_v0, %v248_v60 }
  0xd7   :  { %326 = vst [vmem:[%s488_s4] sm:$0xff] %v325_v1   ;;  %343 = vst [vmem:[%s488_s4 + $0x10] sm:$0xff] %v335_v2  }

// kernel: resnet3d_forward.17
= control target key start
LH: loop header
LB: loop body
LE: loop exit
PB: predicated region body
PF: predicated region fallthrough
CT: control target
= control target key end

     0   :  { %v1431_v1 = vmov 0   ;;  %vm622_vm0 = vcmask 785408   ;;  %s1824_s1 = inlined_call_operand.vmem [shape: bf16[864,128], index: 1, kind: input, shape index: {}]   ;;  %s1825_s0 = inlined_call_operand.vmem [shape: bf16[64,864], index: 0, kind: input, shape index: {}]   ;;  %s1826_s2 = inlined_call_operand.vmem [shape: f32[64,1], index: 2, kind: input, shape index: {}]   ;;  %s1827_s3 = inlined_call_operand.vmem [shape: f32[64,1], index: 3, kind: input, shape index: {}]   ;;  %s1828_s4 = inlined_call_operand.vmem [shape: bf16[64,128], index: 4, kind: output, shape index: {}]  }
   0x1   :  { %v1337_v0 = vld [vmem:[%s1824_s1 + $0x78] sm:$0xff]   ;;  %1336 = vset.pattern.permute.xlu1 %v1431_v1  ;;  %1335 = vset.pattern.permute.xlu0 %v1431_v1  ;;  %v1341_v5 = vld [vmem:[%s1824_s1 + $0x70] sm:$0xff]   ;;  %v1345_v9 = vld [vmem:[%s1824_s1 + $0x68] sm:$0xff]  }
   0x2   :  { %v1338_v2 = vld [vmem:[%s1824_s1 + $0xf8] sm:$0xff]   ;;  %1184 = vmatprep.subr.bf16.mxu0 %v1337_v0  ;;  %v1342_v6 = vld [vmem:[%s1824_s1 + $0xf0] sm:$0xff]   ;;  %v1346_v10 = vld [vmem:[%s1824_s1 + $0xe8] sm:$0xff]  }
   0x3   :  { %v1339_v3 = vld [vmem:[%s1824_s1 + $0x38] sm:$0xff]   ;;  %1224 = vmatprep.subr.bf16.mxu1 %v1338_v2  ;;  %v1343_v7 = vld [vmem:[%s1824_s1 + $0x30] sm:$0xff]   ;;  %v1347_v11 = vld [vmem:[%s1824_s1 + $0x28] sm:$0xff]  }
   0x4   :  { %v1340_v4 = vld [vmem:[%s1824_s1 + $0xb8] sm:$0xff]   ;;  %1185 = vmatpush3.bf16.msra.mxu0 %v1339_v3  ;;  %v1344_v8 = vld [vmem:[%s1824_s1 + $0xb0] sm:$0xff]   ;;  %v1348_v12 = vld [vmem:[%s1824_s1 + $0xa8] sm:$0xff]  }
   0x5   :  { %1225 = vmatpush3.bf16.msra.mxu1 %v1340_v4  ;;  %1186 = vmatprep.subr.bf16.mxu0 %v1341_v5  ;;  %v1349_v13 = vld [vmem:[%s1824_s1 + $0x60] sm:$0xff]   ;;  %v1353_v17 = vld [vmem:[%s1824_s1 + $0x58] sm:$0xff]   ;;  %v1357_v21 = vld [vmem:[%s1824_s1 + $0x50] sm:$0xff]  }
   0x6   :  { %1226 = vmatprep.subr.bf16.mxu1 %v1342_v6  ;;  %v1350_v14 = vld [vmem:[%s1824_s1 + $0xe0] sm:$0xff]   ;;  %v1354_v18 = vld [vmem:[%s1824_s1 + $0xd8] sm:$0xff]   ;;  %v1358_v22 = vld [vmem:[%s1824_s1 + $0xd0] sm:$0xff]  }
   0x7   :  { %v1351_v15 = vld [vmem:[%s1824_s1 + $0x20] sm:$0xff]   ;;  %v1355_v19 = vld [vmem:[%s1824_s1 + $0x18] sm:$0xff]   ;;  %v1359_v23 = vld [vmem:[%s1824_s1 + $0x10] sm:$0xff]  }
   0x8   :  { %1187 = vmatpush3.bf16.msra.mxu0 %v1343_v7  ;;  %v1352_v16 = vld [vmem:[%s1824_s1 + $0xa0] sm:$0xff]   ;;  %v1356_v20 = vld [vmem:[%s1824_s1 + $0x98] sm:$0xff]   ;;  %v1360_v24 = vld [vmem:[%s1824_s1 + $0x90] sm:$0xff]  }
   0x9   :  { %1227 = vmatpush3.bf16.msra.mxu1 %v1344_v8  ;;  %1188 = vmatprep.subr.bf16.mxu0 %v1345_v9  ;;  %v1361_v25 = vld [vmem:[%s1824_s1 + $0x48] sm:$0xff]   ;;  %v1365_v29 = vld [vmem:[%s1824_s1 + $0x40] sm:$0xff]   ;;  %v1375_v37 = vld [vmem:[%s1824_s1 + $0x178] sm:$0xff]  }
   0xa   :  { %1228 = vmatprep.subr.bf16.mxu1 %v1346_v10  ;;  %v1362_v26 = vld [vmem:[%s1824_s1 + $0xc8] sm:$0xff]   ;;  %v1366_v30 = vld [vmem:[%s1824_s1 + $0xc0] sm:$0xff]   ;;  %v1376_v38 = vld [vmem:[%s1824_s1 + $0x138] sm:$0xff]  }
   0xb   :  { %v1363_v27 = vld [vmem:[%s1824_s1 + $0x8] sm:$0xff]   ;;  %v1367_v31 = vld [vmem:[%s1824_s1] sm:$0xff]   ;;  %v1377_v39 = vld [vmem:[%s1824_s1 + $0x170] sm:$0xff]  }
   0xc   :  { %1189 = vmatpush3.bf16.msra.mxu0 %v1347_v11  ;;  %v1364_v28 = vld [vmem:[%s1824_s1 + $0x88] sm:$0xff]   ;;  %v1368_v32 = vld [vmem:[%s1824_s1 + $0x80] sm:$0xff]   ;;  %v1378_v40 = vld [vmem:[%s1824_s1 + $0x130] sm:$0xff]  }
   0xd   :  { %1229 = vmatpush3.bf16.msra.mxu1 %v1348_v12  ;;  %1190 = vmatprep.subr.bf16.mxu0 %v1349_v13  ;;  %v1369_v33 = vld [vmem:[%s1825_s0] ss:$28 sps:$4 sm:$0xff]   ;;  %v1372_v35 = vld [vmem:[%s1825_s0 + $0x8] ss:$28 sps:$4 sm:$0xff]   ;;  %v1383_v43 = vld [vmem:[%s1825_s0 + $0x38] ss:$28 sps:$4 sm:$0xff]  }
   0xe   :  { %1230 = vmatprep.subr.bf16.mxu1 %v1350_v14  ;;  %v1371_v34 = vld [vmem:[%s1825_s0 + $0x4] ss:$28 sps:$4 sm:$0xff]   ;;  %v1374_v36 = vld [vmem:[%s1825_s0 + $0xc] ss:$28 sps:$4 sm:$0xff]   ;;  %v1379_v41 = vld [vmem:[%s1825_s0 + $0x3c] ss:$28 sps:$4 sm:$0xff]  }
   0xf   :  { %667 = vmatprep.mubr.bf16.mxu0 %v1371_v34  ;;  %732 = vmatprep.mubr.bf16.mxu1 %v1374_v36  ;;  %v1381_v42 = vld [vmem:[%s1825_s0 + $0x44] ss:$28 sps:$4 sm:$0xff]   ;;  %v1385_v45 = vld [vmem:[%s1824_s1 + $0x168] sm:$0xff]   ;;  %v1390_v50 = vld [vmem:[%s1825_s0 + $0x74] ss:$28 sps:$4 sm:$0xff]  }
  0x10   :  { %1191 = vmatpush3.bf16.msra.mxu0 %v1351_v15  ;;  %v1384_v44 = vld [vmem:[%s1825_s0 + $0x40] ss:$28 sps:$4 sm:$0xff]   ;;  %v1386_v46 = vld [vmem:[%s1824_s1 + $0x128] sm:$0xff]   ;;  %v1395_v53 = vld [vmem:[%s1825_s0 + $0x78] ss:$28 sps:$4 sm:$0xff]  }
  0x11   :  { %1231 = vmatpush3.bf16.msra.mxu1 %v1352_v16  ;;  %1192 = vmatprep.subr.bf16.mxu0 %v1353_v17  ;;  %v1387_v47 = vld [vmem:[%s1824_s1 + $0x160] sm:$0xff]   ;;  %v1388_v48 = vld [vmem:[%s1824_s1 + $0x1a8] sm:$0xff]   ;;  %v1392_v51 = vld [vmem:[%s1825_s0 + $0x7c] ss:$28 sps:$4 sm:$0xff]  }
  0x12   :  { %1232 = vmatprep.subr.bf16.mxu1 %v1354_v18  ;;  %v1389_v49 = vld [vmem:[%s1824_s1 + $0x120] sm:$0xff]   ;;  %v1394_v52 = vld [vmem:[%s1825_s0 + $0x70] ss:$28 sps:$4 sm:$0xff]   ;;  %v1396_v54 = vld [vmem:[%s1824_s1 + $0x158] sm:$0xff]  }
  0x13   :  { %v1397_v55 = vld [vmem:[%s1824_s1 + $0x1a0] sm:$0xff]   ;;  %v1398_v56 = vld [vmem:[%s1824_s1 + $0x118] sm:$0xff]   ;;  %v1399_v57 = vld [vmem:[%s1824_s1 + $0x150] sm:$0xff]  }
  0x14   :  { %1193 = vmatpush3.bf16.msra.mxu0 %v1355_v19  ;;  %v1400_v58 = vld [vmem:[%s1824_s1 + $0x198] sm:$0xff]   ;;  %v1401_v59 = vld [vmem:[%s1824_s1 + $0x110] sm:$0xff]   ;;  %v1402_v60 = vld [vmem:[%s1825_s0 + $0xac] ss:$28 sps:$4 sm:$0xff]  }
  0x15   :  { %1233 = vmatpush3.bf16.msra.mxu1 %v1356_v20  ;;  %1194 = vmatprep.subr.bf16.mxu0 %v1357_v21  ;;  %v1404_v61 = vld [vmem:[%s1825_s0 + $0xb4] ss:$28 sps:$4 sm:$0xff]   ;;  %v1406_v62 = vld [vmem:[%s1825_s0 + $0xa8] ss:$28 sps:$4 sm:$0xff]   ;;  %v898_v17 = vld [vmem:[%s1826_s2 + $0x18] sm:$0xff] }
  0x16   :  { %1234 = vmatprep.subr.bf16.mxu1 %v1358_v22  ;;  %v1407_v63 = vld [vmem:[%s1825_s0 + $0xb0] ss:$28 sps:$4 sm:$0xff]   ;;  %v1411_v3 = vld [vmem:[%s1824_s1 + $0x140] sm:$0xff]   ;;  %v1418_v9 = vld [vmem:[%s1825_s0 + $0x18] ss:$28 sps:$4 sm:$0xff]  }
  0x17   :  { %v1408_v0 = vld [vmem:[%s1824_s1 + $0x148] sm:$0xff]   ;;  %v1409_v1 = vld [vmem:[%s1824_s1 + $0x190] sm:$0xff]   ;;  %v1413_v5 = vld [vmem:[%s1824_s1 + $0x100] sm:$0xff]  }
  0x18   :  { %1195 = vmatpush3.bf16.msra.mxu0 %v1359_v23  ;;  %v1410_v2 = vld [vmem:[%s1824_s1 + $0x108] sm:$0xff]   ;;  %v1416_v7 = vld [vmem:[%s1825_s0 + $0x14] ss:$28 sps:$4 sm:$0xff]   ;;  %v1417_v8 = vld [vmem:[%s1824_s1 + $0x180] sm:$0xff]  }
  0x19   :  { %1235 = vmatpush3.bf16.msra.mxu1 %v1360_v24  ;;  %1196 = vmatprep.subr.bf16.mxu0 %v1361_v25  ;;  %v1412_v4 = vld [vmem:[%s1824_s1 + $0x188] sm:$0xff]   ;;  %v1423_v14 = vld [vmem:[%s1825_s0 + $0x84] ss:$28 sps:$4 sm:$0xff]   ;;  %v897_v15 = vld [vmem:[%s1826_s2 + $0x10] sm:$0xff] }
  0x1a   :  { %1236 = vmatprep.subr.bf16.mxu1 %v1362_v26  ;;  %v1414_v6 = vld [vmem:[%s1825_s0 + $0x10] ss:$28 sps:$4 sm:$0xff]   ;;  %v1426_v12 = vld [vmem:[%s1825_s0 + $0x88] ss:$28 sps:$4 sm:$0xff]   ;;  %915 = vperm.xlu1 %1336, %v897_v15   ;;  %v1427_v19 = vld [vmem:[%s1825_s0 + $0xc0] ss:$28 sps:$4 sm:$0xff]  }
  0x1b   :  { %v1420_v10 = vld [vmem:[%s1825_s0 + $0x4c] ss:$28 sps:$4 sm:$0xff]   ;;  %v895_v16 = vld [vmem:[%s1826_s2] sm:$0xff]  ;;  %v1428_v23 = vld [vmem:[%s1825_s0 + $0xbc] ss:$28 sps:$4 sm:$0xff]  }
  0x1c   :  { %1197 = vmatpush3.bf16.msra.mxu0 %v1363_v27  ;;  %v1419_v11 = vld [vmem:[%s1825_s0 + $0x50] ss:$28 sps:$4 sm:$0xff]   ;;  %v1422_v13 = vld [vmem:[%s1825_s0 + $0x48] ss:$28 sps:$4 sm:$0xff]   ;;  %905 = vperm.xlu0 %1335, %v895_v16   ;;  %v1425_v22 = vld [vmem:[%s1825_s0 + $0x80] ss:$28 sps:$4 sm:$0xff]  }
  0x1d   :  { %1237 = vmatpush3.bf16.msra.mxu1 %v1364_v28  ;;  %1198 = vmatprep.subr.bf16.mxu0 %v1365_v29  ;;  %v896_v18 = vld [vmem:[%s1826_s2 + $0x8] sm:$0xff]  ;;  %v899_v21 = vld [vmem:[%s1826_s2 + $0x20] sm:$0xff]  ;;  %v902_v24 = vld [vmem:[%s1826_s2 + $0x38] sm:$0xff] }
  0x1e   :  { %1238 = vmatprep.subr.bf16.mxu1 %v1366_v30  ;;  %920 = vperm.xlu1 %1336, %v898_v17   ;;  %v900_v20 = vld [vmem:[%s1826_s2 + $0x28] sm:$0xff]  ;;  %v901_v25 = vld [vmem:[%s1826_s2 + $0x30] sm:$0xff]  ;;  %v951_v27 = vld [vmem:[%s1827_s3] sm:$0xff] }
  0x1f   :  { %v952_v26 = vld [vmem:[%s1827_s3 + $0x8] sm:$0xff]  ;;  %v1430_v28 = vld [vmem:[%s1825_s0 + $0xb8] ss:$28 sps:$4 sm:$0xff]  }
  0x20   :  { %1199 = vmatpush3.bf16.msra.mxu0 %v1367_v31  ;;  %910 = vperm.xlu0 %1335, %v896_v18   ;;  %v954_v29 = vld [vmem:[%s1827_s3 + $0x18] sm:$0xff]  ;;  %v953_v30 = vld [vmem:[%s1827_s3 + $0x10] sm:$0xff]  ;;  %v956_v31 = vld [vmem:[%s1827_s3 + $0x28] sm:$0xff] }
  0x21   :  { %1239 = vmatpush3.bf16.msra.mxu1 %v1368_v32  ;;  %1264 = vmatprep.subr.bf16.mxu0 %v1375_v37  ;;  %v955_v32 = vld [vmem:[%s1827_s3 + $0x20] sm:$0xff]  ;;  %v957_v34 = vld [vmem:[%s1827_s3 + $0x30] sm:$0xff] }
  0x22   :  { %1314 = vmatprep.subr.bf16.mxu1 %v1388_v48  ;;  %930 = vperm.xlu1 %1336, %v900_v20  }
  0x23   :  { %668 = vmatmul.mubr.bf16.vlgmr.msra.gmra.mxu0 %v1369_v33  ;;  %v958_v33 = vld [vmem:[%s1827_s3 + $0x38] sm:$0xff] }
  0x24   :  { %733 = vmatmul.mubr.bf16.vlgmr.msra.gmra.mxu1 %v1372_v35  ;;  %1265 = vmatpush3.bf16.msra.mxu0 %v1376_v38 }
  0x25   :  { %1266 = vmatprep.subr.bf16.mxu0 %v1377_v39  ;;  %675 = vmatprep.mubr.bf16.mxu0 %v1379_v41 }
  0x26   :  { %740 = vmatprep.mubr.bf16.mxu1 %v1381_v42  ;;  %1315 = vmatpush3.bf16.msra.mxu1 %v1388_v48 }
  0x27   :  { %1316 = vmatprep.subr.bf16.mxu1 %v1397_v55  ;;  %925 = vperm.xlu0 %1335, %v899_v21  }
  0x28   :  { %1267 = vmatpush3.bf16.msra.mxu0 %v1378_v40  ;;  %940 = vperm.xlu1 %1336, %v902_v24  }
  0x29   :  { %1268 = vmatprep.subr.bf16.mxu0 %v1385_v45 }
  0x2a   :  { %1317 = vmatpush3.bf16.msra.mxu1 %v1397_v55 }
  0x2b   :  { %676 = vmatmul.mubr.bf16.gmra.mxu0 %v1383_v43  ;;  %1318 = vmatprep.subr.bf16.mxu1 %v1400_v58 }
  0x2c   :  { %741 = vmatmul.mubr.bf16.gmra.mxu1 %v1384_v44  ;;  %1269 = vmatpush3.bf16.msra.mxu0 %v1386_v46 }
  0x2d   :  { %1270 = vmatprep.subr.bf16.mxu0 %v1387_v47  ;;  %683 = vmatprep.mubr.bf16.mxu0 %v1390_v50 }
  0x2e   :  { %748 = vmatprep.mubr.bf16.mxu1 %v1392_v51  ;;  %1319 = vmatpush3.bf16.msra.mxu1 %v1400_v58 }
  0x2f   :  { %1320 = vmatprep.subr.bf16.mxu1 %v1409_v1  ;;  %935 = vperm.xlu0 %1335, %v901_v25  }
  0x30   :  { %1271 = vmatpush3.bf16.msra.mxu0 %v1389_v49  ;;  %966 = vperm.xlu1 %1336, %v952_v26  }
  0x31   :  { %1272 = vmatprep.subr.bf16.mxu0 %v1396_v54 }
  0x32   :  { %1321 = vmatpush3.bf16.msra.mxu1 %v1409_v1 }
  0x33   :  { %684 = vmatmul.mubr.bf16.gmra.mxu0 %v1394_v52  ;;  %1322 = vmatprep.subr.bf16.mxu1 %v1412_v4 }
  0x34   :  { %749 = vmatmul.mubr.bf16.gmra.mxu1 %v1395_v53  ;;  %1273 = vmatpush3.bf16.msra.mxu0 %v1398_v56 }
  0x35   :  { %1274 = vmatprep.subr.bf16.mxu0 %v1399_v57  ;;  %691 = vmatprep.mubr.bf16.mxu0 %v1402_v60 }
  0x36   :  { %756 = vmatprep.mubr.bf16.mxu1 %v1404_v61  ;;  %1323 = vmatpush3.bf16.msra.mxu1 %v1412_v4 }
  0x37   :  { %1324 = vmatprep.subr.bf16.mxu1 %v1417_v8  ;;  %961 = vperm.xlu0 %1335, %v951_v27  }
  0x38   :  { %1275 = vmatpush3.bf16.msra.mxu0 %v1401_v59  ;;  %976 = vperm.xlu1 %1336, %v954_v29  }
  0x39   :  { %1276 = vmatprep.subr.bf16.mxu0 %v1408_v0 }
  0x3a   :  { %1325 = vmatpush3.bf16.msra.mxu1 %v1417_v8 }
  0x3b   :  { %692 = vmatmul.mubr.bf16.gmra.mxu0 %v1406_v62  ;;  %971 = vperm.xlu0 %1335, %v953_v30  }
  0x3c   :  { %757 = vmatmul.mubr.bf16.gmra.mxu1 %v1407_v63  ;;  %1277 = vmatpush3.bf16.msra.mxu0 %v1410_v2 }
  0x3d   :  { %1278 = vmatprep.subr.bf16.mxu0 %v1411_v3  ;;  %797 = vmatprep.mubr.bf16.mxu0 %v1416_v7 }
  0x3e   :  { %1326 = vmatprep.mubr.msk.bf16.mxu1 %vm622_vm0, %v1418_v9  ;;  %986 = vperm.xlu1 %1336, %v956_v31  }
  0x3f   :  { %981 = vperm.xlu0 %1335, %v955_v32  }
  0x40   :  { %1279 = vmatpush3.bf16.msra.mxu0 %v1413_v5 }
  0x42   :  { %996 = vperm.xlu1 %1336, %v958_v33  }
  0x43   :  { %798 = vmatmul.mubr.bf16.vlgmr.msra.gmra.mxu0 %v1414_v6  ;;  %991 = vperm.xlu0 %1335, %v957_v34  }
  0x44   :  { %805 = vmatprep.mubr.bf16.mxu0 %v1420_v10  ;;  %1327 = vmatmul.mubr.msk.bf16.vlgmr.msra.gmra.mxu1 %vm622_vm0, %v1419_v11 }
  0x45   :  { %1330 = vmatprep.mubr.msk.bf16.mxu1 %vm622_vm0, %v1426_v12 }
  0x4b   :  { %806 = vmatmul.mubr.bf16.gmra.mxu0 %v1422_v13 }
  0x4c   :  { %813 = vmatprep.mubr.bf16.mxu0 %v1423_v14  ;;  %1331 = vmatmul.mubr.msk.bf16.gmra.mxu1 %vm622_vm0, %v1427_v19 }
  0x53   :  { %814 = vmatmul.mubr.bf16.gmra.mxu0 %v1425_v22 }
  0x54   :  { %821 = vmatprep.mubr.bf16.mxu0 %v1428_v23 }
  0x5b   :  { %822 = vmatmul.mubr.bf16.gmra.mxu0 %v1430_v28 }
  0x95   :  { %v1759_v58 = vpop.permute.xlu1 %915 }
  0x97   :  { %v906_v55 = vpop.permute.xlu0 %905 }
  0x99   :  { %v1773_v2 = vpop.permute.xlu1 %920 }
  0x9b   :  { %v911_v63 = vpop.permute.xlu0 %910 }
  0x9d   :  { %v1783_v10 = vpop.permute.xlu1 %930 }
  0xa2   :  { %v1781_v8 = vpop.permute.xlu0 %925 }
  0xa3   :  { %v1789_v26 = vpop.permute.xlu1 %940 }
  0xaa   :  { %v1787_v19 = vpop.permute.xlu0 %935 }
  0xe3   :  { %v1200_v35 = vpop.f32.mrf.mxu0 }
  0xe4   :  { %v1240_v36 = vpop.f32.mrf.mxu1 }
  0xe5   :  { %v1201_v37 = vpop.f32.mrf.mxu0 }
  0xe6   :  { %v1241_v38 = vpop.f32.mrf.mxu1  ;;  %v1202_v6 = vadd.f32 %v1201_v37, %v1200_v35 }
  0xe7   :  { %v1203_v39 = vpop.f32.mrf.mxu0  ;;  %v1242_v7 = vadd.f32 %v1241_v38, %v1240_v36  ;;  %v962_v38 = vpop.permute.xlu0 %961 }
  0xe8   :  { %v1243_v40 = vpop.f32.mrf.mxu1 }
  0xe9   :  { %v1204_v41 = vpop.f32.mrf.mxu0  ;;  %v735_v13 = vadd.f32 %v1242_v7, %v1202_v6  ;;  %v967_v7 = vpop.permute.xlu1 %966 }
  0xea   :  { %v1244_v42 = vpop.f32.mrf.mxu1  ;;  %v1205_v14 = vadd.f32 %v1204_v41, %v1203_v39 }
  0xeb   :  { %v1206_v43 = vpop.f32.mrf.mxu0  ;;  %v1245_v15 = vadd.f32 %v1244_v42, %v1243_v40 }
  0xec   :  { %v1246_v44 = vpop.f32.mrf.mxu1 }
  0xed   :  { %v1207_v45 = vpop.f32.mrf.mxu0  ;;  %v738_v25 = vadd.f32 %v1245_v15, %v1205_v14 }
  0xee   :  { %v1247_v46 = vpop.f32.mrf.mxu1  ;;  %v1208_v21 = vadd.f32 %v1207_v45, %v1206_v43 }
  0xef   :  { %v1209_v47 = vpop.f32.mrf.mxu0  ;;  %v1248_v22 = vadd.f32 %v1247_v46, %v1246_v44 }
  0xf0   :  { %v1249_v48 = vpop.f32.mrf.mxu1 }
  0xf1   :  { %v1210_v49 = vpop.f32.mrf.mxu0  ;;  %v743_v33 = vadd.f32 %v1248_v22, %v1208_v21 }
  0xf2   :  { %v1250_v50 = vpop.f32.mrf.mxu1  ;;  %v1211_v36 = vadd.f32 %v1210_v49, %v1209_v47 }
  0xf3   :  { %v1212_v51 = vpop.f32.mrf.mxu0  ;;  %v1251_v37 = vadd.f32 %v1250_v50, %v1249_v48 }
  0xf4   :  { %v1252_v52 = vpop.f32.mrf.mxu1 }
  0xf5   :  { %v1213_v53 = vpop.f32.mrf.mxu0 }
  0xf6   :  { %v1253_v54 = vpop.f32.mrf.mxu1  ;;  %v1214_v46 = vadd.f32 %v1213_v53, %v1212_v51 }
  0xf7   :  { %v1755_v56 = vpop.f32.mrf.mxu0  ;;  %v1254_v6 = vadd.f32 %v1253_v54, %v1252_v52  ;;  %v972_v52 = vpop.permute.xlu0 %971 }
  0xf8   :  { %v1757_v57 = vpop.f32.mrf.mxu1 }
  0xf9   :  { %v1761_v59 = vpop.f32.mrf.mxu0 }
  0xfa   :  { %v1763_v60 = vpop.f32.mrf.mxu1 }
  0xfb   :  { %v1765_v61 = vpop.f32.mrf.mxu0  ;;  %v1257_v51 = vadd.f32 %v1763_v60, %v1757_v57 }
  0xfc   :  { %v1767_v62 = vpop.f32.mrf.mxu1 }
  0xfd   :  { %v1769_v0 = vpop.f32.mrf.mxu0 }
  0xfe   :  { %v1771_v1 = vpop.f32.mrf.mxu1 }
  0xff   :  { %v1775_v3 = vpop.f32.mrf.mxu0  ;;  %v1260_v57 = vadd.f32 %v1771_v1, %v1767_v62 }
 0x100   :  { %v1779_v5 = vpop.f32.mrf.mxu1 }
 0x101   :  { %v1777_v4 = vpop.f32.mrf.mxu0 }
 0x102   :  { %v1785_v11 = vpop.f32.mrf.mxu1 }
 0x103   :  { %v1280_v9 = vpop.f32.mrf.mxu0  ;;  %v1263_v62 = vadd.f32 %v1785_v11, %v1779_v5 }
 0x104   :  { %v1328_v18 = vpop.f32.mrf.mxu1 }
 0x105   :  { %v1281_v12 = vpop.f32.mrf.mxu0 }
 0x106   :  { %v1282_v16 = vadd.f32 %v1281_v12, %v1280_v9  ;;  %v864_v24 = vpop.f32.mrf.mxu1 }
 0x107   :  { %v1283_v17 = vpop.f32.mrf.mxu0 }
 0x108   :  { %v800_v20 = vadd.f32 %v1282_v16, %v735_v13  ;;  %v1329_v30 = vpop.f32.mrf.mxu1 }
 0x109   :  { %v1284_v23 = vpop.f32.mrf.mxu0 }
 0x10a   :  { %v1285_v27 = vadd.f32 %v1284_v23, %v1283_v17  ;;  %v865_v28 = vadd.f32 %v864_v24, %v800_v20  ;;  %v867_v35 = vpop.f32.mrf.mxu1  ;;  %v751_v17 = vadd.f32 %v1254_v6, %v1214_v46  ;;  %v1217_v20 = vadd.f32 %v1761_v59, %v1755_v56  ;;  %v977_v59 = vpop.permute.xlu1 %976 }
 0x10b   :  { %v1286_v29 = vpop.f32.mrf.mxu0  ;;  %v1220_v56 = vadd.f32 %v1769_v0, %v1765_v61  ;;  %v1223_v61 = vadd.f32 %v1777_v4, %v1775_v3 }
 0x10c   :  { %v943_v31 = vmul.f32 %v906_v55, %v865_v28  ;;  %v803_v32 = vadd.f32 %v1285_v27, %v738_v25  ;;  %v1791_v42 = vpop.f32.mrf.mxu1  ;;  %v746_v55 = vadd.f32 %v1251_v37, %v1211_v36  ;;  %v754_v25 = vadd.f32 %v1257_v51, %v1217_v20 }
 0x10d   :  { %v1287_v34 = vpop.f32.mrf.mxu0  ;;  %v762_v3 = vadd.f32 %v1263_v62, %v1223_v61 }
 0x10e   :  { %v1288_v39 = vadd.f32 %v1287_v34, %v1286_v29  ;;  %v868_v40 = vadd.f32 %v867_v35, %v803_v32  ;;  %v999_v43 = vadd.f32 %v962_v38, %v943_v31  ;;  %v880_v47 = vpop.f32.mrf.mxu1  ;;  %v759_v35 = vadd.f32 %v1260_v57, %v1220_v56  ;;  %v982_v38 = vpop.permute.xlu0 %981 }
 0x10f   :  { %v1289_v41 = vpop.f32.mrf.mxu0 }
 0x110   :  { %v808_v44 = vadd.f32 %v1288_v39, %v743_v33  ;;  %v944_v45 = vmul.f32 %v911_v63, %v868_v40  ;;  %v1007_v48 = vmax.f32 %v999_v43, 0.0  ;;  %v1333_v22 = vpop.f32.mrf.mxu1  ;;  %v987_v43 = vpop.permute.xlu1 %986 }
 0x111   :  { %v1290_v9 = vpop.f32.mrf.mxu0 }
 0x112   :  { %v873_v12 = vadd.f32 %v1328_v18, %v808_v44  ;;  %v1000_v13 = vadd.f32 %v967_v7, %v944_v45  ;;  %v1291_v14 = vadd.f32 %v1290_v9, %v1289_v41  ;;  %v883_v31 = vpop.f32.mrf.mxu1 }
 0x113   :  { %v1292_v15 = vpop.f32.mrf.mxu0 }
 0x114   :  { %v945_v49 = vmul.f32 %v1759_v58, %v873_v12  ;;  %v1008_v50 = vmax.f32 %v1000_v13, 0.0  ;;  %v811_v16 = vadd.f32 %v1291_v14, %v746_v55  ;;  %v992_v12 = vpop.permute.xlu0 %991  ;;  %v997_v14 = vpop.permute.xlu1 %996 }
 0x115   :  { %v1293_v63 = vpop.f32.mrf.mxu0 }
 0x116   :  { %v1164_v53 = vpack.c.bf16 %v1008_v50, %v1007_v48  ;;  %v876_v54 = vadd.f32 %v1329_v30, %v811_v16  ;;  %v1294_v18 = vadd.f32 %v1293_v63, %v1292_v15  ;;  %v1001_v23 = vadd.f32 %v972_v52, %v945_v49 }
 0x117   :  { %v1295_v21 = vpop.f32.mrf.mxu0 }
 0x118   :  { %1165 = vst [vmem:[%s1828_s4] sm:$0xff] %v1164_v53   ;;  %v946_v58 = vmul.f32 %v1773_v2, %v876_v54  ;;  %v816_v24 = vadd.f32 %v1294_v18, %v751_v17  ;;  %v1009_v32 = vmax.f32 %v1001_v23, 0.0 }
 0x119   :  { %v1296_v60 = vpop.f32.mrf.mxu0 }
 0x11a   :  { %v1002_v27 = vadd.f32 %v977_v59, %v946_v58  ;;  %v1297_v28 = vadd.f32 %v1296_v60, %v1295_v21  ;;  %v881_v29 = vadd.f32 %v880_v47, %v816_v24 }
 0x11b   :  { %v1298_v30 = vpop.f32.mrf.mxu0 }
 0x11c   :  { %v1010_v33 = vmax.f32 %v1002_v27, 0.0  ;;  %v947_v34 = vmul.f32 %v1781_v8, %v881_v29  ;;  %v819_v2 = vadd.f32 %v1297_v28, %v754_v25 }
 0x11d   :  { %v1299_v0 = vpop.f32.mrf.mxu0 }
 0x11e   :  { %v1169_v1 = vpack.c.bf16 %v1010_v33, %v1009_v32  ;;  %v1300_v36 = vadd.f32 %v1299_v0, %v1298_v30  ;;  %v884_v37 = vadd.f32 %v883_v31, %v819_v2  ;;  %v1003_v40 = vadd.f32 %v982_v38, %v947_v34 }
 0x11f   :  { %v1301_v39 = vpop.f32.mrf.mxu0 }
 0x120   :  { %1181 = vst [vmem:[%s1828_s4 + $0x8] sm:$0xff] %v1169_v1   ;;  %v824_v8 = vadd.f32 %v1300_v36, %v759_v35  ;;  %v948_v41 = vmul.f32 %v1783_v10, %v884_v37  ;;  %v1011_v11 = vmax.f32 %v1003_v40, 0.0 }
 0x121   :  { %v1302_v44 = vpop.f32.mrf.mxu0 }
 0x122   :  { %v889_v4 = vadd.f32 %v1791_v42, %v824_v8  ;;  %v1004_v45 = vadd.f32 %v987_v43, %v948_v41  ;;  %v1303_v5 = vadd.f32 %v1302_v44, %v1301_v39 }
 0x124   :  { %v949_v46 = vmul.f32 %v1787_v19, %v889_v4  ;;  %v1012_v6 = vmax.f32 %v1004_v45, 0.0  ;;  %v827_v7 = vadd.f32 %v1303_v5, %v762_v3 }
 0x126   :  { %v1174_v9 = vpack.c.bf16 %v1012_v6, %v1011_v11  ;;  %v892_v55 = vadd.f32 %v1333_v22, %v827_v7  ;;  %v1005_v13 = vadd.f32 %v992_v12, %v949_v46 }
 0x128   :  { %1182 = vst [vmem:[%s1828_s4 + $0x10] sm:$0xff] %v1174_v9   ;;  %v950_v10 = vmul.f32 %v1789_v26, %v892_v55  ;;  %v1013_v42 = vmax.f32 %v1005_v13, 0.0 }
 0x12a   :  { %v1006_v15 = vadd.f32 %v997_v14, %v950_v10 }
 0x12c   :  { %v1014_v47 = vmax.f32 %v1006_v15, 0.0 }
 0x12e   :  { %v1179_v48 = vpack.c.bf16 %v1014_v47, %v1013_v42 }
 0x130   :  { %1183 = vst [vmem:[%s1828_s4 + $0x18] sm:$0xff] %v1179_v48  }

// kernel: resnet3d_forward.19
= control target key start
LH: loop header
LB: loop body
LE: loop exit
PB: predicated region body
PF: predicated region fallthrough
CT: control target
= control target key end

     0   :  { %v2488_v1 = vmov 0   ;;  %vm1214_vm0 = vcmask 523264   ;;  %s3258_s1 = inlined_call_operand.vmem [shape: bf16[1728,128], index: 1, kind: input, shape index: {}]   ;;  %s3259_s0 = inlined_call_operand.vmem [shape: bf16[64,1728], index: 0, kind: input, shape index: {}]   ;;  %s3260_s2 = inlined_call_operand.vmem [shape: f32[64,1], index: 2, kind: input, shape index: {}]   ;;  %s3261_s3 = inlined_call_operand.vmem [shape: f32[64,1], index: 3, kind: input, shape index: {}]   ;;  %s3262_s4 = inlined_call_operand.vmem [shape: bf16[64,128], index: 4, kind: output, shape index: {}]  }
   0x1   :  { %v2296_v0 = vld [vmem:[%s3258_s1 + $0x78] sm:$0xff]   ;;  %2295 = vset.pattern.permute.xlu1 %v2488_v1  ;;  %2294 = vset.pattern.permute.xlu0 %v2488_v1  ;;  %v2298_v3 = vld [vmem:[%s3258_s1 + $0x70] sm:$0xff]   ;;  %v2300_v5 = vld [vmem:[%s3258_s1 + $0x68] sm:$0xff]  }
   0x2   :  { %v2297_v2 = vld [vmem:[%s3258_s1 + $0x38] sm:$0xff]   ;;  %2053 = vmatprep.subr.bf16.mxu1 %v2296_v0  ;;  %v2299_v4 = vld [vmem:[%s3258_s1 + $0x30] sm:$0xff]   ;;  %v2301_v6 = vld [vmem:[%s3258_s1 + $0x28] sm:$0xff]  }
   0x3   :  { %2054 = vmatpush3.bf16.msra.mxu1 %v2297_v2  ;;  %v2302_v7 = vld [vmem:[%s3258_s1 + $0x60] sm:$0xff]   ;;  %v2306_v9 = vld [vmem:[%s3258_s1 + $0x178] sm:$0xff]   ;;  %v2310_v13 = vld [vmem:[%s3258_s1 + $0x170] sm:$0xff]  }
   0x4   :  { %2055 = vmatprep.subr.bf16.mxu1 %v2298_v3  ;;  %v2303_v8 = vld [vmem:[%s3258_s1 + $0x20] sm:$0xff]   ;;  %v2307_v10 = vld [vmem:[%s3258_s1 + $0x138] sm:$0xff]   ;;  %2133 = vmatprep.subr.bf16.mxu0 %v2306_v9  ;;  %v2311_v14 = vld [vmem:[%s3258_s1 + $0x130] sm:$0xff]  }
   0x5   :  { %v2304_v11 = vld [vmem:[%s3258_s1 + $0x58] sm:$0xff]   ;;  %2134 = vmatpush3.bf16.msra.mxu0 %v2307_v10  ;;  %v2308_v15 = vld [vmem:[%s3258_s1 + $0x50] sm:$0xff]   ;;  %v2314_v17 = vld [vmem:[%s3258_s1 + $0x168] sm:$0xff]  }
   0x6   :  { %v2305_v12 = vld [vmem:[%s3258_s1 + $0x18] sm:$0xff]   ;;  %2135 = vmatprep.subr.bf16.mxu0 %v2310_v13  ;;  %v2309_v16 = vld [vmem:[%s3258_s1 + $0x10] sm:$0xff]   ;;  %v2315_v18 = vld [vmem:[%s3258_s1 + $0x128] sm:$0xff]  }
   0x7   :  { %2056 = vmatpush3.bf16.msra.mxu1 %v2299_v4  ;;  %v2312_v19 = vld [vmem:[%s3258_s1 + $0x48] sm:$0xff]   ;;  %v2318_v21 = vld [vmem:[%s3258_s1 + $0x160] sm:$0xff]   ;;  %v2323_v26 = vld [vmem:[%s3258_s1 + $0xf8] sm:$0xff]  }
   0x8   :  { %2057 = vmatprep.subr.bf16.mxu1 %v2300_v5  ;;  %v2313_v20 = vld [vmem:[%s3258_s1 + $0x8] sm:$0xff]   ;;  %v2319_v22 = vld [vmem:[%s3258_s1 + $0x120] sm:$0xff]   ;;  %v2325_v28 = vld [vmem:[%s3258_s1 + $0x158] sm:$0xff]  }
   0x9   :  { %2136 = vmatpush3.bf16.msra.mxu0 %v2311_v14  ;;  %v2316_v23 = vld [vmem:[%s3258_s1 + $0x40] sm:$0xff]   ;;  %v2326_v29 = vld [vmem:[%s3258_s1 + $0x118] sm:$0xff]   ;;  %v2327_v31 = vld [vmem:[%s3258_s1 + $0xf0] sm:$0xff]  }
   0xa   :  { %2137 = vmatprep.subr.bf16.mxu0 %v2314_v17  ;;  %v2322_v24 = vld [vmem:[%s3259_s0 + $0x4] ss:$56 sps:$4 sm:$0xff]   ;;  %v2320_v27 = vld [vmem:[%s3259_s0] ss:$56 sps:$4 sm:$0xff]   ;;  %v2329_v32 = vld [vmem:[%s3258_s1 + $0x150] sm:$0xff]  }
   0xb   :  { %2058 = vmatpush3.bf16.msra.mxu1 %v2301_v6  ;;  %v2317_v25 = vld [vmem:[%s3258_s1] sm:$0xff]   ;;  %1259 = vmatprep.mubr.bf16.mxu1 %v2322_v24  ;;  %v2324_v30 = vld [vmem:[%s3258_s1 + $0xb8] sm:$0xff]   ;;  %v2330_v33 = vld [vmem:[%s3258_s1 + $0x110] sm:$0xff]  }
   0xc   :  { %2059 = vmatprep.subr.bf16.mxu1 %v2302_v7  ;;  %v2331_v34 = vld [vmem:[%s3259_s0 + $0x74] ss:$56 sps:$4 sm:$0xff]   ;;  %v2333_v36 = vld [vmem:[%s3259_s0 + $0x70] ss:$56 sps:$4 sm:$0xff]   ;;  %v2338_v41 = vld [vmem:[%s3258_s1 + $0xe0] sm:$0xff]  }
   0xd   :  { %2138 = vmatpush3.bf16.msra.mxu0 %v2315_v18  ;;  %v2328_v35 = vld [vmem:[%s3258_s1 + $0xb0] sm:$0xff]   ;;  %v2334_v37 = vld [vmem:[%s3258_s1 + $0xe8] sm:$0xff]   ;;  %v2340_v42 = vld [vmem:[%s3258_s1 + $0x140] sm:$0xff]  }
   0xe   :  { %2139 = vmatprep.subr.bf16.mxu0 %v2318_v21  ;;  %v2336_v38 = vld [vmem:[%s3258_s1 + $0x148] sm:$0xff]   ;;  %v2341_v43 = vld [vmem:[%s3258_s1 + $0x100] sm:$0xff]   ;;  %v2345_v47 = vld [vmem:[%s3258_s1 + $0xd8] sm:$0xff]  }
   0xf   :  { %2060 = vmatpush3.bf16.msra.mxu1 %v2303_v8  ;;  %v2337_v39 = vld [vmem:[%s3258_s1 + $0x108] sm:$0xff]   ;;  %v2339_v44 = vld [vmem:[%s3258_s1 + $0xa0] sm:$0xff]   ;;  %v2346_v48 = vld [vmem:[%s3258_s1 + $0x98] sm:$0xff]  }
  0x10   :  { %2061 = vmatprep.subr.bf16.mxu1 %v2304_v11  ;;  %v2335_v40 = vld [vmem:[%s3258_s1 + $0xa8] sm:$0xff]   ;;  %v2342_v45 = vld [vmem:[%s3259_s0 + $0xe4] ss:$56 sps:$4 sm:$0xff]   ;;  %v2344_v46 = vld [vmem:[%s3259_s0 + $0xe0] ss:$56 sps:$4 sm:$0xff]  }
  0x11   :  { %2140 = vmatpush3.bf16.msra.mxu0 %v2319_v22  ;;  %v2347_v49 = vld [vmem:[%s3259_s0 + $0x10] ss:$56 sps:$4 sm:$0xff]   ;;  %v2349_v50 = vld [vmem:[%s3259_s0 + $0x14] ss:$56 sps:$4 sm:$0xff]   ;;  %v2350_v51 = vld [vmem:[%s3258_s1 + $0x278] sm:$0xff]  }
  0x12   :  { %2141 = vmatprep.subr.bf16.mxu0 %v2325_v28  ;;  %1389 = vmatprep.mubr.bf16.mxu0 %v2349_v50  ;;  %v2351_v52 = vld [vmem:[%s3258_s1 + $0x238] sm:$0xff]   ;;  %v2352_v53 = vld [vmem:[%s3258_s1 + $0xd0] sm:$0xff]   ;;  %v2359_v59 = vld [vmem:[%s3258_s1 + $0xc8] sm:$0xff]  }
  0x13   :  { %2062 = vmatpush3.bf16.msra.mxu1 %v2305_v12  ;;  %v2353_v54 = vld [vmem:[%s3258_s1 + $0x90] sm:$0xff]   ;;  %v2360_v60 = vld [vmem:[%s3258_s1 + $0x88] sm:$0xff]   ;;  %v2361_v61 = vld [vmem:[%s3259_s0 + $0x84] ss:$56 sps:$4 sm:$0xff]  }
  0x14   :  { %2063 = vmatprep.subr.bf16.mxu1 %v2308_v15  ;;  %v2354_v55 = vld [vmem:[%s3258_s1 + $0x270] sm:$0xff]   ;;  %v2363_v62 = vld [vmem:[%s3258_s1 + $0x268] sm:$0xff]   ;;  %v2364_v63 = vld [vmem:[%s3259_s0 + $0x80] ss:$56 sps:$4 sm:$0xff]  }
  0x15   :  { %2142 = vmatpush3.bf16.msra.mxu0 %v2326_v29  ;;  %v2355_v56 = vld [vmem:[%s3258_s1 + $0x230] sm:$0xff]   ;;  %v2365_v0 = vld [vmem:[%s3258_s1 + $0x228] sm:$0xff]   ;;  %v2366_v2 = vld [vmem:[%s3258_s1 + $0xc0] sm:$0xff]  }
  0x16   :  { %2143 = vmatprep.subr.bf16.mxu0 %v2329_v32  ;;  %v2356_v57 = vld [vmem:[%s3259_s0 + $0x154] ss:$56 sps:$4 sm:$0xff]   ;;  %v2358_v58 = vld [vmem:[%s3259_s0 + $0x150] ss:$56 sps:$4 sm:$0xff]   ;;  %v2367_v3 = vld [vmem:[%s3258_s1 + $0x80] sm:$0xff]  }
  0x17   :  { %2064 = vmatpush3.bf16.msra.mxu1 %v2309_v16  ;;  %v2368_v4 = vld [vmem:[%s3258_s1 + $0x260] sm:$0xff]   ;;  %v2373_v8 = vld [vmem:[%s3258_s1 + $0x1f8] sm:$0xff]   ;;  %v2374_v9 = vld [vmem:[%s3259_s0 + $0xf4] ss:$56 sps:$4 sm:$0xff]  }
  0x18   :  { %2065 = vmatprep.subr.bf16.mxu1 %v2312_v19  ;;  %v2369_v5 = vld [vmem:[%s3258_s1 + $0x220] sm:$0xff]   ;;  %v2376_v10 = vld [vmem:[%s3258_s1 + $0x1b8] sm:$0xff]   ;;  %v2378_v12 = vld [vmem:[%s3259_s0 + $0xf0] ss:$56 sps:$4 sm:$0xff]  }
  0x19   :  { %2144 = vmatpush3.bf16.msra.mxu0 %v2330_v33  ;;  %v2370_v6 = vld [vmem:[%s3259_s0 + $0x8] ss:$56 sps:$4 sm:$0xff]   ;;  %v2372_v7 = vld [vmem:[%s3259_s0 + $0xc] ss:$56 sps:$4 sm:$0xff]   ;;  %v2377_v11 = vld [vmem:[%s3258_s1 + $0x258] sm:$0xff]  }
  0x1a   :  { %2145 = vmatprep.subr.bf16.mxu0 %v2336_v38  ;;  %v2379_v13 = vld [vmem:[%s3258_s1 + $0x218] sm:$0xff]   ;;  %v2380_v14 = vld [vmem:[%s3258_s1 + $0x1f0] sm:$0xff]   ;;  %v2390_v22 = vld [vmem:[%s3258_s1 + $0x1a8] sm:$0xff]  }
  0x1b   :  { %2066 = vmatpush3.bf16.msra.mxu1 %v2313_v20  ;;  %v2381_v15 = vld [vmem:[%s3258_s1 + $0x1b0] sm:$0xff]   ;;  %v2387_v20 = vld [vmem:[%s3258_s1 + $0x1e8] sm:$0xff]   ;;  %v2388_v21 = vld [vmem:[%s3259_s0 + $0x164] ss:$56 sps:$4 sm:$0xff]  }
  0x1c   :  { %2067 = vmatprep.subr.bf16.mxu1 %v2316_v23  ;;  %v2382_v16 = vld [vmem:[%s3258_s1 + $0x250] sm:$0xff]   ;;  %v2391_v23 = vld [vmem:[%s3258_s1 + $0x248] sm:$0xff]   ;;  %v2392_v24 = vld [vmem:[%s3259_s0 + $0x160] ss:$56 sps:$4 sm:$0xff]  }
  0x1d   :  { %2146 = vmatpush3.bf16.msra.mxu0 %v2337_v39  ;;  %v2383_v17 = vld [vmem:[%s3258_s1 + $0x210] sm:$0xff]   ;;  %v2396_v28 = vld [vmem:[%s3258_s1 + $0x240] sm:$0xff]   ;;  %v2401_v32 = vld [vmem:[%s3258_s1 + $0x1d8] sm:$0xff]  }
  0x1e   :  { %2147 = vmatprep.subr.bf16.mxu0 %v2340_v42  ;;  %v2384_v18 = vld [vmem:[%s3259_s0 + $0x7c] ss:$56 sps:$4 sm:$0xff]   ;;  %v2386_v19 = vld [vmem:[%s3259_s0 + $0x78] ss:$56 sps:$4 sm:$0xff]   ;;  %v2397_v29 = vld [vmem:[%s3258_s1 + $0x200] sm:$0xff]  }
  0x1f   :  { %2068 = vmatpush3.bf16.msra.mxu1 %v2317_v25  ;;  %v2393_v25 = vld [vmem:[%s3258_s1 + $0x208] sm:$0xff]   ;;  %v2402_v33 = vld [vmem:[%s3258_s1 + $0x198] sm:$0xff]   ;;  %v2408_v38 = vld [vmem:[%s3258_s1 + $0x190] sm:$0xff]  }
  0x20   :  { %2093 = vmatprep.subr.bf16.mxu1 %v2323_v26  ;;  %v2394_v26 = vld [vmem:[%s3258_s1 + $0x1e0] sm:$0xff]   ;;  %v2409_v39 = vld [vmem:[%s3258_s1 + $0x330] sm:$0xff]   ;;  %v2413_v42 = vld [vmem:[%s3258_s1 + $0x1c8] sm:$0xff]  }
  0x21   :  { %2148 = vmatpush3.bf16.msra.mxu0 %v2341_v43  ;;  %v2414_v43 = vld [vmem:[%s3258_s1 + $0x188] sm:$0xff]   ;;  %v2422_v50 = vld [vmem:[%s3258_s1 + $0x2f8] sm:$0xff]  }
  0x22   :  { %1260 = vmatmul.mubr.bf16.vlgmr.msra.gmra.mxu1 %v2320_v27  ;;  %2213 = vmatprep.subr.bf16.mxu0 %v2350_v51  ;;  %v2395_v27 = vld [vmem:[%s3258_s1 + $0x1a0] sm:$0xff]   ;;  %v2423_v51 = vld [vmem:[%s3258_s1 + $0x2b8] sm:$0xff]  }
  0x23   :  { %2094 = vmatpush3.bf16.msra.mxu1 %v2324_v30  ;;  %1267 = vmatprep.mubr.bf16.mxu1 %v2331_v34  ;;  %v2398_v30 = vld [vmem:[%s3259_s0 + $0xec] ss:$56 sps:$4 sm:$0xff]   ;;  %v2403_v34 = vld [vmem:[%s3259_s0 + $0x20] ss:$56 sps:$4 sm:$0xff]  }
  0x24   :  { %2095 = vmatprep.subr.bf16.mxu1 %v2327_v31  ;;  %1390 = vmatmul.mubr.bf16.vlgmr.msra.gmra.mxu0 %v2347_v49  ;;  %v2400_v31 = vld [vmem:[%s3259_s0 + $0xe8] ss:$56 sps:$4 sm:$0xff]   ;;  %v2421_v49 = vld [vmem:[%s3259_s0 + $0x1c] ss:$56 sps:$4 sm:$0xff]  }
  0x25   :  { %2214 = vmatpush3.bf16.msra.mxu0 %v2351_v52  ;;  %1397 = vmatprep.mubr.bf16.mxu0 %v2361_v61  ;;  %v2424_v52 = vld [vmem:[%s3258_s1 + $0x318] sm:$0xff]   ;;  %v2435_v61 = vld [vmem:[%s3258_s1 + $0x2a8] sm:$0xff]  }
  0x26   :  { %2215 = vmatprep.subr.bf16.mxu0 %v2354_v55  ;;  %v2427_v55 = vld [vmem:[%s3258_s1 + $0x310] sm:$0xff]  }
  0x27   :  { %2096 = vmatpush3.bf16.msra.mxu1 %v2328_v35  ;;  %v2405_v35 = vld [vmem:[%s3259_s0 + $0x24] ss:$56 sps:$4 sm:$0xff]  }
  0x28   :  { %2097 = vmatprep.subr.bf16.mxu1 %v2334_v37  ;;  %v2407_v37 = vld [vmem:[%s3258_s1 + $0x1d0] sm:$0xff]  }
  0x29   :  { %2216 = vmatpush3.bf16.msra.mxu0 %v2355_v56  ;;  %v2428_v56 = vld [vmem:[%s3259_s0 + $0x8c] ss:$56 sps:$4 sm:$0xff]  }
  0x2a   :  { %1268 = vmatmul.mubr.bf16.gmra.mxu1 %v2333_v36  ;;  %2217 = vmatprep.subr.bf16.mxu0 %v2363_v62  ;;  %v2406_v36 = vld [vmem:[%s3258_s1 + $0x338] sm:$0xff]   ;;  %v2436_v62 = vld [vmem:[%s3258_s1 + $0x308] sm:$0xff]  }
  0x2b   :  { %2098 = vmatpush3.bf16.msra.mxu1 %v2335_v40  ;;  %1275 = vmatprep.mubr.bf16.mxu1 %v2342_v45  ;;  %v2410_v40 = vld [vmem:[%s3259_s0 + $0x15c] ss:$56 sps:$4 sm:$0xff]   ;;  %v2416_v45 = vld [vmem:[%s3258_s1 + $0x1c0] sm:$0xff]  }
  0x2c   :  { %2099 = vmatprep.subr.bf16.mxu1 %v2338_v41  ;;  %1398 = vmatmul.mubr.bf16.gmra.mxu0 %v2364_v63  ;;  %v2412_v41 = vld [vmem:[%s3259_s0 + $0x158] ss:$56 sps:$4 sm:$0xff]   ;;  %v2437_v63 = vld [vmem:[%s3258_s1 + $0x2e0] sm:$0xff]  }
  0x2d   :  { %2218 = vmatpush3.bf16.msra.mxu0 %v2365_v0  ;;  %1405 = vmatprep.mubr.bf16.mxu0 %v2374_v9  ;;  %v2438_v0 = vld [vmem:[%s3258_s1 + $0x2a0] sm:$0xff]   ;;  %v2448_v9 = vld [vmem:[%s3258_s1 + $0x358] sm:$0xff]  }
  0x2e   :  { %2219 = vmatprep.subr.bf16.mxu0 %v2368_v4  ;;  %v2442_v4 = vld [vmem:[%s3259_s0 + $0xf8] ss:$56 sps:$4 sm:$0xff]  }
  0x2f   :  { %2100 = vmatpush3.bf16.msra.mxu1 %v2339_v44  ;;  %v2415_v44 = vld [vmem:[%s3258_s1 + $0x328] sm:$0xff]  }
  0x30   :  { %2101 = vmatprep.subr.bf16.mxu1 %v2345_v47  ;;  %v2418_v47 = vld [vmem:[%s3258_s1 + $0x320] sm:$0xff]  }
  0x31   :  { %2220 = vmatpush3.bf16.msra.mxu0 %v2369_v5  ;;  %v2443_v5 = vld [vmem:[%s3259_s0 + $0x104] ss:$56 sps:$4 sm:$0xff]  }
  0x32   :  { %1276 = vmatmul.mubr.bf16.gmra.mxu1 %v2344_v46  ;;  %2221 = vmatprep.subr.bf16.mxu0 %v2377_v11  ;;  %v2417_v46 = vld [vmem:[%s3258_s1 + $0x180] sm:$0xff]   ;;  %v2450_v11 = vld [vmem:[%s3258_s1 + $0x290] sm:$0xff]  }
  0x33   :  { %2102 = vmatpush3.bf16.msra.mxu1 %v2346_v48  ;;  %1283 = vmatprep.mubr.bf16.mxu1 %v2356_v57  ;;  %v2419_v48 = vld [vmem:[%s3259_s0 + $0x18] ss:$56 sps:$4 sm:$0xff]   ;;  %v2430_v57 = vld [vmem:[%s3259_s0 + $0x88] ss:$56 sps:$4 sm:$0xff]  }
  0x34   :  { %2103 = vmatprep.subr.bf16.mxu1 %v2352_v53  ;;  %1406 = vmatmul.mubr.bf16.gmra.mxu0 %v2378_v12  ;;  %v2425_v53 = vld [vmem:[%s3258_s1 + $0x2f0] sm:$0xff]  }
  0x35   :  { %2222 = vmatpush3.bf16.msra.mxu0 %v2379_v13  ;;  %1413 = vmatprep.mubr.bf16.mxu0 %v2388_v21  ;;  %v2451_v12 = vld [vmem:[%s3258_s1 + $0x350] sm:$0xff]   ;;  %v2452_v13 = vld [vmem:[%s3259_s0 + $0x16c] ss:$56 sps:$4 sm:$0xff]  }
  0x36   :  { %2223 = vmatprep.subr.bf16.mxu0 %v2382_v16  ;;  %v2457_v16 = vld [vmem:[%s3258_s1 + $0x2c8] sm:$0xff]   ;;  %v2462_v21 = vld [vmem:[%s3258_s1 + $0x280] sm:$0xff]  }
  0x37   :  { %2104 = vmatpush3.bf16.msra.mxu1 %v2353_v54  ;;  %v2426_v54 = vld [vmem:[%s3258_s1 + $0x2b0] sm:$0xff]  }
  0x38   :  { %2105 = vmatprep.subr.bf16.mxu1 %v2359_v59  ;;  %v2433_v59 = vld [vmem:[%s3258_s1 + $0x2e8] sm:$0xff]  }
  0x39   :  { %2224 = vmatpush3.bf16.msra.mxu0 %v2383_v17  ;;  %v2458_v17 = vld [vmem:[%s3259_s0 + $0x170] ss:$56 sps:$4 sm:$0xff]  }
  0x3a   :  { %1284 = vmatmul.mubr.bf16.gmra.mxu1 %v2358_v58  ;;  %2225 = vmatprep.subr.bf16.mxu0 %v2391_v23  ;;  %v2431_v58 = vld [vmem:[%s3259_s0 + $0x94] ss:$56 sps:$4 sm:$0xff]   ;;  %v2464_v23 = vld [vmem:[%s3259_s0 + $0x28] ss:$56 sps:$4 sm:$0xff]  }
  0x3b   :  { %2106 = vmatpush3.bf16.msra.mxu1 %v2360_v60  ;;  %1324 = vmatprep.mubr.bf16.mxu1 %v2372_v7  ;;  %v2434_v60 = vld [vmem:[%s3259_s0 + $0x90] ss:$56 sps:$4 sm:$0xff]   ;;  %v2446_v7 = vld [vmem:[%s3259_s0 + $0x100] ss:$56 sps:$4 sm:$0xff]  }
  0x3c   :  { %2107 = vmatprep.subr.bf16.mxu1 %v2366_v2  ;;  %1414 = vmatmul.mubr.bf16.gmra.mxu0 %v2392_v24  ;;  %v2439_v2 = vld [vmem:[%s3258_s1 + $0x300] sm:$0xff]  }
  0x3d   :  { %2226 = vmatpush3.bf16.msra.mxu0 %v2393_v25  ;;  %1519 = vmatprep.mubr.bf16.mxu0 %v2405_v35  ;;  %v2466_v24 = vld [vmem:[%s3259_s0 + $0x2c] ss:$56 sps:$4 sm:$0xff]   ;;  %v2467_v25 = vld [vmem:[%s3259_s0 + $0x30] ss:$56 sps:$4 sm:$0xff]  }
  0x3e   :  { %2227 = vmatprep.subr.bf16.mxu0 %v2396_v28  ;;  %v2472_v28 = vld [vmem:[%s3259_s0 + $0x98] ss:$56 sps:$4 sm:$0xff]   ;;  %v1683_v35 = vld [vmem:[%s3260_s2 + $0x8] sm:$0xff] }
  0x3f   :  { %2108 = vmatpush3.bf16.msra.mxu1 %v2367_v3  ;;  %v2440_v3 = vld [vmem:[%s3259_s0 + $0xfc] ss:$56 sps:$4 sm:$0xff]  }
  0x40   :  { %2173 = vmatprep.subr.bf16.mxu1 %v2373_v8  ;;  %v2447_v8 = vld [vmem:[%s3258_s1 + $0x298] sm:$0xff]  }
  0x41   :  { %2228 = vmatpush3.bf16.msra.mxu0 %v2397_v29  ;;  %v2475_v29 = vld [vmem:[%s3259_s0 + $0xa0] ss:$56 sps:$4 sm:$0xff]  }
  0x42   :  { %1325 = vmatmul.mubr.bf16.vlgmr.msra.gmra.mxu1 %v2370_v6  ;;  %1617 = vmatprep.subr.bf16.mxu0 %v2488_v1  ;;  %v2445_v6 = vld [vmem:[%s3258_s1 + $0x2d8] sm:$0xff]  }
  0x43   :  { %2174 = vmatpush3.bf16.msra.mxu1 %v2376_v10  ;;  %1332 = vmatprep.mubr.bf16.mxu1 %v2384_v18  ;;  %v2449_v10 = vld [vmem:[%s3258_s1 + $0x2d0] sm:$0xff]   ;;  %v2459_v18 = vld [vmem:[%s3258_s1 + $0x288] sm:$0xff]  }
  0x44   :  { %2175 = vmatprep.subr.bf16.mxu1 %v2380_v14  ;;  %1520 = vmatmul.mubr.bf16.vlgmr.msra.gmra.mxu0 %v2403_v34  ;;  %v2454_v14 = vld [vmem:[%s3259_s0 + $0x168] ss:$56 sps:$4 sm:$0xff]   ;;  %v1685_v34 = vld [vmem:[%s3260_s2 + $0x18] sm:$0xff] }
  0x45   :  { %1618 = vmatpush1.bf16.msra.mxu0 %v2406_v36  ;;  %1527 = vmatprep.mubr.bf16.mxu0 %v2431_v58  ;;  %v2478_v36 = vld [vmem:[%s3259_s0 + $0x108] ss:$56 sps:$4 sm:$0xff]  }
  0x46   :  { %1619 = vmatprep.subr.bf16.mxu0 %v2488_v1 }
  0x47   :  { %2176 = vmatpush3.bf16.msra.mxu1 %v2381_v15  ;;  %v2455_v15 = vld [vmem:[%s3259_s0 + $0x174] ss:$56 sps:$4 sm:$0xff]  }
  0x48   :  { %2177 = vmatprep.subr.bf16.mxu1 %v2387_v20  ;;  %v2461_v20 = vld [vmem:[%s3258_s1 + $0x2c0] sm:$0xff]  }
  0x49   :  { %1620 = vmatpush1.bf16.msra.mxu0 %v2409_v39  ;;  %v2481_v39 = vld [vmem:[%s3259_s0 + $0x110] ss:$56 sps:$4 sm:$0xff]  }
  0x4a   :  { %1333 = vmatmul.mubr.bf16.gmra.mxu1 %v2386_v19  ;;  %1621 = vmatprep.subr.bf16.mxu0 %v2488_v1  ;;  %v2460_v19 = vld [vmem:[%s3258_s1 + $0x348] sm:$0xff]  }
  0x4b   :  { %2178 = vmatpush3.bf16.msra.mxu1 %v2390_v22  ;;  %1340 = vmatprep.mubr.bf16.mxu1 %v2398_v30  ;;  %v2463_v22 = vld [vmem:[%s3258_s1 + $0x340] sm:$0xff]  }
  0x4c   :  { %2179 = vmatprep.subr.bf16.mxu1 %v2394_v26  ;;  %1528 = vmatmul.mubr.bf16.gmra.mxu0 %v2434_v60  ;;  %v2470_v26 = vld [vmem:[%s3259_s0 + $0x9c] ss:$56 sps:$4 sm:$0xff]   ;;  %v2476_v30 = vld [vmem:[%s3259_s0 + $0x10c] ss:$56 sps:$4 sm:$0xff]  }
  0x4d   :  { %1622 = vmatpush1.bf16.msra.mxu0 %v2415_v44  ;;  %1535 = vmatprep.mubr.bf16.mxu0 %v2443_v5  ;;  %v2484_v44 = vld [vmem:[%s3259_s0 + $0x178] ss:$56 sps:$4 sm:$0xff]  }
  0x4e   :  { %1623 = vmatprep.subr.bf16.mxu0 %v2488_v1 }
  0x4f   :  { %2180 = vmatpush3.bf16.msra.mxu1 %v2395_v27  ;;  %v2473_v27 = vld [vmem:[%s3259_s0 + $0xa4] ss:$56 sps:$4 sm:$0xff]  }
  0x50   :  { %2181 = vmatprep.subr.bf16.mxu1 %v2401_v32  ;;  %v1684_v32 = vld [vmem:[%s3260_s2 + $0x10] sm:$0xff] }
  0x51   :  { %1624 = vmatpush1.bf16.msra.mxu0 %v2418_v47  ;;  %1702 = vperm.xlu1 %2295, %v1684_v32   ;;  %v2487_v47 = vld [vmem:[%s3259_s0 + $0x180] ss:$56 sps:$4 sm:$0xff]  }
  0x52   :  { %1341 = vmatmul.mubr.bf16.gmra.mxu1 %v2400_v31  ;;  %1625 = vmatprep.subr.bf16.mxu0 %v2488_v1  ;;  %v2479_v31 = vld [vmem:[%s3259_s0 + $0x114] ss:$56 sps:$4 sm:$0xff]  }
  0x53   :  { %2182 = vmatpush3.bf16.msra.mxu1 %v2402_v33  ;;  %1348 = vmatprep.mubr.bf16.mxu1 %v2410_v40  ;;  %v1682_v33 = vld [vmem:[%s3260_s2] sm:$0xff]  ;;  %v2482_v40 = vld [vmem:[%s3259_s0 + $0x17c] ss:$56 sps:$4 sm:$0xff]  }
  0x54   :  { %2183 = vmatprep.subr.bf16.mxu1 %v2407_v37  ;;  %1536 = vmatmul.mubr.bf16.gmra.mxu0 %v2446_v7  ;;  %v1687_v37 = vld [vmem:[%s3260_s2 + $0x28] sm:$0xff] }
  0x55   :  { %1626 = vmatpush1.bf16.msra.mxu0 %v2424_v52  ;;  %1543 = vmatprep.mubr.bf16.mxu0 %v2455_v15  ;;  %v1745_v52 = vld [vmem:[%s3261_s3 + $0x38] sm:$0xff] }
  0x56   :  { %1627 = vmatprep.subr.bf16.mxu0 %v2488_v1  ;;  %1692 = vperm.xlu0 %2294, %v1682_v33  }
  0x57   :  { %2184 = vmatpush3.bf16.msra.mxu1 %v2408_v38  ;;  %1707 = vperm.xlu1 %2295, %v1685_v34   ;;  %v1686_v38 = vld [vmem:[%s3260_s2 + $0x20] sm:$0xff] }
  0x58   :  { %2185 = vmatprep.subr.bf16.mxu1 %v2413_v42  ;;  %v1689_v42 = vld [vmem:[%s3260_s2 + $0x38] sm:$0xff] }
  0x59   :  { %1628 = vmatpush1.bf16.msra.mxu0 %v2427_v55 }
  0x5a   :  { %1349 = vmatmul.mubr.bf16.gmra.mxu1 %v2412_v41  ;;  %1629 = vmatprep.subr.bf16.mxu0 %v2488_v1  ;;  %v2485_v41 = vld [vmem:[%s3259_s0 + $0x184] ss:$56 sps:$4 sm:$0xff]  }
  0x5b   :  { %2186 = vmatpush3.bf16.msra.mxu1 %v2414_v43  ;;  %1454 = vmatprep.mubr.bf16.mxu1 %v2421_v49  ;;  %v1688_v43 = vld [vmem:[%s3260_s2 + $0x30] sm:$0xff] }
  0x5c   :  { %2187 = vmatprep.subr.bf16.mxu1 %v2416_v45  ;;  %1544 = vmatmul.mubr.bf16.gmra.mxu0 %v2458_v17  ;;  %v1739_v45 = vld [vmem:[%s3261_s3 + $0x8] sm:$0xff]  ;;  %v1740_v49 = vld [vmem:[%s3261_s3 + $0x10] sm:$0xff] }
  0x5d   :  { %1630 = vmatpush1.bf16.msra.mxu0 %v2436_v62  ;;  %1697 = vperm.xlu0 %2294, %v1683_v35  }
  0x5e   :  { %1631 = vmatprep.subr.bf16.mxu0 %v2488_v1  ;;  %1717 = vperm.xlu1 %2295, %v1687_v37  }
  0x5f   :  { %2188 = vmatpush3.bf16.msra.mxu1 %v2417_v46  ;;  %v1738_v46 = vld [vmem:[%s3261_s3] sm:$0xff] }
  0x60   :  { %2253 = vmatprep.subr.bf16.mxu1 %v2422_v50  ;;  %v1743_v50 = vld [vmem:[%s3261_s3 + $0x28] sm:$0xff] }
  0x61   :  { %1632 = vmatpush1.bf16.msra.mxu0 %v2439_v2  ;;  %1712 = vperm.xlu0 %2294, %v1686_v38  }
  0x62   :  { %1455 = vmatmul.mubr.bf16.vlgmr.msra.gmra.mxu1 %v2419_v48  ;;  %1641 = vmatprep.subr.bf16.mxu0 %v2488_v1  ;;  %v1741_v48 = vld [vmem:[%s3261_s3 + $0x18] sm:$0xff] }
  0x63   :  { %2254 = vmatpush3.bf16.msra.mxu1 %v2423_v51  ;;  %1462 = vmatprep.mubr.bf16.mxu1 %v2428_v56  ;;  %v1742_v51 = vld [vmem:[%s3261_s3 + $0x20] sm:$0xff] }
  0x64   :  { %2255 = vmatprep.subr.bf16.mxu1 %v2425_v53  ;;  %1727 = vperm.xlu1 %2295, %v1689_v42   ;;  %v1744_v53 = vld [vmem:[%s3261_s3 + $0x30] sm:$0xff] }
  0x65   :  { %1642 = vmatpush2.bf16.msra.mxu0 %v2448_v9  ;;  %1722 = vperm.xlu0 %2294, %v1688_v43  }
  0x66   :  { %1643 = vmatprep.subr.bf16.mxu0 %v2488_v1 }
  0x67   :  { %2256 = vmatpush3.bf16.msra.mxu1 %v2426_v54 }
  0x68   :  { %2257 = vmatprep.subr.bf16.mxu1 %v2433_v59  ;;  %1753 = vperm.xlu1 %2295, %v1739_v45  }
  0x69   :  { %1644 = vmatpush2.bf16.msra.mxu0 %v2451_v12  ;;  %1748 = vperm.xlu0 %2294, %v1738_v46  }
  0x6a   :  { %1463 = vmatmul.mubr.bf16.gmra.mxu1 %v2430_v57  ;;  %1645 = vmatprep.subr.bf16.mxu0 %v2488_v1 }
  0x6b   :  { %2258 = vmatpush3.bf16.msra.mxu1 %v2435_v61  ;;  %1470 = vmatprep.mubr.bf16.mxu1 %v2440_v3 }
  0x6c   :  { %2259 = vmatprep.subr.bf16.mxu1 %v2437_v63  ;;  %1763 = vperm.xlu1 %2295, %v1741_v48  }
  0x6d   :  { %1646 = vmatpush2.bf16.msra.mxu0 %v2460_v19  ;;  %1758 = vperm.xlu0 %2294, %v1740_v49  }
  0x6e   :  { %1647 = vmatprep.subr.bf16.mxu0 %v2488_v1  ;;  %v2469_v1 = vld [vmem:[%s3259_s0 + $0x34] ss:$56 sps:$4 sm:$0xff]  }
  0x6f   :  { %2260 = vmatpush3.bf16.msra.mxu1 %v2438_v0  ;;  %2010 = vmatprep.mubr.msk.bf16.mxu0 %vm1214_vm0, %v2469_v1 }
  0x70   :  { %2261 = vmatprep.subr.bf16.mxu1 %v2445_v6  ;;  %1773 = vperm.xlu1 %2295, %v1743_v50  }
  0x71   :  { %1648 = vmatpush2.bf16.msra.mxu0 %v2463_v22  ;;  %1768 = vperm.xlu0 %2294, %v1742_v51  }
  0x72   :  { %1471 = vmatmul.mubr.bf16.gmra.mxu1 %v2442_v4 }
  0x73   :  { %2262 = vmatpush3.bf16.msra.mxu1 %v2447_v8  ;;  %1478 = vmatprep.mubr.bf16.mxu1 %v2452_v13 }
  0x74   :  { %2263 = vmatprep.subr.bf16.mxu1 %v2449_v10  ;;  %1650 = vmatmul.mubr.bf16.vlgmr.msra.gmra.mxu0 %v2467_v25 }
  0x75   :  { %2011 = vmatprep.mubr.msk.bf16.mxu0 %vm1214_vm0, %v2473_v27  ;;  %1783 = vperm.xlu1 %2295, %v1745_v52  }
  0x76   :  { %1778 = vperm.xlu0 %2294, %v1744_v53  }
  0x77   :  { %2264 = vmatpush3.bf16.msra.mxu1 %v2450_v11 }
  0x78   :  { %2265 = vmatprep.subr.bf16.mxu1 %v2457_v16 }
  0x7a   :  { %1479 = vmatmul.mubr.bf16.gmra.mxu1 %v2454_v14 }
  0x7b   :  { %2266 = vmatpush3.bf16.msra.mxu1 %v2459_v18  ;;  %1584 = vmatprep.mubr.bf16.mxu1 %v2466_v24 }
  0x7c   :  { %2267 = vmatprep.subr.bf16.mxu1 %v2461_v20  ;;  %1658 = vmatmul.mubr.bf16.gmra.mxu0 %v2475_v29 }
  0x7d   :  { %2012 = vmatprep.mubr.msk.bf16.mxu0 %vm1214_vm0, %v2479_v31 }
  0x7f   :  { %2268 = vmatpush3.bf16.msra.mxu1 %v2462_v21 }
  0x82   :  { %1585 = vmatmul.mubr.bf16.vlgmr.msra.gmra.mxu1 %v2464_v23 }
  0x83   :  { %1592 = vmatprep.mubr.bf16.mxu1 %v2470_v26 }
  0x84   :  { %1666 = vmatmul.mubr.bf16.gmra.mxu0 %v2481_v39 }
  0x85   :  { %2013 = vmatprep.mubr.msk.bf16.mxu0 %vm1214_vm0, %v2485_v41 }
  0x8a   :  { %1593 = vmatmul.mubr.bf16.gmra.mxu1 %v2472_v28 }
  0x8b   :  { %1600 = vmatprep.mubr.bf16.mxu1 %v2476_v30 }
  0x8c   :  { %1674 = vmatmul.mubr.bf16.gmra.mxu0 %v2487_v47 }
  0x92   :  { %1601 = vmatmul.mubr.bf16.gmra.mxu1 %v2478_v36 }
  0x93   :  { %1608 = vmatprep.mubr.bf16.mxu1 %v2482_v40 }
  0x9a   :  { %1609 = vmatmul.mubr.bf16.gmra.mxu1 %v2484_v44 }
  0xe2   :  { %v2069_v54 = vpop.f32.mrf.mxu1 }
  0xe4   :  { %v2070_v55 = vpop.f32.mrf.mxu1  ;;  %v3080_v4 = vpop.f32.mrf.mxu0 }
  0xe5   :  { %v3072_v56 = vadd.f32 %v2070_v55, %v2069_v54 }
  0xe6   :  { %v2072_v57 = vpop.f32.mrf.mxu1  ;;  %v3084_v7 = vpop.f32.mrf.mxu0 }
  0xe8   :  { %v2073_v58 = vpop.f32.mrf.mxu1  ;;  %v3086_v9 = vpop.f32.mrf.mxu0 }
  0xe9   :  { %v3074_v59 = vadd.f32 %v2073_v58, %v2072_v57 }
  0xea   :  { %v2075_v60 = vpop.f32.mrf.mxu1  ;;  %v3090_v12 = vpop.f32.mrf.mxu0 }
  0xec   :  { %v2076_v61 = vpop.f32.mrf.mxu1  ;;  %v3092_v15 = vpop.f32.mrf.mxu0 }
  0xed   :  { %v3076_v62 = vadd.f32 %v2076_v61, %v2075_v60 }
  0xee   :  { %v2078_v63 = vpop.f32.mrf.mxu1  ;;  %v3096_v18 = vpop.f32.mrf.mxu0 }
  0xf0   :  { %v2079_v0 = vpop.f32.mrf.mxu1  ;;  %v3098_v20 = vpop.f32.mrf.mxu0 }
  0xf1   :  { %v3078_v2 = vadd.f32 %v2079_v0, %v2078_v63 }
  0xf2   :  { %v2081_v3 = vpop.f32.mrf.mxu1  ;;  %v3102_v22 = vpop.f32.mrf.mxu0 }
  0xf4   :  { %v2082_v5 = vpop.f32.mrf.mxu1  ;;  %v3104_v25 = vpop.f32.mrf.mxu0 }
  0xf5   :  { %v3082_v6 = vadd.f32 %v2082_v5, %v2081_v3 }
  0xf6   :  { %v2084_v8 = vpop.f32.mrf.mxu1  ;;  %v3106_v26 = vpop.f32.mrf.mxu0 }
  0xf8   :  { %v2085_v10 = vpop.f32.mrf.mxu1  ;;  %v3108_v28 = vpop.f32.mrf.mxu0 }
  0xf9   :  { %v3088_v11 = vadd.f32 %v2085_v10, %v2084_v8 }
  0xfa   :  { %v2087_v13 = vpop.f32.mrf.mxu1  ;;  %v3110_v30 = vpop.f32.mrf.mxu0 }
  0xfc   :  { %v2088_v14 = vpop.f32.mrf.mxu1  ;;  %v3112_v33 = vpop.f32.mrf.mxu0 }
  0xfd   :  { %v3094_v16 = vadd.f32 %v2088_v14, %v2087_v13  ;;  %3265 = vst [vmem:[#allocation4_spill] sm:$0xff] %v3112_v33  ;;  %v3150_v14 = vpop.permute.xlu0 %1692 }
  0xfe   :  { %v2090_v17 = vpop.f32.mrf.mxu1  ;;  %v3114_v35 = vpop.f32.mrf.mxu0 }
  0xff   :  { %3263 = vst [vmem:[#allocation2_spill] sm:$0xff] %v3094_v16  ;;  %3266 = vst [vmem:[#allocation5_spill] sm:$0xff] %v3114_v35 }
 0x100   :  { %v2091_v19 = vpop.f32.mrf.mxu1  ;;  %v3120_v38 = vpop.f32.mrf.mxu0 }
 0x101   :  { %v3100_v21 = vadd.f32 %v2091_v19, %v2090_v17  ;;  %3267 = vst [vmem:[#allocation6_spill] sm:$0xff] %v3120_v38  ;;  %v3156_v38 = vpop.permute.xlu1 %1702 }
 0x102   :  { %v2109_v23 = vpop.f32.mrf.mxu1  ;;  %v3126_v41 = vpop.f32.mrf.mxu0 }
 0x103   :  { %3264 = vst [vmem:[#allocation3_spill] sm:$0xff] %v3100_v21  ;;  %3268 = vst [vmem:[#allocation7_spill] sm:$0xff] %v3126_v41 }
 0x104   :  { %v2110_v24 = vpop.f32.mrf.mxu1  ;;  %v2229_v44 = vpop.f32.mrf.mxu0 }
 0x105   :  { %v2111_v19 = vadd.f32 %v2110_v24, %v2109_v23  ;;  %v2151_v23 = vadd.f32 %v3084_v7, %v3080_v4 }
 0x106   :  { %v2112_v1 = vpop.f32.mrf.mxu1  ;;  %v2230_v47 = vpop.f32.mrf.mxu0 }
 0x108   :  { %v2113_v27 = vpop.f32.mrf.mxu1  ;;  %v2232_v49 = vpop.f32.mrf.mxu0 }
 0x10a   :  { %v2115_v29 = vpop.f32.mrf.mxu1  ;;  %v2233_v52 = vpop.f32.mrf.mxu0 }
 0x10c   :  { %v2116_v31 = vpop.f32.mrf.mxu1  ;;  %v2235_v55 = vpop.f32.mrf.mxu0 }
 0x10e   :  { %v2118_v32 = vpop.f32.mrf.mxu1  ;;  %v2236_v58 = vpop.f32.mrf.mxu0 }
 0x110   :  { %v2119_v34 = vpop.f32.mrf.mxu1  ;;  %v3136_v61 = vpop.f32.mrf.mxu0 }
 0x111   :  { %v2120_v7 = vadd.f32 %v2119_v34, %v2118_v32 }
 0x112   :  { %v3116_v36 = vpop.f32.mrf.mxu1  ;;  %v3138_v0 = vpop.f32.mrf.mxu0 }
 0x113   :  { %v1338_v32 = vadd.f32 %v2120_v7, %v3078_v2 }
 0x114   :  { %v3118_v37 = vpop.f32.mrf.mxu1  ;;  %v3142_v5 = vpop.f32.mrf.mxu0 }
 0x116   :  { %v3122_v39 = vpop.f32.mrf.mxu1  ;;  %v3146_v10 = vpop.f32.mrf.mxu0 }
 0x117   :  { %3271 = vst [vmem:[#allocation10_spill] sm:$0xff] %v3146_v10 }
 0x118   :  { %v3124_v40 = vpop.f32.mrf.mxu1  ;;  %v3152_v17 = vpop.f32.mrf.mxu0 }
 0x119   :  { %3273 = vst [vmem:[#allocation12_spill] sm:$0xff] %v3152_v17 }
 0x11a   :  { %v3128_v42 = vpop.f32.mrf.mxu1  ;;  %v3158_v21 = vpop.f32.mrf.mxu0 }
 0x11b   :  { %3274 = vst [vmem:[#allocation13_spill] sm:$0xff] %v3158_v21  ;;  %v3175_v21 = vpop.permute.xlu1 %1707 }
 0x11c   :  { %v3130_v43 = vpop.f32.mrf.mxu1  ;;  %v3162_v33 = vpop.f32.mrf.mxu0  ;;  %3280 = vst [vmem:[#allocation19_spill] sm:$0xff] %v3175_v21 }
 0x11d   :  { %3276 = vst [vmem:[#allocation15_spill] sm:$0xff] %v3162_v33 }
 0x11e   :  { %v3132_v45 = vpop.f32.mrf.mxu1  ;;  %v3169_v10 = vpop.f32.mrf.mxu0 }
 0x11f   :  { %3269 = vst [vmem:[#allocation8_spill] sm:$0xff] %v3132_v45  ;;  %v2114_v45 = vadd.f32 %v2113_v27, %v2112_v1  ;;  %3278 = vst [vmem:[#allocation17_spill] sm:$0xff] %v3169_v10  ;;  %v2154_v10 = vadd.f32 %v3090_v12, %v3086_v9 }
 0x120   :  { %v3134_v46 = vpop.f32.mrf.mxu1 }
 0x121   :  { %3270 = vst [vmem:[#allocation9_spill] sm:$0xff] %v3134_v46  ;;  %v1327_v46 = vadd.f32 %v2111_v19, %v3072_v56  ;;  %v1330_v33 = vadd.f32 %v2114_v45, %v3074_v59  ;;  %v2117_v56 = vadd.f32 %v2116_v31, %v2115_v29  ;;  %v2157_v29 = vadd.f32 %v3096_v18, %v3092_v15  ;;  %v3191_v31 = vpop.permute.xlu1 %1717 }
 0x122   :  { %v2189_v48 = vpop.f32.mrf.mxu1  ;;  %v2160_v15 = vadd.f32 %v3102_v22, %v3098_v20  ;;  %v2237_v18 = vadd.f32 %v2236_v58, %v2235_v55  ;;  %v2163_v58 = vadd.f32 %v3106_v26, %v3104_v25 }
 0x123   :  { %v1392_v1 = vadd.f32 %v2151_v23, %v1327_v46  ;;  %v1395_v21 = vadd.f32 %v2154_v10, %v1330_v33 }
 0x124   :  { %v2190_v50 = vpop.f32.mrf.mxu1 }
 0x125   :  { %v2191_v24 = vadd.f32 %v2190_v50, %v2189_v48 }
 0x126   :  { %v2192_v51 = vpop.f32.mrf.mxu1 }
 0x128   :  { %v2193_v53 = vpop.f32.mrf.mxu1 }
 0x129   :  { %v2194_v4 = vadd.f32 %v2193_v53, %v2192_v51 }
 0x12a   :  { %v2195_v54 = vpop.f32.mrf.mxu1 }
 0x12b   :  { %v1460_v46 = vadd.f32 %v2194_v4, %v1395_v21 }
 0x12c   :  { %v2196_v57 = vpop.f32.mrf.mxu1 }
 0x12d   :  { %v2197_v23 = vadd.f32 %v2196_v57, %v2195_v54 }
 0x12e   :  { %v2198_v60 = vpop.f32.mrf.mxu1 }
 0x130   :  { %v2199_v63 = vpop.f32.mrf.mxu1 }
 0x131   :  { %v2200_v10 = vadd.f32 %v2199_v63, %v2198_v60 }
 0x132   :  { %v3140_v3 = vpop.f32.mrf.mxu1 }
 0x134   :  { %v3144_v8 = vpop.f32.mrf.mxu1 }
 0x136   :  { %v3148_v13 = vpop.f32.mrf.mxu1 }
 0x137   :  { %3272 = vst [vmem:[#allocation11_spill] sm:$0xff] %v3148_v13  ;;  %v3167_v13 = vpop.permute.xlu0 %1697 }
 0x138   :  { %v3154_v41 = vpop.f32.mrf.mxu1 }
 0x13a   :  { %v3160_v35 = vpop.f32.mrf.mxu1 }
 0x13b   :  { %3275 = vst [vmem:[#allocation14_spill] sm:$0xff] %v3160_v35  ;;  %v3177_v35 = vpop.f32.mrf.mxu0  ;;  %v3186_v48 = vpop.permute.xlu0 %1712 }
 0x13c   :  { %v3165_v16 = vpop.f32.mrf.mxu1  ;;  %3281 = vst [vmem:[#allocation20_spill] sm:$0xff] %v3177_v35  ;;  %v2231_v35 = vadd.f32 %v2230_v47, %v2229_v44  ;;  %v2234_v44 = vadd.f32 %v2233_v52, %v2232_v49  ;;  %v3202_v49 = vpop.permute.xlu1 %1727 }
 0x13d   :  { %3277 = vst [vmem:[#allocation16_spill] sm:$0xff] %v3165_v16  ;;  %v3182_v19 = vpop.f32.mrf.mxu0  ;;  %v1457_v16 = vadd.f32 %v2191_v24, %v1392_v1  ;;  %v2203_v1 = vadd.f32 %v3144_v8, %v3140_v3  ;;  %v2166_v3 = vadd.f32 %v3110_v30, %v3108_v28 }
 0x13e   :  { %v3173_v17 = vpop.f32.mrf.mxu1  ;;  %v1525_v57 = vadd.f32 %v2234_v44, %v1460_v46  ;;  %v3285_v44 = vld [vmem:[#allocation8_spill] sm:$0xff] }
 0x13f   :  { %3279 = vst [vmem:[#allocation18_spill] sm:$0xff] %v3173_v17  ;;  %v1335_v17 = vadd.f32 %v2117_v56, %v3076_v62  ;;  %v1651_v59 = vpop.f32.mrf.mxu0  ;;  %v1522_v9 = vadd.f32 %v2231_v35, %v1457_v16  ;;  %v2123_v62 = vadd.f32 %v3118_v37, %v3116_v36  ;;  %v3198_v21 = vpop.permute.xlu0 %1722  ;;  %v2126_v36 = vadd.f32 %v3124_v40, %v3122_v39 }
 0x140   :  { %v3180_v27 = vpop.f32.mrf.mxu1  ;;  %v1403_v37 = vadd.f32 %v2160_v15, %v1338_v32 }
 0x141   :  { %v1653_v51 = vpop.f32.mrf.mxu0  ;;  %v1400_v33 = vadd.f32 %v2157_v29, %v1335_v17  ;;  %v1343_v17 = vadd.f32 %v2123_v62, %v3082_v6  ;;  %v1346_v7 = vadd.f32 %v2126_v36, %v3088_v11  ;;  %v2129_v6 = vadd.f32 %v3130_v43, %v3128_v42  ;;  %v3282_v11 = vld [vmem:[#allocation10_spill] sm:$0xff]  ;;  %v1754_v43 = vpop.permute.xlu1 %1753 }
 0x142   :  { %v2269_v50 = vpop.f32.mrf.mxu1  ;;  %v1468_v60 = vadd.f32 %v2200_v10, %v1403_v37  ;;  %v3287_v10 = vld [vmem:[#allocation4_spill] sm:$0xff] }
 0x143   :  { %v1654_v53 = vpop.f32.mrf.mxu0  ;;  %v1465_v35 = vadd.f32 %v2197_v23, %v1400_v33  ;;  %v1408_v25 = vadd.f32 %v2163_v58, %v1343_v17  ;;  %v2243_v23 = vadd.f32 %v3282_v11, %v3142_v5  ;;  %v3286_v33 = vld [vmem:[#allocation9_spill] sm:$0xff]  ;;  %v1411_v28 = vadd.f32 %v2166_v3, %v1346_v7 }
 0x144   :  { %v2270_v45 = vpop.f32.mrf.mxu1 }
 0x145   :  { %v2271_v12 = vadd.f32 %v2270_v45, %v2269_v50  ;;  %v1656_v24 = vpop.f32.mrf.mxu0  ;;  %v1530_v56 = vadd.f32 %v2237_v18, %v1465_v35  ;;  %v1749_v50 = vpop.permute.xlu0 %1748 }
 0x146   :  { %v2272_v34 = vpop.f32.mrf.mxu1 }
 0x147   :  { %v1587_v47 = vadd.f32 %v2271_v12, %v1522_v9  ;;  %v1659_v55 = vpop.f32.mrf.mxu0  ;;  %v3283_v9 = vld [vmem:[#allocation11_spill] sm:$0xff] }
 0x148   :  { %v2273_v16 = vpop.f32.mrf.mxu1  ;;  %v2206_v42 = vadd.f32 %v3154_v41, %v3283_v9 }
 0x149   :  { %v1652_v54 = vadd.f32 %v1651_v59, %v1587_v47  ;;  %v2274_v2 = vadd.f32 %v2273_v16, %v2272_v34  ;;  %v1661_v4 = vpop.f32.mrf.mxu0  ;;  %v2132_v47 = vadd.f32 %v3286_v33, %v3285_v44  ;;  %v3288_v16 = vld [vmem:[#allocation5_spill] sm:$0xff] }
 0x14a   :  { %v2275_v52 = vpop.f32.mrf.mxu1  ;;  %v2169_v35 = vadd.f32 %v3288_v16, %v3287_v10  ;;  %v3294_v4 = vld [vmem:[#allocation19_spill] sm:$0xff] }
 0x14b   :  { %v1730_v20 = vmul.f32 %v3150_v14, %v1652_v54  ;;  %v1590_v22 = vadd.f32 %v2274_v2, %v1525_v57  ;;  %v2240_v14 = vadd.f32 %v3138_v0, %v3136_v61  ;;  %v1662_v46 = vpop.f32.mrf.mxu0  ;;  %v1473_v0 = vadd.f32 %v2203_v1, %v1408_v25  ;;  %v3289_v57 = vld [vmem:[#allocation14_spill] sm:$0xff]  ;;  %v3290_v2 = vld [vmem:[#allocation16_spill] sm:$0xff]  ;;  %v1759_v1 = vpop.permute.xlu0 %1758 }
 0x14c   :  { %v2276_v63 = vpop.f32.mrf.mxu1  ;;  %v1476_v54 = vadd.f32 %v2206_v42, %v1411_v28  ;;  %v2209_v24 = vadd.f32 %v3290_v2, %v3289_v57 }
 0x14d   :  { %v1655_v39 = vadd.f32 %v1654_v53, %v1590_v22  ;;  %v2277_v40 = vadd.f32 %v2276_v63, %v2275_v52  ;;  %v1786_v26 = vadd.f32 %v1749_v50, %v1730_v20  ;;  %v1533_v8 = vadd.f32 %v2240_v14, %v1468_v60  ;;  %v1664_v34 = vpop.f32.mrf.mxu0  ;;  %v3292_v60 = vld [vmem:[#allocation12_spill] sm:$0xff]  ;;  %v3293_v63 = vld [vmem:[#allocation13_spill] sm:$0xff]  ;;  %v3295_v50 = vld [vmem:[#allocation6_spill] sm:$0xff] }
 0x14e   :  { %v2278_v59 = vpop.f32.mrf.mxu1  ;;  %v1538_v37 = vadd.f32 %v2243_v23, %v1473_v0  ;;  %v3299_v23 = vld [vmem:[#allocation18_spill] sm:$0xff] }
 0x14f   :  { %v1731_v29 = vmul.f32 %v3167_v13, %v1655_v39  ;;  %v1595_v45 = vadd.f32 %v2277_v40, %v1530_v56  ;;  %v3284_v13 = vld [vmem:[#allocation2_spill] sm:$0xff]  ;;  %v1794_v53 = vmax.f32 %v1786_v26, 0.0  ;;  %v1667_v41 = vpop.f32.mrf.mxu0  ;;  %v2212_v9 = vadd.f32 %v3180_v27, %v3299_v23  ;;  %v1769_v27 = vpop.permute.xlu0 %1768 }
 0x150   :  { %v2279_v61 = vpop.f32.mrf.mxu1  ;;  %v1351_v62 = vadd.f32 %v2129_v6, %v3284_v13 }
 0x151   :  { %v1787_v12 = vadd.f32 %v1754_v43, %v1731_v29  ;;  %v1660_v51 = vadd.f32 %v1659_v55, %v1595_v45  ;;  %v2280_v32 = vadd.f32 %v2279_v61, %v2278_v59  ;;  %v1669_v22 = vpop.f32.mrf.mxu0  ;;  %v3291_v55 = vld [vmem:[#allocation3_spill] sm:$0xff] }
 0x152   :  { %v2281_v30 = vpop.f32.mrf.mxu1  ;;  %v1354_v58 = vadd.f32 %v2132_v47, %v3291_v55  ;;  %v1416_v56 = vadd.f32 %v2169_v35, %v1351_v62  ;;  %v3296_v59 = vld [vmem:[#allocation7_spill] sm:$0xff] }
 0x153   :  { %v1795_v15 = vmax.f32 %v1787_v12, 0.0  ;;  %v1732_v5 = vmul.f32 %v3156_v38, %v1660_v51  ;;  %v1598_v18 = vadd.f32 %v2280_v32, %v1533_v8  ;;  %v2246_v38 = vadd.f32 %v3293_v63, %v3292_v60  ;;  %v1670_v14 = vpop.f32.mrf.mxu0  ;;  %v3297_v45 = vld [vmem:[#allocation15_spill] sm:$0xff]  ;;  %v1764_v8 = vpop.permute.xlu1 %1763 }
 0x154   :  { %v2282_v36 = vpop.f32.mrf.mxu1  ;;  %v2172_v25 = vadd.f32 %v3296_v59, %v3295_v50  ;;  %v1481_v29 = vadd.f32 %v2209_v24, %v1416_v56  ;;  %v1779_v63 = vpop.permute.xlu0 %1778 }
 0x155   :  { %v2033_v52 = vpack.c.bf16 %v1795_v15, %v1794_v53  ;;  %v1663_v17 = vadd.f32 %v1662_v46, %v1598_v18  ;;  %v2283_v20 = vadd.f32 %v2282_v36, %v2281_v30  ;;  %v1788_v40 = vadd.f32 %v1759_v1, %v1732_v5  ;;  %v3298_v46 = vld [vmem:[#allocation17_spill] sm:$0xff]  ;;  %v1672_v0 = vpop.f32.mrf.mxu0 }
 0x156   :  { %v2284_v39 = vpop.f32.mrf.mxu1  ;;  %v1541_v26 = vadd.f32 %v2246_v38, %v1476_v54  ;;  %v2249_v3 = vadd.f32 %v3298_v46, %v3297_v45  ;;  %v1419_v12 = vadd.f32 %v2172_v25, %v1354_v58 }
 0x157   :  { %2034 = vst [vmem:[%s3262_s4] sm:$0xff] %v2033_v52   ;;  %v1733_v7 = vmul.f32 %v3294_v4, %v1663_v17  ;;  %v1603_v6 = vadd.f32 %v2283_v20, %v1538_v37  ;;  %v1796_v32 = vmax.f32 %v1788_v40, 0.0  ;;  %v1675_v44 = vpop.f32.mrf.mxu0  ;;  %v1774_v57 = vpop.permute.xlu1 %1773 }
 0x158   :  { %v2285_v11 = vpop.f32.mrf.mxu1  ;;  %v1546_v33 = vadd.f32 %v2249_v3, %v1481_v29  ;;  %v1484_v28 = vadd.f32 %v2212_v9, %v1419_v12 }
 0x159   :  { %v1789_v42 = vadd.f32 %v1764_v8, %v1733_v7  ;;  %v1668_v43 = vadd.f32 %v1667_v41, %v1603_v6  ;;  %v2286_v61 = vadd.f32 %v2285_v11, %v2284_v39  ;;  %v1677_v5 = vpop.f32.mrf.mxu0  ;;  %v3300_v41 = vld [vmem:[#allocation20_spill] sm:$0xff] }
 0x15a   :  { %v2287_v51 = vpop.f32.mrf.mxu1  ;;  %v2252_v10 = vadd.f32 %v3182_v19, %v3300_v41 }
 0x15b   :  { %v1797_v34 = vmax.f32 %v1789_v42, 0.0  ;;  %v1734_v13 = vmul.f32 %v3186_v48, %v1668_v43  ;;  %v1606_v62 = vadd.f32 %v2286_v61, %v1541_v26  ;;  %v1678_v54 = vpop.f32.mrf.mxu0  ;;  %v1784_v56 = vpop.permute.xlu1 %1783 }
 0x15c   :  { %v2288_v47 = vpop.f32.mrf.mxu1  ;;  %v1549_v24 = vadd.f32 %v2252_v10, %v1484_v28 }
 0x15d   :  { %v2038_v30 = vpack.c.bf16 %v1797_v34, %v1796_v32  ;;  %v1671_v53 = vadd.f32 %v1670_v14, %v1606_v62  ;;  %v2289_v15 = vadd.f32 %v2288_v47, %v2287_v51  ;;  %v1790_v16 = vadd.f32 %v1769_v27, %v1734_v13  ;;  %v1680_v17 = vpop.f32.mrf.mxu0 }
 0x15e   :  { %v2290_v18 = vpop.f32.mrf.mxu1 }
 0x15f   :  { %2050 = vst [vmem:[%s3262_s4 + $0x8] sm:$0xff] %v2038_v30   ;;  %v1735_v48 = vmul.f32 %v3191_v31, %v1671_v53  ;;  %v1611_v35 = vadd.f32 %v2289_v15, %v1546_v33  ;;  %v1798_v20 = vmax.f32 %v1790_v16, 0.0 }
 0x160   :  { %v2291_v2 = vpop.f32.mrf.mxu1 }
 0x161   :  { %v1791_v36 = vadd.f32 %v1774_v57, %v1735_v48  ;;  %v1676_v37 = vadd.f32 %v1675_v44, %v1611_v35  ;;  %v2292_v52 = vadd.f32 %v2291_v2, %v2290_v18 }
 0x163   :  { %v1799_v22 = vmax.f32 %v1791_v36, 0.0  ;;  %v1736_v19 = vmul.f32 %v3198_v21, %v1676_v37  ;;  %v1614_v55 = vadd.f32 %v2292_v52, %v1549_v24 }
 0x165   :  { %v2043_v58 = vpack.c.bf16 %v1799_v22, %v1798_v20  ;;  %v1679_v60 = vadd.f32 %v1678_v54, %v1614_v55  ;;  %v1792_v31 = vadd.f32 %v1779_v63, %v1736_v19 }
 0x167   :  { %2051 = vst [vmem:[%s3262_s4 + $0x10] sm:$0xff] %v2043_v58   ;;  %v1737_v38 = vmul.f32 %v3202_v49, %v1679_v60  ;;  %v1800_v39 = vmax.f32 %v1792_v31, 0.0 }
 0x169   :  { %v1793_v1 = vadd.f32 %v1784_v56, %v1737_v38 }
 0x16b   :  { %v1801_v40 = vmax.f32 %v1793_v1, 0.0 }
 0x16d   :  { %v2048_v4 = vpack.c.bf16 %v1801_v40, %v1800_v39 }
 0x16f   :  { %2052 = vst [vmem:[%s3262_s4 + $0x18] sm:$0xff] %v2048_v4  }

// kernel: resnet3d_forward.18
= control target key start
LH: loop header
LB: loop body
LE: loop exit
PB: predicated region body
PF: predicated region fallthrough
CT: control target
= control target key end

     0   :  { %v2534_v1 = vmov 0   ;;  %vm1217_vm0 = vcmask 523264   ;;  %s3333_s1 = inlined_call_operand.vmem [shape: bf16[1728,128], index: 1, kind: input, shape index: {}]   ;;  %s3334_s0 = inlined_call_operand.vmem [shape: bf16[64,1728], index: 0, kind: input, shape index: {}]   ;;  %s3335_s2 = inlined_call_operand.vmem [shape: f32[64,1], index: 2, kind: input, shape index: {}]   ;;  %s3336_s3 = inlined_call_operand.vmem [shape: f32[64,1], index: 3, kind: input, shape index: {}]   ;;  %s3337_s4 = inlined_call_operand.vmem [shape: bf16[64,128], index: 4, kind: input, shape index: {}]   ;;  %s3338_s5 = inlined_call_operand.vmem [shape: bf16[64,128], index: 5, kind: output, shape index: {}]  }
   0x1   :  { %v2342_v0 = vld [vmem:[%s3333_s1 + $0x78] sm:$0xff]   ;;  %2341 = vset.pattern.permute.xlu1 %v2534_v1  ;;  %2340 = vset.pattern.permute.xlu0 %v2534_v1  ;;  %v2344_v3 = vld [vmem:[%s3333_s1 + $0x70] sm:$0xff]   ;;  %v2346_v5 = vld [vmem:[%s3333_s1 + $0x68] sm:$0xff]  }
   0x2   :  { %v2343_v2 = vld [vmem:[%s3333_s1 + $0x38] sm:$0xff]   ;;  %2099 = vmatprep.subr.bf16.mxu1 %v2342_v0  ;;  %v2345_v4 = vld [vmem:[%s3333_s1 + $0x30] sm:$0xff]   ;;  %v2347_v6 = vld [vmem:[%s3333_s1 + $0x28] sm:$0xff]  }
   0x3   :  { %2100 = vmatpush3.bf16.msra.mxu1 %v2343_v2  ;;  %v2348_v7 = vld [vmem:[%s3333_s1 + $0x60] sm:$0xff]   ;;  %v2352_v9 = vld [vmem:[%s3333_s1 + $0x178] sm:$0xff]   ;;  %v2356_v13 = vld [vmem:[%s3333_s1 + $0x170] sm:$0xff]  }
   0x4   :  { %2101 = vmatprep.subr.bf16.mxu1 %v2344_v3  ;;  %v2349_v8 = vld [vmem:[%s3333_s1 + $0x20] sm:$0xff]   ;;  %v2353_v10 = vld [vmem:[%s3333_s1 + $0x138] sm:$0xff]   ;;  %2179 = vmatprep.subr.bf16.mxu0 %v2352_v9  ;;  %v2357_v14 = vld [vmem:[%s3333_s1 + $0x130] sm:$0xff]  }
   0x5   :  { %v2350_v11 = vld [vmem:[%s3333_s1 + $0x58] sm:$0xff]   ;;  %2180 = vmatpush3.bf16.msra.mxu0 %v2353_v10  ;;  %v2354_v15 = vld [vmem:[%s3333_s1 + $0x50] sm:$0xff]   ;;  %v2360_v17 = vld [vmem:[%s3333_s1 + $0x168] sm:$0xff]  }
   0x6   :  { %v2351_v12 = vld [vmem:[%s3333_s1 + $0x18] sm:$0xff]   ;;  %2181 = vmatprep.subr.bf16.mxu0 %v2356_v13  ;;  %v2355_v16 = vld [vmem:[%s3333_s1 + $0x10] sm:$0xff]   ;;  %v2361_v18 = vld [vmem:[%s3333_s1 + $0x128] sm:$0xff]  }
   0x7   :  { %2102 = vmatpush3.bf16.msra.mxu1 %v2345_v4  ;;  %v2358_v19 = vld [vmem:[%s3333_s1 + $0x48] sm:$0xff]   ;;  %v2364_v21 = vld [vmem:[%s3333_s1 + $0x160] sm:$0xff]   ;;  %v2369_v26 = vld [vmem:[%s3333_s1 + $0xf8] sm:$0xff]  }
   0x8   :  { %2103 = vmatprep.subr.bf16.mxu1 %v2346_v5  ;;  %v2359_v20 = vld [vmem:[%s3333_s1 + $0x8] sm:$0xff]   ;;  %v2365_v22 = vld [vmem:[%s3333_s1 + $0x120] sm:$0xff]   ;;  %v2371_v28 = vld [vmem:[%s3333_s1 + $0x158] sm:$0xff]  }
   0x9   :  { %2182 = vmatpush3.bf16.msra.mxu0 %v2357_v14  ;;  %v2362_v23 = vld [vmem:[%s3333_s1 + $0x40] sm:$0xff]   ;;  %v2372_v29 = vld [vmem:[%s3333_s1 + $0x118] sm:$0xff]   ;;  %v2373_v31 = vld [vmem:[%s3333_s1 + $0xf0] sm:$0xff]  }
   0xa   :  { %2183 = vmatprep.subr.bf16.mxu0 %v2360_v17  ;;  %v2368_v24 = vld [vmem:[%s3334_s0 + $0x4] ss:$56 sps:$4 sm:$0xff]   ;;  %v2366_v27 = vld [vmem:[%s3334_s0] ss:$56 sps:$4 sm:$0xff]   ;;  %v2375_v32 = vld [vmem:[%s3333_s1 + $0x150] sm:$0xff]  }
   0xb   :  { %2104 = vmatpush3.bf16.msra.mxu1 %v2347_v6  ;;  %v2363_v25 = vld [vmem:[%s3333_s1] sm:$0xff]   ;;  %1262 = vmatprep.mubr.bf16.mxu1 %v2368_v24  ;;  %v2370_v30 = vld [vmem:[%s3333_s1 + $0xb8] sm:$0xff]   ;;  %v2376_v33 = vld [vmem:[%s3333_s1 + $0x110] sm:$0xff]  }
   0xc   :  { %2105 = vmatprep.subr.bf16.mxu1 %v2348_v7  ;;  %v2377_v34 = vld [vmem:[%s3334_s0 + $0x74] ss:$56 sps:$4 sm:$0xff]   ;;  %v2379_v36 = vld [vmem:[%s3334_s0 + $0x70] ss:$56 sps:$4 sm:$0xff]   ;;  %v2384_v41 = vld [vmem:[%s3333_s1 + $0xe0] sm:$0xff]  }
   0xd   :  { %2184 = vmatpush3.bf16.msra.mxu0 %v2361_v18  ;;  %v2374_v35 = vld [vmem:[%s3333_s1 + $0xb0] sm:$0xff]   ;;  %v2380_v37 = vld [vmem:[%s3333_s1 + $0xe8] sm:$0xff]   ;;  %v2386_v42 = vld [vmem:[%s3333_s1 + $0x140] sm:$0xff]  }
   0xe   :  { %2185 = vmatprep.subr.bf16.mxu0 %v2364_v21  ;;  %v2382_v38 = vld [vmem:[%s3333_s1 + $0x148] sm:$0xff]   ;;  %v2387_v43 = vld [vmem:[%s3333_s1 + $0x100] sm:$0xff]   ;;  %v2391_v47 = vld [vmem:[%s3333_s1 + $0xd8] sm:$0xff]  }
   0xf   :  { %2106 = vmatpush3.bf16.msra.mxu1 %v2349_v8  ;;  %v2383_v39 = vld [vmem:[%s3333_s1 + $0x108] sm:$0xff]   ;;  %v2385_v44 = vld [vmem:[%s3333_s1 + $0xa0] sm:$0xff]   ;;  %v2392_v48 = vld [vmem:[%s3333_s1 + $0x98] sm:$0xff]  }
  0x10   :  { %2107 = vmatprep.subr.bf16.mxu1 %v2350_v11  ;;  %v2381_v40 = vld [vmem:[%s3333_s1 + $0xa8] sm:$0xff]   ;;  %v2388_v45 = vld [vmem:[%s3334_s0 + $0xe4] ss:$56 sps:$4 sm:$0xff]   ;;  %v2390_v46 = vld [vmem:[%s3334_s0 + $0xe0] ss:$56 sps:$4 sm:$0xff]  }
  0x11   :  { %2186 = vmatpush3.bf16.msra.mxu0 %v2365_v22  ;;  %v2393_v49 = vld [vmem:[%s3334_s0 + $0x10] ss:$56 sps:$4 sm:$0xff]   ;;  %v2395_v50 = vld [vmem:[%s3334_s0 + $0x14] ss:$56 sps:$4 sm:$0xff]   ;;  %v2396_v51 = vld [vmem:[%s3333_s1 + $0x278] sm:$0xff]  }
  0x12   :  { %2187 = vmatprep.subr.bf16.mxu0 %v2371_v28  ;;  %1392 = vmatprep.mubr.bf16.mxu0 %v2395_v50  ;;  %v2397_v52 = vld [vmem:[%s3333_s1 + $0x238] sm:$0xff]   ;;  %v2398_v53 = vld [vmem:[%s3333_s1 + $0xd0] sm:$0xff]   ;;  %v2405_v59 = vld [vmem:[%s3333_s1 + $0xc8] sm:$0xff]  }
  0x13   :  { %2108 = vmatpush3.bf16.msra.mxu1 %v2351_v12  ;;  %v2399_v54 = vld [vmem:[%s3333_s1 + $0x90] sm:$0xff]   ;;  %v2406_v60 = vld [vmem:[%s3333_s1 + $0x88] sm:$0xff]   ;;  %v2407_v61 = vld [vmem:[%s3334_s0 + $0x84] ss:$56 sps:$4 sm:$0xff]  }
  0x14   :  { %2109 = vmatprep.subr.bf16.mxu1 %v2354_v15  ;;  %v2400_v55 = vld [vmem:[%s3333_s1 + $0x270] sm:$0xff]   ;;  %v2409_v62 = vld [vmem:[%s3333_s1 + $0x268] sm:$0xff]   ;;  %v2410_v63 = vld [vmem:[%s3334_s0 + $0x80] ss:$56 sps:$4 sm:$0xff]  }
  0x15   :  { %2188 = vmatpush3.bf16.msra.mxu0 %v2372_v29  ;;  %v2401_v56 = vld [vmem:[%s3333_s1 + $0x230] sm:$0xff]   ;;  %v2411_v0 = vld [vmem:[%s3333_s1 + $0x228] sm:$0xff]   ;;  %v2412_v2 = vld [vmem:[%s3333_s1 + $0xc0] sm:$0xff]  }
  0x16   :  { %2189 = vmatprep.subr.bf16.mxu0 %v2375_v32  ;;  %v2402_v57 = vld [vmem:[%s3334_s0 + $0x154] ss:$56 sps:$4 sm:$0xff]   ;;  %v2404_v58 = vld [vmem:[%s3334_s0 + $0x150] ss:$56 sps:$4 sm:$0xff]   ;;  %v2413_v3 = vld [vmem:[%s3333_s1 + $0x80] sm:$0xff]  }
  0x17   :  { %2110 = vmatpush3.bf16.msra.mxu1 %v2355_v16  ;;  %v2414_v4 = vld [vmem:[%s3333_s1 + $0x260] sm:$0xff]   ;;  %v2419_v8 = vld [vmem:[%s3333_s1 + $0x1f8] sm:$0xff]   ;;  %v2420_v9 = vld [vmem:[%s3334_s0 + $0xf4] ss:$56 sps:$4 sm:$0xff]  }
  0x18   :  { %2111 = vmatprep.subr.bf16.mxu1 %v2358_v19  ;;  %v2415_v5 = vld [vmem:[%s3333_s1 + $0x220] sm:$0xff]   ;;  %v2422_v10 = vld [vmem:[%s3333_s1 + $0x1b8] sm:$0xff]   ;;  %v2424_v12 = vld [vmem:[%s3334_s0 + $0xf0] ss:$56 sps:$4 sm:$0xff]  }
  0x19   :  { %2190 = vmatpush3.bf16.msra.mxu0 %v2376_v33  ;;  %v2416_v6 = vld [vmem:[%s3334_s0 + $0x8] ss:$56 sps:$4 sm:$0xff]   ;;  %v2418_v7 = vld [vmem:[%s3334_s0 + $0xc] ss:$56 sps:$4 sm:$0xff]   ;;  %v2423_v11 = vld [vmem:[%s3333_s1 + $0x258] sm:$0xff]  }
  0x1a   :  { %2191 = vmatprep.subr.bf16.mxu0 %v2382_v38  ;;  %v2425_v13 = vld [vmem:[%s3333_s1 + $0x218] sm:$0xff]   ;;  %v2426_v14 = vld [vmem:[%s3333_s1 + $0x1f0] sm:$0xff]   ;;  %v2436_v22 = vld [vmem:[%s3333_s1 + $0x1a8] sm:$0xff]  }
  0x1b   :  { %2112 = vmatpush3.bf16.msra.mxu1 %v2359_v20  ;;  %v2427_v15 = vld [vmem:[%s3333_s1 + $0x1b0] sm:$0xff]   ;;  %v2433_v20 = vld [vmem:[%s3333_s1 + $0x1e8] sm:$0xff]   ;;  %v2434_v21 = vld [vmem:[%s3334_s0 + $0x164] ss:$56 sps:$4 sm:$0xff]  }
  0x1c   :  { %2113 = vmatprep.subr.bf16.mxu1 %v2362_v23  ;;  %v2428_v16 = vld [vmem:[%s3333_s1 + $0x250] sm:$0xff]   ;;  %v2437_v23 = vld [vmem:[%s3333_s1 + $0x248] sm:$0xff]   ;;  %v2438_v24 = vld [vmem:[%s3334_s0 + $0x160] ss:$56 sps:$4 sm:$0xff]  }
  0x1d   :  { %2192 = vmatpush3.bf16.msra.mxu0 %v2383_v39  ;;  %v2429_v17 = vld [vmem:[%s3333_s1 + $0x210] sm:$0xff]   ;;  %v2442_v28 = vld [vmem:[%s3333_s1 + $0x240] sm:$0xff]   ;;  %v2447_v32 = vld [vmem:[%s3333_s1 + $0x1d8] sm:$0xff]  }
  0x1e   :  { %2193 = vmatprep.subr.bf16.mxu0 %v2386_v42  ;;  %v2430_v18 = vld [vmem:[%s3334_s0 + $0x7c] ss:$56 sps:$4 sm:$0xff]   ;;  %v2432_v19 = vld [vmem:[%s3334_s0 + $0x78] ss:$56 sps:$4 sm:$0xff]   ;;  %v2443_v29 = vld [vmem:[%s3333_s1 + $0x200] sm:$0xff]  }
  0x1f   :  { %2114 = vmatpush3.bf16.msra.mxu1 %v2363_v25  ;;  %v2439_v25 = vld [vmem:[%s3333_s1 + $0x208] sm:$0xff]   ;;  %v2448_v33 = vld [vmem:[%s3333_s1 + $0x198] sm:$0xff]   ;;  %v2454_v38 = vld [vmem:[%s3333_s1 + $0x190] sm:$0xff]  }
  0x20   :  { %2139 = vmatprep.subr.bf16.mxu1 %v2369_v26  ;;  %v2440_v26 = vld [vmem:[%s3333_s1 + $0x1e0] sm:$0xff]   ;;  %v2455_v39 = vld [vmem:[%s3333_s1 + $0x330] sm:$0xff]   ;;  %v2459_v42 = vld [vmem:[%s3333_s1 + $0x1c8] sm:$0xff]  }
  0x21   :  { %2194 = vmatpush3.bf16.msra.mxu0 %v2387_v43  ;;  %v2460_v43 = vld [vmem:[%s3333_s1 + $0x188] sm:$0xff]   ;;  %v2468_v50 = vld [vmem:[%s3333_s1 + $0x2f8] sm:$0xff]  }
  0x22   :  { %1263 = vmatmul.mubr.bf16.vlgmr.msra.gmra.mxu1 %v2366_v27  ;;  %2259 = vmatprep.subr.bf16.mxu0 %v2396_v51  ;;  %v2441_v27 = vld [vmem:[%s3333_s1 + $0x1a0] sm:$0xff]   ;;  %v2469_v51 = vld [vmem:[%s3333_s1 + $0x2b8] sm:$0xff]  }
  0x23   :  { %2140 = vmatpush3.bf16.msra.mxu1 %v2370_v30  ;;  %1270 = vmatprep.mubr.bf16.mxu1 %v2377_v34  ;;  %v2444_v30 = vld [vmem:[%s3334_s0 + $0xec] ss:$56 sps:$4 sm:$0xff]   ;;  %v2449_v34 = vld [vmem:[%s3334_s0 + $0x20] ss:$56 sps:$4 sm:$0xff]  }
  0x24   :  { %2141 = vmatprep.subr.bf16.mxu1 %v2373_v31  ;;  %1393 = vmatmul.mubr.bf16.vlgmr.msra.gmra.mxu0 %v2393_v49  ;;  %v2446_v31 = vld [vmem:[%s3334_s0 + $0xe8] ss:$56 sps:$4 sm:$0xff]   ;;  %v2467_v49 = vld [vmem:[%s3334_s0 + $0x1c] ss:$56 sps:$4 sm:$0xff]  }
  0x25   :  { %2260 = vmatpush3.bf16.msra.mxu0 %v2397_v52  ;;  %1400 = vmatprep.mubr.bf16.mxu0 %v2407_v61  ;;  %v2470_v52 = vld [vmem:[%s3333_s1 + $0x318] sm:$0xff]   ;;  %v2481_v61 = vld [vmem:[%s3333_s1 + $0x2a8] sm:$0xff]  }
  0x26   :  { %2261 = vmatprep.subr.bf16.mxu0 %v2400_v55  ;;  %v2473_v55 = vld [vmem:[%s3333_s1 + $0x310] sm:$0xff]  }
  0x27   :  { %2142 = vmatpush3.bf16.msra.mxu1 %v2374_v35  ;;  %v2451_v35 = vld [vmem:[%s3334_s0 + $0x24] ss:$56 sps:$4 sm:$0xff]  }
  0x28   :  { %2143 = vmatprep.subr.bf16.mxu1 %v2380_v37  ;;  %v2453_v37 = vld [vmem:[%s3333_s1 + $0x1d0] sm:$0xff]  }
  0x29   :  { %2262 = vmatpush3.bf16.msra.mxu0 %v2401_v56  ;;  %v2474_v56 = vld [vmem:[%s3334_s0 + $0x8c] ss:$56 sps:$4 sm:$0xff]  }
  0x2a   :  { %1271 = vmatmul.mubr.bf16.gmra.mxu1 %v2379_v36  ;;  %2263 = vmatprep.subr.bf16.mxu0 %v2409_v62  ;;  %v2452_v36 = vld [vmem:[%s3333_s1 + $0x338] sm:$0xff]   ;;  %v2482_v62 = vld [vmem:[%s3333_s1 + $0x308] sm:$0xff]  }
  0x2b   :  { %2144 = vmatpush3.bf16.msra.mxu1 %v2381_v40  ;;  %1278 = vmatprep.mubr.bf16.mxu1 %v2388_v45  ;;  %v2456_v40 = vld [vmem:[%s3334_s0 + $0x15c] ss:$56 sps:$4 sm:$0xff]   ;;  %v2462_v45 = vld [vmem:[%s3333_s1 + $0x1c0] sm:$0xff]  }
  0x2c   :  { %2145 = vmatprep.subr.bf16.mxu1 %v2384_v41  ;;  %1401 = vmatmul.mubr.bf16.gmra.mxu0 %v2410_v63  ;;  %v2458_v41 = vld [vmem:[%s3334_s0 + $0x158] ss:$56 sps:$4 sm:$0xff]   ;;  %v2483_v63 = vld [vmem:[%s3333_s1 + $0x2e0] sm:$0xff]  }
  0x2d   :  { %2264 = vmatpush3.bf16.msra.mxu0 %v2411_v0  ;;  %1408 = vmatprep.mubr.bf16.mxu0 %v2420_v9  ;;  %v2484_v0 = vld [vmem:[%s3333_s1 + $0x2a0] sm:$0xff]   ;;  %v2494_v9 = vld [vmem:[%s3333_s1 + $0x358] sm:$0xff]  }
  0x2e   :  { %2265 = vmatprep.subr.bf16.mxu0 %v2414_v4  ;;  %v2488_v4 = vld [vmem:[%s3334_s0 + $0xf8] ss:$56 sps:$4 sm:$0xff]  }
  0x2f   :  { %2146 = vmatpush3.bf16.msra.mxu1 %v2385_v44  ;;  %v2461_v44 = vld [vmem:[%s3333_s1 + $0x328] sm:$0xff]  }
  0x30   :  { %2147 = vmatprep.subr.bf16.mxu1 %v2391_v47  ;;  %v2464_v47 = vld [vmem:[%s3333_s1 + $0x320] sm:$0xff]  }
  0x31   :  { %2266 = vmatpush3.bf16.msra.mxu0 %v2415_v5  ;;  %v2489_v5 = vld [vmem:[%s3334_s0 + $0x104] ss:$56 sps:$4 sm:$0xff]  }
  0x32   :  { %1279 = vmatmul.mubr.bf16.gmra.mxu1 %v2390_v46  ;;  %2267 = vmatprep.subr.bf16.mxu0 %v2423_v11  ;;  %v2463_v46 = vld [vmem:[%s3333_s1 + $0x180] sm:$0xff]   ;;  %v2496_v11 = vld [vmem:[%s3333_s1 + $0x290] sm:$0xff]  }
  0x33   :  { %2148 = vmatpush3.bf16.msra.mxu1 %v2392_v48  ;;  %1286 = vmatprep.mubr.bf16.mxu1 %v2402_v57  ;;  %v2465_v48 = vld [vmem:[%s3334_s0 + $0x18] ss:$56 sps:$4 sm:$0xff]   ;;  %v2476_v57 = vld [vmem:[%s3334_s0 + $0x88] ss:$56 sps:$4 sm:$0xff]  }
  0x34   :  { %2149 = vmatprep.subr.bf16.mxu1 %v2398_v53  ;;  %1409 = vmatmul.mubr.bf16.gmra.mxu0 %v2424_v12  ;;  %v2471_v53 = vld [vmem:[%s3333_s1 + $0x2f0] sm:$0xff]  }
  0x35   :  { %2268 = vmatpush3.bf16.msra.mxu0 %v2425_v13  ;;  %1416 = vmatprep.mubr.bf16.mxu0 %v2434_v21  ;;  %v2497_v12 = vld [vmem:[%s3333_s1 + $0x350] sm:$0xff]   ;;  %v2498_v13 = vld [vmem:[%s3334_s0 + $0x16c] ss:$56 sps:$4 sm:$0xff]  }
  0x36   :  { %2269 = vmatprep.subr.bf16.mxu0 %v2428_v16  ;;  %v2503_v16 = vld [vmem:[%s3333_s1 + $0x2c8] sm:$0xff]   ;;  %v2508_v21 = vld [vmem:[%s3333_s1 + $0x280] sm:$0xff]  }
  0x37   :  { %2150 = vmatpush3.bf16.msra.mxu1 %v2399_v54  ;;  %v2472_v54 = vld [vmem:[%s3333_s1 + $0x2b0] sm:$0xff]  }
  0x38   :  { %2151 = vmatprep.subr.bf16.mxu1 %v2405_v59  ;;  %v2479_v59 = vld [vmem:[%s3333_s1 + $0x2e8] sm:$0xff]  }
  0x39   :  { %2270 = vmatpush3.bf16.msra.mxu0 %v2429_v17  ;;  %v2504_v17 = vld [vmem:[%s3334_s0 + $0x170] ss:$56 sps:$4 sm:$0xff]  }
  0x3a   :  { %1287 = vmatmul.mubr.bf16.gmra.mxu1 %v2404_v58  ;;  %2271 = vmatprep.subr.bf16.mxu0 %v2437_v23  ;;  %v2477_v58 = vld [vmem:[%s3334_s0 + $0x94] ss:$56 sps:$4 sm:$0xff]   ;;  %v2510_v23 = vld [vmem:[%s3334_s0 + $0x28] ss:$56 sps:$4 sm:$0xff]  }
  0x3b   :  { %2152 = vmatpush3.bf16.msra.mxu1 %v2406_v60  ;;  %1327 = vmatprep.mubr.bf16.mxu1 %v2418_v7  ;;  %v2480_v60 = vld [vmem:[%s3334_s0 + $0x90] ss:$56 sps:$4 sm:$0xff]   ;;  %v2492_v7 = vld [vmem:[%s3334_s0 + $0x100] ss:$56 sps:$4 sm:$0xff]  }
  0x3c   :  { %2153 = vmatprep.subr.bf16.mxu1 %v2412_v2  ;;  %1417 = vmatmul.mubr.bf16.gmra.mxu0 %v2438_v24  ;;  %v2485_v2 = vld [vmem:[%s3333_s1 + $0x300] sm:$0xff]  }
  0x3d   :  { %2272 = vmatpush3.bf16.msra.mxu0 %v2439_v25  ;;  %1522 = vmatprep.mubr.bf16.mxu0 %v2451_v35  ;;  %v2512_v24 = vld [vmem:[%s3334_s0 + $0x2c] ss:$56 sps:$4 sm:$0xff]   ;;  %v2513_v25 = vld [vmem:[%s3334_s0 + $0x30] ss:$56 sps:$4 sm:$0xff]  }
  0x3e   :  { %2273 = vmatprep.subr.bf16.mxu0 %v2442_v28  ;;  %v2518_v28 = vld [vmem:[%s3334_s0 + $0x98] ss:$56 sps:$4 sm:$0xff]   ;;  %v1686_v35 = vld [vmem:[%s3335_s2 + $0x8] sm:$0xff] }
  0x3f   :  { %2154 = vmatpush3.bf16.msra.mxu1 %v2413_v3  ;;  %v2486_v3 = vld [vmem:[%s3334_s0 + $0xfc] ss:$56 sps:$4 sm:$0xff]  }
  0x40   :  { %2219 = vmatprep.subr.bf16.mxu1 %v2419_v8  ;;  %v2493_v8 = vld [vmem:[%s3333_s1 + $0x298] sm:$0xff]  }
  0x41   :  { %2274 = vmatpush3.bf16.msra.mxu0 %v2443_v29  ;;  %v2521_v29 = vld [vmem:[%s3334_s0 + $0xa0] ss:$56 sps:$4 sm:$0xff]  }
  0x42   :  { %1328 = vmatmul.mubr.bf16.vlgmr.msra.gmra.mxu1 %v2416_v6  ;;  %1620 = vmatprep.subr.bf16.mxu0 %v2534_v1  ;;  %v2491_v6 = vld [vmem:[%s3333_s1 + $0x2d8] sm:$0xff]  }
  0x43   :  { %2220 = vmatpush3.bf16.msra.mxu1 %v2422_v10  ;;  %1335 = vmatprep.mubr.bf16.mxu1 %v2430_v18  ;;  %v2495_v10 = vld [vmem:[%s3333_s1 + $0x2d0] sm:$0xff]   ;;  %v2505_v18 = vld [vmem:[%s3333_s1 + $0x288] sm:$0xff]  }
  0x44   :  { %2221 = vmatprep.subr.bf16.mxu1 %v2426_v14  ;;  %1523 = vmatmul.mubr.bf16.vlgmr.msra.gmra.mxu0 %v2449_v34  ;;  %v2500_v14 = vld [vmem:[%s3334_s0 + $0x168] ss:$56 sps:$4 sm:$0xff]   ;;  %v1688_v34 = vld [vmem:[%s3335_s2 + $0x18] sm:$0xff] }
  0x45   :  { %1621 = vmatpush1.bf16.msra.mxu0 %v2452_v36  ;;  %1530 = vmatprep.mubr.bf16.mxu0 %v2477_v58  ;;  %v2524_v36 = vld [vmem:[%s3334_s0 + $0x108] ss:$56 sps:$4 sm:$0xff]  }
  0x46   :  { %1622 = vmatprep.subr.bf16.mxu0 %v2534_v1 }
  0x47   :  { %2222 = vmatpush3.bf16.msra.mxu1 %v2427_v15  ;;  %v2501_v15 = vld [vmem:[%s3334_s0 + $0x174] ss:$56 sps:$4 sm:$0xff]  }
  0x48   :  { %2223 = vmatprep.subr.bf16.mxu1 %v2433_v20  ;;  %v2507_v20 = vld [vmem:[%s3333_s1 + $0x2c0] sm:$0xff]  }
  0x49   :  { %1623 = vmatpush1.bf16.msra.mxu0 %v2455_v39  ;;  %v2527_v39 = vld [vmem:[%s3334_s0 + $0x110] ss:$56 sps:$4 sm:$0xff]  }
  0x4a   :  { %1336 = vmatmul.mubr.bf16.gmra.mxu1 %v2432_v19  ;;  %1624 = vmatprep.subr.bf16.mxu0 %v2534_v1  ;;  %v2506_v19 = vld [vmem:[%s3333_s1 + $0x348] sm:$0xff]  }
  0x4b   :  { %2224 = vmatpush3.bf16.msra.mxu1 %v2436_v22  ;;  %1343 = vmatprep.mubr.bf16.mxu1 %v2444_v30  ;;  %v2509_v22 = vld [vmem:[%s3333_s1 + $0x340] sm:$0xff]  }
  0x4c   :  { %2225 = vmatprep.subr.bf16.mxu1 %v2440_v26  ;;  %1531 = vmatmul.mubr.bf16.gmra.mxu0 %v2480_v60  ;;  %v2516_v26 = vld [vmem:[%s3334_s0 + $0x9c] ss:$56 sps:$4 sm:$0xff]   ;;  %v2522_v30 = vld [vmem:[%s3334_s0 + $0x10c] ss:$56 sps:$4 sm:$0xff]  }
  0x4d   :  { %1625 = vmatpush1.bf16.msra.mxu0 %v2461_v44  ;;  %1538 = vmatprep.mubr.bf16.mxu0 %v2489_v5  ;;  %v2530_v44 = vld [vmem:[%s3334_s0 + $0x178] ss:$56 sps:$4 sm:$0xff]  }
  0x4e   :  { %1626 = vmatprep.subr.bf16.mxu0 %v2534_v1 }
  0x4f   :  { %2226 = vmatpush3.bf16.msra.mxu1 %v2441_v27  ;;  %v2519_v27 = vld [vmem:[%s3334_s0 + $0xa4] ss:$56 sps:$4 sm:$0xff]  }
  0x50   :  { %2227 = vmatprep.subr.bf16.mxu1 %v2447_v32  ;;  %v1687_v32 = vld [vmem:[%s3335_s2 + $0x10] sm:$0xff] }
  0x51   :  { %1627 = vmatpush1.bf16.msra.mxu0 %v2464_v47  ;;  %1705 = vperm.xlu1 %2341, %v1687_v32   ;;  %v2533_v47 = vld [vmem:[%s3334_s0 + $0x180] ss:$56 sps:$4 sm:$0xff]  }
  0x52   :  { %1344 = vmatmul.mubr.bf16.gmra.mxu1 %v2446_v31  ;;  %1628 = vmatprep.subr.bf16.mxu0 %v2534_v1  ;;  %v2525_v31 = vld [vmem:[%s3334_s0 + $0x114] ss:$56 sps:$4 sm:$0xff]  }
  0x53   :  { %2228 = vmatpush3.bf16.msra.mxu1 %v2448_v33  ;;  %1351 = vmatprep.mubr.bf16.mxu1 %v2456_v40  ;;  %v1685_v33 = vld [vmem:[%s3335_s2] sm:$0xff]  ;;  %v2528_v40 = vld [vmem:[%s3334_s0 + $0x17c] ss:$56 sps:$4 sm:$0xff]  }
  0x54   :  { %2229 = vmatprep.subr.bf16.mxu1 %v2453_v37  ;;  %1539 = vmatmul.mubr.bf16.gmra.mxu0 %v2492_v7  ;;  %v1690_v37 = vld [vmem:[%s3335_s2 + $0x28] sm:$0xff] }
  0x55   :  { %1629 = vmatpush1.bf16.msra.mxu0 %v2470_v52  ;;  %1546 = vmatprep.mubr.bf16.mxu0 %v2501_v15  ;;  %v1748_v52 = vld [vmem:[%s3336_s3 + $0x38] sm:$0xff] }
  0x56   :  { %1630 = vmatprep.subr.bf16.mxu0 %v2534_v1  ;;  %1695 = vperm.xlu0 %2340, %v1685_v33  }
  0x57   :  { %2230 = vmatpush3.bf16.msra.mxu1 %v2454_v38  ;;  %1710 = vperm.xlu1 %2341, %v1688_v34   ;;  %v1689_v38 = vld [vmem:[%s3335_s2 + $0x20] sm:$0xff] }
  0x58   :  { %2231 = vmatprep.subr.bf16.mxu1 %v2459_v42  ;;  %v1692_v42 = vld [vmem:[%s3335_s2 + $0x38] sm:$0xff] }
  0x59   :  { %1631 = vmatpush1.bf16.msra.mxu0 %v2473_v55 }
  0x5a   :  { %1352 = vmatmul.mubr.bf16.gmra.mxu1 %v2458_v41  ;;  %1632 = vmatprep.subr.bf16.mxu0 %v2534_v1  ;;  %v2531_v41 = vld [vmem:[%s3334_s0 + $0x184] ss:$56 sps:$4 sm:$0xff]  }
  0x5b   :  { %2232 = vmatpush3.bf16.msra.mxu1 %v2460_v43  ;;  %1457 = vmatprep.mubr.bf16.mxu1 %v2467_v49  ;;  %v1691_v43 = vld [vmem:[%s3335_s2 + $0x30] sm:$0xff] }
  0x5c   :  { %2233 = vmatprep.subr.bf16.mxu1 %v2462_v45  ;;  %1547 = vmatmul.mubr.bf16.gmra.mxu0 %v2504_v17  ;;  %v1742_v45 = vld [vmem:[%s3336_s3 + $0x8] sm:$0xff]  ;;  %v1743_v49 = vld [vmem:[%s3336_s3 + $0x10] sm:$0xff] }
  0x5d   :  { %1633 = vmatpush1.bf16.msra.mxu0 %v2482_v62  ;;  %1700 = vperm.xlu0 %2340, %v1686_v35  }
  0x5e   :  { %1634 = vmatprep.subr.bf16.mxu0 %v2534_v1  ;;  %1720 = vperm.xlu1 %2341, %v1690_v37  }
  0x5f   :  { %2234 = vmatpush3.bf16.msra.mxu1 %v2463_v46  ;;  %v1741_v46 = vld [vmem:[%s3336_s3] sm:$0xff] }
  0x60   :  { %2299 = vmatprep.subr.bf16.mxu1 %v2468_v50  ;;  %v1746_v50 = vld [vmem:[%s3336_s3 + $0x28] sm:$0xff] }
  0x61   :  { %1635 = vmatpush1.bf16.msra.mxu0 %v2485_v2  ;;  %1715 = vperm.xlu0 %2340, %v1689_v38  }
  0x62   :  { %1458 = vmatmul.mubr.bf16.vlgmr.msra.gmra.mxu1 %v2465_v48  ;;  %1644 = vmatprep.subr.bf16.mxu0 %v2534_v1  ;;  %v1744_v48 = vld [vmem:[%s3336_s3 + $0x18] sm:$0xff] }
  0x63   :  { %2300 = vmatpush3.bf16.msra.mxu1 %v2469_v51  ;;  %1465 = vmatprep.mubr.bf16.mxu1 %v2474_v56  ;;  %v1745_v51 = vld [vmem:[%s3336_s3 + $0x20] sm:$0xff] }
  0x64   :  { %2301 = vmatprep.subr.bf16.mxu1 %v2471_v53  ;;  %1730 = vperm.xlu1 %2341, %v1692_v42   ;;  %v1747_v53 = vld [vmem:[%s3336_s3 + $0x30] sm:$0xff] }
  0x65   :  { %1645 = vmatpush2.bf16.msra.mxu0 %v2494_v9  ;;  %1725 = vperm.xlu0 %2340, %v1691_v43  }
  0x66   :  { %1646 = vmatprep.subr.bf16.mxu0 %v2534_v1 }
  0x67   :  { %2302 = vmatpush3.bf16.msra.mxu1 %v2472_v54 }
  0x68   :  { %2303 = vmatprep.subr.bf16.mxu1 %v2479_v59  ;;  %1756 = vperm.xlu1 %2341, %v1742_v45  }
  0x69   :  { %1647 = vmatpush2.bf16.msra.mxu0 %v2497_v12  ;;  %1751 = vperm.xlu0 %2340, %v1741_v46  }
  0x6a   :  { %1466 = vmatmul.mubr.bf16.gmra.mxu1 %v2476_v57  ;;  %1648 = vmatprep.subr.bf16.mxu0 %v2534_v1 }
  0x6b   :  { %2304 = vmatpush3.bf16.msra.mxu1 %v2481_v61  ;;  %1473 = vmatprep.mubr.bf16.mxu1 %v2486_v3 }
  0x6c   :  { %2305 = vmatprep.subr.bf16.mxu1 %v2483_v63  ;;  %1766 = vperm.xlu1 %2341, %v1744_v48  }
  0x6d   :  { %1649 = vmatpush2.bf16.msra.mxu0 %v2506_v19  ;;  %1761 = vperm.xlu0 %2340, %v1743_v49  }
  0x6e   :  { %1650 = vmatprep.subr.bf16.mxu0 %v2534_v1  ;;  %v2515_v1 = vld [vmem:[%s3334_s0 + $0x34] ss:$56 sps:$4 sm:$0xff]  }
  0x6f   :  { %2306 = vmatpush3.bf16.msra.mxu1 %v2484_v0  ;;  %2037 = vmatprep.mubr.msk.bf16.mxu0 %vm1217_vm0, %v2515_v1 }
  0x70   :  { %2307 = vmatprep.subr.bf16.mxu1 %v2491_v6  ;;  %1776 = vperm.xlu1 %2341, %v1746_v50  }
  0x71   :  { %1651 = vmatpush2.bf16.msra.mxu0 %v2509_v22  ;;  %1771 = vperm.xlu0 %2340, %v1745_v51  }
  0x72   :  { %1474 = vmatmul.mubr.bf16.gmra.mxu1 %v2488_v4 }
  0x73   :  { %2308 = vmatpush3.bf16.msra.mxu1 %v2493_v8  ;;  %1481 = vmatprep.mubr.bf16.mxu1 %v2498_v13 }
  0x74   :  { %2309 = vmatprep.subr.bf16.mxu1 %v2495_v10  ;;  %1653 = vmatmul.mubr.bf16.vlgmr.msra.gmra.mxu0 %v2513_v25 }
  0x75   :  { %2038 = vmatprep.mubr.msk.bf16.mxu0 %vm1217_vm0, %v2519_v27  ;;  %1786 = vperm.xlu1 %2341, %v1748_v52  }
  0x76   :  { %1781 = vperm.xlu0 %2340, %v1747_v53  }
  0x77   :  { %2310 = vmatpush3.bf16.msra.mxu1 %v2496_v11 }
  0x78   :  { %2311 = vmatprep.subr.bf16.mxu1 %v2503_v16 }
  0x7a   :  { %1482 = vmatmul.mubr.bf16.gmra.mxu1 %v2500_v14 }
  0x7b   :  { %2312 = vmatpush3.bf16.msra.mxu1 %v2505_v18  ;;  %1587 = vmatprep.mubr.bf16.mxu1 %v2512_v24 }
  0x7c   :  { %2313 = vmatprep.subr.bf16.mxu1 %v2507_v20  ;;  %1661 = vmatmul.mubr.bf16.gmra.mxu0 %v2521_v29 }
  0x7d   :  { %2039 = vmatprep.mubr.msk.bf16.mxu0 %vm1217_vm0, %v2525_v31 }
  0x7f   :  { %2314 = vmatpush3.bf16.msra.mxu1 %v2508_v21 }
  0x82   :  { %1588 = vmatmul.mubr.bf16.vlgmr.msra.gmra.mxu1 %v2510_v23 }
  0x83   :  { %1595 = vmatprep.mubr.bf16.mxu1 %v2516_v26 }
  0x84   :  { %1669 = vmatmul.mubr.bf16.gmra.mxu0 %v2527_v39 }
  0x85   :  { %2040 = vmatprep.mubr.msk.bf16.mxu0 %vm1217_vm0, %v2531_v41 }
  0x8a   :  { %1596 = vmatmul.mubr.bf16.gmra.mxu1 %v2518_v28 }
  0x8b   :  { %1603 = vmatprep.mubr.bf16.mxu1 %v2522_v30 }
  0x8c   :  { %1677 = vmatmul.mubr.bf16.gmra.mxu0 %v2533_v47 }
  0x92   :  { %1604 = vmatmul.mubr.bf16.gmra.mxu1 %v2524_v36 }
  0x93   :  { %1611 = vmatprep.mubr.bf16.mxu1 %v2528_v40 }
  0x9a   :  { %1612 = vmatmul.mubr.bf16.gmra.mxu1 %v2530_v44 }
  0xe2   :  { %v2115_v54 = vpop.f32.mrf.mxu1 }
  0xe4   :  { %v2116_v55 = vpop.f32.mrf.mxu1  ;;  %v3131_v4 = vpop.f32.mrf.mxu0 }
  0xe5   :  { %v3123_v56 = vadd.f32 %v2116_v55, %v2115_v54 }
  0xe6   :  { %v2118_v57 = vpop.f32.mrf.mxu1  ;;  %v3135_v7 = vpop.f32.mrf.mxu0 }
  0xe8   :  { %v2119_v58 = vpop.f32.mrf.mxu1  ;;  %v3137_v9 = vpop.f32.mrf.mxu0 }
  0xe9   :  { %v3125_v59 = vadd.f32 %v2119_v58, %v2118_v57 }
  0xea   :  { %v2121_v60 = vpop.f32.mrf.mxu1  ;;  %v3141_v12 = vpop.f32.mrf.mxu0 }
  0xec   :  { %v2122_v61 = vpop.f32.mrf.mxu1  ;;  %v3143_v15 = vpop.f32.mrf.mxu0 }
  0xed   :  { %v3127_v62 = vadd.f32 %v2122_v61, %v2121_v60 }
  0xee   :  { %v2124_v63 = vpop.f32.mrf.mxu1  ;;  %v3147_v18 = vpop.f32.mrf.mxu0 }
  0xf0   :  { %v2125_v0 = vpop.f32.mrf.mxu1  ;;  %v3149_v20 = vpop.f32.mrf.mxu0 }
  0xf1   :  { %v3129_v2 = vadd.f32 %v2125_v0, %v2124_v63 }
  0xf2   :  { %v2127_v3 = vpop.f32.mrf.mxu1  ;;  %v3153_v22 = vpop.f32.mrf.mxu0 }
  0xf4   :  { %v2128_v5 = vpop.f32.mrf.mxu1  ;;  %v3155_v25 = vpop.f32.mrf.mxu0 }
  0xf5   :  { %v3133_v6 = vadd.f32 %v2128_v5, %v2127_v3 }
  0xf6   :  { %v2130_v8 = vpop.f32.mrf.mxu1  ;;  %v3157_v26 = vpop.f32.mrf.mxu0 }
  0xf8   :  { %v2131_v10 = vpop.f32.mrf.mxu1  ;;  %v3159_v28 = vpop.f32.mrf.mxu0 }
  0xf9   :  { %v3139_v11 = vadd.f32 %v2131_v10, %v2130_v8  ;;  %v3205_v10 = vpop.permute.xlu0 %1695 }
  0xfa   :  { %v2133_v13 = vpop.f32.mrf.mxu1  ;;  %v3161_v30 = vpop.f32.mrf.mxu0 }
  0xfc   :  { %v2134_v14 = vpop.f32.mrf.mxu1  ;;  %v3165_v33 = vpop.f32.mrf.mxu0 }
  0xfd   :  { %v3145_v16 = vadd.f32 %v2134_v14, %v2133_v13  ;;  %3341 = vst [vmem:[#allocation4_spill] sm:$0xff] %v3165_v33  ;;  %v3221_v33 = vpop.permute.xlu0 %1700 }
  0xfe   :  { %v2136_v17 = vpop.f32.mrf.mxu1  ;;  %v3167_v35 = vpop.f32.mrf.mxu0 }
  0xff   :  { %3339 = vst [vmem:[#allocation2_spill] sm:$0xff] %v3145_v16  ;;  %3342 = vst [vmem:[#allocation5_spill] sm:$0xff] %v3167_v35 }
 0x100   :  { %v2137_v19 = vpop.f32.mrf.mxu1  ;;  %v3173_v38 = vpop.f32.mrf.mxu0 }
 0x101   :  { %v3151_v21 = vadd.f32 %v2137_v19, %v2136_v17  ;;  %3343 = vst [vmem:[#allocation6_spill] sm:$0xff] %v3173_v38 }
 0x102   :  { %v2155_v23 = vpop.f32.mrf.mxu1  ;;  %v3179_v41 = vpop.f32.mrf.mxu0 }
 0x103   :  { %3340 = vst [vmem:[#allocation3_spill] sm:$0xff] %v3151_v21  ;;  %3344 = vst [vmem:[#allocation7_spill] sm:$0xff] %v3179_v41  ;;  %v3215_v41 = vpop.permute.xlu1 %1705 }
 0x104   :  { %v2156_v24 = vpop.f32.mrf.mxu1  ;;  %v2275_v44 = vpop.f32.mrf.mxu0  ;;  %3351 = vst [vmem:[#allocation14_spill] sm:$0xff] %v3215_v41 }
 0x105   :  { %v2157_v19 = vadd.f32 %v2156_v24, %v2155_v23  ;;  %v2197_v23 = vadd.f32 %v3135_v7, %v3131_v4  ;;  %v2200_v4 = vadd.f32 %v3141_v12, %v3137_v9 }
 0x106   :  { %v2158_v1 = vpop.f32.mrf.mxu1  ;;  %v2276_v47 = vpop.f32.mrf.mxu0 }
 0x107   :  { %v3234_v41 = vpop.permute.xlu1 %1710 }
 0x108   :  { %v2159_v27 = vpop.f32.mrf.mxu1  ;;  %v3189_v49 = vpop.f32.mrf.mxu0 }
 0x109   :  { %v2160_v16 = vadd.f32 %v2159_v27, %v2158_v1  ;;  %v3241_v1 = vpop.permute.xlu0 %1715 }
 0x10a   :  { %v2161_v29 = vpop.f32.mrf.mxu1  ;;  %v2279_v52 = vpop.f32.mrf.mxu0  ;;  %3357 = vst [vmem:[#allocation20_spill] sm:$0xff] %v3241_v1 }
 0x10c   :  { %v2162_v31 = vpop.f32.mrf.mxu1  ;;  %v3191_v55 = vpop.f32.mrf.mxu0 }
 0x10e   :  { %v3163_v32 = vpop.f32.mrf.mxu1  ;;  %v2282_v58 = vpop.f32.mrf.mxu0 }
 0x110   :  { %v2165_v34 = vpop.f32.mrf.mxu1  ;;  %v3195_v61 = vpop.f32.mrf.mxu0 }
 0x112   :  { %v3169_v36 = vpop.f32.mrf.mxu1  ;;  %v3197_v0 = vpop.f32.mrf.mxu0 }
 0x114   :  { %v3171_v37 = vpop.f32.mrf.mxu1  ;;  %v3201_v5 = vpop.f32.mrf.mxu0 }
 0x116   :  { %v3175_v39 = vpop.f32.mrf.mxu1  ;;  %v3207_v13 = vpop.f32.mrf.mxu0 }
 0x117   :  { %3347 = vst [vmem:[#allocation10_spill] sm:$0xff] %v3207_v13 }
 0x118   :  { %v3177_v40 = vpop.f32.mrf.mxu1  ;;  %v3211_v17 = vpop.f32.mrf.mxu0 }
 0x119   :  { %3349 = vst [vmem:[#allocation12_spill] sm:$0xff] %v3211_v17 }
 0x11a   :  { %v3181_v42 = vpop.f32.mrf.mxu1  ;;  %v3217_v38 = vpop.f32.mrf.mxu0 }
 0x11b   :  { %3352 = vst [vmem:[#allocation15_spill] sm:$0xff] %v3217_v38  ;;  %v2163_v38 = vadd.f32 %v2162_v31, %v2161_v29 }
 0x11c   :  { %v3183_v43 = vpop.f32.mrf.mxu1 }
 0x11d   :  { %v1338_v29 = vadd.f32 %v2163_v38, %v3127_v62  ;;  %v2169_v62 = vadd.f32 %v3171_v37, %v3169_v36  ;;  %v3255_v38 = vpop.permute.xlu0 %1725  ;;  %v2058_v37 = vld [vmem:[%s3337_s4] sm:$0xff]  }
 0x11e   :  { %v3185_v45 = vpop.f32.mrf.mxu1 }
 0x11f   :  { %3345 = vst [vmem:[#allocation8_spill] sm:$0xff] %v3185_v45  ;;  %v1330_v45 = vadd.f32 %v2157_v19, %v3123_v56  ;;  %v2277_v19 = vadd.f32 %v2276_v47, %v2275_v44  ;;  %v2280_v44 = vadd.f32 %v2279_v52, %v3189_v49  ;;  %v2283_v47 = vadd.f32 %v2282_v58, %v3191_v55 }
 0x120   :  { %v3187_v46 = vpop.f32.mrf.mxu1  ;;  %v1346_v49 = vadd.f32 %v2169_v62, %v3133_v6  ;;  %v2172_v52 = vadd.f32 %v3177_v40, %v3175_v39  ;;  %v2059_v6 = vunpack.c.l.bf16 %v2058_v37 }
 0x121   :  { %3346 = vst [vmem:[#allocation9_spill] sm:$0xff] %v3187_v46  ;;  %v3223_v46 = vpop.f32.mrf.mxu0 }
 0x122   :  { %v2235_v48 = vpop.f32.mrf.mxu1  ;;  %3354 = vst [vmem:[#allocation17_spill] sm:$0xff] %v3223_v46  ;;  %v1333_v46 = vadd.f32 %v2160_v16, %v3125_v59  ;;  %v2203_v16 = vadd.f32 %v3147_v18, %v3143_v15 }
 0x124   :  { %v2236_v50 = vpop.f32.mrf.mxu1 }
 0x125   :  { %v2237_v24 = vadd.f32 %v2236_v50, %v2235_v48  ;;  %v2166_v50 = vadd.f32 %v2165_v34, %v3163_v32 }
 0x126   :  { %v2238_v51 = vpop.f32.mrf.mxu1 }
 0x127   :  { %v1341_v34 = vadd.f32 %v2166_v50, %v3129_v2 }
 0x128   :  { %v2239_v53 = vpop.f32.mrf.mxu1 }
 0x129   :  { %v2240_v48 = vadd.f32 %v2239_v53, %v2238_v51 }
 0x12a   :  { %v2241_v54 = vpop.f32.mrf.mxu1 }
 0x12c   :  { %v2242_v57 = vpop.f32.mrf.mxu1 }
 0x12e   :  { %v3193_v60 = vpop.f32.mrf.mxu1 }
 0x130   :  { %v2245_v63 = vpop.f32.mrf.mxu1 }
 0x131   :  { %v2246_v53 = vadd.f32 %v2245_v63, %v3193_v60 }
 0x132   :  { %v3199_v3 = vpop.f32.mrf.mxu1 }
 0x134   :  { %v3203_v8 = vpop.f32.mrf.mxu1 }
 0x136   :  { %v3209_v14 = vpop.f32.mrf.mxu1 }
 0x137   :  { %3348 = vst [vmem:[#allocation11_spill] sm:$0xff] %v3209_v14  ;;  %v3228_v14 = vpop.f32.mrf.mxu0 }
 0x138   :  { %v3213_v21 = vpop.f32.mrf.mxu1 }
 0x139   :  { %3350 = vst [vmem:[#allocation13_spill] sm:$0xff] %v3213_v21  ;;  %v1395_v21 = vadd.f32 %v2197_v23, %v1330_v45  ;;  %v2243_v45 = vadd.f32 %v2242_v57, %v2241_v54  ;;  %v3251_v23 = vpop.permute.xlu1 %1720 }
 0x13a   :  { %v3219_v35 = vpop.f32.mrf.mxu1 }
 0x13b   :  { %3353 = vst [vmem:[#allocation16_spill] sm:$0xff] %v3219_v35  ;;  %v3236_v35 = vpop.f32.mrf.mxu0  ;;  %v1460_v7 = vadd.f32 %v2237_v24, %v1395_v21  ;;  %v1403_v21 = vadd.f32 %v2203_v16, %v1338_v29  ;;  %v2209_v24 = vadd.f32 %v3157_v26, %v3155_v25  ;;  %v2212_v26 = vadd.f32 %v3161_v30, %v3159_v28  ;;  %v2093_v16 = vld [vmem:[%s3337_s4 + $0x8] sm:$0xff]  }
 0x13c   :  { %v3226_v13 = vpop.f32.mrf.mxu1  ;;  %3355 = vst [vmem:[#allocation18_spill] sm:$0xff] %v3236_v35  ;;  %v1398_v35 = vadd.f32 %v2200_v4, %v1333_v46  ;;  %v2206_v46 = vadd.f32 %v3153_v22, %v3149_v20 }
 0x13d   :  { %v3243_v27 = vpop.f32.mrf.mxu0  ;;  %v3269_v20 = vpop.permute.xlu1 %1730  ;;  %v1411_v50 = vadd.f32 %v2209_v24, %v1346_v49 }
 0x13e   :  { %v3232_v17 = vpop.f32.mrf.mxu1  ;;  %3358 = vst [vmem:[#allocation21_spill] sm:$0xff] %v3243_v27  ;;  %v1463_v1 = vadd.f32 %v2240_v48, %v1398_v35  ;;  %v1468_v35 = vadd.f32 %v2243_v45, %v1403_v21  ;;  %v1406_v55 = vadd.f32 %v2206_v46, %v1341_v34  ;;  %v3364_v46 = vld [vmem:[#allocation9_spill] sm:$0xff] }
 0x13f   :  { %v1654_v59 = vpop.f32.mrf.mxu0 }
 0x140   :  { %v3239_v56 = vpop.f32.mrf.mxu1  ;;  %v1528_v54 = vadd.f32 %v2280_v44, %v1463_v1  ;;  %v2249_v1 = vadd.f32 %v3203_v8, %v3199_v3  ;;  %v2286_v3 = vadd.f32 %v3197_v0, %v3195_v61  ;;  %v3362_v44 = vld [vmem:[#allocation2_spill] sm:$0xff] }
 0x141   :  { %3356 = vst [vmem:[#allocation19_spill] sm:$0xff] %v3239_v56  ;;  %v1525_v56 = vadd.f32 %v2277_v19, %v1460_v7  ;;  %v1656_v12 = vpop.f32.mrf.mxu0  ;;  %v1471_v7 = vadd.f32 %v2246_v53, %v1406_v55  ;;  %v2060_v19 = vunpack.c.h.bf16 %v2058_v37  ;;  %v1757_v21 = vpop.permute.xlu1 %1756 }
 0x142   :  { %v2315_v31 = vpop.f32.mrf.mxu1  ;;  %v1476_v45 = vadd.f32 %v2249_v1, %v1411_v50  ;;  %v3361_v12 = vld [vmem:[#allocation13_spill] sm:$0xff]  ;;  %v2064_v50 = vunpack.c.h.bf16 %v2093_v16 }
 0x143   :  { %v1657_v18 = vpop.f32.mrf.mxu0 }
 0x144   :  { %v2316_v27 = vpop.f32.mrf.mxu1 }
 0x145   :  { %v2317_v9 = vadd.f32 %v2316_v27, %v2315_v31  ;;  %v1659_v57 = vpop.f32.mrf.mxu0  ;;  %v1752_v27 = vpop.permute.xlu0 %1751  ;;  %v1349_v31 = vadd.f32 %v2172_v52, %v3139_v11 }
 0x146   :  { %v2318_v32 = vpop.f32.mrf.mxu1 }
 0x147   :  { %v1590_v15 = vadd.f32 %v2317_v9, %v1525_v56  ;;  %v1662_v63 = vpop.f32.mrf.mxu0  ;;  %v1533_v56 = vadd.f32 %v2283_v47, %v1468_v35  ;;  %v3360_v9 = vld [vmem:[#allocation11_spill] sm:$0xff]  ;;  %v1414_v47 = vadd.f32 %v2212_v26, %v1349_v31 }
 0x148   :  { %v2319_v51 = vpop.f32.mrf.mxu1  ;;  %v2252_v62 = vadd.f32 %v3361_v12, %v3360_v9  ;;  %v3373_v26 = vld [vmem:[#allocation15_spill] sm:$0xff] }
 0x149   :  { %v1655_v36 = vadd.f32 %v1654_v59, %v1590_v15  ;;  %v2320_v2 = vadd.f32 %v2319_v51, %v2318_v32  ;;  %v1664_v29 = vpop.f32.mrf.mxu0  ;;  %v1536_v32 = vadd.f32 %v2286_v3, %v1471_v7  ;;  %v2063_v51 = vunpack.c.l.bf16 %v2093_v16  ;;  %v1762_v24 = vpop.permute.xlu0 %1761  ;;  %v3375_v9 = vld [vmem:[#allocation19_spill] sm:$0xff] }
 0x14a   :  { %v2321_v22 = vpop.f32.mrf.mxu1  ;;  %v1479_v55 = vadd.f32 %v2252_v62, %v1414_v47  ;;  %v3371_v29 = vld [vmem:[#allocation3_spill] sm:$0xff]  ;;  %v2258_v12 = vadd.f32 %v3375_v9, %v3232_v17  ;;  %v1767_v62 = vpop.permute.xlu1 %1766  ;;  %v3376_v17 = vld [vmem:[#allocation20_spill] sm:$0xff] }
 0x14b   :  { %v1733_v58 = vmul.f32 %v3205_v10, %v1655_v36  ;;  %v1593_v60 = vadd.f32 %v2320_v2, %v1528_v54  ;;  %v2175_v10 = vadd.f32 %v3183_v43, %v3181_v42  ;;  %v1665_v11 = vpop.f32.mrf.mxu0  ;;  %v3359_v42 = vld [vmem:[#allocation10_spill] sm:$0xff]  ;;  %v3366_v36 = vld [vmem:[#allocation5_spill] sm:$0xff] }
 0x14c   :  { %v2322_v4 = vpop.f32.mrf.mxu1  ;;  %v2289_v43 = vadd.f32 %v3359_v42, %v3201_v5  ;;  %v3365_v5 = vld [vmem:[#allocation4_spill] sm:$0xff]  ;;  %v3367_v2 = vld [vmem:[#allocation14_spill] sm:$0xff] }
 0x14d   :  { %v1789_v39 = vadd.f32 %v1752_v27, %v1733_v58  ;;  %v1658_v40 = vadd.f32 %v1657_v18, %v1593_v60  ;;  %v2323_v48 = vadd.f32 %v2322_v4, %v2321_v22  ;;  %v1667_v34 = vpop.f32.mrf.mxu0  ;;  %v1354_v15 = vadd.f32 %v2175_v10, %v3362_v44  ;;  %v3363_v18 = vld [vmem:[#allocation8_spill] sm:$0xff]  ;;  %v1772_v47 = vpop.permute.xlu0 %1771 }
 0x14e   :  { %v2324_v25 = vpop.f32.mrf.mxu1  ;;  %v2178_v35 = vadd.f32 %v3364_v46, %v3363_v18  ;;  %v2215_v37 = vadd.f32 %v3366_v36, %v3365_v5  ;;  %v1541_v22 = vadd.f32 %v2289_v43, %v1476_v45  ;;  %v3368_v58 = vld [vmem:[#allocation16_spill] sm:$0xff] }
 0x14f   :  { %v1734_v8 = vmul.f32 %v3221_v33, %v1658_v40  ;;  %v1598_v59 = vadd.f32 %v2323_v48, %v1533_v56  ;;  %v1813_v28 = vadd.f32 %v2059_v6, %v1789_v39  ;;  %v1670_v52 = vpop.f32.mrf.mxu0  ;;  %v2255_v60 = vadd.f32 %v3226_v13, %v3368_v58  ;;  %v3369_v39 = vld [vmem:[#allocation6_spill] sm:$0xff]  ;;  %v3370_v40 = vld [vmem:[#allocation7_spill] sm:$0xff] }
 0x150   :  { %v2325_v30 = vpop.f32.mrf.mxu1  ;;  %v2218_v48 = vadd.f32 %v3370_v40, %v3369_v39  ;;  %v1357_v31 = vadd.f32 %v2178_v35, %v3371_v29  ;;  %v1419_v10 = vadd.f32 %v2215_v37, %v1354_v15  ;;  %v2095_v40 = vld [vmem:[%s3337_s4 + $0x18] sm:$0xff]  }
 0x151   :  { %v1790_v61 = vadd.f32 %v1757_v21, %v1734_v8  ;;  %v1663_v0 = vadd.f32 %v1662_v63, %v1598_v59  ;;  %v2326_v33 = vadd.f32 %v2325_v30, %v2324_v25  ;;  %v1821_v63 = vmax.f32 %v1813_v28, 0.0  ;;  %v1672_v7 = vpop.f32.mrf.mxu0  ;;  %v3372_v25 = vld [vmem:[#allocation12_spill] sm:$0xff] }
 0x152   :  { %v2327_v53 = vpop.f32.mrf.mxu1  ;;  %v2292_v3 = vadd.f32 %v3373_v26, %v3372_v25  ;;  %v1484_v42 = vadd.f32 %v2255_v60, %v1419_v10 }
 0x153   :  { %v1814_v54 = vadd.f32 %v2060_v19, %v1790_v61  ;;  %v1735_v57 = vmul.f32 %v3367_v2, %v1663_v0  ;;  %v1601_v49 = vadd.f32 %v2326_v33, %v1536_v32  ;;  %v1673_v45 = vpop.f32.mrf.mxu0 }
 0x154   :  { %v2328_v56 = vpop.f32.mrf.mxu1  ;;  %v1544_v16 = vadd.f32 %v2292_v3, %v1479_v55 }
 0x155   :  { %v1822_v1 = vmax.f32 %v1814_v54, 0.0  ;;  %v1791_v27 = vadd.f32 %v1762_v24, %v1735_v57  ;;  %v1666_v6 = vadd.f32 %v1665_v11, %v1601_v49  ;;  %v2329_v4 = vadd.f32 %v2328_v56, %v2327_v53  ;;  %v3374_v11 = vld [vmem:[#allocation17_spill] sm:$0xff]  ;;  %v1675_v0 = vpop.f32.mrf.mxu0  ;;  %v3377_v49 = vld [vmem:[#allocation18_spill] sm:$0xff] }
 0x156   :  { %v2330_v19 = vpop.f32.mrf.mxu1  ;;  %v2295_v43 = vadd.f32 %v3228_v14, %v3374_v11  ;;  %v1422_v14 = vadd.f32 %v2218_v48, %v1357_v31 }
 0x157   :  { %v2076_v13 = vpack.c.bf16 %v1822_v1, %v1821_v63  ;;  %v1736_v8 = vmul.f32 %v3234_v41, %v1666_v6  ;;  %v1606_v59 = vadd.f32 %v2329_v4, %v1541_v22  ;;  %v1815_v21 = vadd.f32 %v2063_v51, %v1791_v27  ;;  %v2094_v41 = vld [vmem:[%s3337_s4 + $0x10] sm:$0xff]   ;;  %v1678_v18 = vpop.f32.mrf.mxu0  ;;  %v1777_v27 = vpop.permute.xlu1 %1776 }
 0x158   :  { %v2331_v28 = vpop.f32.mrf.mxu1  ;;  %v1549_v46 = vadd.f32 %v2295_v43, %v1484_v42  ;;  %v1487_v35 = vadd.f32 %v2258_v12, %v1422_v14  ;;  %v2067_v53 = vunpack.c.l.bf16 %v2094_v41  ;;  %v2068_v63 = vunpack.c.h.bf16 %v2094_v41 }
 0x159   :  { %2077 = vst [vmem:[%s3338_s5] sm:$0xff] %v2076_v13   ;;  %v1792_v30 = vadd.f32 %v1767_v62, %v1736_v8  ;;  %v1671_v32 = vadd.f32 %v1670_v52, %v1606_v59  ;;  %v2332_v61 = vadd.f32 %v2331_v28, %v2330_v19  ;;  %v1823_v51 = vmax.f32 %v1815_v21, 0.0  ;;  %v1680_v57 = vpop.f32.mrf.mxu0  ;;  %v3378_v52 = vld [vmem:[#allocation21_spill] sm:$0xff] }
 0x15a   :  { %v2333_v33 = vpop.f32.mrf.mxu1  ;;  %v2298_v22 = vadd.f32 %v3378_v52, %v3377_v49  ;;  %v2071_v19 = vunpack.c.l.bf16 %v2095_v40 }
 0x15b   :  { %v1816_v34 = vadd.f32 %v2064_v50, %v1792_v30  ;;  %v1737_v44 = vmul.f32 %v3376_v17, %v1671_v32  ;;  %v1609_v15 = vadd.f32 %v2332_v61, %v1544_v16  ;;  %v1681_v56 = vpop.f32.mrf.mxu0  ;;  %v1782_v50 = vpop.permute.xlu0 %1781 }
 0x15c   :  { %v2334_v5 = vpop.f32.mrf.mxu1  ;;  %v1552_v1 = vadd.f32 %v2298_v22, %v1487_v35  ;;  %v1787_v42 = vpop.permute.xlu1 %1786 }
 0x15d   :  { %v1824_v36 = vmax.f32 %v1816_v34, 0.0  ;;  %v1793_v37 = vadd.f32 %v1772_v47, %v1737_v44  ;;  %v1674_v54 = vadd.f32 %v1673_v45, %v1609_v15  ;;  %v2335_v2 = vadd.f32 %v2334_v5, %v2333_v33  ;;  %v1683_v29 = vpop.f32.mrf.mxu0 }
 0x15e   :  { %v2336_v55 = vpop.f32.mrf.mxu1  ;;  %v2072_v45 = vunpack.c.h.bf16 %v2095_v40 }
 0x15f   :  { %v2081_v58 = vpack.c.bf16 %v1824_v36, %v1823_v51  ;;  %v1738_v60 = vmul.f32 %v3251_v23, %v1674_v54  ;;  %v1614_v24 = vadd.f32 %v2335_v2, %v1549_v46  ;;  %v1817_v4 = vadd.f32 %v2067_v53, %v1793_v37 }
 0x160   :  { %v2337_v6 = vpop.f32.mrf.mxu1 }
 0x161   :  { %2096 = vst [vmem:[%s3338_s5 + $0x8] sm:$0xff] %v2081_v58   ;;  %v1794_v7 = vadd.f32 %v1777_v27, %v1738_v60  ;;  %v1679_v39 = vadd.f32 %v1678_v18, %v1614_v24  ;;  %v2338_v48 = vadd.f32 %v2337_v6, %v2336_v55  ;;  %v1825_v25 = vmax.f32 %v1817_v4, 0.0 }
 0x163   :  { %v1818_v23 = vadd.f32 %v2068_v63, %v1794_v7  ;;  %v1739_v31 = vmul.f32 %v3255_v38, %v1679_v39  ;;  %v1617_v10 = vadd.f32 %v2338_v48, %v1552_v1 }
 0x165   :  { %v1826_v26 = vmax.f32 %v1818_v23, 0.0  ;;  %v1795_v3 = vadd.f32 %v1782_v50, %v1739_v31  ;;  %v1682_v13 = vadd.f32 %v1681_v56, %v1617_v10 }
 0x167   :  { %v2086_v8 = vpack.c.bf16 %v1826_v26, %v1825_v25  ;;  %v1740_v59 = vmul.f32 %v3269_v20, %v1682_v13  ;;  %v1819_v11 = vadd.f32 %v2071_v19, %v1795_v3 }
 0x169   :  { %2097 = vst [vmem:[%s3338_s5 + $0x10] sm:$0xff] %v2086_v8   ;;  %v1796_v43 = vadd.f32 %v1787_v42, %v1740_v59  ;;  %v1827_v38 = vmax.f32 %v1819_v11, 0.0 }
 0x16b   :  { %v1820_v9 = vadd.f32 %v2072_v45, %v1796_v43 }
 0x16d   :  { %v1828_v12 = vmax.f32 %v1820_v9, 0.0 }
 0x16f   :  { %v2091_v62 = vpack.c.bf16 %v1828_v12, %v1827_v38 }
 0x171   :  { %2098 = vst [vmem:[%s3338_s5 + $0x18] sm:$0xff] %v2091_v62  }

// kernel: resnet3d_forward.21
= control target key start
LH: loop header
LB: loop body
LE: loop exit
PB: predicated region body
PF: predicated region fallthrough
CT: control target
= control target key end

     0   :  { %s1425_s0 = inlined_call_operand.vmem [shape: bf16[64,2,64], index: 0, kind: input, shape index: {}]   ;;  %s1426_s1 = inlined_call_operand.vmem [shape: f32[1,64], index: 1, kind: input, shape index: {}]   ;;  %s1427_s2 = inlined_call_operand.<no memory space> [shape: f32[1,1], index: 2, kind: input, shape index: {}]   ;;  %s1428_s3 = inlined_call_operand.hbm [shape: f32[1,2], index: 3, kind: output, shape index: {}]  }
   0x1   :  { %v8_v0 = vstv %s1427_s2 }
   0x2   :  { %9 = vst [vmem:[#allocation2] sm:$0x1] %v8_v0 }
   0x3   :  { %v75_v1 = vld [vmem:[%s1425_s0 + $0x3a] sm:$0x1]  ;;  %vm145_vm0 = vcmask 517120   ;;  %v73_v2 = vld [vmem:[%s1425_s0 + $0x38] sm:$0x1] }
   0x4   :  { %v139_v3 = vunpack.c.l.bf16 %v75_v1  ;;  %v137_v4 = vunpack.c.l.bf16 %v73_v2  ;;  %v74_v5 = vld [vmem:[%s1425_s0 + $0x39] sm:$0x1]  ;;  %v65_v6 = vld [vmem:[%s1425_s0 + $0x30] sm:$0x1]  ;;  %v66_v9 = vld [vmem:[%s1425_s0 + $0x31] sm:$0x1] }
   0x5   :  { %v138_v7 = vunpack.c.l.bf16 %v74_v5  ;;  %v129_v8 = vunpack.c.l.bf16 %v65_v6  ;;  %v76_v10 = vld [vmem:[%s1425_s0 + $0x3b] sm:$0x1]  ;;  %v130_v15 = vunpack.c.l.bf16 %v66_v9  ;;  %v67_v17 = vld [vmem:[%s1425_s0 + $0x32] sm:$0x1]  ;;  %v77_v18 = vld [vmem:[%s1425_s0 + $0x3c] sm:$0x1] }
   0x6   :  { %v320_v11 = vsel %vm145_vm0, %v139_v3, 0.0  ;;  %v314_v12 = vsel %vm145_vm0, %v137_v4, 0.0  ;;  %v140_v16 = vunpack.c.l.bf16 %v76_v10  ;;  %v131_v21 = vunpack.c.l.bf16 %v67_v17  ;;  %v58_v23 = vld [vmem:[%s1425_s0 + $0x29] sm:$0x1]  ;;  %v57_v24 = vld [vmem:[%s1425_s0 + $0x28] sm:$0x1] }
   0x7   :  { %321 = vadd.xlane.f32.xlu1 %v320_v11  ;;  %315 = vadd.xlane.f32.xlu0 %v314_v12  ;;  %v317_v13 = vsel %vm145_vm0, %v138_v7, 0.0  ;;  %v290_v14 = vsel %vm145_vm0, %v129_v8, 0.0  ;;  %v293_v19 = vsel %vm145_vm0, %v130_v15, 0.0  ;;  %v141_v22 = vunpack.c.l.bf16 %v77_v18  ;;  %v78_v29 = vld [vmem:[%s1425_s0 + $0x3d] sm:$0x1] }
   0x8   :  { %v323_v20 = vsel %vm145_vm0, %v140_v16, 0.0  ;;  %v296_v25 = vsel %vm145_vm0, %v131_v21, 0.0  ;;  %v122_v27 = vunpack.c.l.bf16 %v58_v23  ;;  %v121_v28 = vunpack.c.l.bf16 %v57_v24  ;;  %v68_v30 = vld [vmem:[%s1425_s0 + $0x33] sm:$0x1]  ;;  %v69_v35 = vld [vmem:[%s1425_s0 + $0x34] sm:$0x1] }
   0x9   :  { %v326_v26 = vsel %vm145_vm0, %v141_v22, 0.0  ;;  %v142_v33 = vunpack.c.l.bf16 %v78_v29  ;;  %v132_v34 = vunpack.c.l.bf16 %v68_v30  ;;  %v59_v36 = vld [vmem:[%s1425_s0 + $0x2a] sm:$0x1]  ;;  %v133_v39 = vunpack.c.l.bf16 %v69_v35  ;;  %v79_v41 = vld [vmem:[%s1425_s0 + $0x3e] sm:$0x1] }
   0xa   :  { %v269_v31 = vsel %vm145_vm0, %v122_v27, 0.0  ;;  %v266_v32 = vsel %vm145_vm0, %v121_v28, 0.0  ;;  %v123_v40 = vunpack.c.l.bf16 %v59_v36  ;;  %v49_v42 = vld [vmem:[%s1425_s0 + $0x20] sm:$0x1]  ;;  %v143_v45 = vunpack.c.l.bf16 %v79_v41  ;;  %v50_v47 = vld [vmem:[%s1425_s0 + $0x21] sm:$0x1] }
   0xb   :  { %318 = vadd.xlane.f32.xlu0 %v317_v13  ;;  %291 = vadd.xlane.f32.xlu1 %v290_v14  ;;  %v329_v37 = vsel %vm145_vm0, %v142_v33, 0.0  ;;  %v299_v38 = vsel %vm145_vm0, %v132_v34, 0.0  ;;  %v302_v43 = vsel %vm145_vm0, %v133_v39, 0.0  ;;  %v113_v46 = vunpack.c.l.bf16 %v49_v42  ;;  %v60_v48 = vld [vmem:[%s1425_s0 + $0x2b] sm:$0x1] }
   0xc   :  { %v272_v44 = vsel %vm145_vm0, %v123_v40, 0.0  ;;  %v332_v49 = vsel %vm145_vm0, %v143_v45, 0.0  ;;  %v114_v51 = vunpack.c.l.bf16 %v50_v47  ;;  %v124_v52 = vunpack.c.l.bf16 %v60_v48  ;;  %v70_v53 = vld [vmem:[%s1425_s0 + $0x35] sm:$0x1]  ;;  %v80_v54 = vld [vmem:[%s1425_s0 + $0x3f] sm:$0x1] }
   0xd   :  { %v242_v50 = vsel %vm145_vm0, %v113_v46, 0.0 }
   0xf   :  { %294 = vadd.xlane.f32.xlu0 %v293_v19  ;;  %324 = vadd.xlane.f32.xlu1 %v323_v20 }
  0x13   :  { %297 = vadd.xlane.f32.xlu0 %v296_v25  ;;  %327 = vadd.xlane.f32.xlu1 %v326_v26 }
  0x17   :  { %270 = vadd.xlane.f32.xlu1 %v269_v31  ;;  %267 = vadd.xlane.f32.xlu0 %v266_v32 }
  0x1b   :  { %330 = vadd.xlane.f32.xlu1 %v329_v37  ;;  %300 = vadd.xlane.f32.xlu0 %v299_v38 }
  0x1f   :  { %303 = vadd.xlane.f32.xlu1 %v302_v43  ;;  %273 = vadd.xlane.f32.xlu0 %v272_v44 }
  0x23   :  { %333 = vadd.xlane.f32.xlu0 %v332_v49  ;;  %243 = vadd.xlane.f32.xlu1 %v242_v50 }
  0x24   :  { %10 = vsyncpa [#allocation4], 0  ;;  %v245_v55 = vsel %vm145_vm0, %v114_v51, 0.0  ;;  %v275_v56 = vsel %vm145_vm0, %v124_v52, 0.0  ;;  %v134_v57 = vunpack.c.l.bf16 %v70_v53  ;;  %v144_v58 = vunpack.c.l.bf16 %v80_v54  ;;  %v51_v59 = vld [vmem:[%s1425_s0 + $0x22] sm:$0x1] }
  0x25   :  { %v61_v60 = vld [vmem:[%s1425_s0 + $0x2c] sm:$0x1]  ;;  %v115_v63 = vunpack.c.l.bf16 %v51_v59  ;;  %v71_v1 = vld [vmem:[%s1425_s0 + $0x36] sm:$0x1]  ;;  %v41_v2 = vld [vmem:[%s1425_s0 + $0x18] sm:$0x1] }
  0x26   :  { %v305_v61 = vsel %vm145_vm0, %v134_v57, 0.0  ;;  %v335_v62 = vsel %vm145_vm0, %v144_v58, 0.0  ;;  %v125_v0 = vunpack.c.l.bf16 %v61_v60  ;;  %v135_v5 = vunpack.c.l.bf16 %v71_v1  ;;  %v42_v7 = vld [vmem:[%s1425_s0 + $0x19] sm:$0x1]  ;;  %v52_v8 = vld [vmem:[%s1425_s0 + $0x23] sm:$0x1] }
  0x27   :  { %246 = vadd.xlane.f32.xlu0 %v245_v55  ;;  %276 = vadd.xlane.f32.xlu1 %v275_v56  ;;  %v248_v3 = vsel %vm145_vm0, %v115_v63, 0.0  ;;  %v105_v6 = vunpack.c.l.bf16 %v41_v2  ;;  %v106_v11 = vunpack.c.l.bf16 %v42_v7  ;;  %v116_v12 = vunpack.c.l.bf16 %v52_v8  ;;  %v62_v13 = vld [vmem:[%s1425_s0 + $0x2d] sm:$0x1]  ;;  %v72_v14 = vld [vmem:[%s1425_s0 + $0x37] sm:$0x1]  ;;  %s956_s30 = smov [#allocation3]  }
  0x28   :  { %v278_v4 = vsel %vm145_vm0, %v125_v0, 0.0  ;;  %v308_v9 = vsel %vm145_vm0, %v135_v5, 0.0  ;;  %v126_v17 = vunpack.c.l.bf16 %v62_v13  ;;  %v136_v18 = vunpack.c.l.bf16 %v72_v14  ;;  %v43_v19 = vld [vmem:[%s1425_s0 + $0x1a] sm:$0x1]  ;;  %v53_v20 = vld [vmem:[%s1425_s0 + $0x24] sm:$0x1] }
  0x29   :  { %v218_v10 = vsel %vm145_vm0, %v105_v6, 0.0  ;;  %v221_v15 = vsel %vm145_vm0, %v106_v11, 0.0  ;;  %v251_v16 = vsel %vm145_vm0, %v116_v12, 0.0  ;;  %v107_v21 = vunpack.c.l.bf16 %v43_v19  ;;  %v63_v25 = vld [vmem:[%s1425_s0 + $0x2e] sm:$0x1]  ;;  %s889_s4 = sshll.u32 %s956_s30, 4  ;;  %s890_s4 = int_to_ptr.vmem [resolvable:$true] %s889_s4 }
  0x2a   :  { %v281_v22 = vsel %vm145_vm0, %v126_v17, 0.0  ;;  %v311_v23 = vsel %vm145_vm0, %v136_v18, 0.0  ;;  %v117_v24 = vunpack.c.l.bf16 %v53_v20  ;;  %v33_v26 = vld [vmem:[%s1425_s0 + $0x10] sm:$0x1]  ;;  %v953_v27 = vmov 0.0   ;;  %s931_s5 = scalar_lea.vmem %s890_s4, 16  ;;  %p936_p1 = scmp.lt.s32.totalorder %s890_s4, %s890_s4 }
  0x2b   :  { %306 = vadd.xlane.f32.xlu0 %v305_v61  ;;  %336 = vadd.xlane.f32.xlu1 %v335_v62  ;;  %v224_v28 = vsel %vm145_vm0, %v107_v21, 0.0  ;;  %v127_v30 = vunpack.c.l.bf16 %v63_v25  ;;  %v97_v31 = vunpack.c.l.bf16 %v33_v26  ;;  %v34_v32 = vld [vmem:[%s1425_s0 + $0x11] sm:$0x1]  ;;  %v44_v33 = vld [vmem:[%s1425_s0 + $0x1b] sm:$0x1]  ;;  %vm954_vm1 = vmmov 0   ;;  %p932_p0 = scmp.ne.s32.totalorder %s890_s4, %s931_s5 }
  0x2c   :  { %907 = vmatprep.subr.mxu0 %v953_v27  ;;  %v254_v29 = vsel %vm145_vm0, %v117_v24, 0.0  ;;  %v98_v36 = vunpack.c.l.bf16 %v34_v32  ;;  %v108_v37 = vunpack.c.l.bf16 %v44_v33  ;;  %v54_v38 = vld [vmem:[%s1425_s0 + $0x25] sm:$0x1]  ;;  %v64_v39 = vld [vmem:[%s1425_s0 + $0x2f] sm:$0x1]  ;;  %923 = vmatprep.mubr.msk.f32.mxu0 %vm954_vm1, %v953_v27  ;;  %vm736_vm2 = vcmask 1041409  }
  0x2d   :  { %v284_v34 = vsel %vm145_vm0, %v127_v30, 0.0  ;;  %v194_v35 = vsel %vm145_vm0, %v97_v31, 0.0  ;;  %v118_v42 = vunpack.c.l.bf16 %v54_v38  ;;  %v128_v43 = vunpack.c.l.bf16 %v64_v39  ;;  %v35_v44 = vld [vmem:[%s1425_s0 + $0x12] sm:$0x1]  ;;  %v45_v45 = vld [vmem:[%s1425_s0 + $0x1c] sm:$0x1] }
  0x2e   :  { %v197_v40 = vsel %vm145_vm0, %v98_v36, 0.0  ;;  %v227_v41 = vsel %vm145_vm0, %v108_v37, 0.0  ;;  %v99_v48 = vunpack.c.l.bf16 %v35_v44  ;;  %v109_v49 = vunpack.c.l.bf16 %v45_v45  ;;  %v55_v50 = vld [vmem:[%s1425_s0 + $0x26] sm:$0x1]  ;;  %v25_v51 = vld [vmem:[%s1425_s0 + $0x8] sm:$0x1] }
  0x2f   :  { %249 = vadd.xlane.f32.xlu0 %v248_v3  ;;  %279 = vadd.xlane.f32.xlu1 %v278_v4  ;;  %v257_v46 = vsel %vm145_vm0, %v118_v42, 0.0  ;;  %v287_v47 = vsel %vm145_vm0, %v128_v43, 0.0  ;;  %v119_v54 = vunpack.c.l.bf16 %v55_v50  ;;  %v89_v55 = vunpack.c.l.bf16 %v25_v51  ;;  %v26_v56 = vld [vmem:[%s1425_s0 + $0x9] sm:$0x1]  ;;  %v36_v57 = vld [vmem:[%s1425_s0 + $0x13] sm:$0x1] }
  0x30   :  { %v200_v52 = vsel %vm145_vm0, %v99_v48, 0.0  ;;  %v230_v53 = vsel %vm145_vm0, %v109_v49, 0.0  ;;  %v90_v60 = vunpack.c.l.bf16 %v26_v56  ;;  %v100_v61 = vunpack.c.l.bf16 %v36_v57  ;;  %v46_v62 = vld [vmem:[%s1425_s0 + $0x1d] sm:$0x1]  ;;  %v56_v63 = vld [vmem:[%s1425_s0 + $0x27] sm:$0x1] }
  0x31   :  { %v260_v58 = vsel %vm145_vm0, %v119_v54, 0.0  ;;  %v170_v59 = vsel %vm145_vm0, %v89_v55, 0.0  ;;  %v110_v2 = vunpack.c.l.bf16 %v46_v62  ;;  %v120_v3 = vunpack.c.l.bf16 %v56_v63  ;;  %v27_v4 = vld [vmem:[%s1425_s0 + $0xa] sm:$0x1]  ;;  %v37_v5 = vld [vmem:[%s1425_s0 + $0x14] sm:$0x1] }
  0x32   :  { %v173_v0 = vsel %vm145_vm0, %v90_v60, 0.0  ;;  %v203_v1 = vsel %vm145_vm0, %v100_v61, 0.0  ;;  %v91_v8 = vunpack.c.l.bf16 %v27_v4  ;;  %v17_v11 = vld [vmem:[%s1425_s0] sm:$0x1]  ;;  %v28_v17 = vld [vmem:[%s1425_s0 + $0xb] sm:$0x1] }
  0x33   :  { %309 = vadd.xlane.f32.xlu0 %v308_v9  ;;  %219 = vadd.xlane.f32.xlu1 %v218_v10  ;;  %v233_v6 = vsel %vm145_vm0, %v110_v2, 0.0  ;;  %v263_v7 = vsel %vm145_vm0, %v120_v3, 0.0  ;;  %v101_v9 = vunpack.c.l.bf16 %v37_v5  ;;  %v47_v10 = vld [vmem:[%s1425_s0 + $0x1e] sm:$0x1]  ;;  %v92_v21 = vunpack.c.l.bf16 %v28_v17  ;;  %v29_v30 = vld [vmem:[%s1425_s0 + $0xc] sm:$0x1] }
  0x34   :  { %v176_v12 = vsel %vm145_vm0, %v91_v8, 0.0  ;;  %v111_v14 = vunpack.c.l.bf16 %v47_v10  ;;  %v20_v36 = vld [vmem:[%s1425_s0 + $0x3] sm:$0x1]  ;;  %v40_v42 = vld [vmem:[%s1425_s0 + $0x17] sm:$0x1]  ;;  %vm738_vm3 = vcmask 1042434  }
  0x35   :  { %v206_v13 = vsel %vm145_vm0, %v101_v9, 0.0  ;;  %v179_v25 = vsel %vm145_vm0, %v92_v21, 0.0  ;;  %v31_v48 = vld [vmem:[%s1425_s0 + $0xe] sm:$0x1]  ;;  %v32_v54 = vld [vmem:[%s1425_s0 + $0xf] sm:$0x1] }
  0x36   :  { %v236_v18 = vsel %vm145_vm0, %v111_v14, 0.0  ;;  %v24_v60 = vld [vmem:[%s1425_s0 + $0x7] sm:$0x1]  ;;  %v404_v8 = vld [vmem:[#allocation2] sm:$0x1]  ;;  %vm740_vm4 = vcmask 1043459  }
  0x37   :  { %222 = vadd.xlane.f32.xlu0 %v221_v15  ;;  %252 = vadd.xlane.f32.xlu1 %v251_v16  ;;  %v81_v15 = vunpack.c.l.bf16 %v17_v11  ;;  %v18_v16 = vld [vmem:[%s1425_s0 + $0x1] sm:$0x1]  ;;  %vm742_vm5 = vcmask 1044484   ;;  %vm744_vm6 = vcmask 1045509   ;;  %vm746_vm7 = vcmask 1046534  }
  0x38   :  { %v82_v20 = vunpack.c.l.bf16 %v18_v16  ;;  %vm748_vm8 = vcmask 1047559   ;;  %vm807_vm9 = vcmask 523264   ;;  %vm881_vm10 = vcmask 8192  }
  0x39   :  { %v146_v19 = vsel %vm145_vm0, %v81_v15, 0.0  ;;  %v410_v15 = vlaneseq }
  0x3a   :  { %v149_v24 = vsel %vm145_vm0, %v82_v20, 0.0 }
  0x3b   :  { %282 = vadd.xlane.f32.xlu0 %v281_v22  ;;  %312 = vadd.xlane.f32.xlu1 %v311_v23  ;;  %v38_v22 = vld [vmem:[%s1425_s0 + $0x15] sm:$0x1]  ;;  %v48_v23 = vld [vmem:[%s1425_s0 + $0x1f] sm:$0x1] }
  0x3c   :  { %v102_v26 = vunpack.c.l.bf16 %v38_v22 }
  0x3e   :  { %v209_v31 = vsel %vm145_vm0, %v102_v26, 0.0 }
  0x3f   :  { %225 = vadd.xlane.f32.xlu0 %v224_v28  ;;  %255 = vadd.xlane.f32.xlu1 %v254_v29  ;;  %v112_v28 = vunpack.c.l.bf16 %v48_v23  ;;  %v19_v29 = vld [vmem:[%s1425_s0 + $0x2] sm:$0x1] }
  0x40   :  { %v83_v33 = vunpack.c.l.bf16 %v19_v29 }
  0x41   :  { %v239_v32 = vsel %vm145_vm0, %v112_v28, 0.0 }
  0x42   :  { %v152_v37 = vsel %vm145_vm0, %v83_v33, 0.0 }
  0x43   :  { %285 = vadd.xlane.f32.xlu0 %v284_v34  ;;  %195 = vadd.xlane.f32.xlu1 %v194_v35  ;;  %v93_v34 = vunpack.c.l.bf16 %v29_v30  ;;  %v39_v35 = vld [vmem:[%s1425_s0 + $0x16] sm:$0x1] }
  0x44   :  { %v103_v39 = vunpack.c.l.bf16 %v39_v35 }
  0x45   :  { %v182_v38 = vsel %vm145_vm0, %v93_v34, 0.0 }
  0x46   :  { %v212_v43 = vsel %vm145_vm0, %v103_v39, 0.0 }
  0x47   :  { %198 = vadd.xlane.f32.xlu0 %v197_v40  ;;  %228 = vadd.xlane.f32.xlu1 %v227_v41  ;;  %v84_v40 = vunpack.c.l.bf16 %v20_v36  ;;  %v30_v41 = vld [vmem:[%s1425_s0 + $0xd] sm:$0x1] }
  0x48   :  { %v94_v45 = vunpack.c.l.bf16 %v30_v41 }
  0x49   :  { %v155_v44 = vsel %vm145_vm0, %v84_v40, 0.0 }
  0x4a   :  { %v185_v49 = vsel %vm145_vm0, %v94_v45, 0.0 }
  0x4b   :  { %258 = vadd.xlane.f32.xlu0 %v257_v46  ;;  %288 = vadd.xlane.f32.xlu1 %v287_v47  ;;  %v104_v46 = vunpack.c.l.bf16 %v40_v42  ;;  %v21_v47 = vld [vmem:[%s1425_s0 + $0x4] sm:$0x1] }
  0x4c   :  { %v85_v51 = vunpack.c.l.bf16 %v21_v47 }
  0x4d   :  { %v215_v50 = vsel %vm145_vm0, %v104_v46, 0.0 }
  0x4e   :  { %v158_v55 = vsel %vm145_vm0, %v85_v51, 0.0 }
  0x4f   :  { %201 = vadd.xlane.f32.xlu0 %v200_v52  ;;  %231 = vadd.xlane.f32.xlu1 %v230_v53  ;;  %v95_v52 = vunpack.c.l.bf16 %v31_v48  ;;  %v22_v53 = vld [vmem:[%s1425_s0 + $0x5] sm:$0x1] }
  0x50   :  { %v86_v57 = vunpack.c.l.bf16 %v22_v53 }
  0x51   :  { %v188_v56 = vsel %vm145_vm0, %v95_v52, 0.0 }
  0x52   :  { %v161_v61 = vsel %vm145_vm0, %v86_v57, 0.0 }
  0x53   :  { %261 = vadd.xlane.f32.xlu0 %v260_v58  ;;  %171 = vadd.xlane.f32.xlu1 %v170_v59  ;;  %v96_v58 = vunpack.c.l.bf16 %v32_v54  ;;  %v23_v59 = vld [vmem:[%s1425_s0 + $0x6] sm:$0x1] }
  0x54   :  { %v87_v63 = vunpack.c.l.bf16 %v23_v59 }
  0x55   :  { %v191_v62 = vsel %vm145_vm0, %v96_v58, 0.0 }
  0x57   :  { %174 = vadd.xlane.f32.xlu0 %v173_v0  ;;  %204 = vadd.xlane.f32.xlu1 %v203_v1  ;;  %v88_v0 = vunpack.c.l.bf16 %v24_v60  ;;  %v164_v1 = vsel %vm145_vm0, %v87_v63, 0.0 }
  0x59   :  { %v167_v2 = vsel %vm145_vm0, %v88_v0, 0.0 }
  0x5b   :  { %234 = vadd.xlane.f32.xlu0 %v233_v6  ;;  %264 = vadd.xlane.f32.xlu1 %v263_v7  ;;  %v955_v7 = vmov 0  }
  0x5c   :  { %930 = vset.pattern.permute.xlu0 %v955_v7 }
  0x5f   :  { %177 = vadd.xlane.f32.xlu0 %v176_v12  ;;  %207 = vadd.xlane.f32.xlu1 %v206_v13 }
  0x63   :  { %237 = vadd.xlane.f32.xlu0 %v236_v18  ;;  %147 = vadd.xlane.f32.xlu1 %v146_v19  ;;  %v1242_v18 = vshrl.u32 %v410_v15, 7  ;;  %v479_v19 = vand.u32 127, %v410_v15 }
  0x65   :  { %v1247_v23 = vsub.s32 %v479_v19, %v1242_v18 }
  0x67   :  { %150 = vadd.xlane.f32.xlu0 %v149_v24  ;;  %180 = vadd.xlane.f32.xlu1 %v179_v25 }
  0x6b   :  { %210 = vadd.xlane.f32.xlu0 %v209_v31  ;;  %240 = vadd.xlane.f32.xlu1 %v239_v32 }
  0x6f   :  { %153 = vadd.xlane.f32.xlu0 %v152_v37  ;;  %183 = vadd.xlane.f32.xlu1 %v182_v38 }
  0x73   :  { %213 = vadd.xlane.f32.xlu0 %v212_v43  ;;  %156 = vadd.xlane.f32.xlu1 %v155_v44 }
  0x77   :  { %186 = vadd.xlane.f32.xlu0 %v185_v49  ;;  %216 = vadd.xlane.f32.xlu1 %v215_v50 }
  0x7b   :  { %159 = vadd.xlane.f32.xlu0 %v158_v55  ;;  %189 = vadd.xlane.f32.xlu1 %v188_v56 }
  0x7f   :  { %162 = vadd.xlane.f32.xlu0 %v161_v61  ;;  %192 = vadd.xlane.f32.xlu1 %v191_v62 }
  0x83   :  { %165 = vadd.xlane.f32.xlu0 %v164_v1  ;;  %168 = vadd.xlane.f32.xlu1 %v167_v2 }
  0x90   :  { %v322_v3 = vpop.xlane.xlu1 %321  ;;  %v316_v4 = vpop.xlane.xlu0 %315 }
  0x91   :  { %v395_v24 = vmul.f32 0.015625, %v316_v4  ;;  %v397_v30 = vmul.f32 0.015625, %v322_v3 }
  0x93   :  { %v707_v32 = vrot.slane %v395_v24, %v1247_v23  ;;  %v715_v39 = vrot.slane %v397_v30, %v1247_v23 }
  0x94   :  { %v319_v5 = vpop.xlane.xlu0 %318  ;;  %v292_v6 = vpop.xlane.xlu1 %291 }
  0x95   :  { %v396_v22 = vmul.f32 0.015625, %v319_v5  ;;  %v387_v59 = vmul.f32 0.015625, %v292_v6 }
  0x97   :  { %v711_v28 = vrot.slane %v396_v22, %v1247_v23  ;;  %v675_v4 = vrot.slane %v387_v59, %v1247_v23 }
  0x98   :  { %v295_v9 = vpop.xlane.xlu0 %294  ;;  %v325_v10 = vpop.xlane.xlu1 %324 }
  0x99   :  { %407 = vperm.xlu0 %930, %v404_v8   ;;  %v398_v29 = vmul.f32 0.015625, %v325_v10  ;;  %v792_v37 = vsel %vm736_vm2, %v711_v28, %v707_v32  ;;  %v388_v55 = vmul.f32 0.015625, %v295_v9 }
  0x9a   :  { %v793_v42 = vsel %vm738_vm3, %v715_v39, %v792_v37 }
  0x9b   :  { %v719_v38 = vrot.slane %v398_v29, %v1247_v23  ;;  %v679_v62 = vrot.slane %v388_v55, %v1247_v23 }
  0x9c   :  { %v298_v11 = vpop.xlane.xlu0 %297  ;;  %v328_v12 = vpop.xlane.xlu1 %327 }
  0x9d   :  { %v399_v31 = vmul.f32 0.015625, %v328_v12  ;;  %v794_v46 = vsel %vm740_vm4, %v719_v38, %v793_v42  ;;  %v389_v56 = vmul.f32 0.015625, %v298_v11  ;;  %v785_v8 = vsel %vm736_vm2, %v679_v62, %v675_v4 }
  0x9f   :  { %v723_v40 = vrot.slane %v399_v31, %v1247_v23  ;;  %v683_v0 = vrot.slane %v389_v56, %v1247_v23 }
  0xa0   :  { %v1238_v13 = vpop.xlane.xlu1 %270  ;;  %v1240_v14 = vpop.xlane.xlu0 %267 }
  0xa1   :  { %v795_v48 = vsel %vm742_vm5, %v723_v40, %v794_v46  ;;  %v786_v9 = vsel %vm738_vm3, %v683_v0, %v785_v8  ;;  %v380_v29 = vmul.f32 0.015625, %v1238_v13  ;;  %v379_v30 = vmul.f32 0.015625, %v1240_v14 }
  0xa3   :  { %v647_v38 = vrot.slane %v380_v29, %v1247_v23  ;;  %v643_v39 = vrot.slane %v379_v30, %v1247_v23 }
  0xa4   :  { %v331_v16 = vpop.xlane.xlu1 %330  ;;  %v301_v17 = vpop.xlane.xlu0 %300 }
  0xa5   :  { %v400_v33 = vmul.f32 0.015625, %v331_v16  ;;  %v390_v60 = vmul.f32 0.015625, %v301_v17 }
  0xa7   :  { %v727_v41 = vrot.slane %v400_v33, %v1247_v23  ;;  %v687_v5 = vrot.slane %v390_v60, %v1247_v23 }
  0xa8   :  { %v304_v20 = vpop.xlane.xlu1 %303  ;;  %v1244_v21 = vpop.xlane.xlu0 %273 }
  0xa9   :  { %v796_v50 = vsel %vm744_vm6, %v727_v41, %v795_v48  ;;  %v391_v61 = vmul.f32 0.015625, %v304_v20  ;;  %v787_v15 = vsel %vm740_vm4, %v687_v5, %v786_v9  ;;  %v381_v31 = vmul.f32 0.015625, %v1244_v21 }
  0xab   :  { %v691_v7 = vrot.slane %v391_v61, %v1247_v23  ;;  %v651_v41 = vrot.slane %v381_v31, %v1247_v23 }
  0xac   :  { %v334_v25 = vpop.xlane.xlu0 %333  ;;  %v1249_v26 = vpop.xlane.xlu1 %243 }
  0xad   :  { %v401_v34 = vmul.f32 0.015625, %v334_v25  ;;  %v788_v17 = vsel %vm742_vm5, %v691_v7, %v787_v15  ;;  %v371_v0 = vmul.f32 0.015625, %v1249_v26 }
  0xaf   :  { %v731_v43 = vrot.slane %v401_v34, %v1247_v23 }
  0xb0   :  { %v1253_v35 = vpop.xlane.xlu0 %246  ;;  %v1255_v36 = vpop.xlane.xlu1 %276 }
  0xb1   :  { %v797_v53 = vsel %vm746_vm7, %v731_v43, %v796_v50  ;;  %v382_v34 = vmul.f32 0.015625, %v1255_v36  ;;  %v372_v60 = vmul.f32 0.015625, %v1253_v35 }
  0xb3   :  { %v655_v43 = vrot.slane %v382_v34, %v1247_v23  ;;  %v615_v5 = vrot.slane %v372_v60, %v1247_v23 }
  0xb4   :  { %v307_v44 = vpop.xlane.xlu0 %306  ;;  %v337_v45 = vpop.xlane.xlu1 %336 }
  0xb5   :  { %v402_v47 = vmul.f32 0.015625, %v337_v45  ;;  %v392_v63 = vmul.f32 0.015625, %v307_v44  ;;  %v778_v44 = vsel %vm736_vm2, %v647_v38, %v643_v39 }
  0xb6   :  { %v779_v45 = vsel %vm738_vm3, %v651_v41, %v778_v44 }
  0xb7   :  { %v735_v49 = vrot.slane %v402_v47, %v1247_v23  ;;  %v695_v6 = vrot.slane %v392_v63, %v1247_v23 }
  0xb8   :  { %v1268_v51 = vpop.xlane.xlu0 %249  ;;  %v280_v52 = vpop.xlane.xlu1 %279 }
  0xb9   :  { %v798_v54 = vsel %vm748_vm8, %v735_v49, %v797_v53  ;;  %v789_v20 = vsel %vm744_vm6, %v695_v6, %v788_v17  ;;  %v383_v37 = vmul.f32 0.015625, %v280_v52  ;;  %v780_v49 = vsel %vm740_vm4, %v655_v43, %v779_v45 }
  0xba   :  { %908 = vmatpush3.msra.mxu0 %v798_v54  ;;  %v373_v61 = vmul.f32 0.015625, %v1268_v51 }
  0xbb   :  { %909 = vmatprep.subr.mxu0 %v953_v27  ;;  %v659_v21 = vrot.slane %v383_v37, %v1247_v23 }
  0xbc   :  { %v310_v57 = vpop.xlane.xlu0 %309  ;;  %v1273_v58 = vpop.xlane.xlu1 %219  ;;  %v619_v8 = vrot.slane %v373_v61, %v1247_v23 }
  0xbd   :  { %v393_v1 = vmul.f32 0.015625, %v310_v57  ;;  %v781_v52 = vsel %vm742_vm5, %v659_v21, %v780_v49 }
  0xbf   :  { %v699_v10 = vrot.slane %v393_v1, %v1247_v23 }
  0xc0   :  { %v1277_v2 = vpop.xlane.xlu0 %222  ;;  %v253_v3 = vpop.xlane.xlu1 %252 }
  0xc1   :  { %v790_v25 = vsel %vm746_vm7, %v699_v10, %v789_v20  ;;  %v374_v1 = vmul.f32 0.015625, %v253_v3  ;;  %v611_v10 = vrot.slane %v371_v0, %v1247_v23  ;;  %v364_v34 = vmul.f32 0.015625, %v1277_v2 }
  0xc3   :  { %v623_v51 = vrot.slane %v374_v1, %v1247_v23  ;;  %v583_v43 = vrot.slane %v364_v34, %v1247_v23 }
  0xc4   :  { %v283_v11 = vpop.xlane.xlu0 %282  ;;  %v313_v12 = vpop.xlane.xlu1 %312 }
  0xc5   :  { %v394_v16 = vmul.f32 0.015625, %v313_v12  ;;  %v384_v40 = vmul.f32 0.015625, %v283_v11  ;;  %v771_v12 = vsel %vm736_vm2, %v615_v5, %v611_v10 }
  0xc6   :  { %v772_v3 = vsel %vm738_vm3, %v619_v8, %v771_v12 }
  0xc7   :  { %v703_v19 = vrot.slane %v394_v16, %v1247_v23  ;;  %v663_v36 = vrot.slane %v384_v40, %v1247_v23  ;;  %v363_v40 = vmul.f32 0.015625, %v1273_v58 }
  0xc8   :  { %v1290_v22 = vpop.xlane.xlu0 %225  ;;  %v256_v24 = vpop.xlane.xlu1 %255 }
  0xc9   :  { %v791_v28 = vsel %vm748_vm8, %v703_v19, %v790_v25  ;;  %v782_v54 = vsel %vm744_vm6, %v663_v36, %v781_v52  ;;  %v375_v4 = vmul.f32 0.015625, %v256_v24  ;;  %v773_v19 = vsel %vm740_vm4, %v623_v51, %v772_v3 }
  0xca   :  { %910 = vmatpush3.msra.mxu0 %v791_v28  ;;  %v365_v37 = vmul.f32 0.015625, %v1290_v22  ;;  %v579_v2 = vrot.slane %v363_v40, %v1247_v23 }
  0xcb   :  { %911 = vmatprep.subr.mxu0 %v953_v27  ;;  %v627_v11 = vrot.slane %v375_v4, %v1247_v23 }
  0xcc   :  { %v286_v32 = vpop.xlane.xlu0 %285  ;;  %v1298_v33 = vpop.xlane.xlu1 %195  ;;  %v587_v44 = vrot.slane %v365_v37, %v1247_v23 }
  0xcd   :  { %v385_v13 = vmul.f32 0.015625, %v286_v32  ;;  %v774_v24 = vsel %vm742_vm5, %v627_v11, %v773_v19  ;;  %v355_v4 = vmul.f32 0.015625, %v1298_v33 }
  0xcf   :  { %v667_v46 = vrot.slane %v385_v13, %v1247_v23  ;;  %v547_v11 = vrot.slane %v355_v4, %v1247_v23 }
  0xd0   :  { %v1304_v42 = vpop.xlane.xlu0 %198  ;;  %v229_v14 = vpop.xlane.xlu1 %228 }
  0xd1   :  { %v783_v57 = vsel %vm746_vm7, %v667_v46, %v782_v54  ;;  %v366_v41 = vmul.f32 0.015625, %v229_v14 }
  0xd4   :  { %v259_v47 = vpop.xlane.xlu0 %258  ;;  %v289_v48 = vpop.xlane.xlu1 %288 }
  0xd5   :  { %v386_v50 = vmul.f32 0.015625, %v289_v48  ;;  %v376_v7 = vmul.f32 0.015625, %v259_v47  ;;  %v591_v47 = vrot.slane %v366_v41, %v1247_v23  ;;  %v764_v48 = vsel %vm736_vm2, %v583_v43, %v579_v2 }
  0xd6   :  { %v765_v14 = vsel %vm738_vm3, %v587_v44, %v764_v48 }
  0xd7   :  { %v671_v53 = vrot.slane %v386_v50, %v1247_v23  ;;  %v631_v26 = vrot.slane %v376_v7, %v1247_v23 }
  0xd8   :  { %v1316_v55 = vpop.xlane.xlu0 %201  ;;  %v232_v56 = vpop.xlane.xlu1 %231 }
  0xd9   :  { %v784_v59 = vsel %vm748_vm8, %v671_v53, %v783_v57  ;;  %v775_v28 = vsel %vm744_vm6, %v631_v26, %v774_v24  ;;  %v367_v13 = vmul.f32 0.015625, %v232_v56  ;;  %v766_v53 = vsel %vm740_vm4, %v591_v47, %v765_v14 }
  0xda   :  { %912 = vmatpush3.msra.mxu0 %v784_v59  ;;  %v356_v57 = vmul.f32 0.015625, %v1304_v42  ;;  %v357_v61 = vmul.f32 0.015625, %v1316_v55 }
  0xdb   :  { %913 = vmatprep.subr.mxu0 %v953_v27  ;;  %v595_v22 = vrot.slane %v367_v13, %v1247_v23 }
  0xdc   :  { %v262_v62 = vpop.xlane.xlu0 %261  ;;  %v1323_v63 = vpop.xlane.xlu1 %171  ;;  %v555_v10 = vrot.slane %v357_v61, %v1247_v23 }
  0xdd   :  { %v377_v6 = vmul.f32 0.015625, %v262_v62  ;;  %v767_v56 = vsel %vm742_vm5, %v595_v22, %v766_v53 }
  0xdf   :  { %v635_v15 = vrot.slane %v377_v6, %v1247_v23  ;;  %v551_v6 = vrot.slane %v356_v57, %v1247_v23 }
  0xe0   :  { %v1328_v9 = vpop.xlane.xlu0 %174  ;;  %v205_v35 = vpop.xlane.xlu1 %204 }
  0xe1   :  { %v776_v31 = vsel %vm746_vm7, %v635_v15, %v775_v28  ;;  %v358_v5 = vmul.f32 0.015625, %v205_v35  ;;  %v757_v35 = vsel %vm736_vm2, %v551_v6, %v547_v11  ;;  %v348_v3 = vmul.f32 0.015625, %v1328_v9 }
  0xe3   :  { %v559_v12 = vrot.slane %v358_v5, %v1247_v23  ;;  %v519_v9 = vrot.slane %v348_v3, %v1247_v23 }
  0xe4   :  { %v235_v16 = vpop.xlane.xlu0 %234  ;;  %v265_v17 = vpop.xlane.xlu1 %264 }
  0xe5   :  { %v378_v20 = vmul.f32 0.015625, %v265_v17  ;;  %v368_v21 = vmul.f32 0.015625, %v235_v16  ;;  %v758_v16 = vsel %vm738_vm3, %v555_v10, %v757_v35  ;;  %v347_v17 = vmul.f32 0.015625, %v1323_v63 }
  0xe6   :  { %v759_v28 = vsel %vm740_vm4, %v559_v12, %v758_v16  ;;  %v403_v16 = vld [vmem:[%s1426_s1] sm:$0x1]  ;;  %s935_s1 = scalar_lea.vmem %s890_s4, 32 }
  0xe7   :  { %v639_v25 = vrot.slane %v378_v20, %v1247_v23  ;;  %v599_v58 = vrot.slane %v368_v21, %v1247_v23  ;;  %v515_v63 = vrot.slane %v347_v17, %v1247_v23  ;;  %p937_p2 = scmp.lt.s32.totalorder %s935_s1, %s931_s5 }
  0xe8   :  { %v178_v29 = vpop.xlane.xlu0 %177  ;;  %v208_v30 = vpop.xlane.xlu1 %207 }
  0xe9   :  { %v777_v32 = vsel %vm748_vm8, %v639_v25, %v776_v31  ;;  %v768_v60 = vsel %vm744_vm6, %v599_v58, %v767_v56  ;;  %v359_v8 = vmul.f32 0.015625, %v208_v30  ;;  %v349_v19 = vmul.f32 0.015625, %v178_v29  ;;  %p938_p3 = por %p937_p2, %p936_p1 }
  0xea   :  { %914 = vmatpush3.msra.mxu0 %v777_v32  ;;  %v750_v58 = vsel %vm736_vm2, %v519_v9, %v515_v63 }
  0xeb   :  { %915 = vmatprep.subr.mxu0 %v953_v27  ;;  %v563_v33 = vrot.slane %v359_v8, %v1247_v23  ;;  %v523_v29 = vrot.slane %v349_v19, %v1247_v23  ;;  %v412_v19 = vsub.s32 0, %v1242_v18  ;;  %p939_p4 = pnand %p938_p3, %p932_p0 }
  0xec   :  { %v238_v38 = vpop.xlane.xlu0 %237  ;;  %v1346_v39 = vpop.xlane.xlu1 %147 }
  0xed   :  { %v369_v36 = vmul.f32 0.015625, %v238_v38  ;;  %v760_v32 = vsel %vm742_vm5, %v563_v33, %v759_v28  ;;  %v339_v47 = vmul.f32 0.015625, %v1346_v39 }
  0xef   :  { %v603_v49 = vrot.slane %v369_v36, %v1247_v23 }
  0xf0   :  { %v151_v45 = vpop.xlane.xlu0 %150  ;;  %v181_v46 = vpop.xlane.xlu1 %180 }
  0xf1   :  { %v769_v1 = vsel %vm746_vm7, %v603_v49, %v768_v60  ;;  %v350_v30 = vmul.f32 0.015625, %v181_v46  ;;  %v340_v41 = vmul.f32 0.015625, %v151_v45  ;;  %v751_v49 = vsel %vm738_vm3, %v523_v29, %v750_v58 }
  0xf2   :  { %v483_v60 = vrot.slane %v339_v47, %v1247_v23 }
  0xf3   :  { %v527_v44 = vrot.slane %v350_v30, %v1247_v23 }
  0xf4   :  { %v211_v50 = vpop.xlane.xlu0 %210  ;;  %v241_v52 = vpop.xlane.xlu1 %240 }
  0xf5   :  { %v370_v54 = vmul.f32 0.015625, %v241_v52  ;;  %v360_v42 = vmul.f32 0.015625, %v211_v50  ;;  %v487_v50 = vrot.slane %v340_v41, %v1247_v23  ;;  %v752_v39 = vsel %vm740_vm4, %v527_v44, %v751_v49 }
  0xf7   :  { %v607_v59 = vrot.slane %v370_v54, %v1247_v23  ;;  %v567_v15 = vrot.slane %v360_v42, %v1247_v23  ;;  %v737_v5 = vsel %vm736_vm2, %v487_v50, %v483_v60 }
  0xf8   :  { %v154_v62 = vpop.xlane.xlu0 %153  ;;  %v184_v0 = vpop.xlane.xlu1 %183 }
  0xf9   :  { %v770_v7 = vsel %vm748_vm8, %v607_v59, %v769_v1  ;;  %v351_v34 = vmul.f32 0.015625, %v184_v0  ;;  %v761_v40 = vsel %vm744_vm6, %v567_v15, %v760_v32  ;;  %v341_v36 = vmul.f32 0.015625, %v154_v62 }
  0xfa   :  { %916 = vmatpush3.msra.mxu0 %v770_v7 }
  0xfb   :  { %917 = vmatprep.subr.mxu0 %v953_v27  ;;  %v531_v22 = vrot.slane %v351_v34, %v1247_v23  ;;  %v491_v56 = vrot.slane %v341_v36, %v1247_v23 }
  0xfc   :  { %v214_v51 = vpop.xlane.xlu0 %213  ;;  %v157_v55 = vpop.xlane.xlu1 %156 }
  0xfd   :  { %v361_v26 = vmul.f32 0.015625, %v214_v51  ;;  %v342_v48 = vmul.f32 0.015625, %v157_v55  ;;  %v753_v61 = vsel %vm742_vm5, %v531_v22, %v752_v39  ;;  %v739_v10 = vsel %vm738_vm3, %v491_v56, %v737_v5 }
  0xff   :  { %v571_v20 = vrot.slane %v361_v26, %v1247_v23  ;;  %v495_v62 = vrot.slane %v342_v48, %v1247_v23 }
 0x100   :  { %v187_v24 = vpop.xlane.xlu0 %186  ;;  %v217_v25 = vpop.xlane.xlu1 %216 }
 0x101   :  { %v362_v31 = vmul.f32 0.015625, %v217_v25  ;;  %v352_v37 = vmul.f32 0.015625, %v187_v24  ;;  %v762_v21 = vsel %vm746_vm7, %v571_v20, %v761_v40  ;;  %v741_v12 = vsel %vm740_vm4, %v495_v62, %v739_v10 }
 0x103   :  { %v575_v38 = vrot.slane %v362_v31, %v1247_v23  ;;  %v535_v45 = vrot.slane %v352_v37, %v1247_v23 }
 0x104   :  { %v160_v13 = vpop.xlane.xlu0 %159  ;;  %v190_v43 = vpop.xlane.xlu1 %189 }
 0x105   :  { %v353_v46 = vmul.f32 0.015625, %v190_v43  ;;  %v763_v2 = vsel %vm748_vm8, %v575_v38, %v762_v21  ;;  %v343_v14 = vmul.f32 0.015625, %v160_v13  ;;  %v754_v4 = vsel %vm744_vm6, %v535_v45, %v753_v61 }
 0x106   :  { %918 = vmatpush3.msra.mxu0 %v763_v2 }
 0x107   :  { %919 = vmatprep.subr.mxu0 %v953_v27  ;;  %v539_v52 = vrot.slane %v353_v46, %v1247_v23  ;;  %v499_v0 = vrot.slane %v343_v14, %v1247_v23 }
 0x108   :  { %v163_v53 = vpop.xlane.xlu0 %162  ;;  %v193_v54 = vpop.xlane.xlu1 %192 }
 0x109   :  { %v344_v57 = vmul.f32 0.015625, %v163_v53  ;;  %v354_v59 = vmul.f32 0.015625, %v193_v54  ;;  %v755_v42 = vsel %vm746_vm7, %v539_v52, %v754_v4  ;;  %v743_v26 = vsel %vm742_vm5, %v499_v0, %v741_v12 }
 0x10b   :  { %v543_v1 = vrot.slane %v354_v59, %v1247_v23  ;;  %v503_v7 = vrot.slane %v344_v57, %v1247_v23 }
 0x10c   :  { %v166_v8 = vpop.xlane.xlu0 %165  ;;  %v169_v6 = vpop.xlane.xlu1 %168 }
 0x10d   :  { %v345_v51 = vmul.f32 0.015625, %v166_v8  ;;  %v346_v55 = vmul.f32 0.015625, %v169_v6  ;;  %v756_v11 = vsel %vm748_vm8, %v543_v1, %v755_v42  ;;  %v745_v3 = vsel %vm744_vm6, %v503_v7, %v743_v26 }
 0x10e   :  { %920 = vmatpush3.msra.mxu0 %v756_v11 }
 0x10f   :  { %v507_v33 = vrot.slane %v345_v51, %v1247_v23  ;;  %v511_v35 = vrot.slane %v346_v55, %v1247_v23  ;;  %921 = vmatprep.subr.mxu0 %v953_v27 }
 0x111   :  { %v747_v15 = vsel %vm746_vm7, %v507_v33, %v745_v3 }
 0x112   :  { %v749_v17 = vsel %vm748_vm8, %v511_v35, %v747_v15 }
 0x113   :  { %922 = vmatpush3.msra.mxu0 %v749_v17 }
 0x114   :  { %924 = vmatmul.mubr.msk.f32.vlgmr.msra.gmra.mxu0 %vm807_vm9, %v403_v16  ;;  %v408_v20 = vpop.permute.xlu0 %407 }
 0x115   :  { %v413_v24 = vrot.slane %v408_v20, %v412_v19 }
 0x1d4   :  { %v877_v27 = vpop.f32.mrf.mxu0 }
 0x1d5   :  { %v878_v23 = vadd.f32 %v877_v27, %v413_v24 }
 0x1d6   :  { %v925_v25 = vpop.f32.mrf.mxu0 }
 0x1d7   :  { %882 = vst.msk [vmem:[#allocation3] sm:$0x1] %vm881_vm10, %v878_v23 }
 0x1d8   :  { %942 = shalt.err (!%p939_p4)
}
 0x1d9   :  { %892 = dma.vmem_to_hbm [thread:$0]  %s890_s4, 16, %s1428_s3, [#allocation4]  }
 0x1da   :  { %951 = dma.done.wait [#allocation4], 16  }
 0x1db   :  { %952 = vsyncadd [#allocation4], 4294967280 }
 0x1dc   :  { %896 = vsyncpa [#allocation4], 1 }

</bundles_post_ra>
